<compile_context>
chip_gen: v7x
topology: tpu7x:2x2x1
jax: 0.10.0
libtpu: 0.0.40
codegen_flags: <defaults>
</compile_context>

<pallas_src>
import functools

import jax
import jax.numpy as jnp
from jax import lax
from jax.experimental import pallas as pl
from jax.experimental.pallas import tpu as pltpu


def mha_kernel(x_ref, wqkv_ref, wo_ref, bo_ref, o_ref, acc_ref, *,
               num_heads, head_size, seq_len, batch_block):
    """One grid step == `batch_block` batch elements, rows stacked along M."""
    T = seq_len
    HD = num_heads * head_size

    # Single wide projection for all heads' Q, K, V: (bb*T, C) @ (C, 3*HD).
    # The Dh**-0.5 scale is pre-folded into the Q columns of wqkv.
    qkv = jnp.dot(x_ref[...], wqkv_ref[...],
                  preferred_element_type=jnp.float32)        # (bb*T, 3*HD) f32
    q_all = qkv[:, :HD].astype(jnp.bfloat16)
    k_all = qkv[:, HD:2 * HD].astype(jnp.bfloat16)
    v_all = qkv[:, 2 * HD:].astype(jnp.bfloat16)

    # Causal (lower-triangular) mask == tril[:T, :T], hoisted out of the loops.
    row = lax.broadcasted_iota(jnp.int32, (T, T), 0)
    col = lax.broadcasted_iota(jnp.int32, (T, T), 1)
    causal = col <= row

    for b in range(batch_block):                 # static: batch elems per step
        r0 = b * T
        for h in range(num_heads):               # static: 6 heads
            c0 = h * head_size
            q = q_all[r0:r0 + T, c0:c0 + head_size]          # (T, Dh) bf16
            k = k_all[r0:r0 + T, c0:c0 + head_size]
            v = v_all[r0:r0 + T, c0:c0 + head_size]

            # q @ k^T without materializing k.T: contract last dim of both.
            s = lax.dot_general(q, k, (((1,), (1,)), ((), ())),
                                preferred_element_type=jnp.float32)  # (T, T)
            s = jnp.where(causal, s, -jnp.inf)

            m = jnp.max(s, axis=-1, keepdims=True)
            p = jnp.exp(s - m)
            denom = jnp.sum(p, axis=-1, keepdims=True)
            # attention-weight dropout: identity (eval mode)

            # Deferred normalization: scale the (T, Dh) result, not (T, T) p.
            ah = jnp.dot(p.astype(jnp.bfloat16), v,
                         preferred_element_type=jnp.float32)         # (T, Dh)
            ah = ah * pl.reciprocal(denom, approx=True)

            # Write into the VMEM scratch "concat" buffer as soon as produced.
            acc_ref[r0:r0 + T, c0:c0 + head_size] = ah.astype(jnp.bfloat16)

    # One full-K output projection over the already-concatenated heads.
    out = jnp.dot(acc_ref[...], wo_ref[...],
                  preferred_element_type=jnp.float32)         # (bb*T, C)
    o_ref[...] = (out + bo_ref[...]).astype(o_ref.dtype)      # bias (1, C)


def prepare_mha_weights(wq, wk, wv, wo, bo, *, head_size):
    """One-time weight prep -- call at model init / cache the result.

    wq/wk/wv: (H, C, Dh) per-head W^T.  wo: (H*Dh, C) (= torch W_proj^T).
    bo: (1, C).  Returns (w_qkv_bf16 (C, 3*H*Dh), wo_bf16 (H*Dh, C), bo_f32).
    The attention scale Dh**-0.5 is folded into the Q columns (exact for
    power-of-two head sizes such as 64).
    """
    H, C, Dh = wq.shape
    scale = head_size ** -0.5

    def to_wide(w):                     # (H, C, Dh) -> (C, H*Dh)
        return jnp.transpose(w, (1, 0, 2)).reshape(C, H * Dh)

    w_qkv = jnp.concatenate(
        [to_wide(wq) * scale, to_wide(wk), to_wide(wv)], axis=-1)
    return (w_qkv.astype(jnp.bfloat16),
            wo.astype(jnp.bfloat16),
            bo.astype(jnp.float32))


def multi_head_attention(x, w_qkv, wo, bo, *, num_heads, head_size,
                         batch_block=None):
    """x: (B, T, C) f32.  w_qkv/wo/bo: outputs of prepare_mha_weights().
    batch_block: batch elements per grid step.  Default B (fold the whole
    batch into matmul M -- best on single-TC v5e/v6e); on v7x pass B//2 (or
    smaller) so both TensorCores get a parallel grid step.
    Returns (B, T, C) f32."""
    B, T, C = x.shape
    HD = num_heads * head_size
    if batch_block is None:
        batch_block = B
    assert B % batch_block == 0, "batch_block must divide B"
    rows = batch_block * T                      # matmul M per grid step

    # bf16 activations at the boundary; (B,T,C)->(B*T,C) is a free reshape.
    x2 = x.astype(jnp.bfloat16).reshape(B * T, C)

    # Advisory cost hint (helps XLA overlap this short call with neighbors).
    flops = (2 * B * T * C * 3 * HD            # fused QKV projection
             + 4 * B * num_heads * T * T * head_size  # scores + p@v
             + 2 * B * T * HD * C)             # output projection
    bytes_accessed = (x2.size * 2 + B * T * C * 4
                      + w_qkv.size * 2 + wo.size * 2 + bo.size * 4)
    cost = pl.CostEstimate(flops=flops,
                           transcendentals=B * num_heads * T * T,
                           bytes_accessed=bytes_accessed)

    kernel = functools.partial(mha_kernel, num_heads=num_heads,
                               head_size=head_size, seq_len=T,
                               batch_block=batch_block)
    out = pl.pallas_call(
        kernel,
        out_shape=jax.ShapeDtypeStruct((B * T, C), jnp.float32),
        grid=(B // batch_block,),
        in_specs=[
            pl.BlockSpec((rows, C), lambda i: (i, 0)),         # x rows
            pl.BlockSpec((C, 3 * HD), lambda i: (0, 0)),       # fused W_qkv
            pl.BlockSpec((HD, C), lambda i: (0, 0)),           # W_proj^T
            pl.BlockSpec((1, C), lambda i: (0, 0)),            # b_proj
        ],
        out_specs=pl.BlockSpec((rows, C), lambda i: (i, 0)),
        scratch_shapes=[pltpu.VMEM((rows, HD), jnp.bfloat16)],  # head concat
        compiler_params=pltpu.CompilerParams(
            dimension_semantics=("parallel",)),
        cost_estimate=cost,
    )(x2, w_qkv, wo, bo)
    return out.reshape(B, T, C)


def mha_reference(x, wq, wk, wv, wo, bo, *, num_heads, head_size):
    """Pure-JAX f32 reference matching the PyTorch forward (dropout=identity)."""
    B, T, C = x.shape
    mask = jnp.tril(jnp.ones((T, T), dtype=bool))
    head_outs = []
    for h in range(num_heads):
        q = x @ wq[h]
        k = x @ wk[h]
        v = x @ wv[h]
        s = (q @ jnp.swapaxes(k, -1, -2)) * (head_size ** -0.5)
        s = jnp.where(mask, s, -jnp.inf)
        p = jax.nn.softmax(s, axis=-1)
        head_outs.append(p @ v)
    cat = jnp.concatenate(head_outs, axis=-1)       # (B, T, H*Dh)
    return cat @ wo + bo[0]


if __name__ == "__main__":
    # Module-consistent (small-seq) shapes: n_embd=384, 6 heads of size 64.
    B, T = 2, 64
    n_embd = 384
    num_heads = 6
    head_size = 64

    key = jax.random.PRNGKey(0)
    kx, kq, kk, kv, kw, kb = jax.random.split(key, 6)

    x = jax.random.normal(kx, (B, T, n_embd), dtype=jnp.float32)
    # Deterministic synthetic parameters (shapes from the module's __init__).
    wq = 0.02 * jax.random.normal(kq, (num_heads, n_embd, head_size), jnp.float32)
    wk = 0.02 * jax.random.normal(kk, (num_heads, n_embd, head_size), jnp.float32)
    wv = 0.02 * jax.random.normal(kv, (num_heads, n_embd, head_size), jnp.float32)
    wo = 0.02 * jax.random.normal(kw, (num_heads * head_size, n_embd), jnp.float32)
    bo = 0.02 * jax.random.normal(kb, (1, n_embd), jnp.float32)

    # One-time weight prep (would be cached on the model in real use).
    w_qkv_p, wo_p, bo_p = prepare_mha_weights(wq, wk, wv, wo, bo,
                                              head_size=head_size)
    w_qkv_p, wo_p, bo_p = jax.block_until_ready((w_qkv_p, wo_p, bo_p))

    out = multi_head_attention(x, w_qkv_p, wo_p, bo_p,
                               num_heads=num_heads, head_size=head_size)
    out = jax.block_until_ready(out)

    ref = mha_reference(x, wq, wk, wv, wo, bo,
                        num_heads=num_heads, head_size=head_size)
    assert out.shape == (B, T, n_embd)
    # bf16 inputs on the MXU path => compare against f32 reference at bf16-level
    # tolerance (f32 accumulation keeps the error well inside this bound).
    assert jnp.allclose(out, ref, atol=2e-2, rtol=2e-2), "mismatch vs reference"

    # Also exercise the v7x-friendly configuration (2 parallel grid steps).
    out2 = multi_head_attention(x, w_qkv_p, wo_p, bo_p,
                                num_heads=num_heads, head_size=head_size,
                                batch_block=1)
    out2 = jax.block_until_ready(out2)
    assert jnp.allclose(out2, ref, atol=2e-2, rtol=2e-2), "mismatch (bb=1)"

    print("KERNEL_OK")
</pallas_src>

<mosaic_0001>
module attributes {stable_mosaic.version = 11 : i64} {
  func.func @mha_kernel(%arg0: i32, %arg1: memref<128x384xbf16, #tpu.memory_space<vmem>>, %arg2: memref<384x1152xbf16, #tpu.memory_space<vmem>>, %arg3: memref<384x384xbf16, #tpu.memory_space<vmem>>, %arg4: memref<1x384xf32, #tpu.memory_space<vmem>>, %arg5: memref<128x384xf32, #tpu.memory_space<vmem>>, %arg6: memref<128x384xbf16, #tpu.memory_space<vmem>>) attributes {dimension_semantics = [#tpu.dimension_semantics<parallel>], iteration_bounds = array<i64: 1>, scalar_prefetch = 0 : i64, scratch_operands = 1 : i64, tpu.core_type = #tpu.core_type<tc>, window_params = [{transform_indices = @transform_0, window_bounds = array<i64: 128, 384>}, {pipeline_mode = #tpu.pipeline_mode<synchronous>, transform_indices = @transform_1, window_bounds = array<i64: 384, 1152>}, {pipeline_mode = #tpu.pipeline_mode<synchronous>, transform_indices = @transform_2, window_bounds = array<i64: 384, 384>}, {pipeline_mode = #tpu.pipeline_mode<synchronous>, transform_indices = @transform_3, window_bounds = array<i64: 1, 384>}, {transform_indices = @transform_4, window_bounds = array<i64: 128, 384>}]} {
    %c0 = arith.constant 0 : index
    %c0_0 = arith.constant 0 : index
    %0 = vector.load %arg1[%c0, %c0_0] : memref<128x384xbf16, #tpu.memory_space<vmem>>, vector<128x384xbf16>
    %c0_1 = arith.constant 0 : index
    %c0_2 = arith.constant 0 : index
    %1 = vector.load %arg2[%c0_1, %c0_2] : memref<384x1152xbf16, #tpu.memory_space<vmem>>, vector<384x1152xbf16>
    %cst = arith.constant dense<0.000000e+00> : vector<128x1152xf32>
    %2 = tpu.matmul %0, %1, %cst {dimension_numbers = #tpu.dot_dimension_numbers<[1], [0], [0], [1], [0, 0, 1, 1], [], []>} : vector<128x384xbf16>, vector<384x1152xbf16>, vector<128x1152xf32> -> vector<128x1152xf32>
    %3 = vector.extract_strided_slice %2 {offsets = [0, 0], sizes = [128, 384], strides = [1, 1]} : vector<128x1152xf32> to vector<128x384xf32>
    %4 = arith.truncf %3 : vector<128x384xf32> to vector<128x384xbf16>
    %5 = vector.extract_strided_slice %2 {offsets = [0, 384], sizes = [128, 384], strides = [1, 1]} : vector<128x1152xf32> to vector<128x384xf32>
    %6 = arith.truncf %5 : vector<128x384xf32> to vector<128x384xbf16>
    %7 = vector.extract_strided_slice %2 {offsets = [0, 768], sizes = [128, 384], strides = [1, 1]} : vector<128x1152xf32> to vector<128x384xf32>
    %8 = arith.truncf %7 : vector<128x384xf32> to vector<128x384xbf16>
    %9 = tpu.iota {dimensions = array<i32: 0>} : vector<64x64xi32>
    %10 = tpu.iota {dimensions = array<i32: 1>} : vector<64x64xi32>
    %11 = arith.cmpi sle, %10, %9 : vector<64x64xi32>
    %12 = vector.extract_strided_slice %4 {offsets = [0, 0], sizes = [64, 64], strides = [1, 1]} : vector<128x384xbf16> to vector<64x64xbf16>
    %13 = vector.extract_strided_slice %6 {offsets = [0, 0], sizes = [64, 64], strides = [1, 1]} : vector<128x384xbf16> to vector<64x64xbf16>
    %14 = vector.extract_strided_slice %8 {offsets = [0, 0], sizes = [64, 64], strides = [1, 1]} : vector<128x384xbf16> to vector<64x64xbf16>
    %cst_3 = arith.constant dense<0.000000e+00> : vector<64x64xf32>
    %15 = tpu.matmul %12, %13, %cst_3 {dimension_numbers = #tpu.dot_dimension_numbers<[1], [1], [0], [0], [0, 0, 1, 0], [], []>} : vector<64x64xbf16>, vector<64x64xbf16>, vector<64x64xf32> -> vector<64x64xf32>
    %cst_4 = arith.constant 0xFF800000 : f32
    %16 = vector.broadcast %cst_4 : f32 to vector<64x64xf32>
    %17 = arith.select %11, %15, %16 : vector<64x64xi1>, vector<64x64xf32>
    %cst_5 = arith.constant dense<0xFF800000> : vector<64xf32>
    %18 = vector.multi_reduction <maximumf>, %17, %cst_5 [1] : vector<64x64xf32> to vector<64xf32>
    %19 = vector.shape_cast %18 : vector<64xf32> to vector<64x1xf32>
    %20 = vector.broadcast %19 : vector<64x1xf32> to vector<64x64xf32>
    %21 = arith.subf %17, %20 : vector<64x64xf32>
    %22 = math.exp %21 : vector<64x64xf32>
    %cst_6 = arith.constant dense<0.000000e+00> : vector<64xf32>
    %23 = vector.multi_reduction <add>, %22, %cst_6 [1] : vector<64x64xf32> to vector<64xf32>
    %24 = vector.shape_cast %23 : vector<64xf32> to vector<64x1xf32>
    %25 = arith.truncf %22 : vector<64x64xf32> to vector<64x64xbf16>
    %cst_7 = arith.constant dense<0.000000e+00> : vector<64x64xf32>
    %26 = tpu.matmul %25, %14, %cst_7 {dimension_numbers = #tpu.dot_dimension_numbers<[1], [0], [0], [1], [0, 0, 1, 1], [], []>} : vector<64x64xbf16>, vector<64x64xbf16>, vector<64x64xf32> -> vector<64x64xf32>
    %27 = tpu.reciprocal %24 {approx = true} : vector<64x1xf32> -> vector<64x1xf32>
    %28 = vector.broadcast %27 : vector<64x1xf32> to vector<64x64xf32>
    %29 = arith.mulf %26, %28 : vector<64x64xf32>
    %30 = arith.truncf %29 : vector<64x64xf32> to vector<64x64xbf16>
    %c0_8 = arith.constant 0 : index
    %c0_9 = arith.constant 0 : index
    %31 = vector.load %arg6[%c0_8, %c0_9] : memref<128x384xbf16, #tpu.memory_space<vmem>>, vector<64x64xbf16>
    tpu.vector_store %arg6[%c0_8, %c0_9], %30 {strides = array<i32>} : memref<128x384xbf16, #tpu.memory_space<vmem>>, vector<64x64xbf16>,
    %32 = vector.extract_strided_slice %4 {offsets = [0, 64], sizes = [64, 64], strides = [1, 1]} : vector<128x384xbf16> to vector<64x64xbf16>
    %33 = vector.extract_strided_slice %6 {offsets = [0, 64], sizes = [64, 64], strides = [1, 1]} : vector<128x384xbf16> to vector<64x64xbf16>
    %34 = vector.extract_strided_slice %8 {offsets = [0, 64], sizes = [64, 64], strides = [1, 1]} : vector<128x384xbf16> to vector<64x64xbf16>
    %cst_10 = arith.constant dense<0.000000e+00> : vector<64x64xf32>
    %35 = tpu.matmul %32, %33, %cst_10 {dimension_numbers = #tpu.dot_dimension_numbers<[1], [1], [0], [0], [0, 0, 1, 0], [], []>} : vector<64x64xbf16>, vector<64x64xbf16>, vector<64x64xf32> -> vector<64x64xf32>
    %cst_11 = arith.constant 0xFF800000 : f32
    %36 = vector.broadcast %cst_11 : f32 to vector<64x64xf32>
    %37 = arith.select %11, %35, %36 : vector<64x64xi1>, vector<64x64xf32>
    %cst_12 = arith.constant dense<0xFF800000> : vector<64xf32>
    %38 = vector.multi_reduction <maximumf>, %37, %cst_12 [1] : vector<64x64xf32> to vector<64xf32>
    %39 = vector.shape_cast %38 : vector<64xf32> to vector<64x1xf32>
    %40 = vector.broadcast %39 : vector<64x1xf32> to vector<64x64xf32>
    %41 = arith.subf %37, %40 : vector<64x64xf32>
    %42 = math.exp %41 : vector<64x64xf32>
    %cst_13 = arith.constant dense<0.000000e+00> : vector<64xf32>
    %43 = vector.multi_reduction <add>, %42, %cst_13 [1] : vector<64x64xf32> to vector<64xf32>
    %44 = vector.shape_cast %43 : vector<64xf32> to vector<64x1xf32>
    %45 = arith.truncf %42 : vector<64x64xf32> to vector<64x64xbf16>
    %cst_14 = arith.constant dense<0.000000e+00> : vector<64x64xf32>
    %46 = tpu.matmul %45, %34, %cst_14 {dimension_numbers = #tpu.dot_dimension_numbers<[1], [0], [0], [1], [0, 0, 1, 1], [], []>} : vector<64x64xbf16>, vector<64x64xbf16>, vector<64x64xf32> -> vector<64x64xf32>
    %47 = tpu.reciprocal %44 {approx = true} : vector<64x1xf32> -> vector<64x1xf32>
    %48 = vector.broadcast %47 : vector<64x1xf32> to vector<64x64xf32>
    %49 = arith.mulf %46, %48 : vector<64x64xf32>
    %50 = arith.truncf %49 : vector<64x64xf32> to vector<64x64xbf16>
    %c0_15 = arith.constant 0 : index
    %c64 = arith.constant 64 : index
    %51 = vector.load %arg6[%c0_15, %c64] : memref<128x384xbf16, #tpu.memory_space<vmem>>, vector<64x64xbf16>
    tpu.vector_store %arg6[%c0_15, %c64], %50 {strides = array<i32>} : memref<128x384xbf16, #tpu.memory_space<vmem>>, vector<64x64xbf16>,
    %52 = vector.extract_strided_slice %4 {offsets = [0, 128], sizes = [64, 64], strides = [1, 1]} : vector<128x384xbf16> to vector<64x64xbf16>
    %53 = vector.extract_strided_slice %6 {offsets = [0, 128], sizes = [64, 64], strides = [1, 1]} : vector<128x384xbf16> to vector<64x64xbf16>
    %54 = vector.extract_strided_slice %8 {offsets = [0, 128], sizes = [64, 64], strides = [1, 1]} : vector<128x384xbf16> to vector<64x64xbf16>
    %cst_16 = arith.constant dense<0.000000e+00> : vector<64x64xf32>
    %55 = tpu.matmul %52, %53, %cst_16 {dimension_numbers = #tpu.dot_dimension_numbers<[1], [1], [0], [0], [0, 0, 1, 0], [], []>} : vector<64x64xbf16>, vector<64x64xbf16>, vector<64x64xf32> -> vector<64x64xf32>
    %cst_17 = arith.constant 0xFF800000 : f32
    %56 = vector.broadcast %cst_17 : f32 to vector<64x64xf32>
    %57 = arith.select %11, %55, %56 : vector<64x64xi1>, vector<64x64xf32>
    %cst_18 = arith.constant dense<0xFF800000> : vector<64xf32>
    %58 = vector.multi_reduction <maximumf>, %57, %cst_18 [1] : vector<64x64xf32> to vector<64xf32>
    %59 = vector.shape_cast %58 : vector<64xf32> to vector<64x1xf32>
    %60 = vector.broadcast %59 : vector<64x1xf32> to vector<64x64xf32>
    %61 = arith.subf %57, %60 : vector<64x64xf32>
    %62 = math.exp %61 : vector<64x64xf32>
    %cst_19 = arith.constant dense<0.000000e+00> : vector<64xf32>
    %63 = vector.multi_reduction <add>, %62, %cst_19 [1] : vector<64x64xf32> to vector<64xf32>
    %64 = vector.shape_cast %63 : vector<64xf32> to vector<64x1xf32>
    %65 = arith.truncf %62 : vector<64x64xf32> to vector<64x64xbf16>
    %cst_20 = arith.constant dense<0.000000e+00> : vector<64x64xf32>
    %66 = tpu.matmul %65, %54, %cst_20 {dimension_numbers = #tpu.dot_dimension_numbers<[1], [0], [0], [1], [0, 0, 1, 1], [], []>} : vector<64x64xbf16>, vector<64x64xbf16>, vector<64x64xf32> -> vector<64x64xf32>
    %67 = tpu.reciprocal %64 {approx = true} : vector<64x1xf32> -> vector<64x1xf32>
    %68 = vector.broadcast %67 : vector<64x1xf32> to vector<64x64xf32>
    %69 = arith.mulf %66, %68 : vector<64x64xf32>
    %70 = arith.truncf %69 : vector<64x64xf32> to vector<64x64xbf16>
    %c0_21 = arith.constant 0 : index
    %c128 = arith.constant 128 : index
    %71 = vector.load %arg6[%c0_21, %c128] : memref<128x384xbf16, #tpu.memory_space<vmem>>, vector<64x64xbf16>
    tpu.vector_store %arg6[%c0_21, %c128], %70 {strides = array<i32>} : memref<128x384xbf16, #tpu.memory_space<vmem>>, vector<64x64xbf16>,
    %72 = vector.extract_strided_slice %4 {offsets = [0, 192], sizes = [64, 64], strides = [1, 1]} : vector<128x384xbf16> to vector<64x64xbf16>
    %73 = vector.extract_strided_slice %6 {offsets = [0, 192], sizes = [64, 64], strides = [1, 1]} : vector<128x384xbf16> to vector<64x64xbf16>
    %74 = vector.extract_strided_slice %8 {offsets = [0, 192], sizes = [64, 64], strides = [1, 1]} : vector<128x384xbf16> to vector<64x64xbf16>
    %cst_22 = arith.constant dense<0.000000e+00> : vector<64x64xf32>
    %75 = tpu.matmul %72, %73, %cst_22 {dimension_numbers = #tpu.dot_dimension_numbers<[1], [1], [0], [0], [0, 0, 1, 0], [], []>} : vector<64x64xbf16>, vector<64x64xbf16>, vector<64x64xf32> -> vector<64x64xf32>
    %cst_23 = arith.constant 0xFF800000 : f32
    %76 = vector.broadcast %cst_23 : f32 to vector<64x64xf32>
    %77 = arith.select %11, %75, %76 : vector<64x64xi1>, vector<64x64xf32>
    %cst_24 = arith.constant dense<0xFF800000> : vector<64xf32>
    %78 = vector.multi_reduction <maximumf>, %77, %cst_24 [1] : vector<64x64xf32> to vector<64xf32>
    %79 = vector.shape_cast %78 : vector<64xf32> to vector<64x1xf32>
    %80 = vector.broadcast %79 : vector<64x1xf32> to vector<64x64xf32>
    %81 = arith.subf %77, %80 : vector<64x64xf32>
    %82 = math.exp %81 : vector<64x64xf32>
    %cst_25 = arith.constant dense<0.000000e+00> : vector<64xf32>
    %83 = vector.multi_reduction <add>, %82, %cst_25 [1] : vector<64x64xf32> to vector<64xf32>
    %84 = vector.shape_cast %83 : vector<64xf32> to vector<64x1xf32>
    %85 = arith.truncf %82 : vector<64x64xf32> to vector<64x64xbf16>
    %cst_26 = arith.constant dense<0.000000e+00> : vector<64x64xf32>
    %86 = tpu.matmul %85, %74, %cst_26 {dimension_numbers = #tpu.dot_dimension_numbers<[1], [0], [0], [1], [0, 0, 1, 1], [], []>} : vector<64x64xbf16>, vector<64x64xbf16>, vector<64x64xf32> -> vector<64x64xf32>
    %87 = tpu.reciprocal %84 {approx = true} : vector<64x1xf32> -> vector<64x1xf32>
    %88 = vector.broadcast %87 : vector<64x1xf32> to vector<64x64xf32>
    %89 = arith.mulf %86, %88 : vector<64x64xf32>
    %90 = arith.truncf %89 : vector<64x64xf32> to vector<64x64xbf16>
    %c0_27 = arith.constant 0 : index
    %c192 = arith.constant 192 : index
    %91 = vector.load %arg6[%c0_27, %c192] : memref<128x384xbf16, #tpu.memory_space<vmem>>, vector<64x64xbf16>
    tpu.vector_store %arg6[%c0_27, %c192], %90 {strides = array<i32>} : memref<128x384xbf16, #tpu.memory_space<vmem>>, vector<64x64xbf16>,
    %92 = vector.extract_strided_slice %4 {offsets = [0, 256], sizes = [64, 64], strides = [1, 1]} : vector<128x384xbf16> to vector<64x64xbf16>
    %93 = vector.extract_strided_slice %6 {offsets = [0, 256], sizes = [64, 64], strides = [1, 1]} : vector<128x384xbf16> to vector<64x64xbf16>
    %94 = vector.extract_strided_slice %8 {offsets = [0, 256], sizes = [64, 64], strides = [1, 1]} : vector<128x384xbf16> to vector<64x64xbf16>
    %cst_28 = arith.constant dense<0.000000e+00> : vector<64x64xf32>
    %95 = tpu.matmul %92, %93, %cst_28 {dimension_numbers = #tpu.dot_dimension_numbers<[1], [1], [0], [0], [0, 0, 1, 0], [], []>} : vector<64x64xbf16>, vector<64x64xbf16>, vector<64x64xf32> -> vector<64x64xf32>
    %cst_29 = arith.constant 0xFF800000 : f32
    %96 = vector.broadcast %cst_29 : f32 to vector<64x64xf32>
    %97 = arith.select %11, %95, %96 : vector<64x64xi1>, vector<64x64xf32>
    %cst_30 = arith.constant dense<0xFF800000> : vector<64xf32>
    %98 = vector.multi_reduction <maximumf>, %97, %cst_30 [1] : vector<64x64xf32> to vector<64xf32>
    %99 = vector.shape_cast %98 : vector<64xf32> to vector<64x1xf32>
    %100 = vector.broadcast %99 : vector<64x1xf32> to vector<64x64xf32>
    %101 = arith.subf %97, %100 : vector<64x64xf32>
    %102 = math.exp %101 : vector<64x64xf32>
    %cst_31 = arith.constant dense<0.000000e+00> : vector<64xf32>
    %103 = vector.multi_reduction <add>, %102, %cst_31 [1] : vector<64x64xf32> to vector<64xf32>
    %104 = vector.shape_cast %103 : vector<64xf32> to vector<64x1xf32>
    %105 = arith.truncf %102 : vector<64x64xf32> to vector<64x64xbf16>
    %cst_32 = arith.constant dense<0.000000e+00> : vector<64x64xf32>
    %106 = tpu.matmul %105, %94, %cst_32 {dimension_numbers = #tpu.dot_dimension_numbers<[1], [0], [0], [1], [0, 0, 1, 1], [], []>} : vector<64x64xbf16>, vector<64x64xbf16>, vector<64x64xf32> -> vector<64x64xf32>
    %107 = tpu.reciprocal %104 {approx = true} : vector<64x1xf32> -> vector<64x1xf32>
    %108 = vector.broadcast %107 : vector<64x1xf32> to vector<64x64xf32>
    %109 = arith.mulf %106, %108 : vector<64x64xf32>
    %110 = arith.truncf %109 : vector<64x64xf32> to vector<64x64xbf16>
    %c0_33 = arith.constant 0 : index
    %c256 = arith.constant 256 : index
    %111 = vector.load %arg6[%c0_33, %c256] : memref<128x384xbf16, #tpu.memory_space<vmem>>, vector<64x64xbf16>
    tpu.vector_store %arg6[%c0_33, %c256], %110 {strides = array<i32>} : memref<128x384xbf16, #tpu.memory_space<vmem>>, vector<64x64xbf16>,
    %112 = vector.extract_strided_slice %4 {offsets = [0, 320], sizes = [64, 64], strides = [1, 1]} : vector<128x384xbf16> to vector<64x64xbf16>
    %113 = vector.extract_strided_slice %6 {offsets = [0, 320], sizes = [64, 64], strides = [1, 1]} : vector<128x384xbf16> to vector<64x64xbf16>
    %114 = vector.extract_strided_slice %8 {offsets = [0, 320], sizes = [64, 64], strides = [1, 1]} : vector<128x384xbf16> to vector<64x64xbf16>
    %cst_34 = arith.constant dense<0.000000e+00> : vector<64x64xf32>
    %115 = tpu.matmul %112, %113, %cst_34 {dimension_numbers = #tpu.dot_dimension_numbers<[1], [1], [0], [0], [0, 0, 1, 0], [], []>} : vector<64x64xbf16>, vector<64x64xbf16>, vector<64x64xf32> -> vector<64x64xf32>
    %cst_35 = arith.constant 0xFF800000 : f32
    %116 = vector.broadcast %cst_35 : f32 to vector<64x64xf32>
    %117 = arith.select %11, %115, %116 : vector<64x64xi1>, vector<64x64xf32>
    %cst_36 = arith.constant dense<0xFF800000> : vector<64xf32>
    %118 = vector.multi_reduction <maximumf>, %117, %cst_36 [1] : vector<64x64xf32> to vector<64xf32>
    %119 = vector.shape_cast %118 : vector<64xf32> to vector<64x1xf32>
    %120 = vector.broadcast %119 : vector<64x1xf32> to vector<64x64xf32>
    %121 = arith.subf %117, %120 : vector<64x64xf32>
    %122 = math.exp %121 : vector<64x64xf32>
    %cst_37 = arith.constant dense<0.000000e+00> : vector<64xf32>
    %123 = vector.multi_reduction <add>, %122, %cst_37 [1] : vector<64x64xf32> to vector<64xf32>
    %124 = vector.shape_cast %123 : vector<64xf32> to vector<64x1xf32>
    %125 = arith.truncf %122 : vector<64x64xf32> to vector<64x64xbf16>
    %cst_38 = arith.constant dense<0.000000e+00> : vector<64x64xf32>
    %126 = tpu.matmul %125, %114, %cst_38 {dimension_numbers = #tpu.dot_dimension_numbers<[1], [0], [0], [1], [0, 0, 1, 1], [], []>} : vector<64x64xbf16>, vector<64x64xbf16>, vector<64x64xf32> -> vector<64x64xf32>
    %127 = tpu.reciprocal %124 {approx = true} : vector<64x1xf32> -> vector<64x1xf32>
    %128 = vector.broadcast %127 : vector<64x1xf32> to vector<64x64xf32>
    %129 = arith.mulf %126, %128 : vector<64x64xf32>
    %130 = arith.truncf %129 : vector<64x64xf32> to vector<64x64xbf16>
    %c0_39 = arith.constant 0 : index
    %c320 = arith.constant 320 : index
    %131 = vector.load %arg6[%c0_39, %c320] : memref<128x384xbf16, #tpu.memory_space<vmem>>, vector<64x64xbf16>
    tpu.vector_store %arg6[%c0_39, %c320], %130 {strides = array<i32>} : memref<128x384xbf16, #tpu.memory_space<vmem>>, vector<64x64xbf16>,
    %132 = vector.extract_strided_slice %4 {offsets = [64, 0], sizes = [64, 64], strides = [1, 1]} : vector<128x384xbf16> to vector<64x64xbf16>
    %133 = vector.extract_strided_slice %6 {offsets = [64, 0], sizes = [64, 64], strides = [1, 1]} : vector<128x384xbf16> to vector<64x64xbf16>
    %134 = vector.extract_strided_slice %8 {offsets = [64, 0], sizes = [64, 64], strides = [1, 1]} : vector<128x384xbf16> to vector<64x64xbf16>
    %cst_40 = arith.constant dense<0.000000e+00> : vector<64x64xf32>
    %135 = tpu.matmul %132, %133, %cst_40 {dimension_numbers = #tpu.dot_dimension_numbers<[1], [1], [0], [0], [0, 0, 1, 0], [], []>} : vector<64x64xbf16>, vector<64x64xbf16>, vector<64x64xf32> -> vector<64x64xf32>
    %cst_41 = arith.constant 0xFF800000 : f32
    %136 = vector.broadcast %cst_41 : f32 to vector<64x64xf32>
    %137 = arith.select %11, %135, %136 : vector<64x64xi1>, vector<64x64xf32>
    %cst_42 = arith.constant dense<0xFF800000> : vector<64xf32>
    %138 = vector.multi_reduction <maximumf>, %137, %cst_42 [1] : vector<64x64xf32> to vector<64xf32>
    %139 = vector.shape_cast %138 : vector<64xf32> to vector<64x1xf32>
    %140 = vector.broadcast %139 : vector<64x1xf32> to vector<64x64xf32>
    %141 = arith.subf %137, %140 : vector<64x64xf32>
    %142 = math.exp %141 : vector<64x64xf32>
    %cst_43 = arith.constant dense<0.000000e+00> : vector<64xf32>
    %143 = vector.multi_reduction <add>, %142, %cst_43 [1] : vector<64x64xf32> to vector<64xf32>
    %144 = vector.shape_cast %143 : vector<64xf32> to vector<64x1xf32>
    %145 = arith.truncf %142 : vector<64x64xf32> to vector<64x64xbf16>
    %cst_44 = arith.constant dense<0.000000e+00> : vector<64x64xf32>
    %146 = tpu.matmul %145, %134, %cst_44 {dimension_numbers = #tpu.dot_dimension_numbers<[1], [0], [0], [1], [0, 0, 1, 1], [], []>} : vector<64x64xbf16>, vector<64x64xbf16>, vector<64x64xf32> -> vector<64x64xf32>
    %147 = tpu.reciprocal %144 {approx = true} : vector<64x1xf32> -> vector<64x1xf32>
    %148 = vector.broadcast %147 : vector<64x1xf32> to vector<64x64xf32>
    %149 = arith.mulf %146, %148 : vector<64x64xf32>
    %150 = arith.truncf %149 : vector<64x64xf32> to vector<64x64xbf16>
    %c64_45 = arith.constant 64 : index
    %c0_46 = arith.constant 0 : index
    %151 = vector.load %arg6[%c64_45, %c0_46] : memref<128x384xbf16, #tpu.memory_space<vmem>>, vector<64x64xbf16>
    tpu.vector_store %arg6[%c64_45, %c0_46], %150 {strides = array<i32>} : memref<128x384xbf16, #tpu.memory_space<vmem>>, vector<64x64xbf16>,
    %152 = vector.extract_strided_slice %4 {offsets = [64, 64], sizes = [64, 64], strides = [1, 1]} : vector<128x384xbf16> to vector<64x64xbf16>
    %153 = vector.extract_strided_slice %6 {offsets = [64, 64], sizes = [64, 64], strides = [1, 1]} : vector<128x384xbf16> to vector<64x64xbf16>
    %154 = vector.extract_strided_slice %8 {offsets = [64, 64], sizes = [64, 64], strides = [1, 1]} : vector<128x384xbf16> to vector<64x64xbf16>
    %cst_47 = arith.constant dense<0.000000e+00> : vector<64x64xf32>
    %155 = tpu.matmul %152, %153, %cst_47 {dimension_numbers = #tpu.dot_dimension_numbers<[1], [1], [0], [0], [0, 0, 1, 0], [], []>} : vector<64x64xbf16>, vector<64x64xbf16>, vector<64x64xf32> -> vector<64x64xf32>
    %cst_48 = arith.constant 0xFF800000 : f32
    %156 = vector.broadcast %cst_48 : f32 to vector<64x64xf32>
    %157 = arith.select %11, %155, %156 : vector<64x64xi1>, vector<64x64xf32>
    %cst_49 = arith.constant dense<0xFF800000> : vector<64xf32>
    %158 = vector.multi_reduction <maximumf>, %157, %cst_49 [1] : vector<64x64xf32> to vector<64xf32>
    %159 = vector.shape_cast %158 : vector<64xf32> to vector<64x1xf32>
    %160 = vector.broadcast %159 : vector<64x1xf32> to vector<64x64xf32>
    %161 = arith.subf %157, %160 : vector<64x64xf32>
    %162 = math.exp %161 : vector<64x64xf32>
    %cst_50 = arith.constant dense<0.000000e+00> : vector<64xf32>
    %163 = vector.multi_reduction <add>, %162, %cst_50 [1] : vector<64x64xf32> to vector<64xf32>
    %164 = vector.shape_cast %163 : vector<64xf32> to vector<64x1xf32>
    %165 = arith.truncf %162 : vector<64x64xf32> to vector<64x64xbf16>
    %cst_51 = arith.constant dense<0.000000e+00> : vector<64x64xf32>
    %166 = tpu.matmul %165, %154, %cst_51 {dimension_numbers = #tpu.dot_dimension_numbers<[1], [0], [0], [1], [0, 0, 1, 1], [], []>} : vector<64x64xbf16>, vector<64x64xbf16>, vector<64x64xf32> -> vector<64x64xf32>
    %167 = tpu.reciprocal %164 {approx = true} : vector<64x1xf32> -> vector<64x1xf32>
    %168 = vector.broadcast %167 : vector<64x1xf32> to vector<64x64xf32>
    %169 = arith.mulf %166, %168 : vector<64x64xf32>
    %170 = arith.truncf %169 : vector<64x64xf32> to vector<64x64xbf16>
    %c64_52 = arith.constant 64 : index
    %c64_53 = arith.constant 64 : index
    %171 = vector.load %arg6[%c64_52, %c64_53] : memref<128x384xbf16, #tpu.memory_space<vmem>>, vector<64x64xbf16>
    tpu.vector_store %arg6[%c64_52, %c64_53], %170 {strides = array<i32>} : memref<128x384xbf16, #tpu.memory_space<vmem>>, vector<64x64xbf16>,
    %172 = vector.extract_strided_slice %4 {offsets = [64, 128], sizes = [64, 64], strides = [1, 1]} : vector<128x384xbf16> to vector<64x64xbf16>
    %173 = vector.extract_strided_slice %6 {offsets = [64, 128], sizes = [64, 64], strides = [1, 1]} : vector<128x384xbf16> to vector<64x64xbf16>
    %174 = vector.extract_strided_slice %8 {offsets = [64, 128], sizes = [64, 64], strides = [1, 1]} : vector<128x384xbf16> to vector<64x64xbf16>
    %cst_54 = arith.constant dense<0.000000e+00> : vector<64x64xf32>
    %175 = tpu.matmul %172, %173, %cst_54 {dimension_numbers = #tpu.dot_dimension_numbers<[1], [1], [0], [0], [0, 0, 1, 0], [], []>} : vector<64x64xbf16>, vector<64x64xbf16>, vector<64x64xf32> -> vector<64x64xf32>
    %cst_55 = arith.constant 0xFF800000 : f32
    %176 = vector.broadcast %cst_55 : f32 to vector<64x64xf32>
    %177 = arith.select %11, %175, %176 : vector<64x64xi1>, vector<64x64xf32>
    %cst_56 = arith.constant dense<0xFF800000> : vector<64xf32>
    %178 = vector.multi_reduction <maximumf>, %177, %cst_56 [1] : vector<64x64xf32> to vector<64xf32>
    %179 = vector.shape_cast %178 : vector<64xf32> to vector<64x1xf32>
    %180 = vector.broadcast %179 : vector<64x1xf32> to vector<64x64xf32>
    %181 = arith.subf %177, %180 : vector<64x64xf32>
    %182 = math.exp %181 : vector<64x64xf32>
    %cst_57 = arith.constant dense<0.000000e+00> : vector<64xf32>
    %183 = vector.multi_reduction <add>, %182, %cst_57 [1] : vector<64x64xf32> to vector<64xf32>
    %184 = vector.shape_cast %183 : vector<64xf32> to vector<64x1xf32>
    %185 = arith.truncf %182 : vector<64x64xf32> to vector<64x64xbf16>
    %cst_58 = arith.constant dense<0.000000e+00> : vector<64x64xf32>
    %186 = tpu.matmul %185, %174, %cst_58 {dimension_numbers = #tpu.dot_dimension_numbers<[1], [0], [0], [1], [0, 0, 1, 1], [], []>} : vector<64x64xbf16>, vector<64x64xbf16>, vector<64x64xf32> -> vector<64x64xf32>
    %187 = tpu.reciprocal %184 {approx = true} : vector<64x1xf32> -> vector<64x1xf32>
    %188 = vector.broadcast %187 : vector<64x1xf32> to vector<64x64xf32>
    %189 = arith.mulf %186, %188 : vector<64x64xf32>
    %190 = arith.truncf %189 : vector<64x64xf32> to vector<64x64xbf16>
    %c64_59 = arith.constant 64 : index
    %c128_60 = arith.constant 128 : index
    %191 = vector.load %arg6[%c64_59, %c128_60] : memref<128x384xbf16, #tpu.memory_space<vmem>>, vector<64x64xbf16>
    tpu.vector_store %arg6[%c64_59, %c128_60], %190 {strides = array<i32>} : memref<128x384xbf16, #tpu.memory_space<vmem>>, vector<64x64xbf16>,
    %192 = vector.extract_strided_slice %4 {offsets = [64, 192], sizes = [64, 64], strides = [1, 1]} : vector<128x384xbf16> to vector<64x64xbf16>
    %193 = vector.extract_strided_slice %6 {offsets = [64, 192], sizes = [64, 64], strides = [1, 1]} : vector<128x384xbf16> to vector<64x64xbf16>
    %194 = vector.extract_strided_slice %8 {offsets = [64, 192], sizes = [64, 64], strides = [1, 1]} : vector<128x384xbf16> to vector<64x64xbf16>
    %cst_61 = arith.constant dense<0.000000e+00> : vector<64x64xf32>
    %195 = tpu.matmul %192, %193, %cst_61 {dimension_numbers = #tpu.dot_dimension_numbers<[1], [1], [0], [0], [0, 0, 1, 0], [], []>} : vector<64x64xbf16>, vector<64x64xbf16>, vector<64x64xf32> -> vector<64x64xf32>
    %cst_62 = arith.constant 0xFF800000 : f32
    %196 = vector.broadcast %cst_62 : f32 to vector<64x64xf32>
    %197 = arith.select %11, %195, %196 : vector<64x64xi1>, vector<64x64xf32>
    %cst_63 = arith.constant dense<0xFF800000> : vector<64xf32>
    %198 = vector.multi_reduction <maximumf>, %197, %cst_63 [1] : vector<64x64xf32> to vector<64xf32>
    %199 = vector.shape_cast %198 : vector<64xf32> to vector<64x1xf32>
    %200 = vector.broadcast %199 : vector<64x1xf32> to vector<64x64xf32>
    %201 = arith.subf %197, %200 : vector<64x64xf32>
    %202 = math.exp %201 : vector<64x64xf32>
    %cst_64 = arith.constant dense<0.000000e+00> : vector<64xf32>
    %203 = vector.multi_reduction <add>, %202, %cst_64 [1] : vector<64x64xf32> to vector<64xf32>
    %204 = vector.shape_cast %203 : vector<64xf32> to vector<64x1xf32>
    %205 = arith.truncf %202 : vector<64x64xf32> to vector<64x64xbf16>
    %cst_65 = arith.constant dense<0.000000e+00> : vector<64x64xf32>
    %206 = tpu.matmul %205, %194, %cst_65 {dimension_numbers = #tpu.dot_dimension_numbers<[1], [0], [0], [1], [0, 0, 1, 1], [], []>} : vector<64x64xbf16>, vector<64x64xbf16>, vector<64x64xf32> -> vector<64x64xf32>
    %207 = tpu.reciprocal %204 {approx = true} : vector<64x1xf32> -> vector<64x1xf32>
    %208 = vector.broadcast %207 : vector<64x1xf32> to vector<64x64xf32>
    %209 = arith.mulf %206, %208 : vector<64x64xf32>
    %210 = arith.truncf %209 : vector<64x64xf32> to vector<64x64xbf16>
    %c64_66 = arith.constant 64 : index
    %c192_67 = arith.constant 192 : index
    %211 = vector.load %arg6[%c64_66, %c192_67] : memref<128x384xbf16, #tpu.memory_space<vmem>>, vector<64x64xbf16>
    tpu.vector_store %arg6[%c64_66, %c192_67], %210 {strides = array<i32>} : memref<128x384xbf16, #tpu.memory_space<vmem>>, vector<64x64xbf16>,
    %212 = vector.extract_strided_slice %4 {offsets = [64, 256], sizes = [64, 64], strides = [1, 1]} : vector<128x384xbf16> to vector<64x64xbf16>
    %213 = vector.extract_strided_slice %6 {offsets = [64, 256], sizes = [64, 64], strides = [1, 1]} : vector<128x384xbf16> to vector<64x64xbf16>
    %214 = vector.extract_strided_slice %8 {offsets = [64, 256], sizes = [64, 64], strides = [1, 1]} : vector<128x384xbf16> to vector<64x64xbf16>
    %cst_68 = arith.constant dense<0.000000e+00> : vector<64x64xf32>
    %215 = tpu.matmul %212, %213, %cst_68 {dimension_numbers = #tpu.dot_dimension_numbers<[1], [1], [0], [0], [0, 0, 1, 0], [], []>} : vector<64x64xbf16>, vector<64x64xbf16>, vector<64x64xf32> -> vector<64x64xf32>
    %cst_69 = arith.constant 0xFF800000 : f32
    %216 = vector.broadcast %cst_69 : f32 to vector<64x64xf32>
    %217 = arith.select %11, %215, %216 : vector<64x64xi1>, vector<64x64xf32>
    %cst_70 = arith.constant dense<0xFF800000> : vector<64xf32>
    %218 = vector.multi_reduction <maximumf>, %217, %cst_70 [1] : vector<64x64xf32> to vector<64xf32>
    %219 = vector.shape_cast %218 : vector<64xf32> to vector<64x1xf32>
    %220 = vector.broadcast %219 : vector<64x1xf32> to vector<64x64xf32>
    %221 = arith.subf %217, %220 : vector<64x64xf32>
    %222 = math.exp %221 : vector<64x64xf32>
    %cst_71 = arith.constant dense<0.000000e+00> : vector<64xf32>
    %223 = vector.multi_reduction <add>, %222, %cst_71 [1] : vector<64x64xf32> to vector<64xf32>
    %224 = vector.shape_cast %223 : vector<64xf32> to vector<64x1xf32>
    %225 = arith.truncf %222 : vector<64x64xf32> to vector<64x64xbf16>
    %cst_72 = arith.constant dense<0.000000e+00> : vector<64x64xf32>
    %226 = tpu.matmul %225, %214, %cst_72 {dimension_numbers = #tpu.dot_dimension_numbers<[1], [0], [0], [1], [0, 0, 1, 1], [], []>} : vector<64x64xbf16>, vector<64x64xbf16>, vector<64x64xf32> -> vector<64x64xf32>
    %227 = tpu.reciprocal %224 {approx = true} : vector<64x1xf32> -> vector<64x1xf32>
    %228 = vector.broadcast %227 : vector<64x1xf32> to vector<64x64xf32>
    %229 = arith.mulf %226, %228 : vector<64x64xf32>
    %230 = arith.truncf %229 : vector<64x64xf32> to vector<64x64xbf16>
    %c64_73 = arith.constant 64 : index
    %c256_74 = arith.constant 256 : index
    %231 = vector.load %arg6[%c64_73, %c256_74] : memref<128x384xbf16, #tpu.memory_space<vmem>>, vector<64x64xbf16>
    tpu.vector_store %arg6[%c64_73, %c256_74], %230 {strides = array<i32>} : memref<128x384xbf16, #tpu.memory_space<vmem>>, vector<64x64xbf16>,
    %232 = vector.extract_strided_slice %4 {offsets = [64, 320], sizes = [64, 64], strides = [1, 1]} : vector<128x384xbf16> to vector<64x64xbf16>
    %233 = vector.extract_strided_slice %6 {offsets = [64, 320], sizes = [64, 64], strides = [1, 1]} : vector<128x384xbf16> to vector<64x64xbf16>
    %234 = vector.extract_strided_slice %8 {offsets = [64, 320], sizes = [64, 64], strides = [1, 1]} : vector<128x384xbf16> to vector<64x64xbf16>
    %cst_75 = arith.constant dense<0.000000e+00> : vector<64x64xf32>
    %235 = tpu.matmul %232, %233, %cst_75 {dimension_numbers = #tpu.dot_dimension_numbers<[1], [1], [0], [0], [0, 0, 1, 0], [], []>} : vector<64x64xbf16>, vector<64x64xbf16>, vector<64x64xf32> -> vector<64x64xf32>
    %cst_76 = arith.constant 0xFF800000 : f32
    %236 = vector.broadcast %cst_76 : f32 to vector<64x64xf32>
    %237 = arith.select %11, %235, %236 : vector<64x64xi1>, vector<64x64xf32>
    %cst_77 = arith.constant dense<0xFF800000> : vector<64xf32>
    %238 = vector.multi_reduction <maximumf>, %237, %cst_77 [1] : vector<64x64xf32> to vector<64xf32>
    %239 = vector.shape_cast %238 : vector<64xf32> to vector<64x1xf32>
    %240 = vector.broadcast %239 : vector<64x1xf32> to vector<64x64xf32>
    %241 = arith.subf %237, %240 : vector<64x64xf32>
    %242 = math.exp %241 : vector<64x64xf32>
    %cst_78 = arith.constant dense<0.000000e+00> : vector<64xf32>
    %243 = vector.multi_reduction <add>, %242, %cst_78 [1] : vector<64x64xf32> to vector<64xf32>
    %244 = vector.shape_cast %243 : vector<64xf32> to vector<64x1xf32>
    %245 = arith.truncf %242 : vector<64x64xf32> to vector<64x64xbf16>
    %cst_79 = arith.constant dense<0.000000e+00> : vector<64x64xf32>
    %246 = tpu.matmul %245, %234, %cst_79 {dimension_numbers = #tpu.dot_dimension_numbers<[1], [0], [0], [1], [0, 0, 1, 1], [], []>} : vector<64x64xbf16>, vector<64x64xbf16>, vector<64x64xf32> -> vector<64x64xf32>
    %247 = tpu.reciprocal %244 {approx = true} : vector<64x1xf32> -> vector<64x1xf32>
    %248 = vector.broadcast %247 : vector<64x1xf32> to vector<64x64xf32>
    %249 = arith.mulf %246, %248 : vector<64x64xf32>
    %250 = arith.truncf %249 : vector<64x64xf32> to vector<64x64xbf16>
    %c64_80 = arith.constant 64 : index
    %c320_81 = arith.constant 320 : index
    %251 = vector.load %arg6[%c64_80, %c320_81] : memref<128x384xbf16, #tpu.memory_space<vmem>>, vector<64x64xbf16>
    tpu.vector_store %arg6[%c64_80, %c320_81], %250 {strides = array<i32>} : memref<128x384xbf16, #tpu.memory_space<vmem>>, vector<64x64xbf16>,
    %c0_82 = arith.constant 0 : index
    %c0_83 = arith.constant 0 : index
    %252 = vector.load %arg6[%c0_82, %c0_83] : memref<128x384xbf16, #tpu.memory_space<vmem>>, vector<128x384xbf16>
    %c0_84 = arith.constant 0 : index
    %c0_85 = arith.constant 0 : index
    %253 = vector.load %arg3[%c0_84, %c0_85] : memref<384x384xbf16, #tpu.memory_space<vmem>>, vector<384x384xbf16>
    %cst_86 = arith.constant dense<0.000000e+00> : vector<128x384xf32>
    %254 = tpu.matmul %252, %253, %cst_86 {dimension_numbers = #tpu.dot_dimension_numbers<[1], [0], [0], [1], [0, 0, 1, 1], [], []>} : vector<128x384xbf16>, vector<384x384xbf16>, vector<128x384xf32> -> vector<128x384xf32>
    %c0_87 = arith.constant 0 : index
    %c0_88 = arith.constant 0 : index
    %255 = vector.load %arg4[%c0_87, %c0_88] : memref<1x384xf32, #tpu.memory_space<vmem>>, vector<1x384xf32>
    %256 = vector.broadcast %255 : vector<1x384xf32> to vector<128x384xf32>
    %257 = arith.addf %254, %256 : vector<128x384xf32>
    %c0_89 = arith.constant 0 : index
    %c0_90 = arith.constant 0 : index
    %258 = vector.load %arg5[%c0_89, %c0_90] : memref<128x384xf32, #tpu.memory_space<vmem>>, vector<128x384xf32>
    tpu.vector_store %arg5[%c0_89, %c0_90], %257 {strides = array<i32>} : memref<128x384xf32, #tpu.memory_space<vmem>>, vector<128x384xf32>,
    return
  }
  func.func @transform_0(%arg0: i32) -> (i32, i32) {
    %c0_i32 = arith.constant 0 : i32
    %c0_i32_0 = arith.constant 0 : i32
    return %arg0, %c0_i32 : i32, i32
  }
  func.func @transform_1(%arg0: i32) -> (i32, i32) {
    %c0_i32 = arith.constant 0 : i32
    %c0_i32_0 = arith.constant 0 : i32
    %c0_i32_1 = arith.constant 0 : i32
    return %c0_i32, %c0_i32_0 : i32, i32
  }
  func.func @transform_2(%arg0: i32) -> (i32, i32) {
    %c0_i32 = arith.constant 0 : i32
    %c0_i32_0 = arith.constant 0 : i32
    %c0_i32_1 = arith.constant 0 : i32
    return %c0_i32, %c0_i32_0 : i32, i32
  }
  func.func @transform_3(%arg0: i32) -> (i32, i32) {
    %c0_i32 = arith.constant 0 : i32
    %c0_i32_0 = arith.constant 0 : i32
    %c0_i32_1 = arith.constant 0 : i32
    return %c0_i32, %c0_i32_0 : i32, i32
  }
  func.func @transform_4(%arg0: i32) -> (i32, i32) {
    %c0_i32 = arith.constant 0 : i32
    %c0_i32_0 = arith.constant 0 : i32
    return %arg0, %c0_i32 : i32, i32
  }
}

</mosaic_0001>

<bundles_post_ra>
// kernel: tpu_custom_call.1
= control target key start
LH: loop header
LB: loop body
LE: loop exit
PB: predicated region body
PF: predicated region fallthrough
CT: control target
= control target key end

     0   :  { %9 = vsyncpa [#allocation4], 0  ;;  %s12398_s0 = inlined_call_operand.hbm [shape: bf16[128,384], index: 0, kind: input, shape index: {}]   ;;  %s12399_s1 = inlined_call_operand.hbm [shape: bf16[384,1152], index: 1, kind: input, shape index: {}]   ;;  %s12400_s2 = inlined_call_operand.hbm [shape: bf16[384,384], index: 2, kind: input, shape index: {}]   ;;  %s12401_s3 = inlined_call_operand.vmem [shape: f32[1,384], index: 3, kind: input, shape index: {}]   ;;  %s12402_s4 = inlined_call_operand.hbm [shape: f32[128,384], index: 4, kind: output, shape index: {}]  }
   0x1   :  { %10 = vsyncpa [#allocation7], 0 }
   0x2   :  { %11 = vsyncpa [#allocation5], 0  ;;  %s9788_s15 = smov [#allocation6]   ;;  %s9694_s19 = scalar_lea.hbm %s12399_s1, 27648 }
   0x3   :  { %s29_s16 = sshll.u32 %s9788_s15, 4  ;;  %p9695_p0 = scmp.ne.s32.totalorder %s12399_s1, %s9694_s19  ;;  %s30_s16 = int_to_ptr.vmem [resolvable:$true] %s29_s16 }
   0x4   :  { %p9698_p1 = scmp.lt.u32.totalorder %s9694_s19, %s12399_s1 }
   0x6   :  { %p9700_p2 = pnand %p9698_p1, %p9695_p0 }
   0x8   :  { %9703 = shalt.err (!%p9700_p2)
}
   0x9   :  { %s9704_s24 = scalar_lea.vmem %s30_s16, 27648  ;;  %p9709_p4 = scmp.lt.s32.totalorder %s30_s16, %s30_s16 }
   0xa   :  { %p9705_p3 = scmp.ne.s32.totalorder %s30_s16, %s9704_s24  ;;  %p9710_p5 = scmp.lt.s32.totalorder %s9704_s24, %s9704_s24 }
   0xc   :  { %p9711_p6 = por %p9710_p5, %p9709_p4 }
   0xe   :  { %p9712_p7 = pnand %p9711_p6, %p9705_p3 }
  0x10   :  { %9715 = shalt.err (!%p9712_p7)
}
  0x11   :  { %s9789_s25 = smov 576   ;;  %s9790_s26 = smov 36  }
  0x12   :  { %35 = dma.hbm_to_vmem [thread:$0]  %s12399_s1, 27648, %s30_s16, [#allocation7], %s9789_s25, %s9789_s25, %s9790_s26  }
  0x13   :  { %s9791_s29 = smov [#allocation3]   ;;  %s9716_s7 = scalar_lea.hbm %s12398_s0, 3072 }
  0x14   :  { %s17_s30 = sshll.u32 %s9791_s29, 4  ;;  %p9717_p8 = scmp.ne.s32.totalorder %s12398_s0, %s9716_s7  ;;  %s18_s30 = int_to_ptr.vmem [resolvable:$true] %s17_s30 }
  0x15   :  { %p9720_p9 = scmp.lt.u32.totalorder %s9716_s7, %s12398_s0 }
  0x17   :  { %p9722_p10 = pnand %p9720_p9, %p9717_p8 }
  0x19   :  { %9725 = shalt.err (!%p9722_p10)
}
  0x1a   :  { %s9726_s12 = scalar_lea.vmem %s18_s30, 3072  ;;  %p9731_p12 = scmp.lt.s32.totalorder %s18_s30, %s18_s30 }
  0x1b   :  { %p9727_p11 = scmp.ne.s32.totalorder %s18_s30, %s9726_s12  ;;  %p9732_p13 = scmp.lt.s32.totalorder %s9726_s12, %s9726_s12 }
  0x1d   :  { %p9733_p0 = por %p9732_p13, %p9731_p12 }
  0x1f   :  { %p9734_p1 = pnand %p9733_p0, %p9727_p11 }
  0x21   :  { %9737 = shalt.err (!%p9734_p1)
}
  0x22   :  { %s9792_s1 = smov 192   ;;  %s9793_s13 = smov 12  }
  0x23   :  { %23 = dma.hbm_to_vmem [thread:$0]  %s12398_s0, 3072, %s18_s30, [#allocation4], %s9792_s1, %s9792_s1, %s9793_s13  }
  0x24   :  { %s9794_s16 = smov [#allocation8]   ;;  %s9738_s20 = scalar_lea.hbm %s12400_s2, 9216 }
  0x25   :  { %s41_s17 = sshll.u32 %s9794_s16, 4  ;;  %p9739_p2 = scmp.ne.s32.totalorder %s12400_s2, %s9738_s20  ;;  %s42_s17 = int_to_ptr.vmem [resolvable:$true] %s41_s17 }
  0x26   :  { %p9742_p3 = scmp.lt.u32.totalorder %s9738_s20, %s12400_s2 }
  0x28   :  { %p9744_p4 = pnand %p9742_p3, %p9739_p2 }
  0x2a   :  { %9747 = shalt.err (!%p9744_p4)
}
  0x2b   :  { %s9748_s25 = scalar_lea.vmem %s42_s17, 9216  ;;  %p9753_p6 = scmp.lt.s32.totalorder %s42_s17, %s42_s17 }
  0x2c   :  { %p9749_p5 = scmp.ne.s32.totalorder %s42_s17, %s9748_s25  ;;  %p9754_p7 = scmp.lt.s32.totalorder %s9748_s25, %s9748_s25 }
  0x2e   :  { %p9755_p8 = por %p9754_p7, %p9753_p6 }
  0x30   :  { %p9756_p9 = pnand %p9755_p8, %p9749_p5 }
  0x32   :  { %9759 = shalt.err (!%p9756_p9)
}
  0x33   :  { %47 = dma.hbm_to_vmem [thread:$0]  %s12400_s2, 9216, %s42_s17, [#allocation7], %s9792_s1, %s9792_s1, %s9793_s13  }
  0x34   :  { %9782 = dma.done.wait [#allocation4], 3072  }
  0x35   :  { %9783 = vsyncadd [#allocation4], 4294964224 }
  0x36   :  { %9784 = dma.done.wait [#allocation7], 36864  }
  0x37   :  { %9785 = vsyncadd [#allocation7], 4294930432  ;;  %v12403_v0 = vmov 0   ;;  %v8846_v1 = vld [vmem:[#allocation6 + $0x4] ss:$36 sps:$4 sm:$0xff]   ;;  %vm2753_vm0 = vcmask 523264  }
  0x38   :  { %1709 = vmatprep.mubr.bf16.mxu1 %v12403_v0  ;;  %v8848_v2 = vld [vmem:[#allocation6 + $0x484] ss:$36 sps:$4 sm:$0xff]   ;;  %1564 = vmatprep.subr.bf16.mxu0 %v8846_v1  ;;  %v8852_v5 = vld [vmem:[#allocation6 + $0x4c] ss:$36 sps:$4 sm:$0xff]   ;;  %v8858_v9 = vld [vmem:[#allocation6 + $0x94] ss:$36 sps:$4 sm:$0xff]  }
  0x39   :  { %v8850_v3 = vld [vmem:[#allocation6] ss:$36 sps:$4 sm:$0xff]   ;;  %1677 = vmatprep.subr.bf16.mxu1 %v8848_v2  ;;  %v8854_v6 = vld [vmem:[#allocation6 + $0x4cc] ss:$36 sps:$4 sm:$0xff]   ;;  %v8860_v10 = vld [vmem:[#allocation6 + $0x514] ss:$36 sps:$4 sm:$0xff]  }
  0x3a   :  { %v8851_v4 = vld [vmem:[#allocation6 + $0x480] ss:$36 sps:$4 sm:$0xff]   ;;  %1565 = vmatpush1.bf16.msra.mxu0 %v8850_v3  ;;  %v8856_v7 = vld [vmem:[#allocation6 + $0x48] ss:$36 sps:$4 sm:$0xff]   ;;  %v8862_v11 = vld [vmem:[#allocation6 + $0x90] ss:$36 sps:$4 sm:$0xff]  }
  0x3b   :  { %1678 = vmatpush1.bf16.msra.mxu1 %v8851_v4  ;;  %1566 = vmatprep.subr.bf16.mxu0 %v8852_v5  ;;  %v8857_v8 = vld [vmem:[#allocation6 + $0x4c8] ss:$36 sps:$4 sm:$0xff]   ;;  %v8863_v12 = vld [vmem:[#allocation6 + $0x510] ss:$36 sps:$4 sm:$0xff]   ;;  %v8864_v13 = vld [vmem:[#allocation6 + $0xdc] ss:$36 sps:$4 sm:$0xff]  }
  0x3c   :  { %1679 = vmatprep.subr.bf16.mxu1 %v8854_v6  ;;  %v8866_v14 = vld [vmem:[#allocation6 + $0x55c] ss:$36 sps:$4 sm:$0xff]   ;;  %v8870_v17 = vld [vmem:[#allocation6 + $0x124] ss:$36 sps:$4 sm:$0xff]   ;;  %v8876_v21 = vld [vmem:[#allocation6 + $0x16c] ss:$36 sps:$4 sm:$0xff]  }
  0x3d   :  { %v8868_v15 = vld [vmem:[#allocation6 + $0xd8] ss:$36 sps:$4 sm:$0xff]   ;;  %v8872_v18 = vld [vmem:[#allocation6 + $0x5a4] ss:$36 sps:$4 sm:$0xff]   ;;  %v8878_v22 = vld [vmem:[#allocation6 + $0x5ec] ss:$36 sps:$4 sm:$0xff]  }
  0x3e   :  { %1567 = vmatpush1.bf16.msra.mxu0 %v8856_v7  ;;  %v8869_v16 = vld [vmem:[#allocation6 + $0x558] ss:$36 sps:$4 sm:$0xff]   ;;  %v8874_v19 = vld [vmem:[#allocation6 + $0x120] ss:$36 sps:$4 sm:$0xff]   ;;  %v8880_v23 = vld [vmem:[#allocation6 + $0x168] ss:$36 sps:$4 sm:$0xff]  }
  0x3f   :  { %1680 = vmatpush1.bf16.msra.mxu1 %v8857_v8  ;;  %1568 = vmatprep.subr.bf16.mxu0 %v8858_v9  ;;  %v8875_v20 = vld [vmem:[#allocation6 + $0x5a0] ss:$36 sps:$4 sm:$0xff]   ;;  %v8881_v24 = vld [vmem:[#allocation6 + $0x5e8] ss:$36 sps:$4 sm:$0xff]   ;;  %v8882_v25 = vld [vmem:[#allocation6 + $0x1b4] ss:$36 sps:$4 sm:$0xff]  }
  0x40   :  { %1681 = vmatprep.subr.bf16.mxu1 %v8860_v10  ;;  %v8884_v26 = vld [vmem:[#allocation6 + $0x634] ss:$36 sps:$4 sm:$0xff]   ;;  %v8888_v29 = vld [vmem:[#allocation6 + $0x1fc] ss:$36 sps:$4 sm:$0xff]   ;;  %v8894_v33 = vld [vmem:[#allocation6 + $0x244] ss:$36 sps:$4 sm:$0xff]  }
  0x41   :  { %v8886_v27 = vld [vmem:[#allocation6 + $0x1b0] ss:$36 sps:$4 sm:$0xff]   ;;  %v8890_v30 = vld [vmem:[#allocation6 + $0x67c] ss:$36 sps:$4 sm:$0xff]   ;;  %v8897_v36 = vld [vmem:[#allocation6 + $0x8] ss:$36 sps:$4 sm:$0xff]  }
  0x42   :  { %1569 = vmatpush1.bf16.msra.mxu0 %v8862_v11  ;;  %v8887_v28 = vld [vmem:[#allocation6 + $0x630] ss:$36 sps:$4 sm:$0xff]   ;;  %v8892_v31 = vld [vmem:[#allocation6 + $0x1f8] ss:$36 sps:$4 sm:$0xff]   ;;  %v8900_v37 = vld [vmem:[#allocation6 + $0x240] ss:$36 sps:$4 sm:$0xff]  }
  0x43   :  { %1682 = vmatpush1.bf16.msra.mxu1 %v8863_v12  ;;  %1570 = vmatprep.subr.bf16.mxu0 %v8864_v13  ;;  %v8893_v32 = vld [vmem:[#allocation6 + $0x678] ss:$36 sps:$4 sm:$0xff]   ;;  %v8899_v34 = vld [vmem:[#allocation6 + $0xc] ss:$36 sps:$4 sm:$0xff]   ;;  %v9862_v35 = vld [vmem:[#allocation3 + $0x8] ss:$12 sps:$4 sm:$0xff]  }
  0x44   :  { %1683 = vmatprep.subr.bf16.mxu1 %v8866_v14  ;;  %v8901_v38 = vld [vmem:[#allocation6 + $0x28c] ss:$36 sps:$4 sm:$0xff]   ;;  %v8905_v39 = vld [vmem:[#allocation6 + $0x54] ss:$36 sps:$4 sm:$0xff]   ;;  %v8912_v43 = vld [vmem:[#allocation6 + $0x9c] ss:$36 sps:$4 sm:$0xff]  }
  0x45   :  { %v8903_v40 = vld [vmem:[#allocation6 + $0x50] ss:$36 sps:$4 sm:$0xff]   ;;  %v8906_v41 = vld [vmem:[#allocation6 + $0x288] ss:$36 sps:$4 sm:$0xff]   ;;  %v8910_v45 = vld [vmem:[#allocation6 + $0x98] ss:$36 sps:$4 sm:$0xff]  }
  0x46   :  { %1571 = vmatpush1.bf16.msra.mxu0 %v8868_v15  ;;  %v8907_v42 = vld [vmem:[#allocation6 + $0x2d4] ss:$36 sps:$4 sm:$0xff]   ;;  %v8909_v44 = vld [vmem:[#allocation3 + $0x20] ss:$12 sps:$4 sm:$0xff]   ;;  %v8918_v48 = vld [vmem:[#allocation6 + $0xe4] ss:$36 sps:$4 sm:$0xff]  }
  0x47   :  { %1684 = vmatpush1.bf16.msra.mxu1 %v8869_v16  ;;  %1572 = vmatprep.subr.bf16.mxu0 %v8870_v17  ;;  %v8913_v46 = vld [vmem:[#allocation6 + $0x2d0] ss:$36 sps:$4 sm:$0xff]   ;;  %v8914_v47 = vld [vmem:[#allocation6 + $0x31c] ss:$36 sps:$4 sm:$0xff]   ;;  %v8920_v51 = vld [vmem:[#allocation6 + $0x364] ss:$36 sps:$4 sm:$0xff]  }
  0x48   :  { %1685 = vmatprep.subr.bf16.mxu1 %v8872_v18  ;;  %v8916_v49 = vld [vmem:[#allocation6 + $0xe0] ss:$36 sps:$4 sm:$0xff]   ;;  %v8919_v50 = vld [vmem:[#allocation6 + $0x318] ss:$36 sps:$4 sm:$0xff]   ;;  %v8925_v52 = vld [vmem:[#allocation6 + $0x12c] ss:$36 sps:$4 sm:$0xff]  }
  0x49   :  { %v8922_v53 = vld [vmem:[#allocation3 + $0x38] ss:$12 sps:$4 sm:$0xff]   ;;  %v8923_v54 = vld [vmem:[#allocation6 + $0x128] ss:$36 sps:$4 sm:$0xff]   ;;  %v8929_v59 = vld [vmem:[#allocation6 + $0x170] ss:$36 sps:$4 sm:$0xff]  }
  0x4a   :  { %1573 = vmatpush1.bf16.msra.mxu0 %v8874_v19  ;;  %v8926_v55 = vld [vmem:[#allocation6 + $0x360] ss:$36 sps:$4 sm:$0xff]   ;;  %v8927_v57 = vld [vmem:[#allocation6 + $0x3ac] ss:$36 sps:$4 sm:$0xff]   ;;  %v8931_v58 = vld [vmem:[#allocation6 + $0x174] ss:$36 sps:$4 sm:$0xff]  }
  0x4b   :  { %1686 = vmatpush1.bf16.msra.mxu1 %v8875_v20  ;;  %1574 = vmatprep.subr.bf16.mxu0 %v8876_v21  ;;  %v9867_v56 = vld [vmem:[#allocation3 + $0x4] ss:$12 sps:$4 sm:$0xff]   ;;  %v8932_v60 = vld [vmem:[#allocation6 + $0x3a8] ss:$36 sps:$4 sm:$0xff]   ;;  %v8933_v61 = vld [vmem:[#allocation6 + $0x3f4] ss:$36 sps:$4 sm:$0xff]  }
  0x4c   :  { %1687 = vmatprep.subr.bf16.mxu1 %v8878_v22  ;;  %1596 = vmatprep.mubr.bf16.mxu0 %v9867_v56  ;;  %v8938_v62 = vld [vmem:[#allocation6 + $0x1bc] ss:$36 sps:$4 sm:$0xff]   ;;  %v8939_v2 = vld [vmem:[#allocation6 + $0x3f0] ss:$36 sps:$4 sm:$0xff]   ;;  %v8944_v4 = vld [vmem:[#allocation6 + $0x204] ss:$36 sps:$4 sm:$0xff]  }
  0x4d   :  { %v8935_v63 = vld [vmem:[#allocation3 + $0x50] ss:$12 sps:$4 sm:$0xff]   ;;  %v8942_v5 = vld [vmem:[#allocation6 + $0x200] ss:$36 sps:$4 sm:$0xff]   ;;  %v8949_v9 = vld [vmem:[#allocation3 + $0x68] ss:$12 sps:$4 sm:$0xff]  }
  0x4e   :  { %1575 = vmatpush1.bf16.msra.mxu0 %v8880_v23  ;;  %v8936_v1 = vld [vmem:[#allocation6 + $0x1b8] ss:$36 sps:$4 sm:$0xff]   ;;  %v8952_v7 = vld [vmem:[#allocation6 + $0x24c] ss:$36 sps:$4 sm:$0xff]   ;;  %v9881_v18 = vld [vmem:[#allocation3 + $0x34] ss:$12 sps:$4 sm:$0xff]  }
  0x4f   :  { %1688 = vmatpush1.bf16.msra.mxu1 %v8881_v24  ;;  %1576 = vmatprep.subr.bf16.mxu0 %v8882_v25  ;;  %v8940_v3 = vld [vmem:[#allocation6 + $0x43c] ss:$36 sps:$4 sm:$0xff]   ;;  %v8950_v10 = vld [vmem:[#allocation6 + $0x248] ss:$36 sps:$4 sm:$0xff]   ;;  %v8955_v12 = vld [vmem:[#allocation6 + $0x294] ss:$36 sps:$4 sm:$0xff]  }
  0x50   :  { %1689 = vmatprep.subr.bf16.mxu1 %v8884_v26  ;;  %v8945_v6 = vld [vmem:[#allocation6 + $0x438] ss:$36 sps:$4 sm:$0xff]   ;;  %v9872_v8 = vld [vmem:[#allocation3] ss:$12 sps:$4 sm:$0xff]   ;;  %v8953_v13 = vld [vmem:[#allocation6 + $0x290] ss:$36 sps:$4 sm:$0xff]  }
  0x51   :  { %v9874_v11 = vld [vmem:[#allocation3 + $0x1c] ss:$12 sps:$4 sm:$0xff]   ;;  %v9879_v15 = vld [vmem:[#allocation3 + $0x18] ss:$12 sps:$4 sm:$0xff]   ;;  %v8959_v16 = vld [vmem:[#allocation3 + $0x80] ss:$12 sps:$4 sm:$0xff]  }
  0x52   :  { %1577 = vmatpush1.bf16.msra.mxu0 %v8886_v27  ;;  %v8962_v14 = vld [vmem:[#allocation6 + $0x2dc] ss:$36 sps:$4 sm:$0xff]   ;;  %v8965_v19 = vld [vmem:[#allocation6 + $0x324] ss:$36 sps:$4 sm:$0xff]   ;;  %v8972_v21 = vld [vmem:[#allocation6 + $0x36c] ss:$36 sps:$4 sm:$0xff]  }
  0x53   :  { %1690 = vmatpush1.bf16.msra.mxu1 %v8887_v28  ;;  %1578 = vmatprep.subr.bf16.mxu0 %v8888_v29  ;;  %v8960_v17 = vld [vmem:[#allocation6 + $0x2d8] ss:$36 sps:$4 sm:$0xff]   ;;  %v8963_v20 = vld [vmem:[#allocation6 + $0x320] ss:$36 sps:$4 sm:$0xff]   ;;  %v8970_v24 = vld [vmem:[#allocation6 + $0x368] ss:$36 sps:$4 sm:$0xff]  }
  0x54   :  { %1691 = vmatprep.subr.bf16.mxu1 %v8890_v30  ;;  %v9886_v22 = vld [vmem:[#allocation3 + $0x30] ss:$12 sps:$4 sm:$0xff]   ;;  %v9888_v23 = vld [vmem:[#allocation3 + $0x98] ss:$12 sps:$4 sm:$0xff]   ;;  %v9896_v29 = vld [vmem:[#allocation3 + $0x48] ss:$12 sps:$4 sm:$0xff]  }
  0x55   :  { %v9890_v25 = vld [vmem:[#allocation3 + $0x4c] ss:$12 sps:$4 sm:$0xff]   ;;  %v8973_v27 = vld [vmem:[#allocation6 + $0x3b0] ss:$36 sps:$4 sm:$0xff]   ;;  %v8982_v28 = vld [vmem:[#allocation6 + $0x3fc] ss:$36 sps:$4 sm:$0xff]  }
  0x56   :  { %1579 = vmatpush1.bf16.msra.mxu0 %v8892_v31  ;;  %v8975_v26 = vld [vmem:[#allocation6 + $0x3b4] ss:$36 sps:$4 sm:$0xff]   ;;  %v9898_v30 = vld [vmem:[#allocation3 + $0xb0] ss:$12 sps:$4 sm:$0xff]   ;;  %s9796_s2 = smov 64   ;;  %vm3354_vm9 = vcmask 1048064  }
  0x57   :  { %1692 = vmatpush1.bf16.msra.mxu1 %v8893_v32  ;;  %1580 = vmatprep.subr.bf16.mxu0 %v8894_v33  ;;  %v8980_v31 = vld [vmem:[#allocation6 + $0x3f8] ss:$36 sps:$4 sm:$0xff]   ;;  %v9900_v32 = vld [vmem:[#allocation3 + $0x64] ss:$12 sps:$4 sm:$0xff]  }
  0x58   :  { %1790 = vmatprep.subr.bf16.mxu1 %v8899_v34  ;;  %v8985_v33 = vld [vmem:[#allocation6 + $0x444] ss:$36 sps:$4 sm:$0xff]  }
  0x59   :  { %v8983_v34 = vld [vmem:[#allocation6 + $0x440] ss:$36 sps:$4 sm:$0xff]  }
  0x5a   :  { %1710 = vmatmul.mubr.bf16.vlgmr.msra.gmra.mrb[0].mxu1 %v9862_v35  ;;  %1581 = vmatpush1.bf16.msra.mxu0 %v8900_v37  ;;  %v9906_v37 = vld [vmem:[#allocation3 + $0x60] ss:$12 sps:$4 sm:$0xff]  }
  0x5b   :  { %1791 = vmatpush1.bf16.msra.mxu1 %v8897_v36  ;;  %1582 = vmatprep.subr.bf16.mxu0 %v8901_v38  ;;  %v9000_v36 = vld [vmem:[#allocation6 + $0x48c] ss:$36 sps:$4 sm:$0xff]   ;;  %v9908_v38 = vld [vmem:[#allocation3 + $0x7c] ss:$12 sps:$4 sm:$0xff]  }
  0x5c   :  { %1792 = vmatprep.subr.bf16.mxu1 %v8905_v39  ;;  %1719 = vmatprep.mubr.bf16.mxu1 %v12403_v0  ;;  %v8998_v39 = vld [vmem:[#allocation6 + $0x488] ss:$36 sps:$4 sm:$0xff]  }
  0x5e   :  { %1583 = vmatpush1.bf16.msra.mxu0 %v8906_v41  ;;  %v9001_v41 = vld [vmem:[#allocation6 + $0x4d0] ss:$36 sps:$4 sm:$0xff]  }
  0x5f   :  { %1793 = vmatpush1.bf16.msra.mxu1 %v8903_v40  ;;  %1584 = vmatprep.subr.bf16.mxu0 %v8907_v42  ;;  %v9003_v40 = vld [vmem:[#allocation6 + $0x4d4] ss:$36 sps:$4 sm:$0xff]   ;;  %v9006_v42 = vld [vmem:[#allocation6 + $0x51c] ss:$36 sps:$4 sm:$0xff]  }
  0x60   :  { %1794 = vmatprep.subr.bf16.mxu1 %v8912_v43  ;;  %v9914_v43 = vld [vmem:[#allocation3 + $0x78] ss:$12 sps:$4 sm:$0xff]  }
  0x62   :  { %1720 = vmatmul.mubr.bf16.gmra.mrb[4].mxu1 %v8909_v44  ;;  %1585 = vmatpush1.bf16.msra.mxu0 %v8913_v46  ;;  %v9916_v44 = vld [vmem:[#allocation3 + $0x94] ss:$12 sps:$4 sm:$0xff]  }
  0x63   :  { %1795 = vmatpush1.bf16.msra.mxu1 %v8910_v45  ;;  %1586 = vmatprep.subr.bf16.mxu0 %v8914_v47  ;;  %v9004_v45 = vld [vmem:[#allocation6 + $0x518] ss:$36 sps:$4 sm:$0xff]   ;;  %v9009_v47 = vld [vmem:[#allocation6 + $0x564] ss:$36 sps:$4 sm:$0xff]  }
  0x64   :  { %1796 = vmatprep.subr.bf16.mxu1 %v8918_v48  ;;  %1729 = vmatprep.mubr.bf16.mxu1 %v12403_v0  ;;  %v9072_v46 = vld [vmem:[#allocation6 + $0x14] ss:$36 sps:$4 sm:$0xff]  }
  0x65   :  { %v9070_v48 = vld [vmem:[#allocation6 + $0x10] ss:$36 sps:$4 sm:$0xff]  }
  0x66   :  { %1587 = vmatpush1.bf16.msra.mxu0 %v8919_v50  ;;  %v9922_v50 = vld [vmem:[#allocation3 + $0x90] ss:$12 sps:$4 sm:$0xff]  }
  0x67   :  { %1797 = vmatpush1.bf16.msra.mxu1 %v8916_v49  ;;  %1588 = vmatprep.subr.bf16.mxu0 %v8920_v51  ;;  %v9075_v49 = vld [vmem:[#allocation6 + $0x5c] ss:$36 sps:$4 sm:$0xff]  }
  0x68   :  { %1798 = vmatprep.subr.bf16.mxu1 %v8925_v52  ;;  %v9007_v51 = vld [vmem:[#allocation6 + $0x560] ss:$36 sps:$4 sm:$0xff]   ;;  %v9012_v52 = vld [vmem:[#allocation6 + $0x5ac] ss:$36 sps:$4 sm:$0xff]  }
  0x6a   :  { %1730 = vmatmul.mubr.bf16.gmra.mrb[8].mxu1 %v8922_v53  ;;  %1589 = vmatpush1.bf16.msra.mxu0 %v8926_v55  ;;  %v9073_v53 = vld [vmem:[#allocation6 + $0x58] ss:$36 sps:$4 sm:$0xff]   ;;  %v9010_v55 = vld [vmem:[#allocation6 + $0x5a8] ss:$36 sps:$4 sm:$0xff]  }
  0x6b   :  { %1799 = vmatpush1.bf16.msra.mxu1 %v8923_v54  ;;  %1590 = vmatprep.subr.bf16.mxu0 %v8927_v57  ;;  %v9924_v54 = vld [vmem:[#allocation3 + $0xac] ss:$12 sps:$4 sm:$0xff]  }
  0x6c   :  { %1800 = vmatprep.subr.bf16.mxu1 %v8931_v58  ;;  %1739 = vmatprep.mubr.bf16.mxu1 %v12403_v0  ;;  %v9015_v57 = vld [vmem:[#allocation6 + $0x5f4] ss:$36 sps:$4 sm:$0xff]   ;;  %v9076_v58 = vld [vmem:[#allocation6 + $0xa0] ss:$36 sps:$4 sm:$0xff]  }
  0x6e   :  { %1591 = vmatpush1.bf16.msra.mxu0 %v8932_v60  ;;  %v9013_v60 = vld [vmem:[#allocation6 + $0x5f0] ss:$36 sps:$4 sm:$0xff]  }
  0x6f   :  { %1801 = vmatpush1.bf16.msra.mxu1 %v8929_v59  ;;  %1592 = vmatprep.subr.bf16.mxu0 %v8933_v61  ;;  %v9078_v59 = vld [vmem:[#allocation6 + $0xa4] ss:$36 sps:$4 sm:$0xff]   ;;  %v9081_v61 = vld [vmem:[#allocation6 + $0xec] ss:$36 sps:$4 sm:$0xff]  }
  0x70   :  { %1802 = vmatprep.subr.bf16.mxu1 %v8938_v62  ;;  %v9930_v62 = vld [vmem:[#allocation3 + $0xa8] ss:$12 sps:$4 sm:$0xff]  }
  0x72   :  { %1740 = vmatmul.mubr.bf16.gmra.mrb[12].mxu1 %v8935_v63  ;;  %1593 = vmatpush1.bf16.msra.mxu0 %v8939_v2  ;;  %v9018_v63 = vld [vmem:[#allocation6 + $0x63c] ss:$36 sps:$4 sm:$0xff]  }
  0x73   :  { %1803 = vmatpush1.bf16.msra.mxu1 %v8936_v1  ;;  %1594 = vmatprep.subr.bf16.mxu0 %v8940_v3  ;;  %v9079_v1 = vld [vmem:[#allocation6 + $0xe8] ss:$36 sps:$4 sm:$0xff]   ;;  %v9016_v2 = vld [vmem:[#allocation6 + $0x638] ss:$36 sps:$4 sm:$0xff]  }
  0x74   :  { %1804 = vmatprep.subr.bf16.mxu1 %v8944_v4  ;;  %1749 = vmatprep.mubr.bf16.mxu1 %v12403_v0  ;;  %v9084_v3 = vld [vmem:[#allocation6 + $0x134] ss:$36 sps:$4 sm:$0xff]   ;;  %v9021_v4 = vld [vmem:[#allocation6 + $0x684] ss:$36 sps:$4 sm:$0xff]  }
  0x76   :  { %1595 = vmatpush1.bf16.msra.mxu0 %v8945_v6  ;;  %v9019_v6 = vld [vmem:[#allocation6 + $0x680] ss:$36 sps:$4 sm:$0xff]  }
  0x77   :  { %1805 = vmatpush1.bf16.msra.mxu1 %v8942_v5  ;;  %2016 = vmatprep.subr.bf16.mxu0 %v9072_v46  ;;  %v9082_v5 = vld [vmem:[#allocation6 + $0x130] ss:$36 sps:$4 sm:$0xff]  }
  0x78   :  { %1806 = vmatprep.subr.bf16.mxu1 %v8952_v7  ;;  %v9087_v7 = vld [vmem:[#allocation6 + $0x17c] ss:$36 sps:$4 sm:$0xff]   ;;  %v9030_v46 = vld [vmem:[#allocation6 + $0xac] ss:$36 sps:$4 sm:$0xff]  }
  0x79   :  { %1597 = vmatmul.mubr.bf16.vlgmr.msra.gmra.mrb[0].mxu0 %v9872_v8 }
  0x7a   :  { %1750 = vmatmul.mubr.bf16.gmra.mrb[16].mxu1 %v8949_v9  ;;  %1606 = vmatprep.mubr.bf16.mxu0 %v9874_v11  ;;  %v9024_v9 = vld [vmem:[#allocation6 + $0x1c] ss:$36 sps:$4 sm:$0xff]  }
  0x7b   :  { %1807 = vmatpush1.bf16.msra.mxu1 %v8950_v10  ;;  %1759 = vmatprep.mubr.bf16.mxu1 %v12403_v0  ;;  %v9085_v10 = vld [vmem:[#allocation6 + $0x178] ss:$36 sps:$4 sm:$0xff]  }
  0x7c   :  { %1808 = vmatprep.subr.bf16.mxu1 %v8955_v12  ;;  %2017 = vmatpush1.bf16.msra.mxu0 %v9070_v48  ;;  %v9093_v12 = vld [vmem:[#allocation6 + $0x1c4] ss:$36 sps:$4 sm:$0xff]  }
  0x7d   :  { %2018 = vmatprep.subr.bf16.mxu0 %v9075_v49  ;;  %v9028_v48 = vld [vmem:[#allocation6 + $0xa8] ss:$36 sps:$4 sm:$0xff]   ;;  %v9033_v49 = vld [vmem:[#allocation6 + $0xf4] ss:$36 sps:$4 sm:$0xff]  }
  0x7f   :  { %1809 = vmatpush1.bf16.msra.mxu1 %v8953_v13  ;;  %v9091_v13 = vld [vmem:[#allocation6 + $0x1c0] ss:$36 sps:$4 sm:$0xff]  }
  0x80   :  { %1810 = vmatprep.subr.bf16.mxu1 %v8962_v14  ;;  %2019 = vmatpush1.bf16.msra.mxu0 %v9073_v53  ;;  %v9099_v14 = vld [vmem:[#allocation6 + $0x20c] ss:$36 sps:$4 sm:$0xff]  }
  0x81   :  { %1607 = vmatmul.mubr.bf16.gmra.mrb[4].mxu0 %v9879_v15  ;;  %2020 = vmatprep.subr.bf16.mxu0 %v9078_v59  ;;  %v9946_v53 = vld [vmem:[#allocation3 + $0x20] ss:$12 sps:$4 sm:$0xff]   ;;  %v9039_v59 = vld [vmem:[#allocation6 + $0x184] ss:$36 sps:$4 sm:$0xff]  }
  0x82   :  { %1760 = vmatmul.mubr.bf16.gmra.mrb[20].mxu1 %v8959_v16  ;;  %1616 = vmatprep.mubr.bf16.mxu0 %v9881_v18  ;;  %v9097_v16 = vld [vmem:[#allocation6 + $0x208] ss:$36 sps:$4 sm:$0xff]  }
  0x83   :  { %1811 = vmatpush1.bf16.msra.mxu1 %v8960_v17  ;;  %1769 = vmatprep.mubr.bf16.mxu1 %v12403_v0  ;;  %v9105_v17 = vld [vmem:[#allocation6 + $0x254] ss:$36 sps:$4 sm:$0xff]  }
  0x84   :  { %1812 = vmatprep.subr.bf16.mxu1 %v8965_v19  ;;  %2021 = vmatpush1.bf16.msra.mxu0 %v9076_v58  ;;  %v9103_v19 = vld [vmem:[#allocation6 + $0x250] ss:$36 sps:$4 sm:$0xff]   ;;  %v9151_v58 = vld [vmem:[#allocation6 + $0x4dc] ss:$36 sps:$4 sm:$0xff]  }
  0x85   :  { %2022 = vmatprep.subr.bf16.mxu0 %v9081_v61  ;;  %v9037_v61 = vld [vmem:[#allocation6 + $0x180] ss:$36 sps:$4 sm:$0xff]  }
  0x87   :  { %1813 = vmatpush1.bf16.msra.mxu1 %v8963_v20  ;;  %v9109_v20 = vld [vmem:[#allocation6 + $0x298] ss:$36 sps:$4 sm:$0xff]  }
  0x88   :  { %1814 = vmatprep.subr.bf16.mxu1 %v8972_v21  ;;  %2023 = vmatpush1.bf16.msra.mxu0 %v9079_v1  ;;  %v9117_v21 = vld [vmem:[#allocation6 + $0x2e4] ss:$36 sps:$4 sm:$0xff]  }
  0x89   :  { %1617 = vmatmul.mubr.bf16.gmra.mrb[8].mxu0 %v9886_v22  ;;  %2024 = vmatprep.subr.bf16.mxu0 %v9084_v3  ;;  %v9952_v1 = vld [vmem:[#allocation3 + $0x38] ss:$12 sps:$4 sm:$0xff]   ;;  %v9159_v3 = vld [vmem:[#allocation6 + $0x56c] ss:$36 sps:$4 sm:$0xff]  }
  0x8a   :  { %1770 = vmatmul.mubr.bf16.gmra.mrb[24].mxu1 %v9888_v23  ;;  %1626 = vmatprep.mubr.bf16.mxu0 %v9890_v25 }
  0x8b   :  { %1815 = vmatpush1.bf16.msra.mxu1 %v8970_v24  ;;  %1779 = vmatprep.mubr.bf16.mxu1 %v12403_v0  ;;  %v9115_v24 = vld [vmem:[#allocation6 + $0x2e0] ss:$36 sps:$4 sm:$0xff]  }
  0x8c   :  { %1816 = vmatprep.subr.bf16.mxu1 %v8975_v26  ;;  %2025 = vmatpush1.bf16.msra.mxu0 %v9082_v5  ;;  %v9123_v26 = vld [vmem:[#allocation6 + $0x32c] ss:$36 sps:$4 sm:$0xff]  }
  0x8d   :  { %2026 = vmatprep.subr.bf16.mxu0 %v9087_v7  ;;  %v9157_v5 = vld [vmem:[#allocation6 + $0x568] ss:$36 sps:$4 sm:$0xff]   ;;  %v9163_v7 = vld [vmem:[#allocation6 + $0x5b4] ss:$36 sps:$4 sm:$0xff]  }
  0x8f   :  { %1817 = vmatpush1.bf16.msra.mxu1 %v8973_v27  ;;  %v9121_v27 = vld [vmem:[#allocation6 + $0x328] ss:$36 sps:$4 sm:$0xff]  }
  0x90   :  { %1818 = vmatprep.subr.bf16.mxu1 %v8982_v28  ;;  %2027 = vmatpush1.bf16.msra.mxu0 %v9085_v10  ;;  %v9129_v28 = vld [vmem:[#allocation6 + $0x374] ss:$36 sps:$4 sm:$0xff]   ;;  %v9048_v10 = vld [vmem:[#allocation6 + $0x25c] ss:$36 sps:$4 sm:$0xff]  }
  0x91   :  { %1627 = vmatmul.mubr.bf16.gmra.mrb[12].mxu0 %v9896_v29  ;;  %2028 = vmatprep.subr.bf16.mxu0 %v9093_v12  ;;  %v9167_v12 = vld [vmem:[#allocation6 + $0x5fc] ss:$36 sps:$4 sm:$0xff]  }
  0x92   :  { %1780 = vmatmul.mubr.bf16.gmra.mrb[28].mxu1 %v9898_v30  ;;  %1636 = vmatprep.mubr.bf16.mxu0 %v9900_v32 }
  0x93   :  { %1819 = vmatpush1.bf16.msra.mxu1 %v8980_v31  ;;  %1822 = vmatprep.mubr.bf16.mxu1 %v9867_v56  ;;  %v9127_v31 = vld [vmem:[#allocation6 + $0x370] ss:$36 sps:$4 sm:$0xff]  }
  0x94   :  { %1820 = vmatprep.subr.bf16.mxu1 %v8985_v33  ;;  %2029 = vmatpush1.bf16.msra.mxu0 %v9091_v13  ;;  %v9135_v33 = vld [vmem:[#allocation6 + $0x3bc] ss:$36 sps:$4 sm:$0xff]  }
  0x95   :  { %2030 = vmatprep.subr.bf16.mxu0 %v9099_v14  ;;  %v9165_v13 = vld [vmem:[#allocation6 + $0x5f8] ss:$36 sps:$4 sm:$0xff]   ;;  %v9051_v14 = vld [vmem:[#allocation6 + $0x2a4] ss:$36 sps:$4 sm:$0xff]  }
  0x97   :  { %1821 = vmatpush1.bf16.msra.mxu1 %v8983_v34  ;;  %v9133_v34 = vld [vmem:[#allocation6 + $0x3b8] ss:$36 sps:$4 sm:$0xff]  }
  0x98   :  { %1903 = vmatprep.subr.bf16.mxu1 %v9000_v36  ;;  %2031 = vmatpush1.bf16.msra.mxu0 %v9097_v16  ;;  %v9022_v36 = vld [vmem:[#allocation6 + $0x18] ss:$36 sps:$4 sm:$0xff]   ;;  %v9170_v16 = vld [vmem:[#allocation6 + $0x644] ss:$36 sps:$4 sm:$0xff]  }
  0x99   :  { %1637 = vmatmul.mubr.bf16.gmra.mrb[16].mxu0 %v9906_v37  ;;  %2032 = vmatprep.subr.bf16.mxu0 %v9105_v17  ;;  %v9964_v17 = vld [vmem:[#allocation3 + $0x68] ss:$12 sps:$4 sm:$0xff]  }
  0x9a   :  { %1823 = vmatmul.mubr.bf16.vlgmr.msra.gmra.mrb[32].mxu1 %v9872_v8  ;;  %1646 = vmatprep.mubr.bf16.mxu0 %v9908_v38 }
  0x9b   :  { %1832 = vmatprep.mubr.bf16.mxu1 %v9874_v11  ;;  %1904 = vmatpush1.bf16.msra.mxu1 %v8998_v39  ;;  %v9138_v39 = vld [vmem:[#allocation6 + $0x404] ss:$36 sps:$4 sm:$0xff]  }
  0x9c   :  { %1905 = vmatprep.subr.bf16.mxu1 %v9003_v40  ;;  %2033 = vmatpush1.bf16.msra.mxu0 %v9103_v19  ;;  %v9027_v40 = vld [vmem:[#allocation6 + $0x64] ss:$36 sps:$4 sm:$0xff]  }
  0x9d   :  { %v9168_v19 = vld [vmem:[#allocation6 + $0x640] ss:$36 sps:$4 sm:$0xff]  }
  0x9f   :  { %1906 = vmatpush1.bf16.msra.mxu1 %v9001_v41  ;;  %v9136_v41 = vld [vmem:[#allocation6 + $0x400] ss:$36 sps:$4 sm:$0xff]  }
  0xa0   :  { %1907 = vmatprep.subr.bf16.mxu1 %v9006_v42  ;;  %v9141_v42 = vld [vmem:[#allocation6 + $0x44c] ss:$36 sps:$4 sm:$0xff]  }
  0xa1   :  { %1647 = vmatmul.mubr.bf16.gmra.mrb[20].mxu0 %v9914_v43 }
  0xa2   :  { %1833 = vmatmul.mubr.bf16.gmra.mrb[36].mxu1 %v9879_v15  ;;  %1656 = vmatprep.mubr.bf16.mxu0 %v9916_v44 }
  0xa3   :  { %1842 = vmatprep.mubr.bf16.mxu1 %v9881_v18  ;;  %1908 = vmatpush1.bf16.msra.mxu1 %v9004_v45  ;;  %v9025_v45 = vld [vmem:[#allocation6 + $0x60] ss:$36 sps:$4 sm:$0xff]  }
  0xa4   :  { %1909 = vmatprep.subr.bf16.mxu1 %v9009_v47  ;;  %v9139_v47 = vld [vmem:[#allocation6 + $0x448] ss:$36 sps:$4 sm:$0xff]  }
  0xa7   :  { %1910 = vmatpush1.bf16.msra.mxu1 %v9007_v51  ;;  %v9031_v51 = vld [vmem:[#allocation6 + $0xf0] ss:$36 sps:$4 sm:$0xff]  }
  0xa8   :  { %1911 = vmatprep.subr.bf16.mxu1 %v9012_v52  ;;  %v9147_v52 = vld [vmem:[#allocation6 + $0x494] ss:$36 sps:$4 sm:$0xff]  }
  0xa9   :  { %1657 = vmatmul.mubr.bf16.gmra.mrb[24].mxu0 %v9922_v50 }
  0xaa   :  { %1843 = vmatmul.mubr.bf16.gmra.mrb[40].mxu1 %v9886_v22  ;;  %1666 = vmatprep.mubr.bf16.mxu0 %v9924_v54 }
  0xab   :  { %1852 = vmatprep.mubr.bf16.mxu1 %v9890_v25  ;;  %1912 = vmatpush1.bf16.msra.mxu1 %v9010_v55  ;;  %v9145_v55 = vld [vmem:[#allocation6 + $0x490] ss:$36 sps:$4 sm:$0xff]  }
  0xac   :  { %1913 = vmatprep.subr.bf16.mxu1 %v9015_v57  ;;  %v9034_v57 = vld [vmem:[#allocation6 + $0x138] ss:$36 sps:$4 sm:$0xff]  }
  0xaf   :  { %1914 = vmatpush1.bf16.msra.mxu1 %v9013_v60  ;;  %v9149_v60 = vld [vmem:[#allocation6 + $0x4d8] ss:$36 sps:$4 sm:$0xff]  }
  0xb0   :  { %1915 = vmatprep.subr.bf16.mxu1 %v9018_v63  ;;  %v9155_v63 = vld [vmem:[#allocation6 + $0x524] ss:$36 sps:$4 sm:$0xff]  }
  0xb1   :  { %1667 = vmatmul.mubr.bf16.gmra.mrb[28].mxu0 %v9930_v62 }
  0xb2   :  { %1853 = vmatmul.mubr.bf16.gmra.mrb[44].mxu1 %v9896_v29  ;;  %2048 = vmatprep.mubr.bf16.mxu0 %v9867_v56  ;;  %v9111_v56 = vld [vmem:[#allocation6 + $0x29c] ss:$36 sps:$4 sm:$0xff]  }
  0xb3   :  { %1862 = vmatprep.mubr.bf16.mxu1 %v9900_v32  ;;  %1916 = vmatpush1.bf16.msra.mxu1 %v9016_v2  ;;  %v9042_v2 = vld [vmem:[#allocation6 + $0x1cc] ss:$36 sps:$4 sm:$0xff]  }
  0xb4   :  { %1917 = vmatprep.subr.bf16.mxu1 %v9021_v4  ;;  %2034 = vmatprep.subr.bf16.mxu0 %v9111_v56  ;;  %v9045_v4 = vld [vmem:[#allocation6 + $0x214] ss:$36 sps:$4 sm:$0xff]   ;;  %v9173_v56 = vld [vmem:[#allocation6 + $0x68c] ss:$36 sps:$4 sm:$0xff]  }
  0xb5   :  { %2035 = vmatpush1.bf16.msra.mxu0 %v9109_v20  ;;  %v9171_v20 = vld [vmem:[#allocation6 + $0x688] ss:$36 sps:$4 sm:$0xff]  }
  0xb6   :  { %2036 = vmatprep.subr.bf16.mxu0 %v9117_v21  ;;  %v9052_v21 = vld [vmem:[#allocation6 + $0x2e8] ss:$36 sps:$4 sm:$0xff]  }
  0xb7   :  { %1918 = vmatpush1.bf16.msra.mxu1 %v9019_v6  ;;  %v9043_v6 = vld [vmem:[#allocation6 + $0x210] ss:$36 sps:$4 sm:$0xff]  }
  0xb8   :  { %2242 = vmatprep.subr.bf16.mxu1 %v9024_v9  ;;  %v9958_v9 = vld [vmem:[#allocation3 + $0x50] ss:$12 sps:$4 sm:$0xff]  }
  0xb9   :  { %2037 = vmatpush1.bf16.msra.mxu0 %v9115_v24  ;;  %v9057_v24 = vld [vmem:[#allocation6 + $0x334] ss:$36 sps:$4 sm:$0xff]  }
  0xba   :  { %1863 = vmatmul.mubr.bf16.gmra.mrb[48].mxu1 %v9906_v37  ;;  %2038 = vmatprep.subr.bf16.mxu0 %v9123_v26  ;;  %v9970_v26 = vld [vmem:[#allocation3 + $0x80] ss:$12 sps:$4 sm:$0xff]  }
  0xbb   :  { %1872 = vmatprep.mubr.bf16.mxu1 %v9908_v38 }
  0xbd   :  { %2039 = vmatpush1.bf16.msra.mxu0 %v9121_v27  ;;  %v9055_v27 = vld [vmem:[#allocation6 + $0x330] ss:$36 sps:$4 sm:$0xff]  }
  0xbe   :  { %2040 = vmatprep.subr.bf16.mxu0 %v9129_v28  ;;  %v9063_v28 = vld [vmem:[#allocation6 + $0x3c4] ss:$36 sps:$4 sm:$0xff]  }
  0xc1   :  { %2041 = vmatpush1.bf16.msra.mxu0 %v9127_v31  ;;  %v9061_v31 = vld [vmem:[#allocation6 + $0x3c0] ss:$36 sps:$4 sm:$0xff]  }
  0xc2   :  { %1873 = vmatmul.mubr.bf16.gmra.mrb[52].mxu1 %v9914_v43  ;;  %2042 = vmatprep.subr.bf16.mxu0 %v9135_v33  ;;  %v9066_v33 = vld [vmem:[#allocation6 + $0x40c] ss:$36 sps:$4 sm:$0xff]  }
  0xc3   :  { %1882 = vmatprep.mubr.bf16.mxu1 %v9916_v44 }
  0xc5   :  { %2043 = vmatpush1.bf16.msra.mxu0 %v9133_v34  ;;  %v9067_v34 = vld [vmem:[#allocation6 + $0x450] ss:$36 sps:$4 sm:$0xff]  }
  0xc6   :  { %2044 = vmatprep.subr.bf16.mxu0 %v9138_v39  ;;  %v9986_v39 = vld [vmem:[#allocation3] ss:$12 sps:$4 sm:$0xff]  }
  0xc9   :  { %2045 = vmatpush1.bf16.msra.mxu0 %v9136_v41  ;;  %v9102_v41 = vld [vmem:[#allocation6 + $0x52c] ss:$36 sps:$4 sm:$0xff]  }
  0xca   :  { %1883 = vmatmul.mubr.bf16.gmra.mrb[56].mxu1 %v9922_v50  ;;  %2046 = vmatprep.subr.bf16.mxu0 %v9141_v42  ;;  %v9100_v42 = vld [vmem:[#allocation6 + $0x528] ss:$36 sps:$4 sm:$0xff]  }
  0xcb   :  { %1892 = vmatprep.mubr.bf16.mxu1 %v9924_v54 }
  0xcd   :  { %2047 = vmatpush1.bf16.msra.mxu0 %v9139_v47  ;;  %v9997_v47 = vld [vmem:[#allocation3 + $0x34] ss:$12 sps:$4 sm:$0xff]  }
  0xce   :  { %2129 = vmatprep.subr.bf16.mxu0 %v9147_v52  ;;  %v9112_v52 = vld [vmem:[#allocation6 + $0x5b8] ss:$36 sps:$4 sm:$0xff]  }
  0xd0   :  { %2049 = vmatmul.mubr.bf16.vlgmr.msra.gmra.mrb[32].mxu0 %v9872_v8  ;;  %v9153_v8 = vld [vmem:[#allocation6 + $0x520] ss:$36 sps:$4 sm:$0xff]  }
  0xd1   :  { %2058 = vmatprep.mubr.bf16.mxu0 %v9874_v11  ;;  %2130 = vmatpush1.bf16.msra.mxu0 %v9145_v55  ;;  %v9040_v11 = vld [vmem:[#allocation6 + $0x1c8] ss:$36 sps:$4 sm:$0xff]   ;;  %v10004_v55 = vld [vmem:[#allocation3 + $0x30] ss:$12 sps:$4 sm:$0xff]  }
  0xd2   :  { %1893 = vmatmul.mubr.bf16.gmra.mrb[60].mxu1 %v9930_v62  ;;  %2131 = vmatprep.subr.bf16.mxu0 %v9151_v58  ;;  %v9118_v58 = vld [vmem:[#allocation6 + $0x600] ss:$36 sps:$4 sm:$0xff]  }
  0xd3   :  { %1935 = vmatprep.mubr.bf16.mxu1 %v12403_v0 }
  0xd5   :  { %2132 = vmatpush1.bf16.msra.mxu0 %v9149_v60 }
  0xd6   :  { %2133 = vmatprep.subr.bf16.mxu0 %v9155_v63 }
  0xd8   :  { %2059 = vmatmul.mubr.bf16.gmra.mrb[36].mxu0 %v9879_v15  ;;  %v9161_v15 = vld [vmem:[#allocation6 + $0x5b0] ss:$36 sps:$4 sm:$0xff]  }
  0xd9   :  { %2068 = vmatprep.mubr.bf16.mxu0 %v9881_v18  ;;  %2134 = vmatpush1.bf16.msra.mxu0 %v9153_v8  ;;  %v9046_v18 = vld [vmem:[#allocation6 + $0x258] ss:$36 sps:$4 sm:$0xff]  }
  0xda   :  { %1936 = vmatmul.mubr.bf16.vlgmr.msra.gmra.mrb[32].mxu1 %v9862_v35  ;;  %v9036_v35 = vld [vmem:[#allocation6 + $0x13c] ss:$36 sps:$4 sm:$0xff]   ;;  %2135 = vmatprep.subr.bf16.mxu0 %v9159_v3  ;;  %v10012_v3 = vld [vmem:[#allocation3 + $0x48] ss:$12 sps:$4 sm:$0xff]  }
  0xdb   :  { %2243 = vmatpush1.bf16.msra.mxu1 %v9022_v36  ;;  %1945 = vmatprep.mubr.bf16.mxu1 %v12403_v0  ;;  %v9981_v36 = vld [vmem:[#allocation3 + $0x4] ss:$12 sps:$4 sm:$0xff]  }
  0xdc   :  { %2244 = vmatprep.subr.bf16.mxu1 %v9027_v40  ;;  %v9094_v40 = vld [vmem:[#allocation6 + $0x4e0] ss:$36 sps:$4 sm:$0xff]  }
  0xdd   :  { %2136 = vmatpush1.bf16.msra.mxu0 %v9157_v5  ;;  %v9130_v5 = vld [vmem:[#allocation6 + $0x690] ss:$36 sps:$4 sm:$0xff]  }
  0xde   :  { %2137 = vmatprep.subr.bf16.mxu0 %v9163_v7 }
  0xdf   :  { %2245 = vmatpush1.bf16.msra.mxu1 %v9025_v45  ;;  %v9108_v45 = vld [vmem:[#allocation6 + $0x574] ss:$36 sps:$4 sm:$0xff]  }
  0xe0   :  { %2246 = vmatprep.subr.bf16.mxu1 %v9030_v46  ;;  %2069 = vmatmul.mubr.bf16.gmra.mrb[40].mxu0 %v9886_v22  ;;  %v9049_v22 = vld [vmem:[#allocation6 + $0x2a0] ss:$36 sps:$4 sm:$0xff]  }
  0xe1   :  { %2078 = vmatprep.mubr.bf16.mxu0 %v9890_v25  ;;  %2138 = vmatpush1.bf16.msra.mxu0 %v9161_v15  ;;  %v9054_v25 = vld [vmem:[#allocation6 + $0x2ec] ss:$36 sps:$4 sm:$0xff]   ;;  %v9994_v46 = vld [vmem:[#allocation3 + $0x18] ss:$12 sps:$4 sm:$0xff]  }
  0xe2   :  { %1946 = vmatmul.mubr.bf16.gmra.mrb[36].mxu1 %v9946_v53  ;;  %2139 = vmatprep.subr.bf16.mxu0 %v9167_v12  ;;  %v10023_v12 = vld [vmem:[#allocation3 + $0x60] ss:$12 sps:$4 sm:$0xff]  }
  0xe3   :  { %2247 = vmatpush1.bf16.msra.mxu1 %v9028_v48  ;;  %1955 = vmatprep.mubr.bf16.mxu1 %v12403_v0  ;;  %v9106_v48 = vld [vmem:[#allocation6 + $0x570] ss:$36 sps:$4 sm:$0xff]  }
  0xe4   :  { %2248 = vmatprep.subr.bf16.mxu1 %v9033_v49  ;;  %v9114_v49 = vld [vmem:[#allocation6 + $0x5bc] ss:$36 sps:$4 sm:$0xff]  }
  0xe5   :  { %2140 = vmatpush1.bf16.msra.mxu0 %v9165_v13  ;;  %v10026_v13 = vld [vmem:[#allocation3 + $0x7c] ss:$12 sps:$4 sm:$0xff]  }
  0xe6   :  { %2141 = vmatprep.subr.bf16.mxu0 %v9170_v16 }
  0xe7   :  { %2249 = vmatpush1.bf16.msra.mxu1 %v9031_v51  ;;  %v10000_v51 = vld [vmem:[#allocation3 + $0x8] ss:$12 sps:$4 sm:$0xff]  }
  0xe8   :  { %2250 = vmatprep.subr.bf16.mxu1 %v9036_v35  ;;  %2079 = vmatmul.mubr.bf16.gmra.mrb[44].mxu0 %v9896_v29  ;;  %v9060_v29 = vld [vmem:[#allocation6 + $0x37c] ss:$36 sps:$4 sm:$0xff]   ;;  %v9120_v35 = vld [vmem:[#allocation6 + $0x604] ss:$36 sps:$4 sm:$0xff]  }
  0xe9   :  { %2088 = vmatprep.mubr.bf16.mxu0 %v9900_v32  ;;  %2142 = vmatpush1.bf16.msra.mxu0 %v9168_v19  ;;  %v9058_v32 = vld [vmem:[#allocation6 + $0x378] ss:$36 sps:$4 sm:$0xff]  }
  0xea   :  { %1956 = vmatmul.mubr.bf16.gmra.mrb[40].mxu1 %v9952_v1  ;;  %2143 = vmatprep.subr.bf16.mxu0 %v9173_v56  ;;  %v10042_v56 = vld [vmem:[#allocation3 + $0x94] ss:$12 sps:$4 sm:$0xff]  }
  0xeb   :  { %2251 = vmatpush1.bf16.msra.mxu1 %v9034_v57  ;;  %1965 = vmatprep.mubr.bf16.mxu1 %v12403_v0  ;;  %v10007_v57 = vld [vmem:[#allocation3 + $0x4c] ss:$12 sps:$4 sm:$0xff]  }
  0xec   :  { %2252 = vmatprep.subr.bf16.mxu1 %v9039_v59  ;;  %v9126_v59 = vld [vmem:[#allocation6 + $0x64c] ss:$36 sps:$4 sm:$0xff]  }
  0xed   :  { %2144 = vmatpush1.bf16.msra.mxu0 %v9171_v20 }
  0xef   :  { %2253 = vmatpush1.bf16.msra.mxu1 %v9037_v61 }
  0xf0   :  { %2254 = vmatprep.subr.bf16.mxu1 %v9042_v2  ;;  %2089 = vmatmul.mubr.bf16.gmra.mrb[48].mxu0 %v9906_v37  ;;  %v9064_v37 = vld [vmem:[#allocation6 + $0x408] ss:$36 sps:$4 sm:$0xff]  }
  0xf1   :  { %2098 = vmatprep.mubr.bf16.mxu0 %v9908_v38  ;;  %v9069_v38 = vld [vmem:[#allocation6 + $0x454] ss:$36 sps:$4 sm:$0xff]   ;;  %v9124_v2 = vld [vmem:[#allocation6 + $0x648] ss:$36 sps:$4 sm:$0xff]  }
  0xf2   :  { %1966 = vmatmul.mubr.bf16.gmra.mrb[44].mxu1 %v9958_v9 }
  0xf3   :  { %2255 = vmatpush1.bf16.msra.mxu1 %v9040_v11  ;;  %1975 = vmatprep.mubr.bf16.mxu1 %v12403_v0  ;;  %v9132_v11 = vld [vmem:[#allocation6 + $0x694] ss:$36 sps:$4 sm:$0xff]  }
  0xf4   :  { %2256 = vmatprep.subr.bf16.mxu1 %v9045_v4  ;;  %v10015_v4 = vld [vmem:[#allocation3 + $0x64] ss:$12 sps:$4 sm:$0xff]  }
  0xf7   :  { %2257 = vmatpush1.bf16.msra.mxu1 %v9043_v6  ;;  %v10018_v6 = vld [vmem:[#allocation6 + $0x4a0] ss:$36 sps:$4 sm:$0xff]  }
  0xf8   :  { %2258 = vmatprep.subr.bf16.mxu1 %v9048_v10  ;;  %2099 = vmatmul.mubr.bf16.gmra.mrb[52].mxu0 %v9914_v43  ;;  %v9088_v43 = vld [vmem:[#allocation6 + $0x498] ss:$36 sps:$4 sm:$0xff]  }
  0xf9   :  { %2108 = vmatprep.mubr.bf16.mxu0 %v9916_v44  ;;  %v9096_v44 = vld [vmem:[#allocation6 + $0x4e4] ss:$36 sps:$4 sm:$0xff]  }
  0xfa   :  { %1976 = vmatmul.mubr.bf16.gmra.mrb[48].mxu1 %v9964_v17 }
  0xfb   :  { %2259 = vmatpush1.bf16.msra.mxu1 %v9046_v18  ;;  %1985 = vmatprep.mubr.bf16.mxu1 %v12403_v0 }
  0xfc   :  { %2260 = vmatprep.subr.bf16.mxu1 %v9051_v14 }
  0xff   :  { %2261 = vmatpush1.bf16.msra.mxu1 %v9049_v22 }
 0x100   :  { %2262 = vmatprep.subr.bf16.mxu1 %v9054_v25  ;;  %2109 = vmatmul.mubr.bf16.gmra.mrb[56].mxu0 %v9922_v50  ;;  %v10039_v25 = vld [vmem:[#allocation3 + $0x78] ss:$12 sps:$4 sm:$0xff]  }
 0x101   :  { %2118 = vmatprep.mubr.bf16.mxu0 %v9924_v54 }
 0x102   :  { %1986 = vmatmul.mubr.bf16.gmra.mrb[52].mxu1 %v9970_v26 }
 0x103   :  { %2263 = vmatpush1.bf16.msra.mxu1 %v9052_v21  ;;  %1995 = vmatprep.mubr.bf16.mxu1 %v12403_v0 }
 0x104   :  { %2264 = vmatprep.subr.bf16.mxu1 %v9057_v24 }
 0x107   :  { %2265 = vmatpush1.bf16.msra.mxu1 %v9055_v27 }
 0x108   :  { %2266 = vmatprep.subr.bf16.mxu1 %v9060_v29  ;;  %2119 = vmatmul.mubr.bf16.gmra.mrb[60].mxu0 %v9930_v62 }
 0x109   :  { %2161 = vmatprep.mubr.bf16.mxu0 %v12403_v0 }
 0x10a   :  { %1996 = vmatmul.mubr.bf16.gmra.mrb[56].mxu1 %v9888_v23  ;;  %v9090_v23 = vld [vmem:[#allocation6 + $0x49c] ss:$36 sps:$4 sm:$0xff]  }
 0x10b   :  { %2267 = vmatpush1.bf16.msra.mxu1 %v9058_v32  ;;  %2005 = vmatprep.mubr.bf16.mxu1 %v12403_v0 }
 0x10c   :  { %2268 = vmatprep.subr.bf16.mxu1 %v9063_v28 }
 0x10f   :  { %2269 = vmatpush1.bf16.msra.mxu1 %v9061_v31 }
 0x110   :  { %2270 = vmatprep.subr.bf16.mxu1 %v9066_v33  ;;  %2162 = vmatmul.mubr.bf16.vlgmr.msra.gmra.mrb[32].mxu0 %v10000_v51 }
 0x111   :  { %2171 = vmatprep.mubr.bf16.mxu0 %v12403_v0 }
 0x112   :  { %2006 = vmatmul.mubr.bf16.gmra.mrb[60].mxu1 %v9898_v30  ;;  %v9989_v30 = vld [vmem:[#allocation3 + $0x1c] ss:$12 sps:$4 sm:$0xff]  }
 0x113   :  { %2271 = vmatpush1.bf16.msra.mxu1 %v9064_v37  ;;  %2274 = vmatprep.mubr.bf16.mxu1 %v9981_v36 }
 0x114   :  { %2272 = vmatprep.subr.bf16.mxu1 %v9069_v38 }
 0x117   :  { %2273 = vmatpush1.bf16.msra.mxu1 %v9067_v34 }
 0x118   :  { %2355 = vmatprep.subr.bf16.mxu1 %v9090_v23  ;;  %2172 = vmatmul.mubr.bf16.gmra.mrb[36].mxu0 %v9946_v53 }
 0x119   :  { %2181 = vmatprep.mubr.bf16.mxu0 %v12403_v0 }
 0x11a   :  { %2275 = vmatmul.mubr.bf16.vlgmr.msra.gmra.mrb[64].mxu1 %v9986_v39 }
 0x11b   :  { %2284 = vmatprep.mubr.bf16.mxu1 %v9989_v30  ;;  %2356 = vmatpush1.bf16.msra.mxu1 %v9088_v43 }
 0x11c   :  { %2357 = vmatprep.subr.bf16.mxu1 %v9096_v44 }
 0x11f   :  { %2358 = vmatpush1.bf16.msra.mxu1 %v9094_v40 }
 0x120   :  { %2359 = vmatprep.subr.bf16.mxu1 %v9102_v41  ;;  %2182 = vmatmul.mubr.bf16.gmra.mrb[40].mxu0 %v9952_v1  ;;  %v10073_v41 = vld [vmem:[#allocation3 + $0x98] ss:$12 sps:$4 sm:$0xff]  }
 0x121   :  { %2191 = vmatprep.mubr.bf16.mxu0 %v12403_v0 }
 0x122   :  { %2285 = vmatmul.mubr.bf16.gmra.mrb[68].mxu1 %v9994_v46 }
 0x123   :  { %2294 = vmatprep.mubr.bf16.mxu1 %v9997_v47  ;;  %2360 = vmatpush1.bf16.msra.mxu1 %v9100_v42 }
 0x124   :  { %2361 = vmatprep.subr.bf16.mxu1 %v9108_v45 }
 0x127   :  { %2362 = vmatpush1.bf16.msra.mxu1 %v9106_v48 }
 0x128   :  { %2363 = vmatprep.subr.bf16.mxu1 %v9114_v49  ;;  %2192 = vmatmul.mubr.bf16.gmra.mrb[44].mxu0 %v9958_v9 }
 0x129   :  { %2201 = vmatprep.mubr.bf16.mxu0 %v12403_v0 }
 0x12a   :  { %2295 = vmatmul.mubr.bf16.gmra.mrb[72].mxu1 %v10004_v55 }
 0x12b   :  { %2304 = vmatprep.mubr.bf16.mxu1 %v10007_v57  ;;  %2364 = vmatpush1.bf16.msra.mxu1 %v9112_v52 }
 0x12c   :  { %2365 = vmatprep.subr.bf16.mxu1 %v9120_v35 }
 0x12d   :  { %v1711_v60 = vpop.f32.mrb[0].mxu1 }
 0x12e   :  { %v1713_v61 = vpop.f32.mrb[1].mxu1 }
 0x12f   :  { %v1715_v63 = vpop.f32.mrb[2].mxu1  ;;  %2366 = vmatpush1.bf16.msra.mxu1 %v9118_v58 }
 0x130   :  { %v1717_v8 = vpop.f32.mrb[3].mxu1  ;;  %2367 = vmatprep.subr.bf16.mxu1 %v9126_v59  ;;  %2202 = vmatmul.mubr.bf16.gmra.mrb[48].mxu0 %v9964_v17 }
 0x131   :  { %2211 = vmatprep.mubr.bf16.mxu0 %v12403_v0 }
 0x132   :  { %2305 = vmatmul.mubr.bf16.gmra.mrb[76].mxu1 %v10012_v3 }
 0x133   :  { %2314 = vmatprep.mubr.bf16.mxu1 %v10015_v4  ;;  %2368 = vmatpush1.bf16.msra.mxu1 %v9124_v2  ;;  %v9174_v2 = vld [vmem:[#allocation6 + $0x260] ss:$36 sps:$4 sm:$0xff]  }
 0x134   :  { %2369 = vmatprep.subr.bf16.mxu1 %v9132_v11  ;;  %v9175_v11 = vld [vmem:[#allocation6 + $0x20] ss:$36 sps:$4 sm:$0xff]   ;;  %7794 = vmatprep.subr.bf16.mxu0 %v9174_v2 }
 0x135   :  { %v1721_v7 = vpop.f32.mrb[4].mxu1  ;;  %7795 = vmatpush3.bf16.msra.mxu0 %v9175_v11 }
 0x136   :  { %v1723_v10 = vpop.f32.mrb[5].mxu1 }
 0x137   :  { %v1725_v15 = vpop.f32.mrb[6].mxu1  ;;  %2370 = vmatpush1.bf16.msra.mxu1 %v9130_v5 }
 0x138   :  { %v1727_v18 = vpop.f32.mrb[7].mxu1  ;;  %8146 = vmatprep.subr.bf16.mxu1 %v10018_v6  ;;  %2212 = vmatmul.mubr.bf16.gmra.mrb[52].mxu0 %v9970_v26 }
 0x139   :  { %2221 = vmatprep.mubr.bf16.mxu0 %v12403_v0 }
 0x13a   :  { %2315 = vmatmul.mubr.bf16.gmra.mrb[80].mxu1 %v10023_v12 }
 0x13b   :  { %2324 = vmatprep.mubr.bf16.mxu1 %v10026_v13 }
 0x13d   :  { %v10030_v14 = vpop.f32.mrb[8].mxu1 }
 0x13e   :  { %v10033_v16 = vpop.f32.mrb[9].mxu1 }
 0x13f   :  { %v10035_v19 = vpop.f32.mrb[10].mxu1 }
 0x140   :  { %v10037_v22 = vpop.f32.mrb[11].mxu1  ;;  %2222 = vmatmul.mubr.bf16.gmra.mrb[56].mxu0 %v10073_v41 }
 0x141   :  { %2231 = vmatprep.mubr.bf16.mxu0 %v12403_v0 }
 0x142   :  { %2325 = vmatmul.mubr.bf16.gmra.mrb[84].mxu1 %v10039_v25 }
 0x143   :  { %2334 = vmatprep.mubr.bf16.mxu1 %v10042_v56 }
 0x145   :  { %v10046_v20 = vpop.f32.mrb[12].mxu1 }
 0x146   :  { %v10049_v21 = vpop.f32.mrb[13].mxu1 }
 0x147   :  { %v10051_v24 = vpop.f32.mrb[14].mxu1 }
 0x148   :  { %v10053_v27 = vpop.f32.mrb[15].mxu1 }
 0x14a   :  { %2335 = vmatmul.mubr.bf16.gmra.mrb[88].mxu1 %v9922_v50 }
 0x14b   :  { %2344 = vmatprep.mubr.bf16.mxu1 %v9924_v54 }
 0x14c   :  { %v1598_v29 = vpop.f32.mrb[0].mxu0 }
 0x14d   :  { %v10058_v32 = vpop.f32.mrb[16].mxu1  ;;  %v1712_v28 = vadd.f32 %v1711_v60, %v1598_v29  ;;  %v1600_v31 = vpop.f32.mrb[1].mxu0 }
 0x14e   :  { %v10061_v33 = vpop.f32.mrb[17].mxu1  ;;  %v1714_v37 = vadd.f32 %v1713_v61, %v1600_v31  ;;  %v1602_v38 = vpop.f32.mrb[2].mxu0  ;;  %v9177_v31 = vld [vmem:[#allocation6 + $0x68] ss:$36 sps:$4 sm:$0xff]  }
 0x14f   :  { %v10063_v34 = vpop.f32.mrb[18].mxu1  ;;  %v1716_v23 = vadd.f32 %v1715_v63, %v1602_v38  ;;  %v1604_v43 = vpop.f32.mrb[3].mxu0  ;;  %v9143_v63 = vld [vmem:[#allocation6 + $0x4e8] ss:$36 sps:$4 sm:$0xff]  }
 0x150   :  { %v10065_v50 = vpop.f32.mrb[19].mxu1  ;;  %v1718_v54 = vadd.f32 %v1717_v8, %v1604_v43 }
 0x151   :  { %v10067_v44 = vpack.c.bf16 %v1716_v23, %v1712_v28 }
 0x152   :  { %2345 = vmatmul.mubr.bf16.gmra.mrb[92].mxu1 %v9930_v62  ;;  %v10070_v40 = vpack.c.bf16 %v1718_v54, %v1714_v37 }
 0x153   :  { %2387 = vmatprep.mubr.bf16.mxu1 %v12403_v0 }
 0x154   :  { %v1608_v42 = vpop.f32.mrb[4].mxu0 }
 0x155   :  { %v10076_v45 = vpop.f32.mrb[20].mxu1  ;;  %v1722_v48 = vadd.f32 %v1721_v7, %v1608_v42  ;;  %v1610_v49 = vpop.f32.mrb[5].mxu0 }
 0x156   :  { %v10079_v52 = vpop.f32.mrb[21].mxu1  ;;  %v1724_v35 = vadd.f32 %v1723_v10, %v1610_v49  ;;  %v1612_v58 = vpop.f32.mrb[6].mxu0  ;;  %v9144_v10 = vld [vmem:[#allocation6 + $0x530] ss:$36 sps:$4 sm:$0xff]  }
 0x157   :  { %v10081_v62 = vpop.f32.mrb[22].mxu1  ;;  %v1726_v59 = vadd.f32 %v1725_v15, %v1612_v58  ;;  %v1614_v60 = vpop.f32.mrb[7].mxu0  ;;  %v9176_v15 = vld [vmem:[#allocation6 + $0x2a8] ss:$36 sps:$4 sm:$0xff]  }
 0x158   :  { %v10083_v61 = vpop.f32.mrb[23].mxu1  ;;  %v1728_v8 = vadd.f32 %v1727_v18, %v1614_v60  ;;  %v10094_v18 = vld [vmem:[#allocation3 + $0xb0] ss:$12 sps:$4 sm:$0xff]   ;;  %7796 = vmatprep.subr.bf16.mxu0 %v9176_v15 }
 0x159   :  { %v10085_v5 = vpack.c.bf16 %v1726_v59, %v1722_v48  ;;  %2232 = vmatmul.mubr.bf16.gmra.mrb[60].mxu0 %v10094_v18  ;;  %v9179_v59 = vld [vmem:[#allocation6 + $0xb0] ss:$36 sps:$4 sm:$0xff]  }
 0x15a   :  { %2388 = vmatmul.mubr.bf16.vlgmr.msra.gmra.mrb[64].mxu1 %v10000_v51  ;;  %v10088_v7 = vpack.c.bf16 %v1728_v8, %v1724_v35  ;;  %2500 = vmatprep.mubr.bf16.mxu0 %v9981_v36  ;;  %v9148_v35 = vld [vmem:[#allocation6 + $0x578] ss:$36 sps:$4 sm:$0xff]  }
 0x15b   :  { %2397 = vmatprep.mubr.bf16.mxu1 %v12403_v0  ;;  %8147 = vmatpush3.bf16.msra.mxu1 %v10018_v6  ;;  %v9181_v8 = vld [vmem:[#allocation6 + $0xf8] ss:$36 sps:$4 sm:$0xff]  }
 0x15c   :  { %8148 = vmatprep.subr.bf16.mxu1 %v9143_v63  ;;  %v1618_v29 = vpop.f32.mrb[8].mxu0  ;;  %7797 = vmatpush3.bf16.msra.mxu0 %v9177_v31 }
 0x15d   :  { %v10092_v28 = vpop.f32.mrb[24].mxu1  ;;  %v1732_v37 = vadd.f32 %v10030_v14, %v1618_v29  ;;  %v1620_v38 = vpop.f32.mrb[9].mxu0  ;;  %v9178_v14 = vld [vmem:[#allocation6 + $0x2f0] ss:$36 sps:$4 sm:$0xff]  }
 0x15e   :  { %v10098_v23 = vpop.f32.mrb[25].mxu1  ;;  %v1734_v6 = vadd.f32 %v10033_v16, %v1620_v38  ;;  %v1622_v43 = vpop.f32.mrb[10].mxu0  ;;  %7798 = vmatprep.subr.bf16.mxu0 %v9178_v14  ;;  %v9152_v16 = vld [vmem:[#allocation6 + $0x5c0] ss:$36 sps:$4 sm:$0xff]   ;;  %v9184_v14 = vld [vmem:[#allocation6 + $0x3c8] ss:$36 sps:$4 sm:$0xff]  }
 0x15f   :  { %v10102_v54 = vpop.f32.mrb[26].mxu1  ;;  %8149 = vmatpush3.bf16.msra.mxu1 %v9143_v63  ;;  %v1736_v42 = vadd.f32 %v10035_v19, %v1622_v43  ;;  %v1624_v48 = vpop.f32.mrb[11].mxu0  ;;  %v9180_v19 = vld [vmem:[#allocation6 + $0x338] ss:$36 sps:$4 sm:$0xff]   ;;  %v9156_v43 = vld [vmem:[#allocation6 + $0x608] ss:$36 sps:$4 sm:$0xff]  }
 0x160   :  { %v10105_v49 = vpop.f32.mrb[27].mxu1  ;;  %8150 = vmatprep.subr.bf16.mxu1 %v9144_v10  ;;  %v1738_v58 = vadd.f32 %v10037_v22, %v1624_v48  ;;  %7799 = vmatpush3.bf16.msra.mxu0 %v9179_v59  ;;  %v9183_v48 = vld [vmem:[#allocation6 + $0x140] ss:$36 sps:$4 sm:$0xff]  }
 0x161   :  { %v10108_v60 = vpack.c.bf16 %v1736_v42, %v1732_v37  ;;  %7800 = vmatprep.subr.bf16.mxu0 %v9180_v19  ;;  %v9182_v42 = vld [vmem:[#allocation6 + $0x380] ss:$36 sps:$4 sm:$0xff]   ;;  %v9186_v19 = vld [vmem:[#allocation6 + $0x410] ss:$36 sps:$4 sm:$0xff]  }
 0x162   :  { %2398 = vmatmul.mubr.bf16.gmra.mrb[68].mxu1 %v9946_v53  ;;  %v10111_v36 = vpack.c.bf16 %v1738_v58, %v1734_v6 }
 0x163   :  { %2407 = vmatprep.mubr.bf16.mxu1 %v12403_v0  ;;  %8151 = vmatpush3.bf16.msra.mxu1 %v9144_v10 }
 0x164   :  { %8152 = vmatprep.subr.bf16.mxu1 %v9148_v35  ;;  %v1628_v63 = vpop.f32.mrb[12].mxu0  ;;  %7801 = vmatpush3.bf16.msra.mxu0 %v9181_v8 }
 0x165   :  { %v10114_v2 = vpop.f32.mrb[28].mxu1  ;;  %v1742_v22 = vadd.f32 %v10046_v20, %v1628_v63  ;;  %v1630_v11 = vpop.f32.mrb[13].mxu0  ;;  %7802 = vmatprep.subr.bf16.mxu0 %v9182_v42 }
 0x166   :  { %v10117_v15 = vpop.f32.mrb[29].mxu1  ;;  %v1744_v29 = vadd.f32 %v10049_v21, %v1630_v11  ;;  %v1632_v31 = vpop.f32.mrb[14].mxu0 }
 0x167   :  { %v10120_v37 = vpop.f32.mrb[30].mxu1  ;;  %8153 = vmatpush3.bf16.msra.mxu1 %v9148_v35  ;;  %v1746_v10 = vadd.f32 %v10051_v24, %v1632_v31  ;;  %v1634_v38 = vpop.f32.mrb[15].mxu0  ;;  %v9160_v24 = vld [vmem:[#allocation6 + $0x650] ss:$36 sps:$4 sm:$0xff]   ;;  %v9185_v35 = vld [vmem:[#allocation6 + $0x188] ss:$36 sps:$4 sm:$0xff]  }
 0x168   :  { %v10123_v6 = vpop.f32.mrb[31].mxu1  ;;  %8154 = vmatprep.subr.bf16.mxu1 %v9152_v16  ;;  %v1748_v20 = vadd.f32 %v10053_v27, %v1634_v38  ;;  %7803 = vmatpush3.bf16.msra.mxu0 %v9183_v48  ;;  %v9164_v31 = vld [vmem:[#allocation6 + $0x698] ss:$36 sps:$4 sm:$0xff]  }
 0x169   :  { %v10126_v58 = vpack.c.bf16 %v1746_v10, %v1742_v22  ;;  %7804 = vmatprep.subr.bf16.mxu0 %v9184_v14  ;;  %v9188_v38 = vld [vmem:[#allocation6 + $0x458] ss:$36 sps:$4 sm:$0xff]  }
 0x16a   :  { %2408 = vmatmul.mubr.bf16.gmra.mrb[72].mxu1 %v9952_v1  ;;  %v10129_v21 = vpack.c.bf16 %v1748_v20, %v1744_v29 }
 0x16b   :  { %2417 = vmatprep.mubr.bf16.mxu1 %v12403_v0  ;;  %8155 = vmatpush3.bf16.msra.mxu1 %v9152_v16  ;;  %v9187_v16 = vld [vmem:[#allocation6 + $0x1d0] ss:$36 sps:$4 sm:$0xff]  }
 0x16c   :  { %8156 = vmatprep.subr.bf16.mxu1 %v9156_v43  ;;  %v1638_v59 = vpop.f32.mrb[16].mxu0  ;;  %7805 = vmatpush3.bf16.msra.mxu0 %v9185_v35 }
 0x16d   :  { %v1752_v27 = vadd.f32 %v10058_v32, %v1638_v59  ;;  %v1640_v63 = vpop.f32.mrb[17].mxu0  ;;  %7806 = vmatprep.subr.bf16.mxu0 %v9186_v19 }
 0x16e   :  { %v1754_v8 = vadd.f32 %v10061_v33, %v1640_v63  ;;  %v1642_v22 = vpop.f32.mrb[18].mxu0  ;;  %v9189_v33 = vld [vmem:[#allocation6 + $0x218] ss:$36 sps:$4 sm:$0xff]  }
 0x16f   :  { %8157 = vmatpush3.bf16.msra.mxu1 %v9156_v43  ;;  %v1756_v11 = vadd.f32 %v10063_v34, %v1642_v22  ;;  %v1644_v29 = vpop.f32.mrb[19].mxu0 }
 0x170   :  { %8158 = vmatprep.subr.bf16.mxu1 %v9160_v24  ;;  %v1758_v10 = vadd.f32 %v10065_v50, %v1644_v29  ;;  %7807 = vmatpush3.bf16.msra.mxu0 %v9187_v16 }
 0x171   :  { %v10136_v42 = vpack.c.bf16 %v1756_v11, %v1752_v27  ;;  %7808 = vmatprep.subr.bf16.mxu0 %v9188_v38 }
 0x172   :  { %2418 = vmatmul.mubr.bf16.gmra.mrb[76].mxu1 %v9958_v9  ;;  %v10139_v32 = vpack.c.bf16 %v1758_v10, %v1754_v8 }
 0x173   :  { %12494 = vst [vmem:[#allocation13_spill] sm:$0xff] %v10136_v42  ;;  %2427 = vmatprep.mubr.bf16.mxu1 %v12403_v0  ;;  %8159 = vmatpush3.bf16.msra.mxu1 %v9160_v24 }
 0x174   :  { %12495 = vst [vmem:[#allocation14_spill] sm:$0xff] %v10139_v32  ;;  %8160 = vmatprep.subr.bf16.mxu1 %v9164_v31  ;;  %v1648_v34 = vpop.f32.mrb[20].mxu0  ;;  %7809 = vmatpush3.bf16.msra.mxu0 %v9189_v33 }
 0x175   :  { %v1762_v43 = vadd.f32 %v10076_v45, %v1648_v34  ;;  %v1650_v20 = vpop.f32.mrb[21].mxu0 }
 0x176   :  { %v1764_v50 = vadd.f32 %v10079_v52, %v1650_v20  ;;  %v1652_v48 = vpop.f32.mrb[22].mxu0 }
 0x177   :  { %8161 = vmatpush3.bf16.msra.mxu1 %v9164_v31  ;;  %v1766_v14 = vadd.f32 %v10081_v62, %v1652_v48  ;;  %v1654_v35 = vpop.f32.mrb[23].mxu0  ;;  %2501 = vmatmul.mubr.bf16.vlgmr.msra.gmra.mrb[64].mxu0 %v9986_v39 }
 0x178   :  { %v1768_v59 = vadd.f32 %v10083_v61, %v1654_v35  ;;  %2508 = vmatprep.mubr.bf16.mxu0 %v9989_v30 }
 0x179   :  { %v10146_v19 = vpack.c.bf16 %v1766_v14, %v1762_v43 }
 0x17a   :  { %2428 = vmatmul.mubr.bf16.gmra.mrb[80].mxu1 %v9964_v17  ;;  %v10149_v24 = vpack.c.bf16 %v1768_v59, %v1764_v50 }
 0x17b   :  { %12496 = vst [vmem:[#allocation15_spill] sm:$0xff] %v10146_v19  ;;  %2437 = vmatprep.mubr.bf16.mxu1 %v12403_v0 }
 0x17c   :  { %12497 = vst [vmem:[#allocation16_spill] sm:$0xff] %v10149_v24  ;;  %v1658_v45 = vpop.f32.mrb[24].mxu0 }
 0x17d   :  { %v1772_v52 = vadd.f32 %v10092_v28, %v1658_v45  ;;  %v1660_v62 = vpop.f32.mrb[25].mxu0 }
 0x17e   :  { %v1774_v27 = vadd.f32 %v10098_v23, %v1660_v62  ;;  %v1662_v63 = vpop.f32.mrb[26].mxu0 }
 0x17f   :  { %v1776_v61 = vadd.f32 %v10102_v54, %v1662_v63  ;;  %v1664_v8 = vpop.f32.mrb[27].mxu0  ;;  %2509 = vmatmul.mubr.bf16.gmra.mrb[68].mxu0 %v9994_v46  ;;  %v9691_v46 = vld [vmem:[#allocation3 + $0x90] ss:$12 sps:$4 sm:$0xff]  }
 0x180   :  { %v1778_v22 = vadd.f32 %v10105_v49, %v1664_v8  ;;  %2516 = vmatprep.mubr.bf16.mxu0 %v9997_v47 }
 0x181   :  { %v10158_v11 = vpack.c.bf16 %v1776_v61, %v1772_v52 }
 0x182   :  { %2438 = vmatmul.mubr.bf16.gmra.mrb[84].mxu1 %v9970_v26  ;;  %v10161_v29 = vpack.c.bf16 %v1778_v22, %v1774_v27 }
 0x183   :  { %12498 = vst [vmem:[#allocation17_spill] sm:$0xff] %v10158_v11  ;;  %2447 = vmatprep.mubr.bf16.mxu1 %v12403_v0 }
 0x184   :  { %12499 = vst [vmem:[#allocation18_spill] sm:$0xff] %v10161_v29  ;;  %v1668_v39 = vpop.f32.mrb[28].mxu0 }
 0x185   :  { %v1782_v30 = vadd.f32 %v10114_v2, %v1668_v39  ;;  %v1670_v28 = vpop.f32.mrb[29].mxu0 }
 0x186   :  { %v1784_v23 = vadd.f32 %v10117_v15, %v1670_v28  ;;  %v1672_v54 = vpop.f32.mrb[30].mxu0 }
 0x187   :  { %v1786_v49 = vadd.f32 %v10120_v37, %v1672_v54  ;;  %v1674_v31 = vpop.f32.mrb[31].mxu0  ;;  %2517 = vmatmul.mubr.bf16.gmra.mrb[72].mxu0 %v10004_v55 }
 0x188   :  { %v1788_v16 = vadd.f32 %v10123_v6, %v1674_v31  ;;  %2524 = vmatprep.mubr.bf16.mxu0 %v10007_v57 }
 0x189   :  { %v10170_v10 = vpack.c.bf16 %v1786_v49, %v1782_v30 }
 0x18a   :  { %2448 = vmatmul.mubr.bf16.gmra.mrb[88].mxu1 %v10073_v41  ;;  %v10173_v38 = vpack.c.bf16 %v1788_v16, %v1784_v23 }
 0x18b   :  { %12500 = vst [vmem:[#allocation19_spill] sm:$0xff] %v10170_v10  ;;  %2457 = vmatprep.mubr.bf16.mxu1 %v12403_v0 }
 0x18c   :  { %12501 = vst [vmem:[#allocation20_spill] sm:$0xff] %v10173_v38 }
 0x18f   :  { %2525 = vmatmul.mubr.bf16.gmra.mrb[76].mxu0 %v10012_v3  ;;  %v9693_v3 = vld [vmem:[#allocation3 + $0xa8] ss:$12 sps:$4 sm:$0xff]  }
 0x190   :  { %2532 = vmatprep.mubr.bf16.mxu0 %v10015_v4 }
 0x192   :  { %2458 = vmatmul.mubr.bf16.gmra.mrb[92].mxu1 %v10094_v18 }
 0x193   :  { %8162 = vmatprep.mubr.bf16.mxu1 %v10000_v51 }
 0x197   :  { %2533 = vmatmul.mubr.bf16.gmra.mrb[80].mxu0 %v10023_v12 }
 0x198   :  { %2540 = vmatprep.mubr.bf16.mxu0 %v10026_v13 }
 0x19a   :  { %8163 = vmatmul.mubr.bf16.vlgmr.msra.gmra.mrb[96].mxu1 %v9946_v53  ;;  %v9692_v53 = vld [vmem:[#allocation3 + $0xac] ss:$12 sps:$4 sm:$0xff]  }
 0x19b   :  { %8166 = vmatprep.mubr.bf16.mxu1 %v9952_v1 }
 0x19f   :  { %2541 = vmatmul.mubr.bf16.gmra.mrb[84].mxu0 %v10039_v25 }
 0x1a0   :  { %2548 = vmatprep.mubr.bf16.mxu0 %v10042_v56 }
 0x1a2   :  { %8167 = vmatmul.mubr.bf16.gmra.mrb[100].mxu1 %v9958_v9 }
 0x1a3   :  { %8170 = vmatprep.mubr.bf16.mxu1 %v9964_v17 }
 0x1a7   :  { %2549 = vmatmul.mubr.bf16.gmra.mrb[88].mxu0 %v9691_v46 }
 0x1a8   :  { %2556 = vmatprep.mubr.bf16.mxu0 %v9692_v53 }
 0x1aa   :  { %8171 = vmatmul.mubr.bf16.gmra.mrb[104].mxu1 %v9970_v26 }
 0x1ab   :  { %8174 = vmatprep.mubr.bf16.mxu1 %v10073_v41 }
 0x1ad   :  { %v1937_v1 = vpop.f32.mrb[32].mxu1 }
 0x1ae   :  { %v1939_v47 = vpop.f32.mrb[33].mxu1 }
 0x1af   :  { %v1941_v51 = vpop.f32.mrb[34].mxu1  ;;  %2557 = vmatmul.mubr.bf16.gmra.mrb[92].mxu0 %v9693_v3 }
 0x1b0   :  { %v10192_v55 = vpack.c.bf16 %v1941_v51, %v1937_v1  ;;  %v1943_v9 = vpop.f32.mrb[35].mxu1 }
 0x1b1   :  { %v2686_v17 = vpack.c.bf16 %v1943_v9, %v1939_v47 }
 0x1b2   :  { %8175 = vmatmul.mubr.bf16.gmra.mrb[108].mxu1 %v10094_v18 }
 0x1b3   :  { %3044 = vrot.lane.b32.xlu0 %v2686_v17, %s9796_s2  ;;  %8786 = vmatprep.subr.msk.bf16.mxu1 %vm2753_vm0, %v2686_v17  ;;  %v2767_v26 = vsel %vm2753_vm0, %v2686_v17, 0 }
 0x1b4   :  { %8186 = vmatprep.mubr.msk.bf16.mxu1 %vm2753_vm0, %v10067_v44  ;;  %8179 = vmatpush3.bf16.xpose.msra.mxu1 %v2767_v26 }
 0x1b5   :  { %v1947_v57 = vpop.f32.mrb[36].mxu1 }
 0x1b6   :  { %v1949_v4 = vpop.f32.mrb[37].mxu1 }
 0x1b7   :  { %v1951_v12 = vpop.f32.mrb[38].mxu1 }
 0x1b8   :  { %v10200_v13 = vpack.c.bf16 %v1951_v12, %v1947_v57  ;;  %v1953_v25 = vpop.f32.mrb[39].mxu1 }
 0x1b9   :  { %v2689_v56 = vpack.c.bf16 %v1953_v25, %v1949_v4 }
 0x1bb   :  { %3046 = vrot.lane.b32.xlu0 %v2689_v56, %s9796_s2  ;;  %8787 = vmatprep.subr.msk.bf16.mxu1 %vm2753_vm0, %v2689_v56  ;;  %v2770_v41 = vsel %vm2753_vm0, %v2689_v56, 0 }
 0x1bc   :  { %8181 = vmatpush3.bf16.xpose.msra.mxu1 %v2770_v41 }
 0x1bd   :  { %v1957_v18 = vpop.f32.mrb[40].mxu1 }
 0x1be   :  { %v1959_v2 = vpop.f32.mrb[41].mxu1 }
 0x1bf   :  { %v1961_v15 = vpop.f32.mrb[42].mxu1  ;;  %3032 = vrot.lane.b32.xlu0 %v10067_v44, %s9796_s2 }
 0x1c0   :  { %v10207_v37 = vpack.c.bf16 %v1961_v15, %v1957_v18  ;;  %v1963_v6 = vpop.f32.mrb[43].mxu1 }
 0x1c1   :  { %v2692_v33 = vpack.c.bf16 %v1963_v6, %v1959_v2 }
 0x1c3   :  { %3048 = vrot.lane.b32.xlu1 %v2692_v33, %s9796_s2  ;;  %8788 = vmatprep.subr.msk.bf16.mxu1 %vm2753_vm0, %v2692_v33  ;;  %v2773_v34 = vsel %vm2753_vm0, %v2692_v33, 0 }
 0x1c4   :  { %3036 = vrot.lane.b32.xlu0 %v10108_v60, %s9796_s2  ;;  %8183 = vmatpush3.bf16.xpose.msra.mxu1 %v2773_v34 }
 0x1c5   :  { %v1967_v43 = vpop.f32.mrb[44].mxu1 }
 0x1c6   :  { %v1969_v20 = vpop.f32.mrb[45].mxu1 }
 0x1c7   :  { %v1971_v50 = vpop.f32.mrb[46].mxu1 }
 0x1c8   :  { %v10214_v48 = vpack.c.bf16 %v1971_v50, %v1967_v43  ;;  %v1973_v44 = vpop.f32.mrb[47].mxu1 }
 0x1c9   :  { %v2695_v14 = vpack.c.bf16 %v1973_v44, %v1969_v20 }
 0x1cb   :  { %3050 = vrot.lane.b32.xlu1 %v2695_v14, %s9796_s2  ;;  %8789 = vmatprep.subr.msk.bf16.mxu1 %vm2753_vm0, %v2695_v14  ;;  %v2776_v35 = vsel %vm2753_vm0, %v2695_v14, 0 }
 0x1cc   :  { %8185 = vmatpush3.bf16.xpose.msra.mxu1 %v2776_v35 }
 0x1cd   :  { %v1977_v59 = vpop.f32.mrb[48].mxu1 }
 0x1ce   :  { %v1979_v45 = vpop.f32.mrb[49].mxu1 }
 0x1cf   :  { %v1981_v52 = vpop.f32.mrb[50].mxu1  ;;  %3034 = vrot.lane.b32.xlu1 %v10085_v5, %s9796_s2 }
 0x1d0   :  { %v10221_v62 = vpack.c.bf16 %v1981_v52, %v1977_v59  ;;  %v1983_v27 = vpop.f32.mrb[51].mxu1 }
 0x1d1   :  { %v10223_v63 = vpack.c.bf16 %v1983_v27, %v1979_v45 }
 0x1d2   :  { %12502 = vst [vmem:[#allocation21_spill] sm:$0xff] %v10221_v62 }
 0x1d3   :  { %12503 = vst [vmem:[#allocation22_spill] sm:$0xff] %v10223_v63  ;;  %8187 = vmatmul.mubr.msk.bf16.vlgmr.msra.gmra.mrb[112].mxu1 %vm2753_vm0, %v10085_v5  ;;  %3038 = vrot.lane.b32.xlu1 %v10126_v58, %s9796_s2 }
 0x1d4   :  { %8190 = vmatprep.mubr.msk.bf16.mxu1 %vm2753_vm0, %v10108_v60 }
 0x1d5   :  { %v1987_v61 = vpop.f32.mrb[52].mxu1 }
 0x1d6   :  { %v1989_v8 = vpop.f32.mrb[53].mxu1 }
 0x1d7   :  { %v1991_v22 = vpop.f32.mrb[54].mxu1 }
 0x1d8   :  { %v10231_v39 = vpack.c.bf16 %v1991_v22, %v1987_v61  ;;  %v1993_v30 = vpop.f32.mrb[55].mxu1 }
 0x1d9   :  { %v10233_v28 = vpack.c.bf16 %v1993_v30, %v1989_v8 }
 0x1da   :  { %12504 = vst [vmem:[#allocation23_spill] sm:$0xff] %v10231_v39 }
 0x1db   :  { %12505 = vst [vmem:[#allocation24_spill] sm:$0xff] %v10233_v28  ;;  %8191 = vmatmul.mubr.msk.bf16.gmra.mrb[116].mxu1 %vm2753_vm0, %v10126_v58 }
 0x1dd   :  { %v1997_v23 = vpop.f32.mrb[56].mxu1 }
 0x1de   :  { %v1999_v54 = vpop.f32.mrb[57].mxu1 }
 0x1df   :  { %v2001_v5 = vpop.f32.mrb[58].mxu1 }
 0x1e0   :  { %v10237_v49 = vpack.c.bf16 %v2001_v5, %v1997_v23  ;;  %v2003_v31 = vpop.f32.mrb[59].mxu1 }
 0x1e1   :  { %v10239_v16 = vpack.c.bf16 %v2003_v31, %v1999_v54 }
 0x1e2   :  { %12506 = vst [vmem:[#allocation25_spill] sm:$0xff] %v10237_v49 }
 0x1e3   :  { %12507 = vst [vmem:[#allocation26_spill] sm:$0xff] %v10239_v16  ;;  %v2163_v9 = vpop.f32.mrb[32].mxu0 }
 0x1e4   :  { %v2165_v17 = vpop.f32.mrb[33].mxu0 }
 0x1e5   :  { %v2007_v60 = vpop.f32.mrb[60].mxu1  ;;  %v2167_v26 = vpop.f32.mrb[34].mxu0 }
 0x1e6   :  { %v2009_v46 = vpop.f32.mrb[61].mxu1  ;;  %v10245_v58 = vpack.c.bf16 %v2167_v26, %v2163_v9  ;;  %v2169_v57 = vpop.f32.mrb[35].mxu0 }
 0x1e7   :  { %v2011_v53 = vpop.f32.mrb[62].mxu1  ;;  %v10247_v3 = vpack.c.bf16 %v2169_v57, %v2165_v17 }
 0x1e8   :  { %v10241_v1 = vpack.c.bf16 %v2011_v53, %v2007_v60  ;;  %v2013_v47 = vpop.f32.mrb[63].mxu1 }
 0x1e9   :  { %v10243_v51 = vpack.c.bf16 %v2013_v47, %v2009_v46 }
 0x1ea   :  { %12508 = vst [vmem:[#allocation27_spill] sm:$0xff] %v10241_v1 }
 0x1eb   :  { %12509 = vst [vmem:[#allocation28_spill] sm:$0xff] %v10243_v51  ;;  %v2173_v4 = vpop.f32.mrb[36].mxu0 }
 0x1ec   :  { %v2175_v12 = vpop.f32.mrb[37].mxu0 }
 0x1ed   :  { %v2177_v25 = vpop.f32.mrb[38].mxu0 }
 0x1ee   :  { %v10249_v56 = vpack.c.bf16 %v2177_v25, %v2173_v4  ;;  %v2179_v41 = vpop.f32.mrb[39].mxu0 }
 0x1ef   :  { %v10251_v18 = vpack.c.bf16 %v2179_v41, %v2175_v12 }
 0x1f3   :  { %v2183_v2 = vpop.f32.mrb[40].mxu0 }
 0x1f4   :  { %v2185_v15 = vpop.f32.mrb[41].mxu0 }
 0x1f5   :  { %v2187_v6 = vpop.f32.mrb[42].mxu0 }
 0x1f6   :  { %v10253_v33 = vpack.c.bf16 %v2187_v6, %v2183_v2  ;;  %v2189_v34 = vpop.f32.mrb[43].mxu0 }
 0x1f7   :  { %v10255_v43 = vpack.c.bf16 %v2189_v34, %v2185_v15 }
 0x1fb   :  { %v2193_v20 = vpop.f32.mrb[44].mxu0 }
 0x1fc   :  { %v2195_v50 = vpop.f32.mrb[45].mxu0 }
 0x1fd   :  { %v2197_v44 = vpop.f32.mrb[46].mxu0 }
 0x1fe   :  { %v10257_v14 = vpack.c.bf16 %v2197_v44, %v2193_v20  ;;  %v2199_v35 = vpop.f32.mrb[47].mxu0 }
 0x1ff   :  { %v10259_v59 = vpack.c.bf16 %v2199_v35, %v2195_v50 }
 0x203   :  { %v2203_v45 = vpop.f32.mrb[48].mxu0 }
 0x204   :  { %v2205_v52 = vpop.f32.mrb[49].mxu0 }
 0x205   :  { %v2207_v27 = vpop.f32.mrb[50].mxu0 }
 0x206   :  { %v10261_v61 = vpack.c.bf16 %v2207_v27, %v2203_v45  ;;  %v2209_v8 = vpop.f32.mrb[51].mxu0 }
 0x207   :  { %v10263_v22 = vpack.c.bf16 %v2209_v8, %v2205_v52 }
 0x208   :  { %12510 = vst [vmem:[#allocation29_spill] sm:$0xff] %v10261_v61 }
 0x209   :  { %12511 = vst [vmem:[#allocation30_spill] sm:$0xff] %v10263_v22 }
 0x20b   :  { %v2213_v30 = vpop.f32.mrb[52].mxu0 }
 0x20c   :  { %v2215_v23 = vpop.f32.mrb[53].mxu0 }
 0x20d   :  { %v2217_v54 = vpop.f32.mrb[54].mxu0 }
 0x20e   :  { %v10265_v5 = vpack.c.bf16 %v2217_v54, %v2213_v30  ;;  %v2219_v31 = vpop.f32.mrb[55].mxu0 }
 0x20f   :  { %v10267_v60 = vpack.c.bf16 %v2219_v31, %v2215_v23 }
 0x210   :  { %12512 = vst [vmem:[#allocation31_spill] sm:$0xff] %v10265_v5 }
 0x211   :  { %12513 = vst [vmem:[#allocation32_spill] sm:$0xff] %v10267_v60 }
 0x213   :  { %v2223_v47 = vpop.f32.mrb[56].mxu0 }
 0x214   :  { %v2225_v9 = vpop.f32.mrb[57].mxu0 }
 0x215   :  { %v2227_v17 = vpop.f32.mrb[58].mxu0 }
 0x216   :  { %v10271_v26 = vpack.c.bf16 %v2227_v17, %v2223_v47  ;;  %v2229_v57 = vpop.f32.mrb[59].mxu0 }
 0x217   :  { %v10273_v4 = vpack.c.bf16 %v2229_v57, %v2225_v9 }
 0x218   :  { %12514 = vst [vmem:[#allocation33_spill] sm:$0xff] %v10271_v26 }
 0x219   :  { %12515 = vst [vmem:[#allocation34_spill] sm:$0xff] %v10273_v4 }
 0x225   :  { %v3045_v46 = vpop.permute.xlu0 %3044 }
 0x226   :  { %8790 = vmatprep.subr.msk.bf16.mxu0 %vm2753_vm0, %v3045_v46  ;;  %v3065_v53 = vsel %vm2753_vm0, %v3045_v46, 0 }
 0x227   :  { %8211 = vmatpush3.bf16.xpose.msra.mxu0 %v3065_v53 }
 0x22c   :  { %v2233_v20 = vpop.f32.mrb[60].mxu0 }
 0x22d   :  { %v3047_v12 = vpop.permute.xlu0 %3046  ;;  %v2389_v25 = vpop.f32.mrb[64].mxu1 }
 0x22e   :  { %8791 = vmatprep.subr.msk.bf16.mxu0 %vm2753_vm0, %v3047_v12  ;;  %v3068_v41 = vsel %vm2753_vm0, %v3047_v12, 0  ;;  %v2391_v2 = vpop.f32.mrb[65].mxu1  ;;  %v2235_v35 = vpop.f32.mrb[61].mxu0 }
 0x22f   :  { %8213 = vmatpush3.bf16.xpose.msra.mxu0 %v3068_v41  ;;  %v2393_v15 = vpop.f32.mrb[66].mxu1  ;;  %v2237_v45 = vpop.f32.mrb[62].mxu0 }
 0x230   :  { %v2710_v6 = vpack.c.bf16 %v2393_v15, %v2389_v25  ;;  %v2395_v34 = vpop.f32.mrb[67].mxu1  ;;  %v10280_v52 = vpack.c.bf16 %v2237_v45, %v2233_v20  ;;  %v2239_v27 = vpop.f32.mrb[63].mxu0 }
 0x231   :  { %v3033_v50 = vpop.permute.xlu0 %3032  ;;  %v10277_v44 = vpack.c.bf16 %v2395_v34, %v2391_v2  ;;  %v10283_v8 = vpack.c.bf16 %v2239_v27, %v2235_v35 }
 0x232   :  { %8218 = vmatprep.mubr.msk.bf16.mxu0 %vm2753_vm0, %v3033_v50  ;;  %8194 = vmatprep.subr.bf16.mxu1 %v2710_v6  ;;  %12516 = vst [vmem:[#allocation35_spill] sm:$0xff] %v10280_v52 }
 0x233   :  { %8195 = vmatpush3.bf16.msra.mxu1 %v2710_v6  ;;  %3229 = vrot.lane.b32.xlu1 %v2710_v6, %s9796_s2  ;;  %12517 = vst [vmem:[#allocation36_spill] sm:$0xff] %v10283_v8 }
 0x235   :  { %v3049_v30 = vpop.permute.xlu1 %3048  ;;  %v2399_v23 = vpop.f32.mrb[68].mxu1 }
 0x236   :  { %8792 = vmatprep.subr.msk.bf16.mxu0 %vm2753_vm0, %v3049_v30  ;;  %v3071_v54 = vsel %vm2753_vm0, %v3049_v30, 0  ;;  %v2401_v31 = vpop.f32.mrb[69].mxu1  ;;  %v3037_v50 = vpop.permute.xlu0 %3036 }
 0x237   :  { %8215 = vmatpush3.bf16.xpose.msra.mxu0 %v3071_v54  ;;  %v2403_v46 = vpop.f32.mrb[70].mxu1 }
 0x238   :  { %v10287_v53 = vpack.c.bf16 %v2403_v46, %v2399_v23  ;;  %v2405_v47 = vpop.f32.mrb[71].mxu1 }
 0x239   :  { %v10289_v9 = vpack.c.bf16 %v2405_v47, %v2401_v31 }
 0x23a   :  { %8196 = vmatprep.subr.bf16.mxu1 %v10287_v53 }
 0x23b   :  { %8197 = vmatpush3.bf16.msra.mxu1 %v10287_v53 }
 0x23d   :  { %v3051_v17 = vpop.permute.xlu1 %3050  ;;  %v2409_v57 = vpop.f32.mrb[72].mxu1 }
 0x23e   :  { %8793 = vmatprep.subr.msk.bf16.mxu0 %vm2753_vm0, %v3051_v17  ;;  %v3074_v12 = vsel %vm2753_vm0, %v3051_v17, 0  ;;  %v2411_v25 = vpop.f32.mrb[73].mxu1 }
 0x23f   :  { %8217 = vmatpush3.bf16.xpose.msra.mxu0 %v3074_v12  ;;  %v2413_v41 = vpop.f32.mrb[74].mxu1 }
 0x240   :  { %v2716_v2 = vpack.c.bf16 %v2413_v41, %v2409_v57  ;;  %v2415_v15 = vpop.f32.mrb[75].mxu1 }
 0x241   :  { %v10295_v6 = vpack.c.bf16 %v2415_v15, %v2411_v25  ;;  %v3035_v34 = vpop.permute.xlu1 %3034 }
 0x242   :  { %8198 = vmatprep.subr.bf16.mxu1 %v2716_v2  ;;  %3233 = vrot.lane.b32.xlu1 %v2716_v2, %s9796_s2 }
 0x243   :  { %8199 = vmatpush3.bf16.msra.mxu1 %v2716_v2 }
 0x245   :  { %v2419_v20 = vpop.f32.mrb[76].mxu1  ;;  %v3039_v54 = vpop.permute.xlu1 %3038 }
 0x246   :  { %8219 = vmatmul.mubr.msk.bf16.vlgmr.msra.gmra.mrb[96].mxu0 %vm2753_vm0, %v3035_v34  ;;  %v2421_v35 = vpop.f32.mrb[77].mxu1 }
 0x247   :  { %8222 = vmatprep.mubr.msk.bf16.mxu0 %vm2753_vm0, %v3037_v50  ;;  %v2423_v45 = vpop.f32.mrb[78].mxu1 }
 0x248   :  { %v10300_v27 = vpack.c.bf16 %v2423_v45, %v2419_v20  ;;  %v2425_v30 = vpop.f32.mrb[79].mxu1 }
 0x249   :  { %v10302_v23 = vpack.c.bf16 %v2425_v30, %v2421_v35 }
 0x24a   :  { %8200 = vmatprep.subr.bf16.mxu1 %v10300_v27  ;;  %v7810_v47 = vpop.f32.mrb[64].mxu0 }
 0x24b   :  { %8201 = vmatpush3.bf16.msra.mxu1 %v10300_v27  ;;  %v7811_v57 = vpop.f32.mrb[65].mxu0 }
 0x24c   :  { %8258 = vmatprep.subr.bf16.mxu1 %v10277_v44  ;;  %v7812_v41 = vadd.f32 %v7811_v57, %v7810_v47  ;;  %v7813_v2 = vpop.f32.mrb[66].mxu0 }
 0x24d   :  { %v2429_v31 = vpop.f32.mrb[80].mxu1  ;;  %v7814_v34 = vpop.f32.mrb[67].mxu0 }
 0x24e   :  { %8223 = vmatmul.mubr.msk.bf16.gmra.mrb[100].mxu0 %vm2753_vm0, %v3039_v54  ;;  %v2431_v46 = vpop.f32.mrb[81].mxu1  ;;  %v7815_v20 = vadd.f32 %v7814_v34, %v7813_v2 }
 0x24f   :  { %v2433_v17 = vpop.f32.mrb[82].mxu1 }
 0x250   :  { %v10308_v12 = vpack.c.bf16 %v2433_v17, %v2429_v31  ;;  %v2435_v25 = vpop.f32.mrb[83].mxu1 }
 0x251   :  { %v10310_v15 = vpack.c.bf16 %v2435_v25, %v2431_v46 }
 0x252   :  { %v7816_v45 = vpop.f32.mrb[68].mxu0 }
 0x253   :  { %12518 = vst [vmem:[#allocation37_spill] sm:$0xff] %v10310_v15  ;;  %v7817_v0 = vpop.f32.mrb[69].mxu0 }
 0x254   :  { %v7818_v62 = vadd.f32 %v7817_v0, %v7816_v45  ;;  %v7819_v60 = vpop.f32.mrb[70].mxu0 }
 0x255   :  { %v2439_v50 = vpop.f32.mrb[84].mxu1  ;;  %v7820_v31 = vpop.f32.mrb[71].mxu0 }
 0x256   :  { %v2441_v35 = vpop.f32.mrb[85].mxu1  ;;  %v7821_v17 = vadd.f32 %v7820_v31, %v7819_v60 }
 0x257   :  { %v2443_v30 = vpop.f32.mrb[86].mxu1 }
 0x258   :  { %v10312_v49 = vpack.c.bf16 %v2443_v30, %v2439_v50  ;;  %v2445_v54 = vpop.f32.mrb[87].mxu1 }
 0x259   :  { %v10314_v1 = vpack.c.bf16 %v2445_v54, %v2441_v35 }
 0x25a   :  { %v7822_v46 = vpop.f32.mrb[72].mxu0 }
 0x25b   :  { %12519 = vst [vmem:[#allocation38_spill] sm:$0xff] %v10314_v1  ;;  %v7823_v39 = vpop.f32.mrb[73].mxu0 }
 0x25c   :  { %v7824_v8 = vadd.f32 %v7823_v39, %v7822_v46  ;;  %v7825_v4 = vpop.f32.mrb[74].mxu0 }
 0x25d   :  { %v2449_v47 = vpop.f32.mrb[88].mxu1  ;;  %v7826_v50 = vpop.f32.mrb[75].mxu0 }
 0x25e   :  { %v2451_v57 = vpop.f32.mrb[89].mxu1  ;;  %v7827_v30 = vadd.f32 %v7826_v50, %v7825_v4 }
 0x25f   :  { %v2453_v25 = vpop.f32.mrb[90].mxu1 }
 0x260   :  { %v10316_v2 = vpack.c.bf16 %v2453_v25, %v2449_v47  ;;  %v2455_v34 = vpop.f32.mrb[91].mxu1 }
 0x261   :  { %v10318_v22 = vpack.c.bf16 %v2455_v34, %v2451_v57 }
 0x262   :  { %12520 = vst [vmem:[#allocation39_spill] sm:$0xff] %v10316_v2  ;;  %v7828_v35 = vpop.f32.mrb[76].mxu0 }
 0x263   :  { %12521 = vst [vmem:[#allocation40_spill] sm:$0xff] %v10318_v22  ;;  %v7829_v38 = vpop.f32.mrb[77].mxu0 }
 0x264   :  { %v7830_v29 = vadd.f32 %v7829_v38, %v7828_v35  ;;  %v7831_v24 = vpop.f32.mrb[78].mxu0 }
 0x265   :  { %v2459_v0 = vpop.f32.mrb[92].mxu1  ;;  %v7832_v47 = vpop.f32.mrb[79].mxu0 }
 0x266   :  { %v2461_v45 = vpop.f32.mrb[93].mxu1  ;;  %v7833_v25 = vadd.f32 %v7832_v47, %v7831_v24 }
 0x267   :  { %v2463_v54 = vpop.f32.mrb[94].mxu1 }
 0x268   :  { %v10320_v60 = vpack.c.bf16 %v2463_v54, %v2459_v0  ;;  %v2465_v31 = vpop.f32.mrb[95].mxu1 }
 0x269   :  { %v10322_v32 = vpack.c.bf16 %v2465_v31, %v2461_v45 }
 0x26a   :  { %12522 = vst [vmem:[#allocation41_spill] sm:$0xff] %v10320_v60  ;;  %v7834_v34 = vpop.f32.mrb[80].mxu0 }
 0x26b   :  { %12523 = vst [vmem:[#allocation42_spill] sm:$0xff] %v10322_v32  ;;  %v7835_v50 = vpop.f32.mrb[81].mxu0 }
 0x26c   :  { %v7836_v61 = vadd.f32 %v7835_v50, %v7834_v34  ;;  %v7837_v22 = vpop.f32.mrb[82].mxu0 }
 0x26d   :  { %v8164_v39 = vpop.f32.mrb[96].mxu1  ;;  %v7838_v54 = vpop.f32.mrb[83].mxu0 }
 0x26e   :  { %v2599_v46 = vpop.f32.mrb[97].mxu1  ;;  %v2608_v57 = vadd.f32 %v8164_v39, %v7818_v62  ;;  %v7839_v1 = vadd.f32 %v7838_v54, %v7837_v22 }
 0x26f   :  { %v8165_v52 = vpop.f32.mrb[98].mxu1  ;;  %v2600_v4 = vadd.f32 %v7812_v41, %v2599_v46 }
 0x270   :  { %v2602_v26 = vpop.f32.mrb[99].mxu1  ;;  %v2611_v5 = vadd.f32 %v8165_v52, %v7821_v17 }
 0x271   :  { %v2603_v0 = vadd.f32 %v7815_v20, %v2602_v26 }
 0x272   :  { %v10324_v38 = vpack.c.bf16 %v2611_v5, %v2608_v57  ;;  %v7840_v47 = vpop.f32.mrb[84].mxu0 }
 0x273   :  { %v10326_v45 = vpack.c.bf16 %v2603_v0, %v2600_v4  ;;  %v7841_v32 = vpop.f32.mrb[85].mxu0 }
 0x274   :  { %v7842_v15 = vadd.f32 %v7841_v32, %v7840_v47  ;;  %v7843_v52 = vpop.f32.mrb[86].mxu0 }
 0x275   :  { %v8168_v35 = vpop.f32.mrb[100].mxu1  ;;  %v7844_v34 = vpop.f32.mrb[87].mxu0 }
 0x276   :  { %v2615_v24 = vpop.f32.mrb[101].mxu1  ;;  %v2624_v31 = vadd.f32 %v8168_v35, %v7830_v29  ;;  %v7845_v26 = vadd.f32 %v7844_v34, %v7843_v52 }
 0x277   :  { %v8169_v62 = vpop.f32.mrb[102].mxu1  ;;  %v2616_v39 = vadd.f32 %v7824_v8, %v2615_v24 }
 0x278   :  { %v2618_v41 = vpop.f32.mrb[103].mxu1  ;;  %v2627_v46 = vadd.f32 %v8169_v62, %v7833_v25 }
 0x279   :  { %v2619_v17 = vadd.f32 %v7827_v30, %v2618_v41 }
 0x27a   :  { %v10328_v20 = vpack.c.bf16 %v2627_v46, %v2624_v31  ;;  %v7846_v50 = vpop.f32.mrb[88].mxu0 }
 0x27b   :  { %v10330_v22 = vpack.c.bf16 %v2619_v17, %v2616_v39  ;;  %v7847_v54 = vpop.f32.mrb[89].mxu0 }
 0x27c   :  { %v7848_v24 = vadd.f32 %v7847_v54, %v7846_v50  ;;  %v7849_v25 = vpop.f32.mrb[90].mxu0 }
 0x27d   :  { %v8172_v5 = vpop.f32.mrb[104].mxu1  ;;  %v7850_v47 = vpop.f32.mrb[91].mxu0 }
 0x27e   :  { %v2631_v57 = vpop.f32.mrb[105].mxu1  ;;  %v2640_v4 = vadd.f32 %v8172_v5, %v7842_v15  ;;  %v7851_v30 = vadd.f32 %v7850_v47, %v7849_v25 }
 0x27f   :  { %v8173_v29 = vpop.f32.mrb[106].mxu1  ;;  %v2632_v0 = vadd.f32 %v7836_v61, %v2631_v57 }
 0x280   :  { %v2634_v8 = vpop.f32.mrb[107].mxu1  ;;  %v2643_v35 = vadd.f32 %v8173_v29, %v7845_v26 }
 0x281   :  { %v2635_v32 = vadd.f32 %v7839_v1, %v2634_v8 }
 0x282   :  { %v10334_v52 = vpack.c.bf16 %v2643_v35, %v2640_v4  ;;  %v7852_v17 = vpop.f32.mrb[92].mxu0 }
 0x283   :  { %v10332_v62 = vpack.c.bf16 %v2635_v32, %v2632_v0  ;;  %v7853_v61 = vpop.f32.mrb[93].mxu0 }
 0x284   :  { %12525 = vst [vmem:[#allocation44_spill] sm:$0xff] %v10334_v52  ;;  %v7854_v5 = vadd.f32 %v7853_v61, %v7852_v17  ;;  %v7855_v57 = vpop.f32.mrb[94].mxu0 }
 0x285   :  { %12524 = vst [vmem:[#allocation43_spill] sm:$0xff] %v10332_v62  ;;  %v8176_v31 = vpop.f32.mrb[108].mxu1  ;;  %v7856_v26 = vpop.f32.mrb[95].mxu0 }
 0x286   :  { %v2647_v41 = vpop.f32.mrb[109].mxu1  ;;  %v2656_v50 = vadd.f32 %v8176_v31, %v7854_v5  ;;  %v7857_v29 = vadd.f32 %v7856_v26, %v7855_v57 }
 0x287   :  { %v8177_v39 = vpop.f32.mrb[110].mxu1  ;;  %v2648_v46 = vadd.f32 %v7848_v24, %v2647_v41  ;;  %v2734_v41 = vlaneseq }
 0x288   :  { %v2650_v15 = vpop.f32.mrb[111].mxu1  ;;  %v2659_v1 = vadd.f32 %v8177_v39, %v7857_v29 }
 0x289   :  { %v2651_v34 = vadd.f32 %v7851_v30, %v2650_v15  ;;  %v10348_v39 = vshrl.u32 %v2734_v41, 7  ;;  %v2744_v15 = vand.u32 127, %v2734_v41 }
 0x28a   :  { %v10338_v0 = vpack.c.bf16 %v2659_v1, %v2656_v50 }
 0x28b   :  { %v10336_v54 = vpack.c.bf16 %v2651_v34, %v2648_v46  ;;  %12528 = vst [vmem:[#allocation47_spill] sm:$0xff] %v10348_v39  ;;  %v2737_v46 = vadd.s32 16, %v10348_v39  ;;  %v2736_v17 = vadd.s32 8, %v10348_v39  ;;  %vm10361_vm2 = vcmp.le.s32.totalorder %v2744_v15, %v10348_v39 }
 0x28c   :  { %12527 = vst [vmem:[#allocation46_spill] sm:$0xff] %v10338_v0  ;;  %v2738_v50 = vadd.s32 24, %v10348_v39 }
 0x28d   :  { %12526 = vst [vmem:[#allocation45_spill] sm:$0xff] %v10336_v54  ;;  %vm10352_vm1 = vcmp.le.s32.totalorder %v2744_v15, %v2737_v46  ;;  %vm10368_vm3 = vcmp.le.s32.totalorder %v2744_v15, %v2736_v17 }
 0x28e   :  { %vm10382_vm4 = vcmp.le.s32.totalorder %v2744_v15, %v2738_v50 }
 0x2a5   :  { %v3230_v32 = vpop.permute.xlu1 %3229 }
 0x2a6   :  { %v8188_v8 = vpop.f32.mrb[112].mxu1  ;;  %8226 = vmatprep.subr.bf16.mxu0 %v3230_v32 }
 0x2a7   :  { %v2812_v25 = vpop.f32.mrb[113].mxu1  ;;  %8227 = vmatpush3.bf16.msra.mxu0 %v3230_v32  ;;  %v10427_v19 = vsel %vm10352_vm1, %v8188_v8, -inf }
 0x2a8   :  { %v10340_v24 = vpop.f32.mrb[114].mxu1  ;;  %v2857_v42 = vsel %vm2753_vm0, %v10427_v19, -inf }
 0x2a9   :  { %v10342_v4 = vpop.f32.mrb[115].mxu1 }
 0x2ae   :  { %v8192_v35 = vpop.f32.mrb[116].mxu1 }
 0x2af   :  { %v2828_v47 = vpop.f32.mrb[117].mxu1 }
 0x2b0   :  { %v10344_v30 = vpop.f32.mrb[118].mxu1 }
 0x2b1   :  { %v10346_v31 = vpop.f32.mrb[119].mxu1 }
 0x319   :  { %v8220_v61 = vpop.f32.mrb[96].mxu0 }
 0x31a   :  { %v10358_v5 = vsel %vm10352_vm1, %v8220_v61, -inf  ;;  %v3110_v57 = vpop.f32.mrb[97].mxu0 }
 0x31b   :  { %v8221_v29 = vpop.f32.mrb[98].mxu0  ;;  %v3155_v1 = vsel %vm2753_vm0, %v10358_v5, -inf  ;;  %v10374_v41 = vsel %vm10361_vm2, %v3110_v57, -inf }
 0x31c   :  { %3156 = vmax.xlane.f32.xlu0 %v3155_v1  ;;  %v3113_v46 = vpop.f32.mrb[99].mxu0  ;;  %v3149_v17 = vsel %vm2753_vm0, %v10374_v41, -inf  ;;  %v10390_v57 = vsel %vm10382_vm4, %v8221_v29, -inf }
 0x31d   :  { %v10378_v61 = vsel %vm10368_vm3, %v3113_v46, -inf  ;;  %v3158_v62 = vsel %vm2753_vm0, %v10390_v57, -inf }
 0x31e   :  { %v3152_v0 = vsel %vm2753_vm0, %v10378_v61, -inf }
 0x31f   :  { %3153 = vmax.xlane.f32.xlu1 %v3152_v0  ;;  %v2740_v0 = vadd.s32 40, %v10348_v39 }
 0x320   :  { %3150 = vmax.xlane.f32.xlu0 %v3149_v17  ;;  %v2739_v17 = vadd.s32 32, %v10348_v39 }
 0x321   :  { %v8224_v1 = vpop.f32.mrb[100].mxu0  ;;  %vm10399_vm5 = vcmp.le.s32.totalorder %v2744_v15, %v2740_v0 }
 0x322   :  { %v3126_v52 = vpop.f32.mrb[101].mxu0  ;;  %vm10415_vm6 = vcmp.le.s32.totalorder %v2744_v15, %v2739_v17  ;;  %v2742_v17 = vadd.s32 56, %v10348_v39 }
 0x323   :  { %v8225_v46 = vpop.f32.mrb[102].mxu0  ;;  %v10421_v11 = vsel %vm10415_vm6, %v3126_v52, -inf  ;;  %v10444_v8 = vsel %vm10415_vm6, %v2828_v47, -inf }
 0x324   :  { %3159 = vmax.xlane.f32.xlu0 %v3158_v62  ;;  %v3129_v50 = vpop.f32.mrb[103].mxu0  ;;  %vm10446_vm8 = vcmp.le.s32.totalorder %v2744_v15, %v2742_v17 }
 0x325   :  { %v10406_v10 = vsel %vm10399_vm5, %v3129_v50, -inf }
 0x326   :  { %v3164_v62 = vsel %vm2753_vm0, %v10406_v10, -inf }
 0x330   :  { %3235 = vrot.lane.b32.xlu1 %v10300_v27, %s9796_s2  ;;  %v10412_v27 = vsel %vm10361_vm2, %v2812_v25, -inf }
 0x331   :  { %v2851_v50 = vsel %vm2753_vm0, %v10412_v27, -inf }
 0x33a   :  { %3231 = vrot.lane.b32.xlu0 %v10287_v53, %s9796_s2  ;;  %v2741_v53 = vadd.s32 48, %v10348_v39 }
 0x33c   :  { %vm10429_vm7 = vcmp.le.s32.totalorder %v2744_v15, %v2741_v53 }
 0x33d   :  { %v10438_v52 = vsel %vm10429_vm7, %v8224_v1, -inf  ;;  %v10454_v1 = vsel %vm10446_vm8, %v8225_v46, -inf  ;;  %v10460_v47 = vsel %vm10429_vm7, %v8192_v35, -inf  ;;  %v10476_v35 = vsel %vm10382_vm4, %v10340_v24, -inf }
 0x33e   :  { %v3170_v15 = vsel %vm2753_vm0, %v10454_v1, -inf  ;;  %v2869_v46 = vsel %vm2753_vm0, %v10460_v47, -inf }
 0x354   :  { %3165 = vmax.xlane.f32.xlu1 %v3164_v62  ;;  %v3161_v62 = vsel %vm2753_vm0, %v10421_v11, -inf }
 0x358   :  { %2852 = vmax.xlane.f32.xlu1 %v2851_v50  ;;  %v3167_v50 = vsel %vm2753_vm0, %v10438_v52, -inf }
 0x359   :  { %3162 = vmax.xlane.f32.xlu0 %v3161_v62  ;;  %v2863_v62 = vsel %vm2753_vm0, %v10444_v8, -inf }
 0x35c   :  { %2858 = vmax.xlane.f32.xlu1 %v2857_v42  ;;  %v10467_v42 = vsel %vm10368_vm3, %v10342_v4, -inf  ;;  %v10483_v4 = vsel %vm10399_vm5, %v10346_v31, -inf }
 0x35d   :  { %3168 = vmax.xlane.f32.xlu0 %v3167_v50  ;;  %v2854_v17 = vsel %vm2753_vm0, %v10467_v42, -inf  ;;  %v2860_v50 = vsel %vm2753_vm0, %v10476_v35, -inf }
 0x360   :  { %2864 = vmax.xlane.f32.xlu1 %v2863_v62  ;;  %v2866_v62 = vsel %vm2753_vm0, %v10483_v4, -inf }
 0x361   :  { %3171 = vmax.xlane.f32.xlu0 %v3170_v15  ;;  %v10490_v15 = vsel %vm10446_vm8, %v10344_v30, -inf }
 0x362   :  { %v2872_v24 = vsel %vm2753_vm0, %v10490_v15, -inf }
 0x364   :  { %2870 = vmax.xlane.f32.xlu1 %v2869_v46  ;;  %v3234_v46 = vpop.permute.xlu1 %3233 }
 0x365   :  { %2855 = vmax.xlane.f32.xlu0 %v2854_v17 }
 0x369   :  { %2861 = vmax.xlane.f32.xlu0 %v2860_v50 }
 0x36d   :  { %2867 = vmax.xlane.f32.xlu0 %v2866_v62 }
 0x371   :  { %2873 = vmax.xlane.f32.xlu0 %v2872_v24 }
 0x3a9   :  { %v3157_v17 = vpop.xlane.xlu0 %3156 }
 0x3aa   :  { %v3175_v31 = vsub.f32 %v10358_v5, %v3157_v17 }
 0x3ac   :  { %v3154_v39 = vpop.xlane.xlu1 %3153  ;;  %v3185_v60 = vmul.f32 1.442695, %v3175_v31 }
 0x3ad   :  { %v3174_v50 = vsub.f32 %v10378_v61, %v3154_v39  ;;  %v3151_v51 = vpop.xlane.xlu0 %3150  ;;  %v3378_v61 = vsel %vm2753_vm0, %v10253_v33, 0 }
 0x3ae   :  { %v3173_v16 = vsub.f32 %v10374_v41, %v3151_v51  ;;  %v3375_v41 = vsel %vm2753_vm0, %v10249_v56, 0 }
 0x3af   :  { %v3183_v28 = vmul.f32 1.442695, %v3174_v50 }
 0x3b0   :  { %v3181_v63 = vmul.f32 1.442695, %v3173_v16  ;;  %v3236_v39 = vpop.permute.xlu1 %3235 }
 0x3b1   :  { %9286 = vpow2.f32 %v3183_v28  ;;  %v3160_v30 = vpop.xlane.xlu0 %3159 }
 0x3b2   :  { %9288 = vpow2.f32 %v3181_v63  ;;  %v3176_v62 = vsub.f32 %v10390_v57, %v3160_v30  ;;  %v3381_v57 = vsel %vm2753_vm0, %v10257_v14, 0 }
 0x3b3   :  { %9290 = vpow2.f32 %v3185_v60  ;;  %v3372_v60 = vsel %vm2753_vm0, %v10245_v58, 0 }
 0x3b4   :  { %v3187_v2 = vmul.f32 1.442695, %v3176_v62 }
 0x3b5   :  { %v3232_v24 = vpop.permute.xlu0 %3231 }
 0x3b6   :  { %9292 = vpow2.f32 %v3187_v2  ;;  %8228 = vmatprep.subr.bf16.mxu0 %v3232_v24 }
 0x3b7   :  { %8229 = vmatpush3.bf16.msra.mxu0 %v3232_v24 }
 0x3b8   :  { %8230 = vmatprep.subr.bf16.mxu0 %v3234_v46 }
 0x3bb   :  { %v10498_v5 = vpop.eup %9286  ;;  %8231 = vmatpush3.bf16.msra.mxu0 %v3234_v46 }
 0x3bc   :  { %v10500_v51 = vpop.eup %9288  ;;  %8232 = vmatprep.subr.bf16.mxu0 %v3236_v39 }
 0x3bd   :  { %v3221_v28 = vpack.c.bf16 %v10498_v5, %v10500_v51  ;;  %v10504_v63 = vpop.eup %9290 }
 0x3be   :  { %12545 = vst [vmem:[#allocation48_spill] sm:$0xff] %v10504_v63 }
 0x3bf   :  { %8233 = vmatpush3.bf16.msra.mxu0 %v3236_v39  ;;  %8234 = vmatprep.mubr.msk.bf16.mxu0 %vm2753_vm0, %v3221_v28 }
 0x3c0   :  { %v10507_v16 = vpop.eup %9292  ;;  %8794 = vmatprep.subr.msk.bf16.mxu0 %vm2753_vm0, %v10245_v58 }
 0x3c1   :  { %v3222_v2 = vpack.c.bf16 %v10507_v16, %v10504_v63 }
 0x3c3   :  { %8235 = vmatmul.mubr.msk.bf16.vlgmr.msra.gmra.mrb[104].mxu0 %vm2753_vm0, %v3222_v2 }
 0x3c8   :  { %8243 = vmatpush3.bf16.xpose.msra.mxu0 %v3372_v60 }
 0x3c9   :  { %8795 = vmatprep.subr.msk.bf16.mxu0 %vm2753_vm0, %v10249_v56 }
 0x3d0   :  { %8245 = vmatpush3.bf16.xpose.msra.mxu0 %v3375_v41 }
 0x3d1   :  { %8796 = vmatprep.subr.msk.bf16.mxu0 %vm2753_vm0, %v10253_v33 }
 0x3d8   :  { %8247 = vmatpush3.bf16.xpose.msra.mxu0 %v3378_v61 }
 0x3d9   :  { %8797 = vmatprep.subr.msk.bf16.mxu0 %vm2753_vm0, %v10257_v14 }
 0x3e0   :  { %8249 = vmatpush3.bf16.xpose.msra.mxu0 %v3381_v57 }
 0x3e1   :  { %v3166_v46 = vpop.xlane.xlu1 %3165 }
 0x3e2   :  { %v3178_v17 = vsub.f32 %v10406_v10, %v3166_v46 }
 0x3e4   :  { %v3191_v50 = vmul.f32 1.442695, %v3178_v17 }
 0x3e5   :  { %v2853_v31 = vpop.xlane.xlu1 %2852 }
 0x3e6   :  { %v3163_v30 = vpop.xlane.xlu0 %3162  ;;  %9294 = vpow2.f32 %v3191_v50  ;;  %v2875_v60 = vsub.f32 %v10412_v27, %v2853_v31 }
 0x3e7   :  { %v3177_v62 = vsub.f32 %v10421_v11, %v3163_v30 }
 0x3e8   :  { %v2883_v46 = vmul.f32 1.442695, %v2875_v60 }
 0x3e9   :  { %v3189_v24 = vmul.f32 1.442695, %v3177_v62  ;;  %v2859_v28 = vpop.xlane.xlu1 %2858 }
 0x3ea   :  { %v3169_v39 = vpop.xlane.xlu0 %3168  ;;  %v2877_v17 = vsub.f32 %v10427_v19, %v2859_v28 }
 0x3eb   :  { %9296 = vpow2.f32 %v3189_v24  ;;  %v3179_v2 = vsub.f32 %v10438_v52, %v3169_v39 }
 0x3ec   :  { %v2887_v27 = vmul.f32 1.442695, %v2877_v17 }
 0x3ed   :  { %v3193_v41 = vmul.f32 1.442695, %v3179_v2  ;;  %v2865_v63 = vpop.xlane.xlu1 %2864 }
 0x3ee   :  { %v3172_v61 = vpop.xlane.xlu0 %3171  ;;  %v2879_v31 = vsub.f32 %v10444_v8, %v2865_v63 }
 0x3ef   :  { %v3180_v57 = vsub.f32 %v10454_v1, %v3172_v61  ;;  %9298 = vpow2.f32 %v3193_v41 }
 0x3f0   :  { %v10535_v30 = vpop.eup %9294  ;;  %v2891_v28 = vmul.f32 1.442695, %v2879_v31 }
 0x3f1   :  { %v3195_v10 = vmul.f32 1.442695, %v3180_v57  ;;  %v2871_v39 = vpop.xlane.xlu1 %2870 }
 0x3f2   :  { %v2856_v11 = vpop.xlane.xlu0 %2855  ;;  %v2881_v2 = vsub.f32 %v10460_v47, %v2871_v39 }
 0x3f3   :  { %9300 = vpow2.f32 %v3195_v10  ;;  %v2876_v50 = vsub.f32 %v10467_v42, %v2856_v11 }
 0x3f4   :  { %9302 = vpow2.f32 %v2883_v46  ;;  %v2895_v57 = vmul.f32 1.442695, %v2881_v2 }
 0x3f5   :  { %v10537_v62 = vpop.eup %9296  ;;  %v2885_v52 = vmul.f32 1.442695, %v2876_v50 }
 0x3f6   :  { %v2862_v1 = vpop.xlane.xlu0 %2861  ;;  %v3223_v24 = vpack.c.bf16 %v10535_v30, %v10537_v62 }
 0x3f7   :  { %9304 = vpow2.f32 %v2885_v52  ;;  %v2878_v19 = vsub.f32 %v10476_v35, %v2862_v1 }
 0x3f8   :  { %8238 = vmatprep.mubr.msk.bf16.mxu0 %vm2753_vm0, %v3223_v24  ;;  %9306 = vpow2.f32 %v2887_v27 }
 0x3f9   :  { %v2889_v42 = vmul.f32 1.442695, %v2878_v19  ;;  %v10546_v8 = vpop.eup %9298 }
 0x3fa   :  { %v2868_v60 = vpop.xlane.xlu0 %2867 }
 0x3fb   :  { %9308 = vpow2.f32 %v2889_v42  ;;  %v2880_v41 = vsub.f32 %v10483_v4, %v2868_v60 }
 0x3fc   :  { %9310 = vpow2.f32 %v2891_v28 }
 0x3fd   :  { %v10548_v63 = vpop.eup %9300  ;;  %v2893_v61 = vmul.f32 1.442695, %v2880_v41 }
 0x3fe   :  { %v2874_v10 = vpop.xlane.xlu0 %2873  ;;  %v3224_v35 = vpack.c.bf16 %v10548_v63, %v10546_v8  ;;  %v10553_v17 = vpop.eup %9302 }
 0x3ff   :  { %9312 = vpow2.f32 %v2893_v61  ;;  %v2882_v46 = vsub.f32 %v10490_v15, %v2874_v10  ;;  %12546 = vst [vmem:[#allocation49_spill] sm:$0xff] %v10553_v17 }
 0x400   :  { %8239 = vmatmul.mubr.msk.bf16.gmra.mrb[108].mxu0 %vm2753_vm0, %v3224_v35  ;;  %9314 = vpow2.f32 %v2895_v57 }
 0x401   :  { %v10556_v47 = vpop.eup %9304  ;;  %v2897_v4 = vmul.f32 1.442695, %v2882_v46  ;;  %8250 = vmatprep.mubr.msk.bf16.mxu0 %vm2753_vm0, %v10070_v40 }
 0x402   :  { %12547 = vst [vmem:[#allocation50_spill] sm:$0xff] %v10556_v47  ;;  %v2923_v11 = vpack.c.bf16 %v10556_v47, %v10553_v17  ;;  %v10562_v50 = vpop.eup %9306 }
 0x403   :  { %9316 = vpow2.f32 %v2897_v4  ;;  %12548 = vst [vmem:[#allocation51_spill] sm:$0xff] %v10562_v50 }
 0x404   :  { %8202 = vmatprep.mubr.msk.bf16.mxu1 %vm2753_vm0, %v2923_v11 }
 0x405   :  { %v10565_v15 = vpop.eup %9308 }
 0x406   :  { %12549 = vst [vmem:[#allocation52_spill] sm:$0xff] %v10565_v15  ;;  %v2924_v52 = vpack.c.bf16 %v10565_v15, %v10562_v50  ;;  %v10569_v27 = vpop.eup %9310 }
 0x407   :  { %12550 = vst [vmem:[#allocation53_spill] sm:$0xff] %v10569_v27 }
 0x408   :  { %8203 = vmatmul.mubr.msk.bf16.vlgmr.msra.gmra.mrb[120].mxu1 %vm2753_vm0, %v2924_v52  ;;  %8251 = vmatmul.mubr.msk.bf16.vlgmr.msra.gmra.mrb[112].mxu0 %vm2753_vm0, %v10088_v7 }
 0x409   :  { %v10574_v31 = vpop.eup %9312  ;;  %8259 = vmatpush3.bf16.msra.mxu1 %v10277_v44  ;;  %8254 = vmatprep.mubr.msk.bf16.mxu0 %vm2753_vm0, %v10111_v36 }
 0x40a   :  { %12551 = vst [vmem:[#allocation54_spill] sm:$0xff] %v10574_v31  ;;  %8260 = vmatprep.subr.bf16.mxu1 %v10289_v9  ;;  %v2925_v1 = vpack.c.bf16 %v10574_v31, %v10569_v27  ;;  %v10582_v24 = vpop.eup %9314 }
 0x40b   :  { %12552 = vst [vmem:[#allocation55_spill] sm:$0xff] %v10582_v24 }
 0x40c   :  { %8206 = vmatprep.mubr.msk.bf16.mxu1 %vm2753_vm0, %v2925_v1 }
 0x40d   :  { %v10585_v39 = vpop.eup %9316  ;;  %8261 = vmatpush3.bf16.msra.mxu1 %v10289_v9 }
 0x40e   :  { %12553 = vst [vmem:[#allocation56_spill] sm:$0xff] %v10585_v39  ;;  %8262 = vmatprep.subr.bf16.mxu1 %v10295_v6  ;;  %v2926_v19 = vpack.c.bf16 %v10585_v39, %v10582_v24 }
 0x410   :  { %8207 = vmatmul.mubr.msk.bf16.gmra.mrb[124].mxu1 %vm2753_vm0, %v2926_v19  ;;  %8255 = vmatmul.mubr.msk.bf16.gmra.mrb[116].mxu0 %vm2753_vm0, %v10129_v21 }
 0x411   :  { %8263 = vmatpush3.bf16.msra.mxu1 %v10295_v6 }
 0x412   :  { %8264 = vmatprep.subr.bf16.mxu1 %v10302_v23 }
 0x415   :  { %8265 = vmatpush3.bf16.msra.mxu1 %v10302_v23 }
 0x496   :  { %v10597_v42 = vpop.f32.mrb[104].mxu0 }
 0x497   :  { %v10599_v28 = vpop.f32.mrb[105].mxu0 }
 0x498   :  { %v10601_v2 = vpop.f32.mrb[106].mxu0 }
 0x499   :  { %v10603_v60 = vpop.f32.mrb[107].mxu0 }
 0x4d3   :  { %v10605_v41 = vpop.f32.mrb[108].mxu0 }
 0x4d4   :  { %12554 = vst [vmem:[#allocation57_spill] sm:$0xff] %v10605_v41  ;;  %v10607_v61 = vpop.f32.mrb[109].mxu0 }
 0x4d5   :  { %12555 = vst [vmem:[#allocation58_spill] sm:$0xff] %v10607_v61  ;;  %v10609_v57 = vpop.f32.mrb[110].mxu0 }
 0x4d6   :  { %12556 = vst [vmem:[#allocation59_spill] sm:$0xff] %v10609_v57  ;;  %v10611_v10 = vpop.f32.mrb[111].mxu0 }
 0x4d7   :  { %12557 = vst [vmem:[#allocation60_spill] sm:$0xff] %v10611_v10 }
 0x4db   :  { %v10613_v35 = vpop.f32.mrb[120].mxu1  ;;  %v8252_v46 = vpop.f32.mrb[112].mxu0 }
 0x4dc   :  { %12558 = vst [vmem:[#allocation61_spill] sm:$0xff] %v10613_v35  ;;  %v3450_v4 = vsel %vm10352_vm1, %v8252_v46, -inf  ;;  %v10617_v11 = vpop.f32.mrb[121].mxu1  ;;  %v3417_v52 = vpop.f32.mrb[113].mxu0 }
 0x4dd   :  { %12559 = vst [vmem:[#allocation62_spill] sm:$0xff] %v10617_v11  ;;  %v10619_v1 = vpop.f32.mrb[122].mxu1  ;;  %v8253_v19 = vpop.f32.mrb[114].mxu0  ;;  %v3462_v24 = vsel %vm2753_vm0, %v3450_v4, -inf  ;;  %v3448_v39 = vsel %vm10361_vm2, %v3417_v52, -inf }
 0x4de   :  { %12560 = vst [vmem:[#allocation63_spill] sm:$0xff] %v10619_v1  ;;  %v3451_v27 = vsel %vm10382_vm4, %v8253_v19, -inf  ;;  %3463 = vmax.xlane.f32.xlu1 %v3462_v24  ;;  %v10626_v35 = vpop.f32.mrb[123].mxu1  ;;  %v3420_v31 = vpop.f32.mrb[115].mxu0  ;;  %v3456_v1 = vsel %vm2753_vm0, %v3448_v39, -inf }
 0x4df   :  { %12561 = vst [vmem:[#allocation64_spill] sm:$0xff] %v10626_v35  ;;  %v3465_v46 = vsel %vm2753_vm0, %v3451_v27, -inf  ;;  %v3449_v11 = vsel %vm10368_vm3, %v3420_v31, -inf }
 0x4e0   :  { %3466 = vmax.xlane.f32.xlu0 %v3465_v46  ;;  %v3459_v52 = vsel %vm2753_vm0, %v3449_v11, -inf }
 0x4e2   :  { %3457 = vmax.xlane.f32.xlu1 %v3456_v1 }
 0x4e3   :  { %v10632_v50 = vpop.f32.mrb[124].mxu1  ;;  %v8256_v15 = vpop.f32.mrb[116].mxu0 }
 0x4e4   :  { %12562 = vst [vmem:[#allocation65_spill] sm:$0xff] %v10632_v50  ;;  %3460 = vmax.xlane.f32.xlu0 %v3459_v52  ;;  %v10635_v19 = vpop.f32.mrb[125].mxu1  ;;  %v3433_v24 = vpop.f32.mrb[117].mxu0 }
 0x4e5   :  { %12563 = vst [vmem:[#allocation66_spill] sm:$0xff] %v10635_v19  ;;  %v10637_v35 = vpop.f32.mrb[126].mxu1  ;;  %v8257_v17 = vpop.f32.mrb[118].mxu0 }
 0x4e6   :  { %12564 = vst [vmem:[#allocation67_spill] sm:$0xff] %v10637_v35  ;;  %v10641_v47 = vsel %vm10446_vm8, %v8257_v17, -inf  ;;  %v10643_v31 = vpop.f32.mrb[127].mxu1  ;;  %v3436_v46 = vpop.f32.mrb[119].mxu0  ;;  %v3454_v17 = vsel %vm10429_vm7, %v8256_v15, -inf }
 0x4e7   :  { %12565 = vst [vmem:[#allocation68_spill] sm:$0xff] %v10643_v31  ;;  %v3477_v1 = vsel %vm2753_vm0, %v10641_v47, -inf  ;;  %v3453_v50 = vsel %vm10399_vm5, %v3436_v46, -inf  ;;  %v3474_v46 = vsel %vm2753_vm0, %v3454_v17, -inf }
 0x4e8   :  { %3478 = vmax.xlane.f32.xlu0 %v3477_v1  ;;  %v3471_v52 = vsel %vm2753_vm0, %v3453_v50, -inf  ;;  %v3452_v1 = vsel %vm10415_vm6, %v3433_v24, -inf }
 0x4ec   :  { %3472 = vmax.xlane.f32.xlu0 %v3471_v52 }
 0x4f3   :  { %3649 = vrot.lane.b32.xlu1 %v10245_v58, %s9796_s2  ;;  %v3468_v58 = vsel %vm2753_vm0, %v3452_v1, -inf }
 0x502   :  { %3651 = vrot.lane.b32.xlu0 %v10249_v56, %s9796_s2 }
 0x506   :  { %3637 = vrot.lane.b32.xlu0 %v10070_v40, %s9796_s2 }
 0x50a   :  { %3641 = vrot.lane.b32.xlu0 %v10111_v36, %s9796_s2 }
 0x517   :  { %3475 = vmax.xlane.f32.xlu1 %v3474_v46 }
 0x51b   :  { %3469 = vmax.xlane.f32.xlu1 %v3468_v58 }
 0x52c   :  { %3653 = vrot.lane.b32.xlu1 %v10253_v33, %s9796_s2 }
 0x530   :  { %3655 = vrot.lane.b32.xlu1 %v10257_v14, %s9796_s2 }
 0x534   :  { %3639 = vrot.lane.b32.xlu1 %v10088_v7, %s9796_s2 }
 0x538   :  { %3643 = vrot.lane.b32.xlu1 %v10129_v21, %s9796_s2 }
 0x53c   :  { %3834 = vrot.lane.b32.xlu1 %v10277_v44, %s9796_s2 }
 0x540   :  { %3838 = vrot.lane.b32.xlu1 %v10295_v6, %s9796_s2 }
 0x56b   :  { %v3464_v40 = vpop.xlane.xlu1 %3463 }
 0x56c   :  { %v3482_v15 = vsub.f32 %v3450_v4, %v3464_v40 }
 0x56d   :  { %v3467_v36 = vpop.xlane.xlu0 %3466 }
 0x56e   :  { %v3483_v56 = vsub.f32 %v3451_v27, %v3467_v36  ;;  %v3492_v7 = vmul.f32 1.442695, %v3482_v15 }
 0x56f   :  { %v3458_v33 = vpop.xlane.xlu1 %3457 }
 0x570   :  { %v3494_v24 = vmul.f32 1.442695, %v3483_v56  ;;  %v3480_v52 = vsub.f32 %v3448_v39, %v3458_v33 }
 0x571   :  { %v3461_v14 = vpop.xlane.xlu0 %3460 }
 0x572   :  { %v3488_v46 = vmul.f32 1.442695, %v3480_v52  ;;  %v3481_v58 = vsub.f32 %v3449_v11, %v3461_v14  ;;  %9318 = vpow2.f32 %v3494_v24 }
 0x573   :  { %v3650_v35 = vpop.permute.xlu1 %3649 }
 0x574   :  { %v3490_v21 = vmul.f32 1.442695, %v3481_v58  ;;  %8798 = vmatprep.subr.msk.bf16.mxu1 %vm2753_vm0, %v3650_v35  ;;  %9320 = vpow2.f32 %v3488_v46  ;;  %v3670_v56 = vsel %vm2753_vm0, %v3650_v35, 0 }
 0x575   :  { %v3479_v44 = vpop.xlane.xlu0 %3478 }
 0x576   :  { %9322 = vpow2.f32 %v3490_v21  ;;  %v3487_v46 = vsub.f32 %v10641_v47, %v3479_v44 }
 0x577   :  { %9324 = vpow2.f32 %v3492_v7 }
 0x578   :  { %v3502_v19 = vmul.f32 1.442695, %v3487_v46 }
 0x579   :  { %v3473_v4 = vpop.xlane.xlu0 %3472 }
 0x57a   :  { %v3485_v24 = vsub.f32 %v3453_v50, %v3473_v4 }
 0x57c   :  { %v10677_v6 = vpop.eup %9318  ;;  %v3498_v58 = vmul.f32 1.442695, %v3485_v24 }
 0x57d   :  { %12566 = vst [vmem:[#allocation69_spill] sm:$0xff] %v10677_v6  ;;  %v3652_v15 = vpop.permute.xlu0 %3651 }
 0x57e   :  { %v10679_v27 = vpop.eup %9320  ;;  %v3673_v33 = vsel %vm2753_vm0, %v3652_v15, 0  ;;  %9326 = vpow2.f32 %v3498_v58 }
 0x57f   :  { %12567 = vst [vmem:[#allocation70_spill] sm:$0xff] %v10679_v27 }
 0x580   :  { %v10681_v40 = vpop.eup %9322 }
 0x581   :  { %12568 = vst [vmem:[#allocation71_spill] sm:$0xff] %v10681_v40  ;;  %v10683_v39 = vpop.eup %9324  ;;  %v3528_v11 = vpack.c.bf16 %v10681_v40, %v10679_v27 }
 0x582   :  { %12569 = vst [vmem:[#allocation72_spill] sm:$0xff] %v10683_v39  ;;  %v3529_v36 = vpack.c.bf16 %v10677_v6, %v10683_v39 }
 0x583   :  { %8266 = vmatprep.mubr.msk.bf16.mxu1 %vm2753_vm0, %v3528_v11 }
 0x584   :  { %8267 = vmatmul.mubr.msk.bf16.vlgmr.msra.gmra.mrb[128].mxu1 %vm2753_vm0, %v3529_v36 }
 0x585   :  { %8275 = vmatpush3.bf16.xpose.msra.mxu1 %v3670_v56 }
 0x586   :  { %8799 = vmatprep.subr.msk.bf16.mxu1 %vm2753_vm0, %v3652_v15 }
 0x58d   :  { %8277 = vmatpush3.bf16.xpose.msra.mxu1 %v3673_v33 }
 0x5a4   :  { %v3476_v52 = vpop.xlane.xlu1 %3475 }
 0x5a5   :  { %v3486_v14 = vsub.f32 %v3454_v17, %v3476_v52  ;;  %v10698_v17 = vpop.eup %9326  ;;  %v3638_v52 = vpop.permute.xlu0 %3637 }
 0x5a6   :  { %12570 = vst [vmem:[#allocation73_spill] sm:$0xff] %v10698_v17 }
 0x5a7   :  { %v3500_v7 = vmul.f32 1.442695, %v3486_v14 }
 0x5a8   :  { %v3470_v21 = vpop.xlane.xlu1 %3469 }
 0x5a9   :  { %v3484_v11 = vsub.f32 %v3452_v1, %v3470_v21  ;;  %9328 = vpow2.f32 %v3500_v7  ;;  %v3642_v46 = vpop.permute.xlu0 %3641 }
 0x5ab   :  { %v3496_v36 = vmul.f32 1.442695, %v3484_v11 }
 0x5ac   :  { %v3654_v35 = vpop.permute.xlu1 %3653 }
 0x5ad   :  { %9330 = vpow2.f32 %v3496_v36  ;;  %8800 = vmatprep.subr.msk.bf16.mxu1 %vm2753_vm0, %v3654_v35  ;;  %v3676_v56 = vsel %vm2753_vm0, %v3654_v35, 0 }
 0x5ae   :  { %9332 = vpow2.f32 %v3502_v19  ;;  %8279 = vmatpush3.bf16.xpose.msra.mxu1 %v3676_v56 }
 0x5b0   :  { %v3656_v50 = vpop.permute.xlu1 %3655 }
 0x5b1   :  { %8801 = vmatprep.subr.msk.bf16.mxu1 %vm2753_vm0, %v3656_v50  ;;  %v3679_v1 = vsel %vm2753_vm0, %v3656_v50, 0 }
 0x5b3   :  { %v10701_v44 = vpop.eup %9328 }
 0x5b4   :  { %v3640_v47 = vpop.permute.xlu1 %3639  ;;  %12571 = vst [vmem:[#allocation74_spill] sm:$0xff] %v10701_v44 }
 0x5b6   :  { %8281 = vmatpush3.bf16.xpose.msra.mxu1 %v3679_v1 }
 0x5b7   :  { %v10703_v4 = vpop.eup %9330  ;;  %8322 = vmatprep.subr.bf16.mxu1 %v10326_v45 }
 0x5b8   :  { %12572 = vst [vmem:[#allocation75_spill] sm:$0xff] %v10703_v4  ;;  %v10706_v15 = vpop.eup %9332  ;;  %v3644_v33 = vpop.permute.xlu1 %3643  ;;  %v3530_v19 = vpack.c.bf16 %v10698_v17, %v10703_v4 }
 0x5b9   :  { %12573 = vst [vmem:[#allocation76_spill] sm:$0xff] %v10706_v15  ;;  %v3531_v24 = vpack.c.bf16 %v10706_v15, %v10701_v44 }
 0x5ba   :  { %8270 = vmatprep.mubr.msk.bf16.mxu1 %vm2753_vm0, %v3530_v19 }
 0x5bb   :  { %8271 = vmatmul.mubr.msk.bf16.gmra.mrb[132].mxu1 %vm2753_vm0, %v3531_v24 }
 0x5bc   :  { %8282 = vmatprep.mubr.msk.bf16.mxu1 %vm2753_vm0, %v3638_v52  ;;  %v3835_v14 = vpop.permute.xlu1 %3834 }
 0x5bd   :  { %8290 = vmatprep.subr.bf16.mxu0 %v3835_v14 }
 0x5be   :  { %8291 = vmatpush3.bf16.msra.mxu0 %v3835_v14 }
 0x5c3   :  { %8283 = vmatmul.mubr.msk.bf16.vlgmr.msra.gmra.mrb[136].mxu1 %vm2753_vm0, %v3640_v47 }
 0x5c4   :  { %8323 = vmatpush3.bf16.msra.mxu1 %v10326_v45  ;;  %8286 = vmatprep.mubr.msk.bf16.mxu1 %vm2753_vm0, %v3642_v46 }
 0x5c5   :  { %8324 = vmatprep.subr.bf16.mxu1 %v10324_v38 }
 0x5c8   :  { %8325 = vmatpush3.bf16.msra.mxu1 %v10324_v38 }
 0x5c9   :  { %8326 = vmatprep.subr.bf16.mxu1 %v10330_v22 }
 0x5cb   :  { %8287 = vmatmul.mubr.msk.bf16.gmra.mrb[140].mxu1 %vm2753_vm0, %v3644_v33 }
 0x5cc   :  { %8327 = vmatpush3.bf16.msra.mxu1 %v10330_v22 }
 0x5cd   :  { %8328 = vmatprep.subr.bf16.mxu1 %v10328_v20 }
 0x5d0   :  { %8329 = vmatpush3.bf16.msra.mxu1 %v10328_v20 }
 0x657   :  { %v10725_v58 = vpop.f32.mrb[128].mxu1 }
 0x658   :  { %12574 = vst [vmem:[#allocation77_spill] sm:$0xff] %v10725_v58  ;;  %v10727_v7 = vpop.f32.mrb[129].mxu1 }
 0x659   :  { %12575 = vst [vmem:[#allocation78_spill] sm:$0xff] %v10727_v7  ;;  %v10729_v21 = vpop.f32.mrb[130].mxu1 }
 0x65a   :  { %12576 = vst [vmem:[#allocation79_spill] sm:$0xff] %v10729_v21  ;;  %v10731_v11 = vpop.f32.mrb[131].mxu1 }
 0x65b   :  { %12577 = vst [vmem:[#allocation80_spill] sm:$0xff] %v10731_v11 }
 0x68e   :  { %v10733_v36 = vpop.f32.mrb[132].mxu1 }
 0x68f   :  { %12578 = vst [vmem:[#allocation81_spill] sm:$0xff] %v10733_v36  ;;  %v10735_v35 = vpop.f32.mrb[133].mxu1 }
 0x690   :  { %12579 = vst [vmem:[#allocation82_spill] sm:$0xff] %v10735_v35  ;;  %v10737_v56 = vpop.f32.mrb[134].mxu1 }
 0x691   :  { %12580 = vst [vmem:[#allocation83_spill] sm:$0xff] %v10737_v56  ;;  %v10739_v50 = vpop.f32.mrb[135].mxu1 }
 0x692   :  { %12581 = vst [vmem:[#allocation84_spill] sm:$0xff] %v10739_v50 }
 0x696   :  { %v8284_v47 = vpop.f32.mrb[136].mxu1 }
 0x697   :  { %v3748_v1 = vsel %vm10352_vm1, %v8284_v47, -inf  ;;  %v3715_v33 = vpop.f32.mrb[137].mxu1 }
 0x698   :  { %v8285_v19 = vpop.f32.mrb[138].mxu1  ;;  %v3760_v24 = vsel %vm2753_vm0, %v3748_v1, -inf  ;;  %v3746_v52 = vsel %vm10361_vm2, %v3715_v33, -inf }
 0x699   :  { %3761 = vmax.xlane.f32.xlu0 %v3760_v24  ;;  %v3718_v14 = vpop.f32.mrb[139].mxu1  ;;  %v3754_v56 = vsel %vm2753_vm0, %v3746_v52, -inf  ;;  %v3749_v47 = vsel %vm10382_vm4, %v8285_v19, -inf }
 0x69a   :  { %v3747_v46 = vsel %vm10368_vm3, %v3718_v14, -inf  ;;  %v3763_v58 = vsel %vm2753_vm0, %v3749_v47, -inf }
 0x69b   :  { %v3757_v36 = vsel %vm2753_vm0, %v3747_v46, -inf }
 0x69c   :  { %3758 = vmax.xlane.f32.xlu1 %v3757_v36 }
 0x69d   :  { %3755 = vmax.xlane.f32.xlu0 %v3754_v56 }
 0x69e   :  { %v8288_v31 = vpop.f32.mrb[140].mxu1 }
 0x69f   :  { %v3731_v35 = vpop.f32.mrb[141].mxu1 }
 0x6a0   :  { %v8289_v50 = vpop.f32.mrb[142].mxu1  ;;  %v3750_v56 = vsel %vm10415_vm6, %v3731_v35, -inf }
 0x6a1   :  { %3764 = vmax.xlane.f32.xlu0 %v3763_v58  ;;  %v3734_v33 = vpop.f32.mrb[143].mxu1  ;;  %v3766_v19 = vsel %vm2753_vm0, %v3750_v56, -inf  ;;  %v3752_v58 = vsel %vm10429_vm7, %v8288_v31, -inf }
 0x6a2   :  { %v3751_v36 = vsel %vm10399_vm5, %v3734_v33, -inf  ;;  %v3839_v33 = vpop.permute.xlu1 %3838 }
 0x6a3   :  { %v3769_v24 = vsel %vm2753_vm0, %v3751_v36, -inf }
 0x6ad   :  { %3840 = vrot.lane.b32.xlu1 %v10302_v23, %s9796_s2  ;;  %v3772_v23 = vsel %vm2753_vm0, %v3752_v58, -inf }
 0x6b7   :  { %3836 = vrot.lane.b32.xlu0 %v10289_v9, %s9796_s2  ;;  %v3753_v9 = vsel %vm10446_vm8, %v8289_v50, -inf }
 0x6b8   :  { %v3775_v14 = vsel %vm2753_vm0, %v3753_v9, -inf }
 0x6d1   :  { %3770 = vmax.xlane.f32.xlu1 %v3769_v24 }
 0x6d6   :  { %3767 = vmax.xlane.f32.xlu0 %v3766_v19 }
 0x6da   :  { %3773 = vmax.xlane.f32.xlu0 %v3772_v23 }
 0x6de   :  { %3776 = vmax.xlane.f32.xlu0 %v3775_v14 }
 0x726   :  { %v3762_v24 = vpop.xlane.xlu0 %3761 }
 0x727   :  { %v3780_v7 = vsub.f32 %v3748_v1, %v3762_v24 }
 0x729   :  { %v3759_v21 = vpop.xlane.xlu1 %3758  ;;  %v3790_v31 = vmul.f32 1.442695, %v3780_v7  ;;  %v3979_v7 = vsel %vm2753_vm0, %v10251_v18, 0 }
 0x72a   :  { %v3779_v35 = vsub.f32 %v3747_v46, %v3759_v21  ;;  %v3756_v11 = vpop.xlane.xlu0 %3755 }
 0x72b   :  { %v3778_v44 = vsub.f32 %v3746_v52, %v3756_v11  ;;  %v3982_v11 = vsel %vm2753_vm0, %v10255_v43, 0  ;;  %v3985_v52 = vsel %vm2753_vm0, %v10259_v59, 0 }
 0x72c   :  { %v3788_v15 = vmul.f32 1.442695, %v3779_v35 }
 0x72d   :  { %v3786_v4 = vmul.f32 1.442695, %v3778_v44  ;;  %v3841_v1 = vpop.permute.xlu1 %3840 }
 0x72e   :  { %9334 = vpow2.f32 %v3788_v15  ;;  %v3765_v19 = vpop.xlane.xlu0 %3764 }
 0x72f   :  { %9336 = vpow2.f32 %v3786_v4  ;;  %v3781_v17 = vsub.f32 %v3749_v47, %v3765_v19  ;;  %v3976_v4 = vsel %vm2753_vm0, %v10247_v3, 0 }
 0x730   :  { %9338 = vpow2.f32 %v3790_v31 }
 0x731   :  { %v3792_v39 = vmul.f32 1.442695, %v3781_v17 }
 0x732   :  { %v3837_v50 = vpop.permute.xlu0 %3836 }
 0x733   :  { %9340 = vpow2.f32 %v3792_v39  ;;  %8292 = vmatprep.subr.bf16.mxu0 %v3837_v50 }
 0x734   :  { %8293 = vmatpush3.bf16.msra.mxu0 %v3837_v50 }
 0x735   :  { %8294 = vmatprep.subr.bf16.mxu0 %v3839_v33 }
 0x738   :  { %v10769_v23 = vpop.eup %9334  ;;  %8295 = vmatpush3.bf16.msra.mxu0 %v3839_v33 }
 0x739   :  { %v10771_v21 = vpop.eup %9336  ;;  %8296 = vmatprep.subr.bf16.mxu0 %v3841_v1 }
 0x73a   :  { %v3826_v44 = vpack.c.bf16 %v10769_v23, %v10771_v21  ;;  %v10775_v15 = vpop.eup %9338 }
 0x73c   :  { %8297 = vmatpush3.bf16.msra.mxu0 %v3841_v1  ;;  %8298 = vmatprep.mubr.msk.bf16.mxu0 %vm2753_vm0, %v3826_v44 }
 0x73d   :  { %v10778_v17 = vpop.eup %9340  ;;  %8802 = vmatprep.subr.msk.bf16.mxu0 %vm2753_vm0, %v10247_v3 }
 0x73e   :  { %v3827_v39 = vpack.c.bf16 %v10778_v17, %v10775_v15 }
 0x740   :  { %8299 = vmatmul.mubr.msk.bf16.vlgmr.msra.gmra.mrb[120].mxu0 %vm2753_vm0, %v3827_v39 }
 0x745   :  { %8307 = vmatpush3.bf16.xpose.msra.mxu0 %v3976_v4 }
 0x746   :  { %8803 = vmatprep.subr.msk.bf16.mxu0 %vm2753_vm0, %v10251_v18 }
 0x74d   :  { %8309 = vmatpush3.bf16.xpose.msra.mxu0 %v3979_v7 }
 0x74e   :  { %8804 = vmatprep.subr.msk.bf16.mxu0 %vm2753_vm0, %v10255_v43 }
 0x755   :  { %8311 = vmatpush3.bf16.xpose.msra.mxu0 %v3982_v11 }
 0x756   :  { %8805 = vmatprep.subr.msk.bf16.mxu0 %vm2753_vm0, %v10259_v59 }
 0x75d   :  { %8313 = vmatpush3.bf16.xpose.msra.mxu0 %v3985_v52 }
 0x75e   :  { %v3771_v46 = vpop.xlane.xlu1 %3770 }
 0x75f   :  { %v3783_v47 = vsub.f32 %v3751_v36, %v3771_v46 }
 0x761   :  { %v3796_v14 = vmul.f32 1.442695, %v3783_v47 }
 0x763   :  { %v3768_v33 = vpop.xlane.xlu0 %3767  ;;  %9342 = vpow2.f32 %v3796_v14 }
 0x764   :  { %v3782_v24 = vsub.f32 %v3750_v56, %v3768_v33 }
 0x766   :  { %v3794_v35 = vmul.f32 1.442695, %v3782_v24 }
 0x767   :  { %v3774_v31 = vpop.xlane.xlu0 %3773 }
 0x768   :  { %9344 = vpow2.f32 %v3794_v35  ;;  %v3784_v19 = vsub.f32 %v3752_v58, %v3774_v31 }
 0x76a   :  { %v3798_v50 = vmul.f32 1.442695, %v3784_v19 }
 0x76b   :  { %v3777_v1 = vpop.xlane.xlu0 %3776 }
 0x76c   :  { %v3785_v44 = vsub.f32 %v3753_v9, %v3777_v1  ;;  %9346 = vpow2.f32 %v3798_v50 }
 0x76d   :  { %v10799_v4 = vpop.eup %9342 }
 0x76e   :  { %v3800_v39 = vmul.f32 1.442695, %v3785_v44 }
 0x770   :  { %9348 = vpow2.f32 %v3800_v39 }
 0x772   :  { %v10801_v7 = vpop.eup %9344 }
 0x773   :  { %v3828_v36 = vpack.c.bf16 %v10799_v4, %v10801_v7 }
 0x775   :  { %8302 = vmatprep.mubr.msk.bf16.mxu0 %vm2753_vm0, %v3828_v36 }
 0x776   :  { %v10806_v56 = vpop.eup %9346 }
 0x77a   :  { %v10808_v11 = vpop.eup %9348 }
 0x77b   :  { %v3829_v58 = vpack.c.bf16 %v10808_v11, %v10806_v56 }
 0x77d   :  { %8303 = vmatmul.mubr.msk.bf16.gmra.mrb[124].mxu0 %vm2753_vm0, %v3829_v58 }
 0x77e   :  { %8314 = vmatprep.mubr.msk.bf16.mxu0 %vm2753_vm0, %v10192_v55 }
 0x785   :  { %8315 = vmatmul.mubr.msk.bf16.vlgmr.msra.gmra.mrb[128].mxu0 %vm2753_vm0, %v10200_v13 }
 0x786   :  { %8318 = vmatprep.mubr.msk.bf16.mxu0 %vm2753_vm0, %v10207_v37 }
 0x78d   :  { %8319 = vmatmul.mubr.msk.bf16.gmra.mrb[132].mxu0 %vm2753_vm0, %v10214_v48 }
 0x813   :  { %v10821_v9 = vpop.f32.mrb[120].mxu0 }
 0x814   :  { %v10823_v52 = vpop.f32.mrb[121].mxu0 }
 0x815   :  { %v10825_v46 = vpop.f32.mrb[122].mxu0 }
 0x816   :  { %v10827_v47 = vpop.f32.mrb[123].mxu0 }
 0x850   :  { %v10829_v14 = vpop.f32.mrb[124].mxu0 }
 0x851   :  { %12582 = vst [vmem:[#allocation85_spill] sm:$0xff] %v10829_v14  ;;  %v10831_v33 = vpop.f32.mrb[125].mxu0 }
 0x852   :  { %v10833_v24 = vpop.f32.mrb[126].mxu0 }
 0x853   :  { %12583 = vst [vmem:[#allocation86_spill] sm:$0xff] %v10833_v24  ;;  %v10835_v35 = vpop.f32.mrb[127].mxu0 }
 0x858   :  { %v8316_v31 = vpop.f32.mrb[128].mxu0 }
 0x859   :  { %v4054_v19 = vsel %vm10352_vm1, %v8316_v31, -inf  ;;  %v4021_v50 = vpop.f32.mrb[129].mxu0 }
 0x85a   :  { %v8317_v1 = vpop.f32.mrb[130].mxu0  ;;  %v4066_v44 = vsel %vm2753_vm0, %v4054_v19, -inf  ;;  %v4052_v39 = vsel %vm10361_vm2, %v4021_v50, -inf }
 0x85b   :  { %v4055_v36 = vsel %vm10382_vm4, %v8317_v1, -inf  ;;  %4067 = vmax.xlane.f32.xlu1 %v4066_v44  ;;  %v4024_v58 = vpop.f32.mrb[131].mxu0  ;;  %v4060_v31 = vsel %vm2753_vm0, %v4052_v39, -inf }
 0x85c   :  { %v4069_v6 = vsel %vm2753_vm0, %v4055_v36, -inf  ;;  %v4053_v27 = vsel %vm10368_vm3, %v4024_v58, -inf }
 0x85d   :  { %4070 = vmax.xlane.f32.xlu0 %v4069_v6  ;;  %v4063_v57 = vsel %vm2753_vm0, %v4053_v27, -inf }
 0x85f   :  { %4061 = vmax.xlane.f32.xlu1 %v4060_v31 }
 0x860   :  { %v8320_v40 = vpop.f32.mrb[132].mxu0 }
 0x861   :  { %4064 = vmax.xlane.f32.xlu0 %v4063_v57  ;;  %v4037_v41 = vpop.f32.mrb[133].mxu0  ;;  %v4058_v57 = vsel %vm10429_vm7, %v8320_v40, -inf }
 0x862   :  { %v8321_v50 = vpop.f32.mrb[134].mxu0  ;;  %v4056_v31 = vsel %vm10415_vm6, %v4037_v41, -inf }
 0x863   :  { %v10851_v1 = vsel %vm10446_vm8, %v8321_v50, -inf  ;;  %v4040_v44 = vpop.f32.mrb[135].mxu0 }
 0x864   :  { %v4081_v24 = vsel %vm2753_vm0, %v10851_v1, -inf  ;;  %v4057_v6 = vsel %vm10399_vm5, %v4040_v44, -inf }
 0x865   :  { %4082 = vmax.xlane.f32.xlu0 %v4081_v24  ;;  %v4075_v58 = vsel %vm2753_vm0, %v4057_v6, -inf  ;;  %v4078_v24 = vsel %vm2753_vm0, %v4058_v57, -inf }
 0x869   :  { %4076 = vmax.xlane.f32.xlu0 %v4075_v58 }
 0x870   :  { %4253 = vrot.lane.b32.xlu1 %v10247_v3, %s9796_s2  ;;  %v4072_v3 = vsel %vm2753_vm0, %v4056_v31, -inf }
 0x87f   :  { %4255 = vrot.lane.b32.xlu0 %v10251_v18, %s9796_s2 }
 0x883   :  { %4241 = vrot.lane.b32.xlu0 %v10192_v55, %s9796_s2 }
 0x887   :  { %4245 = vrot.lane.b32.xlu0 %v10207_v37, %s9796_s2 }
 0x894   :  { %4079 = vmax.xlane.f32.xlu1 %v4078_v24 }
 0x898   :  { %4073 = vmax.xlane.f32.xlu1 %v4072_v3 }
 0x8a9   :  { %4257 = vrot.lane.b32.xlu1 %v10255_v43, %s9796_s2 }
 0x8ad   :  { %4259 = vrot.lane.b32.xlu1 %v10259_v59, %s9796_s2 }
 0x8b1   :  { %4243 = vrot.lane.b32.xlu1 %v10200_v13, %s9796_s2 }
 0x8b5   :  { %4247 = vrot.lane.b32.xlu1 %v10214_v48, %s9796_s2 }
 0x8b9   :  { %4438 = vrot.lane.b32.xlu1 %v10326_v45, %s9796_s2 }
 0x8bd   :  { %4442 = vrot.lane.b32.xlu1 %v10330_v22, %s9796_s2 }
 0x8e8   :  { %v4068_v55 = vpop.xlane.xlu1 %4067 }
 0x8e9   :  { %v4086_v41 = vsub.f32 %v4054_v19, %v4068_v55 }
 0x8ea   :  { %v4071_v37 = vpop.xlane.xlu0 %4070 }
 0x8eb   :  { %v4087_v18 = vsub.f32 %v4055_v36, %v4071_v37  ;;  %v4096_v13 = vmul.f32 1.442695, %v4086_v41 }
 0x8ec   :  { %v4062_v43 = vpop.xlane.xlu1 %4061 }
 0x8ed   :  { %v4098_v40 = vmul.f32 1.442695, %v4087_v18  ;;  %v4084_v50 = vsub.f32 %v4052_v39, %v4062_v43 }
 0x8ee   :  { %v4065_v59 = vpop.xlane.xlu0 %4064 }
 0x8ef   :  { %v4092_v44 = vmul.f32 1.442695, %v4084_v50  ;;  %v4085_v58 = vsub.f32 %v4053_v27, %v4065_v59  ;;  %9350 = vpow2.f32 %v4098_v40 }
 0x8f0   :  { %v4254_v24 = vpop.permute.xlu1 %4253 }
 0x8f1   :  { %v4094_v48 = vmul.f32 1.442695, %v4085_v58  ;;  %8806 = vmatprep.subr.msk.bf16.mxu1 %vm2753_vm0, %v4254_v24  ;;  %9352 = vpow2.f32 %v4092_v44  ;;  %v4274_v37 = vsel %vm2753_vm0, %v4254_v24, 0 }
 0x8f2   :  { %v4083_v45 = vpop.xlane.xlu0 %4082 }
 0x8f3   :  { %9354 = vpow2.f32 %v4094_v48  ;;  %v4091_v59 = vsub.f32 %v10851_v1, %v4083_v45 }
 0x8f4   :  { %9356 = vpow2.f32 %v4096_v13 }
 0x8f6   :  { %v4077_v19 = vpop.xlane.xlu0 %4076 }
 0x8f7   :  { %v4089_v43 = vsub.f32 %v4057_v6, %v4077_v19 }
 0x8f9   :  { %v10885_v22 = vpop.eup %9350  ;;  %v4102_v44 = vmul.f32 1.442695, %v4089_v43 }
 0x8fa   :  { %12584 = vst [vmem:[#allocation87_spill] sm:$0xff] %v10885_v22  ;;  %v4256_v18 = vpop.permute.xlu0 %4255 }
 0x8fb   :  { %v10887_v36 = vpop.eup %9352  ;;  %v4277_v41 = vsel %vm2753_vm0, %v4256_v18, 0  ;;  %9358 = vpow2.f32 %v4102_v44 }
 0x8fc   :  { %12585 = vst [vmem:[#allocation88_spill] sm:$0xff] %v10887_v36 }
 0x8fd   :  { %v10889_v3 = vpop.eup %9354 }
 0x8fe   :  { %12586 = vst [vmem:[#allocation89_spill] sm:$0xff] %v10889_v3  ;;  %v10891_v39 = vpop.eup %9356  ;;  %v4132_v27 = vpack.c.bf16 %v10889_v3, %v10887_v36 }
 0x8ff   :  { %12587 = vst [vmem:[#allocation90_spill] sm:$0xff] %v10891_v39  ;;  %v4133_v55 = vpack.c.bf16 %v10885_v22, %v10891_v39 }
 0x900   :  { %8330 = vmatprep.mubr.msk.bf16.mxu1 %vm2753_vm0, %v4132_v27  ;;  %v4106_v27 = vmul.f32 1.442695, %v4091_v59 }
 0x901   :  { %8331 = vmatmul.mubr.msk.bf16.vlgmr.msra.gmra.mrb[144].mxu1 %vm2753_vm0, %v4133_v55 }
 0x902   :  { %8339 = vmatpush3.bf16.xpose.msra.mxu1 %v4274_v37 }
 0x903   :  { %8807 = vmatprep.subr.msk.bf16.mxu1 %vm2753_vm0, %v4256_v18 }
 0x90a   :  { %8341 = vmatpush3.bf16.xpose.msra.mxu1 %v4277_v41 }
 0x921   :  { %v4080_v40 = vpop.xlane.xlu1 %4079 }
 0x922   :  { %v4090_v50 = vsub.f32 %v4058_v57, %v4080_v40  ;;  %v10906_v57 = vpop.eup %9358 }
 0x923   :  { %12588 = vst [vmem:[#allocation91_spill] sm:$0xff] %v10906_v57 }
 0x924   :  { %v4104_v58 = vmul.f32 1.442695, %v4090_v50  ;;  %v4242_v50 = vpop.permute.xlu0 %4241 }
 0x925   :  { %v4074_v13 = vpop.xlane.xlu1 %4073 }
 0x926   :  { %v4088_v48 = vsub.f32 %v4056_v31, %v4074_v13  ;;  %9360 = vpow2.f32 %v4104_v58  ;;  %v12592_v58 = vld [vmem:[#allocation39_spill] sm:$0xff]  ;;  %v12593_v13 = vld [vmem:[#allocation41_spill] sm:$0xff] }
 0x928   :  { %v4100_v55 = vmul.f32 1.442695, %v4088_v48  ;;  %v4246_v44 = vpop.permute.xlu0 %4245 }
 0x929   :  { %v4258_v24 = vpop.permute.xlu1 %4257 }
 0x92a   :  { %9362 = vpow2.f32 %v4100_v55  ;;  %8808 = vmatprep.subr.msk.bf16.mxu1 %vm2753_vm0, %v4258_v24  ;;  %v4280_v37 = vsel %vm2753_vm0, %v4258_v24, 0 }
 0x92b   :  { %9364 = vpow2.f32 %v4106_v27  ;;  %8343 = vmatpush3.bf16.xpose.msra.mxu1 %v4280_v37 }
 0x92d   :  { %v4260_v6 = vpop.permute.xlu1 %4259 }
 0x92e   :  { %8809 = vmatprep.subr.msk.bf16.mxu1 %vm2753_vm0, %v4260_v6  ;;  %v4283_v31 = vsel %vm2753_vm0, %v4260_v6, 0 }
 0x930   :  { %v10909_v45 = vpop.eup %9360 }
 0x931   :  { %v4244_v1 = vpop.permute.xlu1 %4243  ;;  %12589 = vst [vmem:[#allocation92_spill] sm:$0xff] %v10909_v45 }
 0x933   :  { %8345 = vmatpush3.bf16.xpose.msra.mxu1 %v4283_v31 }
 0x934   :  { %v10911_v19 = vpop.eup %9362  ;;  %8386 = vmatprep.subr.bf16.mxu1 %v10308_v12 }
 0x935   :  { %12590 = vst [vmem:[#allocation93_spill] sm:$0xff] %v10911_v19  ;;  %v10914_v18 = vpop.eup %9364  ;;  %v4248_v41 = vpop.permute.xlu1 %4247  ;;  %v4134_v43 = vpack.c.bf16 %v10906_v57, %v10911_v19 }
 0x936   :  { %12591 = vst [vmem:[#allocation94_spill] sm:$0xff] %v10914_v18  ;;  %v4135_v40 = vpack.c.bf16 %v10914_v18, %v10909_v45 }
 0x937   :  { %8334 = vmatprep.mubr.msk.bf16.mxu1 %vm2753_vm0, %v4134_v43 }
 0x938   :  { %8335 = vmatmul.mubr.msk.bf16.gmra.mrb[148].mxu1 %vm2753_vm0, %v4135_v40 }
 0x939   :  { %v4439_v59 = vpop.permute.xlu1 %4438  ;;  %8346 = vmatprep.mubr.msk.bf16.mxu1 %vm2753_vm0, %v4242_v50 }
 0x93a   :  { %8354 = vmatprep.subr.bf16.mxu0 %v4439_v59 }
 0x93b   :  { %8355 = vmatpush3.bf16.msra.mxu0 %v4439_v59 }
 0x940   :  { %8347 = vmatmul.mubr.msk.bf16.vlgmr.msra.gmra.mrb[152].mxu1 %vm2753_vm0, %v4244_v1 }
 0x941   :  { %8387 = vmatpush3.bf16.msra.mxu1 %v10308_v12  ;;  %8350 = vmatprep.mubr.msk.bf16.mxu1 %vm2753_vm0, %v4246_v44 }
 0x942   :  { %8388 = vmatprep.subr.bf16.mxu1 %v10312_v49 }
 0x945   :  { %8389 = vmatpush3.bf16.msra.mxu1 %v10312_v49 }
 0x946   :  { %8390 = vmatprep.subr.bf16.mxu1 %v12592_v58 }
 0x948   :  { %8351 = vmatmul.mubr.msk.bf16.gmra.mrb[156].mxu1 %vm2753_vm0, %v4248_v41 }
 0x949   :  { %8391 = vmatpush3.bf16.msra.mxu1 %v12592_v58 }
 0x94a   :  { %8392 = vmatprep.subr.bf16.mxu1 %v12593_v13 }
 0x94d   :  { %8393 = vmatpush3.bf16.msra.mxu1 %v12593_v13 }
 0x9d4   :  { %v10933_v48 = vpop.f32.mrb[144].mxu1 }
 0x9d5   :  { %12594 = vst [vmem:[#allocation39_spill] sm:$0xff] %v10933_v48  ;;  %v10935_v27 = vpop.f32.mrb[145].mxu1 }
 0x9d6   :  { %12595 = vst [vmem:[#allocation41_spill] sm:$0xff] %v10935_v27  ;;  %v10937_v55 = vpop.f32.mrb[146].mxu1 }
 0x9d7   :  { %12596 = vst [vmem:[#allocation95_spill] sm:$0xff] %v10937_v55  ;;  %v10939_v24 = vpop.f32.mrb[147].mxu1 }
 0x9d8   :  { %12597 = vst [vmem:[#allocation96_spill] sm:$0xff] %v10939_v24 }
 0xa0b   :  { %v10941_v37 = vpop.f32.mrb[148].mxu1 }
 0xa0c   :  { %12598 = vst [vmem:[#allocation97_spill] sm:$0xff] %v10941_v37  ;;  %v10943_v6 = vpop.f32.mrb[149].mxu1 }
 0xa0d   :  { %12599 = vst [vmem:[#allocation98_spill] sm:$0xff] %v10943_v6  ;;  %v10945_v1 = vpop.f32.mrb[150].mxu1 }
 0xa0e   :  { %12600 = vst [vmem:[#allocation99_spill] sm:$0xff] %v10945_v1  ;;  %v10947_v31 = vpop.f32.mrb[151].mxu1 }
 0xa0f   :  { %12601 = vst [vmem:[#allocation100_spill] sm:$0xff] %v10947_v31 }
 0xa13   :  { %v8348_v41 = vpop.f32.mrb[152].mxu1 }
 0xa14   :  { %v4352_v43 = vsel %vm10352_vm1, %v8348_v41, -inf  ;;  %v4319_v40 = vpop.f32.mrb[153].mxu1 }
 0xa15   :  { %v8349_v50 = vpop.f32.mrb[154].mxu1  ;;  %v4364_v59 = vsel %vm2753_vm0, %v4352_v43, -inf  ;;  %v4350_v44 = vsel %vm10361_vm2, %v4319_v40, -inf }
 0xa16   :  { %4365 = vmax.xlane.f32.xlu0 %v4364_v59  ;;  %v4322_v55 = vpop.f32.mrb[155].mxu1  ;;  %v4358_v31 = vsel %vm2753_vm0, %v4350_v44, -inf  ;;  %v4353_v41 = vsel %vm10382_vm4, %v8349_v50, -inf }
 0xa17   :  { %v4351_v37 = vsel %vm10368_vm3, %v4322_v55, -inf  ;;  %v4367_v24 = vsel %vm2753_vm0, %v4353_v41, -inf }
 0xa18   :  { %v4361_v1 = vsel %vm2753_vm0, %v4351_v37, -inf }
 0xa19   :  { %4362 = vmax.xlane.f32.xlu1 %v4361_v1 }
 0xa1a   :  { %4359 = vmax.xlane.f32.xlu0 %v4358_v31 }
 0xa1b   :  { %v8352_v6 = vpop.f32.mrb[156].mxu1 }
 0xa1c   :  { %v4335_v48 = vpop.f32.mrb[157].mxu1 }
 0xa1d   :  { %v8353_v18 = vpop.f32.mrb[158].mxu1  ;;  %v4354_v31 = vsel %vm10415_vm6, %v4335_v48, -inf }
 0xa1e   :  { %4368 = vmax.xlane.f32.xlu0 %v4367_v24  ;;  %v4338_v40 = vpop.f32.mrb[159].mxu1  ;;  %v4370_v50 = vsel %vm2753_vm0, %v4354_v31, -inf  ;;  %v4356_v24 = vsel %vm10429_vm7, %v8352_v6, -inf }
 0xa1f   :  { %v4355_v55 = vsel %vm10399_vm5, %v4338_v40, -inf  ;;  %v4443_v40 = vpop.permute.xlu1 %4442 }
 0xa20   :  { %v4373_v1 = vsel %vm2753_vm0, %v4355_v55, -inf }
 0xa2a   :  { %4444 = vrot.lane.b32.xlu1 %v10328_v20, %s9796_s2  ;;  %v4376_v20 = vsel %vm2753_vm0, %v4356_v24, -inf }
 0xa34   :  { %4440 = vrot.lane.b32.xlu0 %v10324_v38, %s9796_s2  ;;  %v4357_v38 = vsel %vm10446_vm8, %v8353_v18, -inf }
 0xa35   :  { %v4379_v59 = vsel %vm2753_vm0, %v4357_v38, -inf }
 0xa4e   :  { %4374 = vmax.xlane.f32.xlu1 %v4373_v1 }
 0xa53   :  { %4371 = vmax.xlane.f32.xlu0 %v4370_v50 }
 0xa57   :  { %4377 = vmax.xlane.f32.xlu0 %v4376_v20 }
 0xa5b   :  { %4380 = vmax.xlane.f32.xlu0 %v4379_v59  ;;  %v12609_v59 = vld [vmem:[#allocation28_spill] sm:$0xff] }
 0xaa3   :  { %v4366_v1 = vpop.xlane.xlu0 %4365 }
 0xaa4   :  { %v4384_v45 = vsub.f32 %v4352_v43, %v4366_v1 }
 0xaa6   :  { %v4363_v27 = vpop.xlane.xlu1 %4362  ;;  %v4394_v6 = vmul.f32 1.442695, %v4384_v45 }
 0xaa7   :  { %v4383_v48 = vsub.f32 %v4351_v37, %v4363_v27  ;;  %v4360_v57 = vpop.xlane.xlu0 %4359 }
 0xaa8   :  { %v4382_v19 = vsub.f32 %v4350_v44, %v4360_v57  ;;  %v12608_v44 = vld [vmem:[#allocation26_spill] sm:$0xff] }
 0xaa9   :  { %v4392_v22 = vmul.f32 1.442695, %v4383_v48 }
 0xaaa   :  { %v4390_v39 = vmul.f32 1.442695, %v4382_v19  ;;  %v4445_v43 = vpop.permute.xlu1 %4444  ;;  %v12607_v19 = vld [vmem:[#allocation24_spill] sm:$0xff] }
 0xaab   :  { %9366 = vpow2.f32 %v4392_v22  ;;  %v4369_v50 = vpop.xlane.xlu0 %4368  ;;  %v4583_v37 = vsel %vm2753_vm0, %v12607_v19, 0 }
 0xaac   :  { %9368 = vpow2.f32 %v4390_v39  ;;  %v4385_v3 = vsub.f32 %v4353_v41, %v4369_v50  ;;  %v4586_v41 = vsel %vm2753_vm0, %v12608_v44, 0 }
 0xaad   :  { %9370 = vpow2.f32 %v4394_v6 }
 0xaae   :  { %v4396_v36 = vmul.f32 1.442695, %v4385_v3 }
 0xaaf   :  { %v4441_v18 = vpop.permute.xlu0 %4440 }
 0xab0   :  { %9372 = vpow2.f32 %v4396_v36  ;;  %8356 = vmatprep.subr.bf16.mxu0 %v4441_v18  ;;  %v12606_v36 = vld [vmem:[#allocation22_spill] sm:$0xff] }
 0xab1   :  { %8357 = vmatpush3.bf16.msra.mxu0 %v4441_v18  ;;  %v4580_v45 = vsel %vm2753_vm0, %v12606_v36, 0 }
 0xab2   :  { %8358 = vmatprep.subr.bf16.mxu0 %v4443_v40 }
 0xab5   :  { %v10977_v20 = vpop.eup %9366  ;;  %8359 = vmatpush3.bf16.msra.mxu0 %v4443_v40  ;;  %v4589_v40 = vsel %vm2753_vm0, %v12609_v59, 0 }
 0xab6   :  { %12602 = vst [vmem:[#allocation101_spill] sm:$0xff] %v10977_v20  ;;  %v10979_v27 = vpop.eup %9368  ;;  %8360 = vmatprep.subr.bf16.mxu0 %v4445_v43 }
 0xab7   :  { %12603 = vst [vmem:[#allocation102_spill] sm:$0xff] %v10979_v27  ;;  %v4430_v22 = vpack.c.bf16 %v10977_v20, %v10979_v27  ;;  %v10983_v57 = vpop.eup %9370 }
 0xab8   :  { %12604 = vst [vmem:[#allocation103_spill] sm:$0xff] %v10983_v57 }
 0xab9   :  { %8361 = vmatpush3.bf16.msra.mxu0 %v4445_v43  ;;  %8362 = vmatprep.mubr.msk.bf16.mxu0 %vm2753_vm0, %v4430_v22 }
 0xaba   :  { %v10986_v3 = vpop.eup %9372  ;;  %8810 = vmatprep.subr.msk.bf16.mxu0 %vm2753_vm0, %v12606_v36 }
 0xabb   :  { %12605 = vst [vmem:[#allocation104_spill] sm:$0xff] %v10986_v3  ;;  %v4431_v39 = vpack.c.bf16 %v10986_v3, %v10983_v57 }
 0xabd   :  { %8363 = vmatmul.mubr.msk.bf16.vlgmr.msra.gmra.mrb[136].mxu0 %vm2753_vm0, %v4431_v39 }
 0xac2   :  { %8371 = vmatpush3.bf16.xpose.msra.mxu0 %v4580_v45 }
 0xac3   :  { %8811 = vmatprep.subr.msk.bf16.mxu0 %vm2753_vm0, %v12607_v19 }
 0xaca   :  { %8373 = vmatpush3.bf16.xpose.msra.mxu0 %v4583_v37 }
 0xacb   :  { %8812 = vmatprep.subr.msk.bf16.mxu0 %vm2753_vm0, %v12608_v44 }
 0xad2   :  { %8375 = vmatpush3.bf16.xpose.msra.mxu0 %v4586_v41 }
 0xad3   :  { %8813 = vmatprep.subr.msk.bf16.mxu0 %vm2753_vm0, %v12609_v59 }
 0xada   :  { %8377 = vmatpush3.bf16.xpose.msra.mxu0 %v4589_v40 }
 0xadb   :  { %v4375_v1 = vpop.xlane.xlu1 %4374 }
 0xadc   :  { %v4387_v48 = vsub.f32 %v4355_v55, %v4375_v1  ;;  %v12616_v1 = vld [vmem:[#allocation17_spill] sm:$0xff] }
 0xade   :  { %v4400_v6 = vmul.f32 1.442695, %v4387_v48  ;;  %v12617_v48 = vld [vmem:[#allocation19_spill] sm:$0xff] }
 0xae0   :  { %v4372_v50 = vpop.xlane.xlu0 %4371  ;;  %9374 = vpow2.f32 %v4400_v6 }
 0xae1   :  { %v4386_v18 = vsub.f32 %v4354_v31, %v4372_v50 }
 0xae3   :  { %v4398_v43 = vmul.f32 1.442695, %v4386_v18 }
 0xae4   :  { %v4378_v22 = vpop.xlane.xlu0 %4377 }
 0xae5   :  { %9376 = vpow2.f32 %v4398_v43  ;;  %v4388_v39 = vsub.f32 %v4356_v24, %v4378_v22 }
 0xae7   :  { %v4402_v45 = vmul.f32 1.442695, %v4388_v39 }
 0xae8   :  { %v4381_v37 = vpop.xlane.xlu0 %4380 }
 0xae9   :  { %v4389_v41 = vsub.f32 %v4357_v38, %v4381_v37  ;;  %9378 = vpow2.f32 %v4402_v45  ;;  %v12614_v38 = vld [vmem:[#allocation13_spill] sm:$0xff] }
 0xaea   :  { %v11007_v3 = vpop.eup %9374 }
 0xaeb   :  { %v4404_v57 = vmul.f32 1.442695, %v4389_v41  ;;  %12610 = vst [vmem:[#allocation22_spill] sm:$0xff] %v11007_v3 }
 0xaed   :  { %9380 = vpow2.f32 %v4404_v57  ;;  %v12615_v57 = vld [vmem:[#allocation15_spill] sm:$0xff] }
 0xaef   :  { %v11009_v27 = vpop.eup %9376 }
 0xaf0   :  { %12611 = vst [vmem:[#allocation24_spill] sm:$0xff] %v11009_v27  ;;  %v4432_v55 = vpack.c.bf16 %v11007_v3, %v11009_v27 }
 0xaf2   :  { %8366 = vmatprep.mubr.msk.bf16.mxu0 %vm2753_vm0, %v4432_v55 }
 0xaf3   :  { %v11014_v31 = vpop.eup %9378 }
 0xaf4   :  { %12612 = vst [vmem:[#allocation26_spill] sm:$0xff] %v11014_v31 }
 0xaf7   :  { %v11016_v40 = vpop.eup %9380 }
 0xaf8   :  { %12613 = vst [vmem:[#allocation28_spill] sm:$0xff] %v11016_v40  ;;  %v4433_v24 = vpack.c.bf16 %v11016_v40, %v11014_v31 }
 0xafa   :  { %8367 = vmatmul.mubr.msk.bf16.gmra.mrb[140].mxu0 %vm2753_vm0, %v4433_v24 }
 0xafb   :  { %8378 = vmatprep.mubr.msk.bf16.mxu0 %vm2753_vm0, %v12614_v38 }
 0xb02   :  { %8379 = vmatmul.mubr.msk.bf16.vlgmr.msra.gmra.mrb[144].mxu0 %vm2753_vm0, %v12615_v57 }
 0xb03   :  { %8382 = vmatprep.mubr.msk.bf16.mxu0 %vm2753_vm0, %v12616_v1 }
 0xb0a   :  { %8383 = vmatmul.mubr.msk.bf16.gmra.mrb[148].mxu0 %vm2753_vm0, %v12617_v48 }
 0xb90   :  { %v11029_v6 = vpop.f32.mrb[136].mxu0 }
 0xb91   :  { %12618 = vst [vmem:[#allocation13_spill] sm:$0xff] %v11029_v6  ;;  %v11031_v50 = vpop.f32.mrb[137].mxu0 }
 0xb92   :  { %12619 = vst [vmem:[#allocation15_spill] sm:$0xff] %v11031_v50  ;;  %v11033_v18 = vpop.f32.mrb[138].mxu0 }
 0xb93   :  { %12620 = vst [vmem:[#allocation17_spill] sm:$0xff] %v11033_v18  ;;  %v11035_v43 = vpop.f32.mrb[139].mxu0 }
 0xb94   :  { %12621 = vst [vmem:[#allocation19_spill] sm:$0xff] %v11035_v43 }
 0xbcd   :  { %v11037_v22 = vpop.f32.mrb[140].mxu0 }
 0xbce   :  { %12622 = vst [vmem:[#allocation105_spill] sm:$0xff] %v11037_v22  ;;  %v11039_v39 = vpop.f32.mrb[141].mxu0 }
 0xbcf   :  { %12623 = vst [vmem:[#allocation106_spill] sm:$0xff] %v11039_v39  ;;  %v11041_v45 = vpop.f32.mrb[142].mxu0 }
 0xbd0   :  { %12624 = vst [vmem:[#allocation107_spill] sm:$0xff] %v11041_v45  ;;  %v11043_v37 = vpop.f32.mrb[143].mxu0 }
 0xbd1   :  { %12625 = vst [vmem:[#allocation108_spill] sm:$0xff] %v11043_v37 }
 0xbd5   :  { %v8380_v41 = vpop.f32.mrb[144].mxu0 }
 0xbd6   :  { %v4658_v55 = vsel %vm10352_vm1, %v8380_v41, -inf  ;;  %v4625_v24 = vpop.f32.mrb[145].mxu0 }
 0xbd7   :  { %v8381_v6 = vpop.f32.mrb[146].mxu0  ;;  %v4670_v50 = vsel %vm2753_vm0, %v4658_v55, -inf  ;;  %v4656_v18 = vsel %vm10361_vm2, %v4625_v24, -inf }
 0xbd8   :  { %v4659_v22 = vsel %vm10382_vm4, %v8381_v6, -inf  ;;  %4671 = vmax.xlane.f32.xlu1 %v4670_v50  ;;  %v4628_v39 = vpop.f32.mrb[147].mxu0  ;;  %v4664_v41 = vsel %vm2753_vm0, %v4656_v18, -inf }
 0xbd9   :  { %v4673_v45 = vsel %vm2753_vm0, %v4659_v22, -inf  ;;  %v4657_v37 = vsel %vm10368_vm3, %v4628_v39, -inf }
 0xbda   :  { %4674 = vmax.xlane.f32.xlu0 %v4673_v45  ;;  %v4667_v31 = vsel %vm2753_vm0, %v4657_v37, -inf }
 0xbdc   :  { %4665 = vmax.xlane.f32.xlu1 %v4664_v41 }
 0xbdd   :  { %v8384_v43 = vpop.f32.mrb[148].mxu0 }
 0xbde   :  { %4668 = vmax.xlane.f32.xlu0 %v4667_v31  ;;  %v4641_v40 = vpop.f32.mrb[149].mxu0  ;;  %v4662_v31 = vsel %vm10429_vm7, %v8384_v43, -inf }
 0xbdf   :  { %v8385_v24 = vpop.f32.mrb[150].mxu0  ;;  %v4660_v41 = vsel %vm10415_vm6, %v4641_v40, -inf }
 0xbe0   :  { %v11059_v6 = vsel %vm10446_vm8, %v8385_v24, -inf  ;;  %v4644_v50 = vpop.f32.mrb[151].mxu0 }
 0xbe1   :  { %v4685_v27 = vsel %vm2753_vm0, %v11059_v6, -inf  ;;  %v4661_v39 = vsel %vm10399_vm5, %v4644_v50, -inf }
 0xbe2   :  { %4686 = vmax.xlane.f32.xlu0 %v4685_v27  ;;  %v4679_v45 = vsel %vm2753_vm0, %v4661_v39, -inf  ;;  %v4682_v27 = vsel %vm2753_vm0, %v4662_v31, -inf }
 0xbe6   :  { %4680 = vmax.xlane.f32.xlu0 %v4679_v45 }
 0xbed   :  { %4857 = vrot.lane.b32.xlu1 %v12606_v36, %s9796_s2  ;;  %v4676_v36 = vsel %vm2753_vm0, %v4660_v41, -inf }
 0xbfc   :  { %4859 = vrot.lane.b32.xlu0 %v12607_v19, %s9796_s2 }
 0xc00   :  { %4845 = vrot.lane.b32.xlu0 %v12614_v38, %s9796_s2 }
 0xc04   :  { %4849 = vrot.lane.b32.xlu0 %v12616_v1, %s9796_s2 }
 0xc11   :  { %4683 = vmax.xlane.f32.xlu1 %v4682_v27 }
 0xc15   :  { %4677 = vmax.xlane.f32.xlu1 %v4676_v36 }
 0xc26   :  { %4861 = vrot.lane.b32.xlu1 %v12608_v44, %s9796_s2 }
 0xc2a   :  { %4863 = vrot.lane.b32.xlu1 %v12609_v59, %s9796_s2 }
 0xc2e   :  { %4847 = vrot.lane.b32.xlu1 %v12615_v57, %s9796_s2 }
 0xc32   :  { %4851 = vrot.lane.b32.xlu1 %v12617_v48, %s9796_s2 }
 0xc36   :  { %5042 = vrot.lane.b32.xlu1 %v10308_v12, %s9796_s2 }
 0xc3a   :  { %5046 = vrot.lane.b32.xlu1 %v12592_v58, %s9796_s2 }
 0xc65   :  { %v4672_v19 = vpop.xlane.xlu1 %4671 }
 0xc66   :  { %v4690_v1 = vsub.f32 %v4658_v55, %v4672_v19 }
 0xc67   :  { %v4675_v40 = vpop.xlane.xlu0 %4674 }
 0xc68   :  { %v4691_v38 = vsub.f32 %v4659_v22, %v4675_v40  ;;  %v4700_v57 = vmul.f32 1.442695, %v4690_v1 }
 0xc69   :  { %v4666_v44 = vpop.xlane.xlu1 %4665 }
 0xc6a   :  { %v4702_v43 = vmul.f32 1.442695, %v4691_v38  ;;  %v4688_v24 = vsub.f32 %v4656_v18, %v4666_v44 }
 0xc6b   :  { %v4669_v59 = vpop.xlane.xlu0 %4668 }
 0xc6c   :  { %v4696_v50 = vmul.f32 1.442695, %v4688_v24  ;;  %v4689_v45 = vsub.f32 %v4657_v37, %v4669_v59  ;;  %9382 = vpow2.f32 %v4702_v43 }
 0xc6d   :  { %v4858_v27 = vpop.permute.xlu1 %4857 }
 0xc6e   :  { %v4698_v48 = vmul.f32 1.442695, %v4689_v45  ;;  %8814 = vmatprep.subr.msk.bf16.mxu1 %vm2753_vm0, %v4858_v27  ;;  %9384 = vpow2.f32 %v4696_v50  ;;  %v4878_v40 = vsel %vm2753_vm0, %v4858_v27, 0 }
 0xc6f   :  { %v4687_v12 = vpop.xlane.xlu0 %4686 }
 0xc70   :  { %9386 = vpow2.f32 %v4698_v48  ;;  %v4695_v59 = vsub.f32 %v11059_v6, %v4687_v12 }
 0xc71   :  { %9388 = vpow2.f32 %v4700_v57 }
 0xc73   :  { %v4681_v55 = vpop.xlane.xlu0 %4680 }
 0xc74   :  { %v4693_v44 = vsub.f32 %v4661_v39, %v4681_v55 }
 0xc76   :  { %v11093_v58 = vpop.eup %9382  ;;  %v4706_v50 = vmul.f32 1.442695, %v4693_v44 }
 0xc77   :  { %12626 = vst [vmem:[#allocation109_spill] sm:$0xff] %v11093_v58  ;;  %v4860_v38 = vpop.permute.xlu0 %4859 }
 0xc78   :  { %v11095_v22 = vpop.eup %9384  ;;  %v4881_v1 = vsel %vm2753_vm0, %v4860_v38, 0  ;;  %9390 = vpow2.f32 %v4706_v50 }
 0xc79   :  { %12627 = vst [vmem:[#allocation110_spill] sm:$0xff] %v11095_v22 }
 0xc7a   :  { %v11097_v36 = vpop.eup %9386 }
 0xc7b   :  { %12628 = vst [vmem:[#allocation111_spill] sm:$0xff] %v11097_v36  ;;  %v11099_v18 = vpop.eup %9388  ;;  %v4736_v37 = vpack.c.bf16 %v11097_v36, %v11095_v22 }
 0xc7c   :  { %12629 = vst [vmem:[#allocation112_spill] sm:$0xff] %v11099_v18  ;;  %v4737_v19 = vpack.c.bf16 %v11093_v58, %v11099_v18 }
 0xc7d   :  { %8394 = vmatprep.mubr.msk.bf16.mxu1 %vm2753_vm0, %v4736_v37  ;;  %v4710_v37 = vmul.f32 1.442695, %v4695_v59  ;;  %v4846_v59 = vpop.permute.xlu0 %4845 }
 0xc7e   :  { %8395 = vmatmul.mubr.msk.bf16.vlgmr.msra.gmra.mrb[160].mxu1 %vm2753_vm0, %v4737_v19 }
 0xc7f   :  { %8403 = vmatpush3.bf16.xpose.msra.mxu1 %v4878_v40 }
 0xc80   :  { %8815 = vmatprep.subr.msk.bf16.mxu1 %vm2753_vm0, %v4860_v38  ;;  %v12633_v38 = vld [vmem:[#allocation37_spill] sm:$0xff] }
 0xc87   :  { %8405 = vmatpush3.bf16.xpose.msra.mxu1 %v4881_v1 }
 0xc9e   :  { %v4684_v43 = vpop.xlane.xlu1 %4683 }
 0xc9f   :  { %v4694_v24 = vsub.f32 %v4662_v31, %v4684_v43  ;;  %v11114_v31 = vpop.eup %9390 }
 0xca0   :  { %12630 = vst [vmem:[#allocation113_spill] sm:$0xff] %v11114_v31 }
 0xca1   :  { %v4708_v45 = vmul.f32 1.442695, %v4694_v24 }
 0xca2   :  { %v4678_v57 = vpop.xlane.xlu1 %4677 }
 0xca3   :  { %v4692_v48 = vsub.f32 %v4660_v41, %v4678_v57  ;;  %9392 = vpow2.f32 %v4708_v45  ;;  %v4850_v45 = vpop.permute.xlu0 %4849  ;;  %v12635_v57 = vld [vmem:[#allocation38_spill] sm:$0xff] }
 0xca5   :  { %v4704_v19 = vmul.f32 1.442695, %v4692_v48  ;;  %v12636_v48 = vld [vmem:[#allocation40_spill] sm:$0xff] }
 0xca6   :  { %v4862_v27 = vpop.permute.xlu1 %4861 }
 0xca7   :  { %9394 = vpow2.f32 %v4704_v19  ;;  %8816 = vmatprep.subr.msk.bf16.mxu1 %vm2753_vm0, %v4862_v27  ;;  %v4884_v40 = vsel %vm2753_vm0, %v4862_v27, 0 }
 0xca8   :  { %9396 = vpow2.f32 %v4710_v37  ;;  %8407 = vmatpush3.bf16.xpose.msra.mxu1 %v4884_v40  ;;  %v12637_v37 = vld [vmem:[#allocation42_spill] sm:$0xff] }
 0xcaa   :  { %v4864_v39 = vpop.permute.xlu1 %4863 }
 0xcab   :  { %8817 = vmatprep.subr.msk.bf16.mxu1 %vm2753_vm0, %v4864_v39  ;;  %v4887_v41 = vsel %vm2753_vm0, %v4864_v39, 0 }
 0xcad   :  { %v11117_v12 = vpop.eup %9392 }
 0xcae   :  { %v4848_v6 = vpop.permute.xlu1 %4847  ;;  %12631 = vst [vmem:[#allocation114_spill] sm:$0xff] %v11117_v12 }
 0xcb0   :  { %8409 = vmatpush3.bf16.xpose.msra.mxu1 %v4887_v41 }
 0xcb1   :  { %v11119_v55 = vpop.eup %9394  ;;  %8450 = vmatprep.subr.bf16.mxu1 %v12633_v38 }
 0xcb2   :  { %12632 = vst [vmem:[#allocation115_spill] sm:$0xff] %v11119_v55  ;;  %v11122_v1 = vpop.eup %9396  ;;  %v4852_v44 = vpop.permute.xlu1 %4851  ;;  %v4738_v43 = vpack.c.bf16 %v11114_v31, %v11119_v55 }
 0xcb3   :  { %12634 = vst [vmem:[#allocation37_spill] sm:$0xff] %v11122_v1  ;;  %v4739_v24 = vpack.c.bf16 %v11122_v1, %v11117_v12 }
 0xcb4   :  { %8398 = vmatprep.mubr.msk.bf16.mxu1 %vm2753_vm0, %v4738_v43 }
 0xcb5   :  { %8399 = vmatmul.mubr.msk.bf16.gmra.mrb[164].mxu1 %vm2753_vm0, %v4739_v24 }
 0xcb6   :  { %v5043_v50 = vpop.permute.xlu1 %5042  ;;  %8410 = vmatprep.mubr.msk.bf16.mxu1 %vm2753_vm0, %v4846_v59 }
 0xcb7   :  { %8418 = vmatprep.subr.bf16.mxu0 %v5043_v50 }
 0xcb8   :  { %8419 = vmatpush3.bf16.msra.mxu0 %v5043_v50 }
 0xcbd   :  { %8411 = vmatmul.mubr.msk.bf16.vlgmr.msra.gmra.mrb[168].mxu1 %vm2753_vm0, %v4848_v6 }
 0xcbe   :  { %8451 = vmatpush3.bf16.msra.mxu1 %v12633_v38  ;;  %8414 = vmatprep.mubr.msk.bf16.mxu1 %vm2753_vm0, %v4850_v45 }
 0xcbf   :  { %8452 = vmatprep.subr.bf16.mxu1 %v12635_v57 }
 0xcc2   :  { %8453 = vmatpush3.bf16.msra.mxu1 %v12635_v57 }
 0xcc3   :  { %8454 = vmatprep.subr.bf16.mxu1 %v12636_v48 }
 0xcc5   :  { %8415 = vmatmul.mubr.msk.bf16.gmra.mrb[172].mxu1 %vm2753_vm0, %v4852_v44 }
 0xcc6   :  { %8455 = vmatpush3.bf16.msra.mxu1 %v12636_v48 }
 0xcc7   :  { %8456 = vmatprep.subr.bf16.mxu1 %v12637_v37 }
 0xcca   :  { %8457 = vmatpush3.bf16.msra.mxu1 %v12637_v37 }
 0xd51   :  { %v11141_v19 = vpop.f32.mrb[160].mxu1 }
 0xd52   :  { %12638 = vst [vmem:[#allocation38_spill] sm:$0xff] %v11141_v19  ;;  %v11143_v27 = vpop.f32.mrb[161].mxu1 }
 0xd53   :  { %12639 = vst [vmem:[#allocation40_spill] sm:$0xff] %v11143_v27  ;;  %v11145_v40 = vpop.f32.mrb[162].mxu1 }
 0xd54   :  { %12640 = vst [vmem:[#allocation42_spill] sm:$0xff] %v11145_v40  ;;  %v11147_v39 = vpop.f32.mrb[163].mxu1 }
 0xd55   :  { %12641 = vst [vmem:[#allocation116_spill] sm:$0xff] %v11147_v39 }
 0xd88   :  { %v11149_v6 = vpop.f32.mrb[164].mxu1 }
 0xd89   :  { %12642 = vst [vmem:[#allocation117_spill] sm:$0xff] %v11149_v6  ;;  %v11151_v41 = vpop.f32.mrb[165].mxu1 }
 0xd8a   :  { %12643 = vst [vmem:[#allocation118_spill] sm:$0xff] %v11151_v41  ;;  %v11153_v43 = vpop.f32.mrb[166].mxu1 }
 0xd8b   :  { %12644 = vst [vmem:[#allocation119_spill] sm:$0xff] %v11153_v43  ;;  %v11155_v44 = vpop.f32.mrb[167].mxu1 }
 0xd8c   :  { %12645 = vst [vmem:[#allocation120_spill] sm:$0xff] %v11155_v44 }
 0xd90   :  { %v8412_v24 = vpop.f32.mrb[168].mxu1 }
 0xd91   :  { %v4956_v59 = vsel %vm10352_vm1, %v8412_v24, -inf  ;;  %v4923_v50 = vpop.f32.mrb[169].mxu1 }
 0xd92   :  { %v4968_v45 = vsel %vm2753_vm0, %v4956_v59, -inf  ;;  %v8413_v19 = vpop.f32.mrb[170].mxu1  ;;  %v4954_v40 = vsel %vm10361_vm2, %v4923_v50, -inf }
 0xd93   :  { %4969 = vmax.xlane.f32.xlu0 %v4968_v45  ;;  %v4926_v12 = vpop.f32.mrb[171].mxu1  ;;  %v4962_v41 = vsel %vm2753_vm0, %v4954_v40, -inf  ;;  %v4957_v24 = vsel %vm10382_vm4, %v8413_v19, -inf }
 0xd94   :  { %v4955_v6 = vsel %vm10368_vm3, %v4926_v12, -inf  ;;  %v4971_v27 = vsel %vm2753_vm0, %v4957_v24, -inf }
 0xd95   :  { %v4965_v43 = vsel %vm2753_vm0, %v4955_v6, -inf }
 0xd96   :  { %4966 = vmax.xlane.f32.xlu1 %v4965_v43 }
 0xd97   :  { %4963 = vmax.xlane.f32.xlu0 %v4962_v41 }
 0xd98   :  { %v8416_v44 = vpop.f32.mrb[172].mxu1 }
 0xd99   :  { %v4939_v1 = vpop.f32.mrb[173].mxu1 }
 0xd9a   :  { %v8417_v39 = vpop.f32.mrb[174].mxu1  ;;  %v4958_v19 = vsel %vm10415_vm6, %v4939_v1, -inf }
 0xd9b   :  { %4972 = vmax.xlane.f32.xlu0 %v4971_v27  ;;  %v4942_v50 = vpop.f32.mrb[175].mxu1  ;;  %v4974_v41 = vsel %vm2753_vm0, %v4958_v19, -inf  ;;  %v4960_v27 = vsel %vm10429_vm7, %v8416_v44, -inf }
 0xd9c   :  { %v4959_v12 = vsel %vm10399_vm5, %v4942_v50, -inf  ;;  %v5047_v50 = vpop.permute.xlu1 %5046 }
 0xd9d   :  { %v4977_v43 = vsel %vm2753_vm0, %v4959_v12, -inf }
 0xda7   :  { %5048 = vrot.lane.b32.xlu1 %v12593_v13, %s9796_s2  ;;  %v4980_v13 = vsel %vm2753_vm0, %v4960_v27, -inf }
 0xdb1   :  { %5044 = vrot.lane.b32.xlu0 %v10312_v49, %s9796_s2  ;;  %v4961_v49 = vsel %vm10446_vm8, %v8417_v39, -inf }
 0xdb2   :  { %v4983_v45 = vsel %vm2753_vm0, %v4961_v49, -inf }
 0xdcb   :  { %4978 = vmax.xlane.f32.xlu1 %v4977_v43 }
 0xdd0   :  { %4975 = vmax.xlane.f32.xlu0 %v4974_v41 }
 0xdd4   :  { %4981 = vmax.xlane.f32.xlu0 %v4980_v13 }
 0xdd8   :  { %4984 = vmax.xlane.f32.xlu0 %v4983_v45  ;;  %v12649_v45 = vld [vmem:[#allocation35_spill] sm:$0xff] }
 0xe20   :  { %v4970_v43 = vpop.xlane.xlu0 %4969 }
 0xe21   :  { %v4988_v31 = vsub.f32 %v4956_v59, %v4970_v43 }
 0xe23   :  { %v4967_v55 = vpop.xlane.xlu1 %4966  ;;  %v4998_v44 = vmul.f32 1.442695, %v4988_v31  ;;  %v12647_v31 = vld [vmem:[#allocation31_spill] sm:$0xff] }
 0xe24   :  { %v4987_v1 = vsub.f32 %v4955_v6, %v4967_v55  ;;  %v4964_v18 = vpop.xlane.xlu0 %4963  ;;  %v12648_v6 = vld [vmem:[#allocation33_spill] sm:$0xff] }
 0xe25   :  { %v4986_v58 = vsub.f32 %v4954_v40, %v4964_v18  ;;  %v5187_v40 = vsel %vm2753_vm0, %v12647_v31, 0 }
 0xe26   :  { %v4996_v22 = vmul.f32 1.442695, %v4987_v1 }
 0xe27   :  { %v4994_v36 = vmul.f32 1.442695, %v4986_v58  ;;  %v5049_v59 = vpop.permute.xlu1 %5048 }
 0xe28   :  { %9398 = vpow2.f32 %v4996_v22  ;;  %v4973_v41 = vpop.xlane.xlu0 %4972 }
 0xe29   :  { %9400 = vpow2.f32 %v4994_v36  ;;  %v4989_v3 = vsub.f32 %v4957_v24, %v4973_v41  ;;  %v5190_v24 = vsel %vm2753_vm0, %v12648_v6, 0 }
 0xe2a   :  { %9402 = vpow2.f32 %v4998_v44 }
 0xe2b   :  { %v5000_v20 = vmul.f32 1.442695, %v4989_v3 }
 0xe2c   :  { %v5045_v39 = vpop.permute.xlu0 %5044 }
 0xe2d   :  { %9404 = vpow2.f32 %v5000_v20  ;;  %8420 = vmatprep.subr.bf16.mxu0 %v5045_v39  ;;  %v12646_v20 = vld [vmem:[#allocation29_spill] sm:$0xff] }
 0xe2e   :  { %8421 = vmatpush3.bf16.msra.mxu0 %v5045_v39  ;;  %v5184_v18 = vsel %vm2753_vm0, %v12646_v20, 0 }
 0xe2f   :  { %8422 = vmatprep.subr.bf16.mxu0 %v5047_v50 }
 0xe32   :  { %v11185_v13 = vpop.eup %9398  ;;  %8423 = vmatpush3.bf16.msra.mxu0 %v5047_v50  ;;  %v5193_v50 = vsel %vm2753_vm0, %v12649_v45, 0 }
 0xe33   :  { %v11187_v55 = vpop.eup %9400  ;;  %8424 = vmatprep.subr.bf16.mxu0 %v5049_v59 }
 0xe34   :  { %v5034_v58 = vpack.c.bf16 %v11185_v13, %v11187_v55  ;;  %v11191_v22 = vpop.eup %9402 }
 0xe36   :  { %8425 = vmatpush3.bf16.msra.mxu0 %v5049_v59  ;;  %8426 = vmatprep.mubr.msk.bf16.mxu0 %vm2753_vm0, %v5034_v58 }
 0xe37   :  { %v11194_v3 = vpop.eup %9404  ;;  %8818 = vmatprep.subr.msk.bf16.mxu0 %vm2753_vm0, %v12646_v20 }
 0xe38   :  { %v5035_v36 = vpack.c.bf16 %v11194_v3, %v11191_v22 }
 0xe3a   :  { %8427 = vmatmul.mubr.msk.bf16.vlgmr.msra.gmra.mrb[152].mxu0 %vm2753_vm0, %v5035_v36 }
 0xe3f   :  { %8435 = vmatpush3.bf16.xpose.msra.mxu0 %v5184_v18 }
 0xe40   :  { %8819 = vmatprep.subr.msk.bf16.mxu0 %vm2753_vm0, %v12647_v31 }
 0xe47   :  { %8437 = vmatpush3.bf16.xpose.msra.mxu0 %v5187_v40 }
 0xe48   :  { %8820 = vmatprep.subr.msk.bf16.mxu0 %vm2753_vm0, %v12648_v6 }
 0xe4f   :  { %8439 = vmatpush3.bf16.xpose.msra.mxu0 %v5190_v24 }
 0xe50   :  { %8821 = vmatprep.subr.msk.bf16.mxu0 %vm2753_vm0, %v12649_v45 }
 0xe57   :  { %8441 = vmatpush3.bf16.xpose.msra.mxu0 %v5193_v50 }
 0xe58   :  { %v4979_v43 = vpop.xlane.xlu1 %4978 }
 0xe59   :  { %v4991_v1 = vsub.f32 %v4959_v12, %v4979_v43  ;;  %v12655_v43 = vld [vmem:[#allocation18_spill] sm:$0xff] }
 0xe5b   :  { %v5004_v44 = vmul.f32 1.442695, %v4991_v1  ;;  %v12656_v1 = vld [vmem:[#allocation20_spill] sm:$0xff] }
 0xe5d   :  { %v4976_v41 = vpop.xlane.xlu0 %4975  ;;  %9406 = vpow2.f32 %v5004_v44 }
 0xe5e   :  { %v4990_v39 = vsub.f32 %v4958_v19, %v4976_v41 }
 0xe60   :  { %v5002_v59 = vmul.f32 1.442695, %v4990_v39 }
 0xe61   :  { %v4982_v58 = vpop.xlane.xlu0 %4981 }
 0xe62   :  { %9408 = vpow2.f32 %v5002_v59  ;;  %v4992_v36 = vsub.f32 %v4960_v27, %v4982_v58 }
 0xe64   :  { %v5006_v18 = vmul.f32 1.442695, %v4992_v36 }
 0xe65   :  { %v4985_v40 = vpop.xlane.xlu0 %4984 }
 0xe66   :  { %v4993_v24 = vsub.f32 %v4961_v49, %v4985_v40  ;;  %9410 = vpow2.f32 %v5006_v18  ;;  %v12653_v49 = vld [vmem:[#allocation14_spill] sm:$0xff] }
 0xe67   :  { %v11215_v10 = vpop.eup %9406 }
 0xe68   :  { %v5008_v14 = vmul.f32 1.442695, %v4993_v24 }
 0xe6a   :  { %9412 = vpow2.f32 %v5008_v14  ;;  %v12654_v14 = vld [vmem:[#allocation16_spill] sm:$0xff] }
 0xe6c   :  { %v11217_v61 = vpop.eup %9408 }
 0xe6d   :  { %12650 = vst [vmem:[#allocation29_spill] sm:$0xff] %v11217_v61  ;;  %v5036_v12 = vpack.c.bf16 %v11215_v10, %v11217_v61 }
 0xe6f   :  { %8430 = vmatprep.mubr.msk.bf16.mxu0 %vm2753_vm0, %v5036_v12 }
 0xe70   :  { %v11222_v19 = vpop.eup %9410 }
 0xe71   :  { %12651 = vst [vmem:[#allocation31_spill] sm:$0xff] %v11222_v19 }
 0xe74   :  { %v11224_v50 = vpop.eup %9412 }
 0xe75   :  { %12652 = vst [vmem:[#allocation33_spill] sm:$0xff] %v11224_v50  ;;  %v5037_v27 = vpack.c.bf16 %v11224_v50, %v11222_v19 }
 0xe77   :  { %8431 = vmatmul.mubr.msk.bf16.gmra.mrb[156].mxu0 %vm2753_vm0, %v5037_v27 }
 0xe78   :  { %8442 = vmatprep.mubr.msk.bf16.mxu0 %vm2753_vm0, %v12653_v49 }
 0xe7f   :  { %8443 = vmatmul.mubr.msk.bf16.vlgmr.msra.gmra.mrb[160].mxu0 %vm2753_vm0, %v12654_v14 }
 0xe80   :  { %8446 = vmatprep.mubr.msk.bf16.mxu0 %vm2753_vm0, %v12655_v43 }
 0xe87   :  { %8447 = vmatmul.mubr.msk.bf16.gmra.mrb[164].mxu0 %vm2753_vm0, %v12656_v1 }
 0xf0d   :  { %v11237_v44 = vpop.f32.mrb[152].mxu0 }
 0xf0e   :  { %12657 = vst [vmem:[#allocation35_spill] sm:$0xff] %v11237_v44  ;;  %v11239_v41 = vpop.f32.mrb[153].mxu0 }
 0xf0f   :  { %12658 = vst [vmem:[#allocation14_spill] sm:$0xff] %v11239_v41  ;;  %v11241_v39 = vpop.f32.mrb[154].mxu0 }
 0xf10   :  { %12659 = vst [vmem:[#allocation16_spill] sm:$0xff] %v11241_v39  ;;  %v11243_v59 = vpop.f32.mrb[155].mxu0 }
 0xf11   :  { %12660 = vst [vmem:[#allocation18_spill] sm:$0xff] %v11243_v59 }
 0xf4a   :  { %v11245_v58 = vpop.f32.mrb[156].mxu0 }
 0xf4b   :  { %12661 = vst [vmem:[#allocation20_spill] sm:$0xff] %v11245_v58  ;;  %v11247_v36 = vpop.f32.mrb[157].mxu0 }
 0xf4c   :  { %12662 = vst [vmem:[#allocation121_spill] sm:$0xff] %v11247_v36  ;;  %v11249_v18 = vpop.f32.mrb[158].mxu0 }
 0xf4d   :  { %12663 = vst [vmem:[#allocation122_spill] sm:$0xff] %v11249_v18  ;;  %v11251_v40 = vpop.f32.mrb[159].mxu0 }
 0xf4e   :  { %12664 = vst [vmem:[#allocation123_spill] sm:$0xff] %v11251_v40 }
 0xf52   :  { %v8444_v24 = vpop.f32.mrb[160].mxu0 }
 0xf53   :  { %v5262_v12 = vsel %vm10352_vm1, %v8444_v24, -inf  ;;  %v5229_v27 = vpop.f32.mrb[161].mxu0 }
 0xf54   :  { %v5274_v19 = vsel %vm2753_vm0, %v5262_v12, -inf  ;;  %v8445_v50 = vpop.f32.mrb[162].mxu0  ;;  %v5260_v61 = vsel %vm10361_vm2, %v5229_v27, -inf }
 0xf55   :  { %v5263_v58 = vsel %vm10382_vm4, %v8445_v50, -inf  ;;  %5275 = vmax.xlane.f32.xlu1 %v5274_v19  ;;  %v5232_v36 = vpop.f32.mrb[163].mxu0  ;;  %v5268_v24 = vsel %vm2753_vm0, %v5260_v61, -inf }
 0xf56   :  { %v5277_v18 = vsel %vm2753_vm0, %v5263_v58, -inf  ;;  %v5261_v40 = vsel %vm10368_vm3, %v5232_v36, -inf }
 0xf57   :  { %5278 = vmax.xlane.f32.xlu0 %v5277_v18  ;;  %v5271_v39 = vsel %vm2753_vm0, %v5261_v40, -inf }
 0xf59   :  { %5269 = vmax.xlane.f32.xlu1 %v5268_v24 }
 0xf5a   :  { %v8448_v44 = vpop.f32.mrb[164].mxu0 }
 0xf5b   :  { %5272 = vmax.xlane.f32.xlu0 %v5271_v39  ;;  %v5245_v59 = vpop.f32.mrb[165].mxu0  ;;  %v5266_v39 = vsel %vm10429_vm7, %v8448_v44, -inf }
 0xf5c   :  { %v8449_v27 = vpop.f32.mrb[166].mxu0  ;;  %v5264_v24 = vsel %vm10415_vm6, %v5245_v59, -inf }
 0xf5d   :  { %v11267_v50 = vsel %vm10446_vm8, %v8449_v27, -inf  ;;  %v5248_v19 = vpop.f32.mrb[167].mxu0 }
 0xf5e   :  { %v5289_v41 = vsel %vm2753_vm0, %v11267_v50, -inf  ;;  %v5265_v36 = vsel %vm10399_vm5, %v5248_v19, -inf }
 0xf5f   :  { %5290 = vmax.xlane.f32.xlu0 %v5289_v41  ;;  %v5283_v18 = vsel %vm2753_vm0, %v5265_v36, -inf  ;;  %v5286_v41 = vsel %vm2753_vm0, %v5266_v39, -inf }
 0xf63   :  { %5284 = vmax.xlane.f32.xlu0 %v5283_v18 }
 0xf6a   :  { %5461 = vrot.lane.b32.xlu1 %v12646_v20, %s9796_s2  ;;  %v5280_v20 = vsel %vm2753_vm0, %v5264_v24, -inf }
 0xf79   :  { %5463 = vrot.lane.b32.xlu0 %v12647_v31, %s9796_s2 }
 0xf7d   :  { %5449 = vrot.lane.b32.xlu0 %v12653_v49, %s9796_s2 }
 0xf81   :  { %5453 = vrot.lane.b32.xlu0 %v12655_v43, %s9796_s2 }
 0xf8e   :  { %5287 = vmax.xlane.f32.xlu1 %v5286_v41 }
 0xf92   :  { %5281 = vmax.xlane.f32.xlu1 %v5280_v20 }
 0xfa3   :  { %5465 = vrot.lane.b32.xlu1 %v12648_v6, %s9796_s2 }
 0xfa7   :  { %5467 = vrot.lane.b32.xlu1 %v12649_v45, %s9796_s2 }
 0xfab   :  { %5451 = vrot.lane.b32.xlu1 %v12654_v14, %s9796_s2 }
 0xfaf   :  { %5455 = vrot.lane.b32.xlu1 %v12656_v1, %s9796_s2 }
 0xfb3   :  { %5646 = vrot.lane.b32.xlu1 %v12633_v38, %s9796_s2 }
 0xfb7   :  { %5650 = vrot.lane.b32.xlu1 %v12636_v48, %s9796_s2 }
 0xfe2   :  { %v5276_v31 = vpop.xlane.xlu1 %5275 }
 0xfe3   :  { %v5294_v44 = vsub.f32 %v5262_v12, %v5276_v31 }
 0xfe4   :  { %v5279_v49 = vpop.xlane.xlu0 %5278 }
 0xfe5   :  { %v5295_v43 = vsub.f32 %v5263_v58, %v5279_v49  ;;  %v5304_v14 = vmul.f32 1.442695, %v5294_v44 }
 0xfe6   :  { %v5270_v6 = vpop.xlane.xlu1 %5269 }
 0xfe7   :  { %v5306_v59 = vmul.f32 1.442695, %v5295_v43  ;;  %v5292_v27 = vsub.f32 %v5260_v61, %v5270_v6 }
 0xfe8   :  { %v5273_v45 = vpop.xlane.xlu0 %5272 }
 0xfe9   :  { %v5300_v19 = vmul.f32 1.442695, %v5292_v27  ;;  %v5293_v18 = vsub.f32 %v5261_v40, %v5273_v45  ;;  %9414 = vpow2.f32 %v5306_v59 }
 0xfea   :  { %v5462_v41 = vpop.permute.xlu1 %5461 }
 0xfeb   :  { %v5302_v1 = vmul.f32 1.442695, %v5293_v18  ;;  %8822 = vmatprep.subr.msk.bf16.mxu1 %vm2753_vm0, %v5462_v41  ;;  %9416 = vpow2.f32 %v5300_v19  ;;  %v5482_v49 = vsel %vm2753_vm0, %v5462_v41, 0 }
 0xfec   :  { %v5291_v38 = vpop.xlane.xlu0 %5290 }
 0xfed   :  { %9418 = vpow2.f32 %v5302_v1  ;;  %v5299_v45 = vsub.f32 %v11267_v50, %v5291_v38 }
 0xfee   :  { %9420 = vpow2.f32 %v5304_v14 }
 0xff0   :  { %v5285_v12 = vpop.xlane.xlu0 %5284 }
 0xff1   :  { %v5297_v6 = vsub.f32 %v5265_v36, %v5285_v12 }
 0xff3   :  { %v11301_v48 = vpop.eup %9414  ;;  %v5310_v19 = vmul.f32 1.442695, %v5297_v6 }
 0xff4   :  { %12665 = vst [vmem:[#allocation124_spill] sm:$0xff] %v11301_v48  ;;  %v5464_v43 = vpop.permute.xlu0 %5463 }
 0xff5   :  { %v11303_v58 = vpop.eup %9416  ;;  %v5485_v44 = vsel %vm2753_vm0, %v5464_v43, 0  ;;  %9422 = vpow2.f32 %v5310_v19 }
 0xff6   :  { %12666 = vst [vmem:[#allocation125_spill] sm:$0xff] %v11303_v58 }
 0xff7   :  { %v11305_v20 = vpop.eup %9418 }
 0xff8   :  { %v11307_v61 = vpop.eup %9420  ;;  %v5340_v40 = vpack.c.bf16 %v11305_v20, %v11303_v58  ;;  %v12692_v58 = vld [vmem:[#allocation48_spill] sm:$0xff] }
 0xff9   :  { %12667 = vst [vmem:[#allocation126_spill] sm:$0xff] %v11307_v61  ;;  %v5341_v31 = vpack.c.bf16 %v11301_v48, %v11307_v61  ;;  %v3197_v61 = vsel %vm2753_vm0, %v10500_v51, 0.0 }
 0xffa   :  { %8458 = vmatprep.mubr.msk.bf16.mxu1 %vm2753_vm0, %v5340_v40  ;;  %v5314_v40 = vmul.f32 1.442695, %v5299_v45  ;;  %v5450_v45 = vpop.permute.xlu0 %5449 }
 0xffb   :  { %8459 = vmatmul.mubr.msk.bf16.vlgmr.msra.gmra.mrb[176].mxu1 %vm2753_vm0, %v5341_v31 }
 0xffc   :  { %8467 = vmatpush3.bf16.xpose.msra.mxu1 %v5482_v49 }
 0xffd   :  { %8823 = vmatprep.subr.msk.bf16.mxu1 %vm2753_vm0, %v5464_v43  ;;  %v12671_v43 = vld [vmem:[#allocation43_spill] sm:$0xff] }
0x1004   :  { %8469 = vmatpush3.bf16.xpose.msra.mxu1 %v5485_v44 }
0x101b   :  { %v5288_v59 = vpop.xlane.xlu1 %5287 }
0x101c   :  { %v5298_v27 = vsub.f32 %v5266_v39, %v5288_v59  ;;  %v11322_v39 = vpop.eup %9422 }
0x101d   :  { %12668 = vst [vmem:[#allocation127_spill] sm:$0xff] %v11322_v39 }
0x101e   :  { %v5312_v18 = vmul.f32 1.442695, %v5298_v27 }
0x101f   :  { %v5282_v14 = vpop.xlane.xlu1 %5281 }
0x1020   :  { %v5296_v1 = vsub.f32 %v5264_v24, %v5282_v14  ;;  %9424 = vpow2.f32 %v5312_v18  ;;  %v5454_v18 = vpop.permute.xlu0 %5453  ;;  %v12673_v14 = vld [vmem:[#allocation44_spill] sm:$0xff] }
0x1022   :  { %v5308_v31 = vmul.f32 1.442695, %v5296_v1  ;;  %v12674_v1 = vld [vmem:[#allocation45_spill] sm:$0xff] }
0x1023   :  { %v5466_v41 = vpop.permute.xlu1 %5465 }
0x1024   :  { %9426 = vpow2.f32 %v5308_v31  ;;  %8824 = vmatprep.subr.msk.bf16.mxu1 %vm2753_vm0, %v5466_v41  ;;  %v5488_v49 = vsel %vm2753_vm0, %v5466_v41, 0 }
0x1025   :  { %9428 = vpow2.f32 %v5314_v40  ;;  %8471 = vmatpush3.bf16.xpose.msra.mxu1 %v5488_v49  ;;  %v12675_v40 = vld [vmem:[#allocation46_spill] sm:$0xff] }
0x1027   :  { %v5468_v36 = vpop.permute.xlu1 %5467 }
0x1028   :  { %8825 = vmatprep.subr.msk.bf16.mxu1 %vm2753_vm0, %v5468_v36  ;;  %v5491_v24 = vsel %vm2753_vm0, %v5468_v36, 0 }
0x102a   :  { %v11325_v38 = vpop.eup %9424 }
0x102b   :  { %v5452_v50 = vpop.permute.xlu1 %5451  ;;  %12669 = vst [vmem:[#allocation128_spill] sm:$0xff] %v11325_v38 }
0x102d   :  { %8473 = vmatpush3.bf16.xpose.msra.mxu1 %v5491_v24 }
0x102e   :  { %v11327_v12 = vpop.eup %9426  ;;  %8514 = vmatprep.subr.bf16.mxu1 %v12671_v43 }
0x102f   :  { %12670 = vst [vmem:[#allocation129_spill] sm:$0xff] %v11327_v12  ;;  %v11330_v44 = vpop.eup %9428  ;;  %v5456_v6 = vpop.permute.xlu1 %5455  ;;  %v5342_v59 = vpack.c.bf16 %v11322_v39, %v11327_v12  ;;  %v3805_v12 = vsel %vm2753_vm0, %v10769_v23, 0.0 }
0x1030   :  { %12672 = vst [vmem:[#allocation43_spill] sm:$0xff] %v11330_v44  ;;  %v5343_v27 = vpack.c.bf16 %v11330_v44, %v11325_v38 }
0x1031   :  { %8462 = vmatprep.mubr.msk.bf16.mxu1 %vm2753_vm0, %v5342_v59 }
0x1032   :  { %8463 = vmatmul.mubr.msk.bf16.gmra.mrb[180].mxu1 %vm2753_vm0, %v5343_v27 }
0x1033   :  { %v5647_v19 = vpop.permute.xlu1 %5646  ;;  %8474 = vmatprep.mubr.msk.bf16.mxu1 %vm2753_vm0, %v5450_v45 }
0x1034   :  { %8482 = vmatprep.subr.bf16.mxu0 %v5647_v19 }
0x1035   :  { %8483 = vmatpush3.bf16.msra.mxu0 %v5647_v19 }
0x1037   :  { %v5651_v39 = vpop.permute.xlu1 %5650 }
0x103a   :  { %8475 = vmatmul.mubr.msk.bf16.vlgmr.msra.gmra.mrb[184].mxu1 %vm2753_vm0, %v5452_v50 }
0x103b   :  { %8515 = vmatpush3.bf16.msra.mxu1 %v12671_v43  ;;  %8478 = vmatprep.mubr.msk.bf16.mxu1 %vm2753_vm0, %v5454_v18 }
0x103c   :  { %8516 = vmatprep.subr.bf16.mxu1 %v12673_v14 }
0x103f   :  { %8517 = vmatpush3.bf16.msra.mxu1 %v12673_v14 }
0x1040   :  { %8518 = vmatprep.subr.bf16.mxu1 %v12674_v1 }
0x1042   :  { %8479 = vmatmul.mubr.msk.bf16.gmra.mrb[188].mxu1 %vm2753_vm0, %v5456_v6 }
0x1043   :  { %8519 = vmatpush3.bf16.msra.mxu1 %v12674_v1 }
0x1044   :  { %8520 = vmatprep.subr.bf16.mxu1 %v12675_v40 }
0x1047   :  { %8521 = vmatpush3.bf16.msra.mxu1 %v12675_v40 }
0x10ce   :  { %v11349_v31 = vpop.f32.mrb[176].mxu1 }
0x10cf   :  { %12676 = vst [vmem:[#allocation44_spill] sm:$0xff] %v11349_v31  ;;  %v11351_v41 = vpop.f32.mrb[177].mxu1 }
0x10d0   :  { %12677 = vst [vmem:[#allocation45_spill] sm:$0xff] %v11351_v41  ;;  %v11353_v49 = vpop.f32.mrb[178].mxu1 }
0x10d1   :  { %12678 = vst [vmem:[#allocation46_spill] sm:$0xff] %v11353_v49  ;;  %v11355_v36 = vpop.f32.mrb[179].mxu1 }
0x10d2   :  { %12679 = vst [vmem:[#allocation130_spill] sm:$0xff] %v11355_v36  ;;  %v12691_v36 = vld [vmem:[#allocation25_spill] sm:$0xff] }
0x1105   :  { %v11357_v50 = vpop.f32.mrb[180].mxu1 }
0x1106   :  { %12680 = vst [vmem:[#allocation131_spill] sm:$0xff] %v11357_v50  ;;  %v11359_v24 = vpop.f32.mrb[181].mxu1 }
0x1107   :  { %12681 = vst [vmem:[#allocation132_spill] sm:$0xff] %v11359_v24  ;;  %v11361_v59 = vpop.f32.mrb[182].mxu1 }
0x1108   :  { %12682 = vst [vmem:[#allocation133_spill] sm:$0xff] %v11361_v59  ;;  %v11363_v6 = vpop.f32.mrb[183].mxu1 }
0x1109   :  { %12683 = vst [vmem:[#allocation134_spill] sm:$0xff] %v11363_v6 }
0x110d   :  { %v8476_v27 = vpop.f32.mrb[184].mxu1 }
0x110e   :  { %v11367_v45 = vsel %vm10352_vm1, %v8476_v27, -inf  ;;  %v5527_v19 = vpop.f32.mrb[185].mxu1 }
0x110f   :  { %v5572_v18 = vsel %vm2753_vm0, %v11367_v45, -inf  ;;  %v8477_v31 = vpop.f32.mrb[186].mxu1  ;;  %v11373_v49 = vsel %vm10361_vm2, %v5527_v19, -inf }
0x1110   :  { %5573 = vmax.xlane.f32.xlu0 %v5572_v18  ;;  %v5530_v50 = vpop.f32.mrb[187].mxu1  ;;  %v5566_v27 = vsel %vm2753_vm0, %v11373_v49, -inf  ;;  %v11382_v6 = vsel %vm10382_vm4, %v8477_v31, -inf }
0x1111   :  { %v5559_v59 = vsel %vm10368_vm3, %v5530_v50, -inf  ;;  %v5575_v19 = vsel %vm2753_vm0, %v11382_v6, -inf }
0x1112   :  { %v5569_v24 = vsel %vm2753_vm0, %v5559_v59, -inf }
0x1113   :  { %5570 = vmax.xlane.f32.xlu1 %v5569_v24 }
0x1114   :  { %5567 = vmax.xlane.f32.xlu0 %v5566_v27 }
0x1115   :  { %v8480_v38 = vpop.f32.mrb[188].mxu1 }
0x1116   :  { %v5543_v44 = vpop.f32.mrb[189].mxu1 }
0x1117   :  { %v8481_v18 = vpop.f32.mrb[190].mxu1  ;;  %v11398_v24 = vsel %vm10415_vm6, %v5543_v44, -inf }
0x1118   :  { %5576 = vmax.xlane.f32.xlu0 %v5575_v19  ;;  %v5546_v41 = vpop.f32.mrb[191].mxu1  ;;  %v5578_v27 = vsel %vm2753_vm0, %v11398_v24, -inf  ;;  %v12684_v19 = vld [vmem:[#allocation30_spill] sm:$0xff] }
0x1119   :  { %v11392_v50 = vsel %vm10399_vm5, %v5546_v41, -inf  ;;  %v11410_v41 = vsel %vm10446_vm8, %v8481_v18, -inf  ;;  %v12688_v18 = vld [vmem:[#allocation27_spill] sm:$0xff] }
0x111a   :  { %v5581_v31 = vsel %vm2753_vm0, %v11392_v50, -inf  ;;  %v5587_v44 = vsel %vm2753_vm0, %v11410_v41, -inf }
0x1124   :  { %5652 = vrot.lane.b32.xlu1 %v12637_v37, %s9796_s2  ;;  %v11404_v37 = vsel %vm10429_vm7, %v8480_v38, -inf  ;;  %v12686_v38 = vld [vmem:[#allocation36_spill] sm:$0xff] }
0x112e   :  { %5648 = vrot.lane.b32.xlu0 %v12635_v57, %s9796_s2  ;;  %v5584_v57 = vsel %vm2753_vm0, %v11404_v37, -inf }
0x1148   :  { %5582 = vmax.xlane.f32.xlu1 %v5581_v31  ;;  %v12685_v31 = vld [vmem:[#allocation34_spill] sm:$0xff] }
0x114d   :  { %5579 = vmax.xlane.f32.xlu0 %v5578_v27  ;;  %v12687_v27 = vld [vmem:[#allocation23_spill] sm:$0xff] }
0x1151   :  { %5585 = vmax.xlane.f32.xlu0 %v5584_v57  ;;  %v12689_v57 = vld [vmem:[#allocation32_spill] sm:$0xff] }
0x1155   :  { %5588 = vmax.xlane.f32.xlu0 %v5587_v44  ;;  %v12690_v44 = vld [vmem:[#allocation21_spill] sm:$0xff] }
0x1159   :  { %6065 = vrot.lane.b32.xlu1 %v12684_v19, %s9796_s2 }
0x115d   :  { %6069 = vrot.lane.b32.xlu1 %v12685_v31, %s9796_s2 }
0x1161   :  { %6071 = vrot.lane.b32.xlu1 %v12686_v38, %s9796_s2 }
0x1165   :  { %6055 = vrot.lane.b32.xlu1 %v12687_v27, %s9796_s2 }
0x1169   :  { %6059 = vrot.lane.b32.xlu1 %v12688_v18, %s9796_s2 }
0x116b   :  { %6067 = vrot.lane.b32.xlu0 %v12689_v57, %s9796_s2 }
0x116d   :  { %6250 = vrot.lane.b32.xlu1 %v12671_v43, %s9796_s2  ;;  %v3802_v43 = vsel %vm2753_vm0, %v10771_v21, 0.0 }
0x116f   :  { %6053 = vrot.lane.b32.xlu0 %v12690_v44, %s9796_s2 }
0x1171   :  { %6254 = vrot.lane.b32.xlu1 %v12674_v1, %s9796_s2  ;;  %v3200_v1 = vsel %vm2753_vm0, %v10498_v5, 0.0 }
0x1173   :  { %6057 = vrot.lane.b32.xlu0 %v12691_v36, %s9796_s2 }
0x1175   :  { %6256 = vrot.lane.b32.xlu1 %v12675_v40, %s9796_s2 }
0x1177   :  { %6252 = vrot.lane.b32.xlu0 %v12673_v14, %s9796_s2  ;;  %v3811_v14 = vsel %vm2753_vm0, %v10778_v17, 0.0  ;;  %v3203_v17 = vsel %vm2753_vm0, %v12692_v58, 0.0  ;;  %v3212_v58 = vsel %vm2753_vm0, %v10535_v30, 0.0  ;;  %v3820_v30 = vsel %vm2753_vm0, %v10806_v56, 0.0 }
0x1178   :  { %v5013_v56 = vsel %vm2753_vm0, %v11185_v13, 0.0 }
0x1196   :  { %3806 = vadd.xlane.f32.xlu0 %v3805_v12  ;;  %v3808_v12 = vsel %vm2753_vm0, %v10775_v15, 0.0 }
0x1199   :  { %3803 = vadd.xlane.f32.xlu1 %v3802_v43 }
0x119a   :  { %3201 = vadd.xlane.f32.xlu0 %v3200_v1  ;;  %v3206_v1 = vsel %vm2753_vm0, %v10507_v16, 0.0 }
0x119d   :  { %3198 = vadd.xlane.f32.xlu1 %v3197_v61  ;;  %v5574_v40 = vpop.xlane.xlu0 %5573 }
0x119e   :  { %3812 = vadd.xlane.f32.xlu0 %v3811_v14  ;;  %v5592_v21 = vsub.f32 %v11367_v45, %v5574_v40 }
0x11a0   :  { %v5571_v23 = vpop.xlane.xlu1 %5570  ;;  %v5602_v14 = vmul.f32 1.442695, %v5592_v21 }
0x11a1   :  { %v5591_v43 = vsub.f32 %v5559_v59, %v5571_v23  ;;  %3809 = vadd.xlane.f32.xlu1 %v3808_v12  ;;  %v5568_v5 = vpop.xlane.xlu0 %5567  ;;  %v3817_v59 = vsel %vm2753_vm0, %v10799_v4, 0.0  ;;  %v3209_v4 = vsel %vm2753_vm0, %v10537_v62, 0.0  ;;  %v3218_v12 = vsel %vm2753_vm0, %v10548_v63, 0.0 }
0x11a2   :  { %v5590_v51 = vsub.f32 %v11373_v49, %v5568_v5  ;;  %3207 = vadd.xlane.f32.xlu0 %v3206_v1  ;;  %v3814_v49 = vsel %vm2753_vm0, %v10801_v7, 0.0  ;;  %v5010_v63 = vsel %vm2753_vm0, %v11187_v55, 0.0  ;;  %v5019_v5 = vsel %vm2753_vm0, %v11194_v3, 0.0 }
0x11a3   :  { %v5600_v61 = vmul.f32 1.442695, %v5591_v43  ;;  %v5788_v1 = vsel %vm2753_vm0, %v12684_v19, 0 }
0x11a4   :  { %v5598_v48 = vmul.f32 1.442695, %v5590_v51 }
0x11a5   :  { %9430 = vpow2.f32 %v5600_v61  ;;  %3204 = vadd.xlane.f32.xlu1 %v3203_v17  ;;  %v5577_v15 = vpop.xlane.xlu0 %5576  ;;  %v5797_v61 = vsel %vm2753_vm0, %v12686_v38, 0 }
0x11a6   :  { %9432 = vpow2.f32 %v5598_v48  ;;  %v5593_v45 = vsub.f32 %v11382_v6, %v5577_v15  ;;  %3818 = vadd.xlane.f32.xlu0 %v3817_v59  ;;  %v3823_v48 = vsel %vm2753_vm0, %v10808_v11, 0.0  ;;  %v5653_v6 = vpop.permute.xlu1 %5652 }
0x11a7   :  { %9434 = vpow2.f32 %v5602_v14 }
0x11a8   :  { %v5604_v16 = vmul.f32 1.442695, %v5593_v45 }
0x11a9   :  { %3815 = vadd.xlane.f32.xlu1 %v3814_v49  ;;  %v5649_v40 = vpop.permute.xlu0 %5648 }
0x11aa   :  { %9436 = vpow2.f32 %v5604_v16  ;;  %3213 = vadd.xlane.f32.xlu0 %v3212_v58  ;;  %8484 = vmatprep.subr.bf16.mxu0 %v5649_v40 }
0x11ab   :  { %8485 = vmatpush3.bf16.msra.mxu0 %v5649_v40 }
0x11ac   :  { %8486 = vmatprep.subr.bf16.mxu0 %v5651_v39 }
0x11ad   :  { %3210 = vadd.xlane.f32.xlu1 %v3209_v4 }
0x11ae   :  { %3824 = vadd.xlane.f32.xlu0 %v3823_v48 }
0x11af   :  { %v9431_v7 = vpop.eup %9430  ;;  %8487 = vmatpush3.bf16.msra.mxu0 %v5651_v39  ;;  %v3215_v39 = vsel %vm2753_vm0, %v10546_v8, 0.0  ;;  %v5016_v8 = vsel %vm2753_vm0, %v11191_v22, 0.0  ;;  %v5794_v22 = vsel %vm2753_vm0, %v12685_v31, 0 }
0x11b0   :  { %v9433_v23 = vpop.eup %9432  ;;  %8488 = vmatprep.subr.bf16.mxu0 %v5653_v6  ;;  %v5617_v3 = vsel %vm2753_vm0, %v9431_v7, 0.0 }
0x11b1   :  { %3821 = vadd.xlane.f32.xlu1 %v3820_v30  ;;  %v5638_v21 = vpack.c.bf16 %v9431_v7, %v9433_v23  ;;  %v9435_v62 = vpop.eup %9434  ;;  %v5614_v51 = vsel %vm2753_vm0, %v9433_v23, 0.0 }
0x11b2   :  { %3219 = vadd.xlane.f32.xlu0 %v3218_v12  ;;  %v5620_v55 = vsel %vm2753_vm0, %v9435_v62, 0.0 }
0x11b3   :  { %8489 = vmatpush3.bf16.msra.mxu0 %v5653_v6  ;;  %8490 = vmatprep.mubr.msk.bf16.mxu0 %vm2753_vm0, %v5638_v21 }
0x11b4   :  { %v9437_v11 = vpop.eup %9436  ;;  %8826 = vmatprep.subr.msk.bf16.mxu0 %vm2753_vm0, %v12684_v19  ;;  %v5791_v19 = vsel %vm2753_vm0, %v12689_v57, 0 }
0x11b5   :  { %v5639_v43 = vpack.c.bf16 %v9437_v11, %v9435_v62  ;;  %3216 = vadd.xlane.f32.xlu1 %v3215_v39  ;;  %v5623_v13 = vsel %vm2753_vm0, %v9437_v11, 0.0 }
0x11b6   :  { %5014 = vadd.xlane.f32.xlu0 %v5013_v56 }
0x11b7   :  { %8491 = vmatmul.mubr.msk.bf16.vlgmr.msra.gmra.mrb[168].mxu0 %vm2753_vm0, %v5639_v43 }
0x11b9   :  { %5011 = vadd.xlane.f32.xlu1 %v5010_v63 }
0x11ba   :  { %5020 = vadd.xlane.f32.xlu0 %v5019_v5 }
0x11bc   :  { %8499 = vmatpush3.bf16.xpose.msra.mxu0 %v5788_v1 }
0x11bd   :  { %5017 = vadd.xlane.f32.xlu1 %v5016_v8  ;;  %8827 = vmatprep.subr.msk.bf16.mxu0 %vm2753_vm0, %v12689_v57 }
0x11be   :  { %5624 = vadd.xlane.f32.xlu0 %v5623_v13 }
0x11c1   :  { %5621 = vadd.xlane.f32.xlu1 %v5620_v55 }
0x11c2   :  { %5618 = vadd.xlane.f32.xlu0 %v5617_v3 }
0x11c4   :  { %8501 = vmatpush3.bf16.xpose.msra.mxu0 %v5791_v19 }
0x11c5   :  { %5615 = vadd.xlane.f32.xlu1 %v5614_v51  ;;  %8828 = vmatprep.subr.msk.bf16.mxu0 %vm2753_vm0, %v12685_v31 }
0x11cc   :  { %8503 = vmatpush3.bf16.xpose.msra.mxu0 %v5794_v22 }
0x11cd   :  { %8829 = vmatprep.subr.msk.bf16.mxu0 %vm2753_vm0, %v12686_v38 }
0x11d4   :  { %8505 = vmatpush3.bf16.xpose.msra.mxu0 %v5797_v61 }
0x11d5   :  { %v5583_v17 = vpop.xlane.xlu1 %5582 }
0x11d6   :  { %v5595_v57 = vsub.f32 %v11392_v50, %v5583_v17 }
0x11d8   :  { %v5608_v14 = vmul.f32 1.442695, %v5595_v57 }
0x11d9   :  { %v11504_v15 = vpop.permute.xlu1 %6065 }
0x11da   :  { %9438 = vpow2.f32 %v5608_v14  ;;  %8830 = vmatprep.subr.msk.bf16.mxu1 %vm2753_vm0, %v11504_v15  ;;  %v5580_v59 = vpop.xlane.xlu0 %5579  ;;  %v12706_v14 = vld [vmem:[#allocation33_spill] sm:$0xff] }
0x11db   :  { %v5594_v31 = vsub.f32 %v11398_v24, %v5580_v59 }
0x11dd   :  { %v5606_v45 = vmul.f32 1.442695, %v5594_v31  ;;  %v11509_v16 = vpop.permute.xlu1 %6069 }
0x11de   :  { %v5586_v49 = vpop.xlane.xlu0 %5585 }
0x11df   :  { %9440 = vpow2.f32 %v5606_v45  ;;  %v5596_v38 = vsub.f32 %v11404_v37, %v5586_v49  ;;  %v5025_v37 = vsel %vm2753_vm0, %v11215_v10, 0.0 }
0x11e1   :  { %v11512_v40 = vpop.permute.xlu1 %6071  ;;  %v5610_v50 = vmul.f32 1.442695, %v5596_v38 }
0x11e2   :  { %v5589_v58 = vpop.xlane.xlu0 %5588 }
0x11e3   :  { %v5597_v4 = vsub.f32 %v11410_v41, %v5589_v58  ;;  %9442 = vpow2.f32 %v5610_v50 }
0x11e4   :  { %v9439_v48 = vpop.eup %9438 }
0x11e5   :  { %v5612_v7 = vmul.f32 1.442695, %v5597_v4  ;;  %v11515_v6 = vpop.permute.xlu1 %6055  ;;  %v5629_v23 = vsel %vm2753_vm0, %v9439_v48, 0.0 }
0x11e6   :  { %5630 = vadd.xlane.f32.xlu0 %v5629_v23  ;;  %v11523_v41 = vpop.permute.xlu0 %6067 }
0x11e7   :  { %9444 = vpow2.f32 %v5612_v7 }
0x11e9   :  { %v9441_v24 = vpop.eup %9440  ;;  %v11518_v30 = vpop.permute.xlu1 %6059 }
0x11ea   :  { %5026 = vadd.xlane.f32.xlu0 %v5025_v37  ;;  %v5626_v12 = vsel %vm2753_vm0, %v9441_v24, 0.0  ;;  %v5640_v21 = vpack.c.bf16 %v9439_v48, %v9441_v24  ;;  %v11530_v43 = vpop.permute.xlu0 %6053 }
0x11eb   :  { %5627 = vadd.xlane.f32.xlu1 %v5626_v12 }
0x11ec   :  { %8494 = vmatprep.mubr.msk.bf16.mxu0 %vm2753_vm0, %v5640_v21 }
0x11ed   :  { %v6251_v62 = vpop.permute.xlu1 %6250  ;;  %v11526_v11 = vpop.eup %9442 }
0x11ee   :  { %8546 = vmatprep.subr.bf16.mxu0 %v6251_v62  ;;  %v11537_v56 = vpop.permute.xlu0 %6057 }
0x11f1   :  { %v11528_v39 = vpop.eup %9444  ;;  %v6255_v5 = vpop.permute.xlu1 %6254 }
0x11f2   :  { %v5641_v10 = vpack.c.bf16 %v11528_v39, %v11526_v11  ;;  %v6253_v63 = vpop.permute.xlu0 %6252 }
0x11f4   :  { %8495 = vmatmul.mubr.msk.bf16.gmra.mrb[172].mxu0 %vm2753_vm0, %v5641_v10 }
0x11f5   :  { %8506 = vmatprep.mubr.msk.bf16.mxu0 %vm2753_vm0, %v12690_v44  ;;  %v6257_v1 = vpop.permute.xlu1 %6256 }
0x11fc   :  { %8507 = vmatmul.mubr.msk.bf16.vlgmr.msra.gmra.mrb[176].mxu0 %vm2753_vm0, %v12687_v27 }
0x11fd   :  { %8547 = vmatpush3.bf16.msra.mxu0 %v6251_v62  ;;  %8510 = vmatprep.mubr.msk.bf16.mxu0 %vm2753_vm0, %v12691_v36 }
0x11fe   :  { %8548 = vmatprep.subr.bf16.mxu0 %v6253_v63 }
0x1201   :  { %8549 = vmatpush3.bf16.msra.mxu0 %v6253_v63 }
0x1202   :  { %8550 = vmatprep.subr.bf16.mxu0 %v6255_v5 }
0x1204   :  { %8511 = vmatmul.mubr.msk.bf16.gmra.mrb[180].mxu0 %vm2753_vm0, %v12688_v18 }
0x1205   :  { %8551 = vmatpush3.bf16.msra.mxu0 %v6255_v5 }
0x1206   :  { %8552 = vmatprep.subr.bf16.mxu0 %v6257_v1 }
0x1209   :  { %8553 = vmatpush3.bf16.msra.mxu0 %v6257_v1 }
0x1223   :  { %v3807_v44 = vpop.xlane.xlu0 %3806 }
0x1224   :  { %9446 = vrcp.f32 %v3807_v44 }
0x1226   :  { %v3804_v8 = vpop.xlane.xlu1 %3803 }
0x1227   :  { %9448 = vrcp.f32 %v3804_v8  ;;  %v3202_v27 = vpop.xlane.xlu0 %3201 }
0x1228   :  { %9450 = vrcp.f32 %v3202_v27  ;;  %v12693_v27 = vld [vmem:[#allocation58_spill] sm:$0xff] }
0x122a   :  { %v3199_v13 = vpop.xlane.xlu1 %3198 }
0x122b   :  { %9452 = vrcp.f32 %v3199_v13  ;;  %v3813_v36 = vpop.xlane.xlu0 %3812 }
0x122c   :  { %9454 = vrcp.f32 %v3813_v36  ;;  %v12694_v36 = vld [vmem:[#allocation60_spill] sm:$0xff] }
0x122e   :  { %v3810_v55 = vpop.xlane.xlu1 %3809  ;;  %v9447_v3 = vpop.eup %9446 }
0x122f   :  { %9456 = vrcp.f32 %v3810_v55  ;;  %v3208_v19 = vpop.xlane.xlu0 %3207  ;;  %v11549_v61 = vmul.f32 %v9447_v3, %v10827_v47 }
0x1230   :  { %9458 = vrcp.f32 %v3208_v19 }
0x1231   :  { %v9449_v51 = vpop.eup %9448 }
0x1232   :  { %v3205_v18 = vpop.xlane.xlu1 %3204  ;;  %v11546_v22 = vmul.f32 %v9449_v51, %v10823_v52  ;;  %v9451_v17 = vpop.eup %9450 }
0x1233   :  { %9460 = vrcp.f32 %v3205_v18  ;;  %v3819_v57 = vpop.xlane.xlu0 %3818  ;;  %v11557_v49 = vmul.f32 %v9451_v17, %v10603_v60  ;;  %v12695_v18 = vld [vmem:[#allocation85_spill] sm:$0xff] }
0x1234   :  { %9462 = vrcp.f32 %v3819_v57  ;;  %v12696_v57 = vld [vmem:[#allocation86_spill] sm:$0xff] }
0x1235   :  { %v9453_v59 = vpop.eup %9452 }
0x1236   :  { %v3816_v31 = vpop.xlane.xlu1 %3815  ;;  %v11554_v45 = vmul.f32 %v9453_v59, %v10599_v28  ;;  %v9455_v52 = vpop.eup %9454 }
0x1237   :  { %9464 = vrcp.f32 %v3816_v31  ;;  %v3214_v38 = vpop.xlane.xlu0 %3213  ;;  %v11565_v48 = vmul.f32 %v9455_v52, %v10825_v46 }
0x1238   :  { %9466 = vrcp.f32 %v3214_v38 }
0x1239   :  { %v9457_v50 = vpop.eup %9456 }
0x123a   :  { %v3211_v58 = vpop.xlane.xlu1 %3210  ;;  %v11562_v4 = vmul.f32 %v9457_v50, %v10821_v9  ;;  %v9459_v28 = vpop.eup %9458  ;;  %v12697_v50 = vld [vmem:[#allocation57_spill] sm:$0xff] }
0x123b   :  { %9468 = vrcp.f32 %v3211_v58  ;;  %v3825_v7 = vpop.xlane.xlu0 %3824  ;;  %v11573_v12 = vmul.f32 %v9459_v28, %v10601_v2  ;;  %v12698_v28 = vld [vmem:[#allocation59_spill] sm:$0xff] }
0x123c   :  { %9470 = vrcp.f32 %v3825_v7 }
0x123d   :  { %v9461_v23 = vpop.eup %9460 }
0x123e   :  { %v3822_v24 = vpop.xlane.xlu1 %3821  ;;  %v11570_v37 = vmul.f32 %v9461_v23, %v10597_v42  ;;  %v9463_v9 = vpop.eup %9462 }
0x123f   :  { %9472 = vrcp.f32 %v3822_v24  ;;  %v3220_v21 = vpop.xlane.xlu0 %3219  ;;  %v11581_v5 = vmul.f32 %v9463_v9, %v10835_v35  ;;  %v12703_v35 = vld [vmem:[#allocation29_spill] sm:$0xff] }
0x1240   :  { %9474 = vrcp.f32 %v3220_v21  ;;  %v12699_v21 = vld [vmem:[#allocation14_spill] sm:$0xff]  ;;  %v5022_v2 = vsel %vm2753_vm0, %v12703_v35, 0.0  ;;  %v12707_v35 = vld [vmem:[#allocation31_spill] sm:$0xff] }
0x1241   :  { %v9465_v62 = vpop.eup %9464 }
0x1242   :  { %v3217_v10 = vpop.xlane.xlu1 %3216  ;;  %v11578_v63 = vmul.f32 %v9465_v62, %v10831_v33  ;;  %v9467_v42 = vpop.eup %9466 }
0x1243   :  { %9476 = vrcp.f32 %v3217_v10  ;;  %v5015_v1 = vpop.xlane.xlu0 %5014  ;;  %v11589_v55 = vmul.f32 %v9467_v42, %v12694_v36  ;;  %v12700_v10 = vld [vmem:[#allocation18_spill] sm:$0xff] }
0x1244   :  { %9478 = vrcp.f32 %v5015_v1 }
0x1245   :  { %v9469_v44 = vpop.eup %9468 }
0x1246   :  { %v5012_v8 = vpop.xlane.xlu1 %5011  ;;  %v11586_v13 = vmul.f32 %v9469_v44, %v12693_v27  ;;  %v9471_v33 = vpop.eup %9470  ;;  %v12701_v27 = vld [vmem:[#allocation35_spill] sm:$0xff] }
0x1247   :  { %9480 = vrcp.f32 %v5012_v8  ;;  %v5021_v3 = vpop.xlane.xlu0 %5020  ;;  %v11597_v59 = vmul.f32 %v9471_v33, %v12696_v57  ;;  %v12702_v33 = vld [vmem:[#allocation16_spill] sm:$0xff] }
0x1248   :  { %9482 = vrcp.f32 %v5021_v3 }
0x1249   :  { %v9473_v19 = vpop.eup %9472 }
0x124a   :  { %v5018_v51 = vpop.xlane.xlu1 %5017  ;;  %v11594_v17 = vmul.f32 %v9473_v19, %v12695_v18  ;;  %v9475_v31 = vpop.eup %9474 }
0x124b   :  { %9484 = vrcp.f32 %v5018_v51  ;;  %v11605_v7 = vmul.f32 %v9475_v31, %v12698_v28  ;;  %v5625_v51 = vpop.xlane.xlu0 %5624 }
0x124c   :  { %9486 = vrcp.f32 %v5625_v51 }
0x124d   :  { %v9477_v38 = vpop.eup %9476 }
0x124e   :  { %v11602_v58 = vmul.f32 %v9477_v38, %v12697_v50  ;;  %v9479_v23 = vpop.eup %9478  ;;  %v5622_v18 = vpop.xlane.xlu1 %5621 }
0x124f   :  { %v11613_v42 = vmul.f32 %v9479_v23, %v12700_v10  ;;  %v5619_v57 = vpop.xlane.xlu0 %5618  ;;  %9488 = vrcp.f32 %v5622_v18 }
0x1250   :  { %9490 = vrcp.f32 %v5619_v57 }
0x1251   :  { %v9481_v9 = vpop.eup %9480 }
0x1252   :  { %v11610_v62 = vmul.f32 %v9481_v9, %v12699_v21  ;;  %v9483_v1 = vpop.eup %9482  ;;  %v5616_v31 = vpop.xlane.xlu1 %5615 }
0x1253   :  { %v11621_v3 = vmul.f32 %v9483_v1, %v12702_v33  ;;  %9492 = vrcp.f32 %v5616_v31 }
0x1255   :  { %v9485_v8 = vpop.eup %9484 }
0x1256   :  { %v11618_v36 = vmul.f32 %v9485_v8, %v12701_v27  ;;  %v9487_v38 = vpop.eup %9486 }
0x1259   :  { %v9489_v28 = vpop.eup %9488 }
0x125a   :  { %v9491_v9 = vpop.eup %9490 }
0x125d   :  { %v9493_v10 = vpop.eup %9492 }
0x1273   :  { %v5631_v57 = vpop.xlane.xlu0 %5630 }
0x1274   :  { %9494 = vrcp.f32 %v5631_v57 }
0x1278   :  { %v5628_v31 = vpop.xlane.xlu1 %5627 }
0x1279   :  { %9496 = vrcp.f32 %v5628_v31 }
0x128a   :  { %v8492_v50 = vpop.f32.mrb[168].mxu0 }
0x128b   :  { %v5704_v23 = vpop.f32.mrb[169].mxu0  ;;  %v11625_v1 = vmul.f32 %v9489_v28, %v8492_v50 }
0x128c   :  { %v8493_v21 = vpop.f32.mrb[170].mxu0  ;;  %v11629_v33 = vmul.f32 %v9493_v10, %v5704_v23 }
0x128d   :  { %v11627_v8 = vmul.f32 %v9487_v38, %v8493_v21  ;;  %v5707_v27 = vpop.f32.mrb[171].mxu0  ;;  %v9495_v38 = vpop.eup %9494 }
0x128e   :  { %v11631_v19 = vmul.f32 %v9491_v9, %v5707_v27  ;;  %v9497_v23 = vpop.eup %9496 }
0x12c7   :  { %v11637_v44 = vpop.f32.mrb[172].mxu0 }
0x12c8   :  { %v5720_v50 = vpop.f32.mrb[173].mxu0 }
0x12c9   :  { %v11639_v28 = vpop.f32.mrb[174].mxu0  ;;  %v11641_v9 = vmul.f32 %v9497_v23, %v5720_v50 }
0x12ca   :  { %v5723_v21 = vpop.f32.mrb[175].mxu0 }
0x12cb   :  { %v11643_v10 = vmul.f32 %v9495_v38, %v5723_v21 }
0x12cf   :  { %v8508_v51 = vpop.f32.mrb[176].mxu0 }
0x12d0   :  { %v11649_v57 = vsel %vm10352_vm1, %v8508_v51, -inf  ;;  %v5833_v31 = vpop.f32.mrb[177].mxu0 }
0x12d1   :  { %v5878_v18 = vsel %vm2753_vm0, %v11649_v57, -inf  ;;  %v8509_v24 = vpop.f32.mrb[178].mxu0  ;;  %v11655_v52 = vsel %vm10361_vm2, %v5833_v31, -inf }
0x12d2   :  { %v11659_v50 = vsel %vm10382_vm4, %v8509_v24, -inf  ;;  %5879 = vmax.xlane.f32.xlu1 %v5878_v18  ;;  %v5836_v38 = vpop.f32.mrb[179].mxu0  ;;  %v5872_v21 = vsel %vm2753_vm0, %v11655_v52, -inf }
0x12d3   :  { %v5881_v23 = vsel %vm2753_vm0, %v11659_v50, -inf  ;;  %v11665_v51 = vsel %vm10368_vm3, %v5836_v38, -inf  ;;  %v5635_v38 = vsel %vm2753_vm0, %v11528_v39, 0.0  ;;  %v5028_v39 = vsel %vm2753_vm0, %v12707_v35, 0.0  ;;  %v12710_v35 = vld [vmem:[#allocation69_spill] sm:$0xff] }
0x12d4   :  { %5882 = vmax.xlane.f32.xlu0 %v5881_v23  ;;  %v5875_v31 = vsel %vm2753_vm0, %v11665_v51, -inf  ;;  %v5632_v23 = vsel %vm2753_vm0, %v11526_v11, 0.0  ;;  %v12708_v11 = vld [vmem:[#allocation50_spill] sm:$0xff] }
0x12d6   :  { %5873 = vmax.xlane.f32.xlu1 %v5872_v21  ;;  %v12704_v21 = vld [vmem:[#allocation71_spill] sm:$0xff] }
0x12d7   :  { %v8512_v27 = vpop.f32.mrb[180].mxu0  ;;  %v3507_v60 = vsel %vm2753_vm0, %v12704_v21, 0.0 }
0x12d8   :  { %5876 = vmax.xlane.f32.xlu0 %v5875_v31  ;;  %v5849_v24 = vpop.f32.mrb[181].mxu0  ;;  %v12705_v31 = vld [vmem:[#allocation70_spill] sm:$0xff] }
0x12d9   :  { %v8513_v18 = vpop.f32.mrb[182].mxu0  ;;  %v3504_v47 = vsel %vm2753_vm0, %v12705_v31, 0.0 }
0x12da   :  { %5023 = vadd.xlane.f32.xlu1 %v5022_v2  ;;  %v5852_v46 = vpop.f32.mrb[183].mxu0  ;;  %v5031_v2 = vsel %vm2753_vm0, %v12706_v14, 0.0 }
0x12db   :  { %v11705_v21 = vsel %vm10399_vm5, %v5852_v46, -inf }
0x12dc   :  { %5636 = vadd.xlane.f32.xlu0 %v5635_v38  ;;  %v11687_v38 = vsel %vm10429_vm7, %v8512_v27, -inf  ;;  %v5887_v31 = vsel %vm2753_vm0, %v11705_v21, -inf }
0x12dd   :  { %v5890_v14 = vsel %vm2753_vm0, %v11687_v38, -inf }
0x12de   :  { %5633 = vadd.xlane.f32.xlu1 %v5632_v23  ;;  %v2902_v23 = vsel %vm2753_vm0, %v12708_v11, 0.0  ;;  %v12711_v11 = vld [vmem:[#allocation72_spill] sm:$0xff] }
0x12df   :  { %v3510_v46 = vsel %vm2753_vm0, %v12711_v11, 0.0 }
0x12e0   :  { %3508 = vadd.xlane.f32.xlu0 %v3507_v60  ;;  %v11693_v60 = vsel %vm10446_vm8, %v8513_v18, -inf }
0x12e1   :  { %v5893_v27 = vsel %vm2753_vm0, %v11693_v60, -inf }
0x12e2   :  { %3505 = vadd.xlane.f32.xlu1 %v3504_v47  ;;  %v11699_v47 = vsel %vm10415_vm6, %v5849_v24, -inf }
0x12e3   :  { %v5884_v18 = vsel %vm2753_vm0, %v11699_v47, -inf }
0x12e4   :  { %5032 = vadd.xlane.f32.xlu0 %v5031_v2  ;;  %v12709_v2 = vld [vmem:[#allocation49_spill] sm:$0xff] }
0x12e5   :  { %v2899_v24 = vsel %vm2753_vm0, %v12709_v2, 0.0 }
0x12e6   :  { %5029 = vadd.xlane.f32.xlu1 %v5028_v39  ;;  %v3513_v39 = vsel %vm2753_vm0, %v12710_v35, 0.0 }
0x12e8   :  { %2903 = vadd.xlane.f32.xlu0 %v2902_v23  ;;  %v12712_v23 = vld [vmem:[#allocation101_spill] sm:$0xff] }
0x12ea   :  { %5891 = vmax.xlane.f32.xlu1 %v5890_v14  ;;  %v4409_v14 = vsel %vm2753_vm0, %v12712_v23, 0.0 }
0x12ec   :  { %5894 = vmax.xlane.f32.xlu0 %v5893_v27  ;;  %v12713_v27 = vld [vmem:[#allocation102_spill] sm:$0xff] }
0x12ee   :  { %5885 = vmax.xlane.f32.xlu1 %v5884_v18  ;;  %v4406_v18 = vsel %vm2753_vm0, %v12713_v27, 0.0 }
0x12f0   :  { %5888 = vmax.xlane.f32.xlu0 %v5887_v31  ;;  %v12714_v31 = vld [vmem:[#allocation52_spill] sm:$0xff] }
0x12f1   :  { %v2908_v2 = vsel %vm2753_vm0, %v12714_v31, 0.0 }
0x12f2   :  { %2900 = vadd.xlane.f32.xlu1 %v2899_v24  ;;  %v12715_v24 = vld [vmem:[#allocation51_spill] sm:$0xff] }
0x12f3   :  { %v2905_v35 = vsel %vm2753_vm0, %v12715_v24, 0.0 }
0x12f4   :  { %3514 = vadd.xlane.f32.xlu0 %v3513_v39  ;;  %v12716_v39 = vld [vmem:[#allocation73_spill] sm:$0xff] }
0x12f5   :  { %v3519_v11 = vsel %vm2753_vm0, %v12716_v39, 0.0 }
0x12f6   :  { %3511 = vadd.xlane.f32.xlu1 %v3510_v46  ;;  %v12717_v46 = vld [vmem:[#allocation75_spill] sm:$0xff] }
0x12f7   :  { %v3516_v23 = vsel %vm2753_vm0, %v12717_v46, 0.0 }
0x12f8   :  { %4410 = vadd.xlane.f32.xlu0 %v4409_v14  ;;  %v12718_v14 = vld [vmem:[#allocation104_spill] sm:$0xff] }
0x12f9   :  { %v4415_v27 = vsel %vm2753_vm0, %v12718_v14, 0.0 }
0x12fa   :  { %4407 = vadd.xlane.f32.xlu1 %v4406_v18  ;;  %v12719_v18 = vld [vmem:[#allocation103_spill] sm:$0xff] }
0x12fb   :  { %v4412_v31 = vsel %vm2753_vm0, %v12719_v18, 0.0 }
0x12fc   :  { %2909 = vadd.xlane.f32.xlu0 %v2908_v2  ;;  %v12720_v2 = vld [vmem:[#allocation54_spill] sm:$0xff] }
0x12fd   :  { %v2914_v24 = vsel %vm2753_vm0, %v12720_v2, 0.0 }
0x12fe   :  { %2906 = vadd.xlane.f32.xlu1 %v2905_v35  ;;  %v12721_v35 = vld [vmem:[#allocation53_spill] sm:$0xff] }
0x12ff   :  { %v2911_v39 = vsel %vm2753_vm0, %v12721_v35, 0.0 }
0x1300   :  { %3520 = vadd.xlane.f32.xlu0 %v3519_v11  ;;  %v12722_v11 = vld [vmem:[#allocation76_spill] sm:$0xff] }
0x1301   :  { %v3525_v46 = vsel %vm2753_vm0, %v12722_v11, 0.0 }
0x1302   :  { %3517 = vadd.xlane.f32.xlu1 %v3516_v23  ;;  %v12723_v23 = vld [vmem:[#allocation74_spill] sm:$0xff] }
0x1303   :  { %v3522_v14 = vsel %vm2753_vm0, %v12723_v23, 0.0  ;;  %v12729_v23 = vpack.c.bf16 %v11557_v49, %v11554_v45  ;;  %v12734_v49 = vld [vmem:[#allocation110_spill] sm:$0xff] }
0x1304   :  { %4416 = vadd.xlane.f32.xlu0 %v4415_v27  ;;  %v12724_v27 = vld [vmem:[#allocation22_spill] sm:$0xff] }
0x1305   :  { %v4421_v18 = vsel %vm2753_vm0, %v12724_v27, 0.0 }
0x1306   :  { %4413 = vadd.xlane.f32.xlu1 %v4412_v31  ;;  %v12725_v31 = vld [vmem:[#allocation24_spill] sm:$0xff] }
0x1307   :  { %v4418_v2 = vsel %vm2753_vm0, %v12725_v31, 0.0 }
0x1308   :  { %2915 = vadd.xlane.f32.xlu0 %v2914_v24  ;;  %v12726_v24 = vld [vmem:[#allocation56_spill] sm:$0xff] }
0x1309   :  { %v2920_v35 = vsel %vm2753_vm0, %v12726_v24, 0.0  ;;  %v12732_v24 = vld [vmem:[#allocation125_spill] sm:$0xff] }
0x130a   :  { %2912 = vadd.xlane.f32.xlu1 %v2911_v39  ;;  %v12727_v39 = vld [vmem:[#allocation55_spill] sm:$0xff] }
0x130b   :  { %v2917_v11 = vsel %vm2753_vm0, %v12727_v39, 0.0  ;;  %v5027_v39 = vpop.xlane.xlu0 %5026 }
0x130c   :  { %3526 = vadd.xlane.f32.xlu0 %v3525_v46  ;;  %v12728_v46 = vpack.c.bf16 %v11549_v61, %v11546_v22  ;;  %v5316_v22 = vsel %vm2753_vm0, %v12732_v24, 0.0  ;;  %v12733_v61 = vld [vmem:[#allocation111_spill] sm:$0xff]  ;;  %9498 = vrcp.f32 %v5027_v39 }
0x130d   :  { %v4715_v45 = vsel %vm2753_vm0, %v12733_v61, 0.0 }
0x130e   :  { %3523 = vadd.xlane.f32.xlu1 %v3522_v14  ;;  %v12730_v14 = vld [vmem:[#allocation28_spill] sm:$0xff] }
0x130f   :  { %v4427_v27 = vsel %vm2753_vm0, %v12730_v14, 0.0 }
0x1310   :  { %4422 = vadd.xlane.f32.xlu0 %v4421_v18  ;;  %v12731_v18 = vld [vmem:[#allocation26_spill] sm:$0xff] }
0x1311   :  { %v4424_v31 = vsel %vm2753_vm0, %v12731_v18, 0.0 }
0x1312   :  { %4419 = vadd.xlane.f32.xlu1 %v4418_v2  ;;  %v5319_v2 = vsel %vm2753_vm0, %v11305_v20, 0.0 }
0x1314   :  { %2921 = vadd.xlane.f32.xlu0 %v2920_v35  ;;  %v4712_v35 = vsel %vm2753_vm0, %v12734_v49, 0.0 }
0x1316   :  { %2918 = vadd.xlane.f32.xlu1 %v2917_v11  ;;  %v9499_v49 = vpop.eup %9498 }
0x1327   :  { %3947 = vrot.lane.b32.xlu1 %v12728_v46, %s9796_s2 }
0x132a   :  { %3342 = vrot.lane.b32.xlu0 %v12729_v23, %s9796_s2 }
0x1349   :  { %4428 = vadd.xlane.f32.xlu0 %v4427_v27 }
0x134b   :  { %4425 = vadd.xlane.f32.xlu1 %v4424_v31 }
0x134d   :  { %5320 = vadd.xlane.f32.xlu0 %v5319_v2  ;;  %v12735_v2 = vpack.c.bf16 %v11565_v48, %v11562_v4 }
0x134f   :  { %5317 = vadd.xlane.f32.xlu1 %v5316_v22 }
0x1351   :  { %4716 = vadd.xlane.f32.xlu0 %v4715_v45 }
0x1353   :  { %4713 = vadd.xlane.f32.xlu1 %v4712_v35 }
0x135f   :  { %v5880_v11 = vpop.xlane.xlu1 %5879 }
0x1360   :  { %v5898_v46 = vsub.f32 %v11649_v57, %v5880_v11 }
0x1361   :  { %v5883_v23 = vpop.xlane.xlu0 %5882 }
0x1362   :  { %v5908_v14 = vmul.f32 1.442695, %v5898_v46  ;;  %v5899_v20 = vsub.f32 %v11659_v50, %v5883_v23  ;;  %v12736_v50 = vpack.c.bf16 %v11573_v12, %v11570_v37 }
0x1363   :  { %v5874_v27 = vpop.xlane.xlu1 %5873 }
0x1364   :  { %v5910_v18 = vmul.f32 1.442695, %v5899_v20  ;;  %v5896_v31 = vsub.f32 %v11655_v52, %v5874_v27  ;;  %3949 = vrot.lane.b32.xlu1 %v12735_v2, %s9796_s2  ;;  %9500 = vpow2.f32 %v5908_v14  ;;  %v12737_v14 = vld [vmem:[#allocation121_spill] sm:$0xff]  ;;  %v12738_v27 = vld [vmem:[#allocation123_spill] sm:$0xff] }
0x1365   :  { %v5877_v24 = vpop.xlane.xlu0 %5876 }
0x1366   :  { %v5904_v22 = vmul.f32 1.442695, %v5896_v31  ;;  %v5897_v61 = vsub.f32 %v11665_v51, %v5877_v24  ;;  %9502 = vpow2.f32 %v5910_v18  ;;  %v11793_v18 = vmul.f32 %v9499_v49, %v12738_v27 }
0x1367   :  { %v5024_v57 = vpop.xlane.xlu1 %5023  ;;  %3344 = vrot.lane.b32.xlu0 %v12736_v50, %s9796_s2  ;;  %v6086_v49 = vsel %vm2753_vm0, %v11504_v15, 0 }
0x1368   :  { %9504 = vpow2.f32 %v5904_v22  ;;  %v5906_v52 = vmul.f32 1.442695, %v5897_v61 }
0x1369   :  { %9506 = vrcp.f32 %v5024_v57  ;;  %v5637_v45 = vpop.xlane.xlu0 %5636 }
0x136a   :  { %9508 = vpow2.f32 %v5906_v52 }
0x136b   :  { %9510 = vrcp.f32 %v5637_v45  ;;  %v5634_v4 = vpop.xlane.xlu1 %5633 }
0x136c   :  { %9512 = vrcp.f32 %v5634_v4 }
0x136d   :  { %v3509_v48 = vpop.xlane.xlu0 %3508 }
0x136e   :  { %9514 = vrcp.f32 %v3509_v48  ;;  %v11781_v51 = vpop.eup %9500 }
0x136f   :  { %v3506_v35 = vpop.xlane.xlu1 %3505 }
0x1370   :  { %9516 = vrcp.f32 %v3506_v35  ;;  %v11783_v39 = vpop.eup %9502 }
0x1371   :  { %v5033_v11 = vpop.xlane.xlu0 %5032  ;;  %v5945_v61 = vpack.c.bf16 %v11783_v39, %v11781_v51 }
0x1372   :  { %v11785_v37 = vpop.eup %9504  ;;  %9518 = vrcp.f32 %v5033_v11 }
0x1373   :  { %v9507_v12 = vpop.eup %9506  ;;  %v5030_v46 = vpop.xlane.xlu1 %5029 }
0x1374   :  { %v11787_v23 = vpop.eup %9508  ;;  %9520 = vrcp.f32 %v5030_v46  ;;  %v11790_v20 = vmul.f32 %v9507_v12, %v12737_v14 }
0x1375   :  { %v9511_v31 = vpop.eup %9510  ;;  %v2904_v2 = vpop.xlane.xlu0 %2903  ;;  %v5944_v24 = vpack.c.bf16 %v11787_v23, %v11785_v37 }
0x1376   :  { %v9513_v22 = vpop.eup %9512  ;;  %v11806_v45 = vmul.f32 %v9511_v31, %v11639_v28  ;;  %v12739_v28 = vld [vmem:[#allocation80_spill] sm:$0xff]  ;;  %9522 = vrcp.f32 %v2904_v2  ;;  %v6089_v2 = vsel %vm2753_vm0, %v11523_v41, 0 }
0x1377   :  { %v5892_v50 = vpop.xlane.xlu1 %5891  ;;  %8522 = vmatprep.mubr.msk.bf16.mxu1 %vm2753_vm0, %v5944_v24  ;;  %v11803_v52 = vmul.f32 %v9513_v22, %v11637_v44 }
0x1378   :  { %v9515_v4 = vpop.eup %9514  ;;  %v5902_v48 = vsub.f32 %v11687_v38, %v5892_v50  ;;  %8523 = vmatmul.mubr.msk.bf16.vlgmr.msra.gmra.mrb[192].mxu1 %vm2753_vm0, %v5945_v61  ;;  %v12740_v38 = vld [vmem:[#allocation78_spill] sm:$0xff] }
0x1379   :  { %8531 = vmatpush3.bf16.xpose.msra.mxu1 %v6086_v49  ;;  %v5895_v35 = vpop.xlane.xlu0 %5894  ;;  %v3618_v14 = vmul.f32 %v9515_v4, %v12739_v28 }
0x137a   :  { %v9517_v12 = vpop.eup %9516  ;;  %v5916_v46 = vmul.f32 1.442695, %v5902_v48  ;;  %8831 = vmatprep.subr.msk.bf16.mxu1 %vm2753_vm0, %v11523_v41  ;;  %v5903_v44 = vsub.f32 %v11693_v60, %v5895_v35  ;;  %v12741_v60 = vld [vmem:[#allocation20_spill] sm:$0xff]  ;;  %v12742_v35 = vld [vmem:[#allocation122_spill] sm:$0xff] }
0x137b   :  { %v3617_v27 = vmul.f32 %v9517_v12, %v12740_v38  ;;  %v5886_v31 = vpop.xlane.xlu1 %5885  ;;  %v12744_v38 = vld [vmem:[#allocation126_spill] sm:$0xff] }
0x137c   :  { %v9519_v24 = vpop.eup %9518  ;;  %v5918_v22 = vmul.f32 1.442695, %v5903_v44  ;;  %v5900_v15 = vsub.f32 %v11699_v47, %v5886_v31  ;;  %9524 = vpow2.f32 %v5916_v46 }
0x137d   :  { %v5889_v61 = vpop.xlane.xlu0 %5888  ;;  %v3625_v50 = vpack.c.bf16 %v3618_v14, %v3617_v27  ;;  %v11826_v12 = vmul.f32 %v9519_v24, %v12742_v35  ;;  %v12743_v14 = vld [vmem:[#allocation124_spill] sm:$0xff]  ;;  %v5322_v27 = vsel %vm2753_vm0, %v12744_v38, 0.0  ;;  %v6092_v24 = vsel %vm2753_vm0, %v11509_v16, 0 }
0x137e   :  { %v9521_v49 = vpop.eup %9520  ;;  %v5912_v48 = vmul.f32 1.442695, %v5900_v15  ;;  %v5901_v11 = vsub.f32 %v11705_v21, %v5889_v61  ;;  %9526 = vpow2.f32 %v5918_v22  ;;  %v12747_v61 = vld [vmem:[#allocation109_spill] sm:$0xff]  ;;  %v12748_v35 = vld [vmem:[#allocation112_spill] sm:$0xff] }
0x137f   :  { %v2901_v57 = vpop.xlane.xlu1 %2900  ;;  %3629 = vst.msk [vmem:[#allocation2 + $0x8] sm:$0xff] %vm2753_vm0, %v3625_v50  ;;  %v11823_v4 = vmul.f32 %v9521_v49, %v12741_v60  ;;  %v4721_v50 = vsel %vm2753_vm0, %v12747_v61, 0.0  ;;  %v12751_v61 = vld [vmem:[#allocation79_spill] sm:$0xff] }
0x1380   :  { %9528 = vpow2.f32 %v5912_v48  ;;  %v5914_v47 = vmul.f32 1.442695, %v5901_v11  ;;  %v5325_v11 = vsel %vm2753_vm0, %v12743_v14, 0.0  ;;  %v9523_v41 = vpop.eup %9522 }
0x1381   :  { %9530 = vrcp.f32 %v2901_v57  ;;  %8533 = vmatpush3.bf16.xpose.msra.mxu1 %v6089_v2  ;;  %v3515_v46 = vpop.xlane.xlu0 %3514  ;;  %v12749_v2 = vld [vmem:[#allocation64_spill] sm:$0xff] }
0x1382   :  { %9532 = vpow2.f32 %v5914_v47  ;;  %8832 = vmatprep.subr.msk.bf16.mxu1 %vm2753_vm0, %v11509_v16  ;;  %v4718_v47 = vsel %vm2753_vm0, %v12748_v35, 0.0  ;;  %v12752_v35 = vld [vmem:[#allocation77_spill] sm:$0xff] }
0x1383   :  { %9534 = vrcp.f32 %v3515_v46  ;;  %v3512_v44 = vpop.xlane.xlu1 %3511  ;;  %v3013_v46 = vmul.f32 %v9523_v41, %v12749_v2 }
0x1384   :  { %9536 = vrcp.f32 %v3512_v44  ;;  %v12750_v44 = vld [vmem:[#allocation62_spill] sm:$0xff] }
0x1385   :  { %v4411_v28 = vpop.xlane.xlu0 %4410 }
0x1386   :  { %9538 = vrcp.f32 %v4411_v28  ;;  %5326 = vadd.xlane.f32.xlu0 %v5325_v11  ;;  %v11838_v31 = vpop.eup %9524 }
0x1387   :  { %v4408_v57 = vpop.xlane.xlu1 %4407  ;;  %12745 = vst [vmem:[#allocation30_spill] sm:$0xff] %v11838_v31 }
0x1388   :  { %9540 = vrcp.f32 %v4408_v57  ;;  %5323 = vadd.xlane.f32.xlu1 %v5322_v27  ;;  %v11842_v22 = vpop.eup %9526 }
0x1389   :  { %12746 = vst [vmem:[#allocation34_spill] sm:$0xff] %v11842_v22  ;;  %8535 = vmatpush3.bf16.xpose.msra.mxu1 %v6092_v24  ;;  %v2910_v15 = vpop.xlane.xlu0 %2909  ;;  %v5947_v27 = vpack.c.bf16 %v11842_v22, %v11838_v31  ;;  %v9190_v24 = vld [vmem:[#allocation8 + $0xc8] ss:$12 sps:$4 sm:$0xff]   ;;  %v12807_v31 = vld [vmem:[#allocation117_spill] sm:$0xff] }
0x138a   :  { %v11846_v49 = vpop.eup %9528  ;;  %8833 = vmatprep.subr.msk.bf16.mxu1 %vm2753_vm0, %v11512_v40  ;;  %9542 = vrcp.f32 %v2910_v15  ;;  %4722 = vadd.xlane.f32.xlu0 %v4721_v50  ;;  %v12806_v22 = vld [vmem:[#allocation119_spill] sm:$0xff] }
0x138b   :  { %v9531_v48 = vpop.eup %9530  ;;  %v2907_v60 = vpop.xlane.xlu1 %2906 }
0x138c   :  { %v11852_v16 = vpop.eup %9532  ;;  %v3012_v28 = vmul.f32 %v9531_v48, %v12750_v44  ;;  %9544 = vrcp.f32 %v2907_v60  ;;  %4719 = vadd.xlane.f32.xlu1 %v4718_v47  ;;  %v6095_v60 = vsel %vm2753_vm0, %v11512_v40, 0 }
0x138d   :  { %v9535_v14 = vpop.eup %9534  ;;  %v3521_v11 = vpop.xlane.xlu0 %3520  ;;  %v5946_v57 = vpack.c.bf16 %v11852_v16, %v11846_v49 }
0x138e   :  { %v9537_v38 = vpop.eup %9536  ;;  %9546 = vrcp.f32 %v3521_v11  ;;  %v3020_v15 = vpack.c.bf16 %v3013_v46, %v3012_v28  ;;  %v3620_v50 = vmul.f32 %v9535_v14, %v12751_v61  ;;  %v12753_v14 = vld [vmem:[#allocation15_spill] sm:$0xff] }
0x138f   :  { %v3619_v41 = vmul.f32 %v9537_v38, %v12752_v35  ;;  %v3518_v2 = vpop.xlane.xlu1 %3517  ;;  %8526 = vmatprep.mubr.msk.bf16.mxu1 %vm2753_vm0, %v5946_v57  ;;  %v12754_v57 = vld [vmem:[#allocation19_spill] sm:$0xff] }
0x1390   :  { %v9539_v48 = vpop.eup %9538  ;;  %9548 = vrcp.f32 %v3518_v2  ;;  %8527 = vmatmul.mubr.msk.bf16.gmra.mrb[196].mxu1 %vm2753_vm0, %v5947_v27  ;;  %3024 = vst.msk [vmem:[#allocation2] sm:$0xff] %vm2753_vm0, %v3020_v15  ;;  %v9191_v15 = vld [vmem:[#allocation8 + $0x8] ss:$12 sps:$4 sm:$0xff]  }
0x1391   :  { %8537 = vmatpush3.bf16.xpose.msra.mxu1 %v6095_v60  ;;  %8538 = vmatprep.mubr.msk.bf16.mxu1 %vm2753_vm0, %v11530_v43  ;;  %v4417_v47 = vpop.xlane.xlu0 %4416  ;;  %v3626_v46 = vpack.c.bf16 %v3620_v50, %v3619_v41  ;;  %v11874_v38 = vmul.f32 %v9539_v48, %v12754_v57  ;;  %v9192_v50 = vld [vmem:[#allocation8 + $0xe0] ss:$12 sps:$4 sm:$0xff]   ;;  %v12757_v57 = vld [vmem:[#allocation84_spill] sm:$0xff] }
0x1392   :  { %v9541_v44 = vpop.eup %9540  ;;  %9550 = vrcp.f32 %v4417_v47  ;;  %8066 = vmatprep.subr.bf16.mxu1 %v9190_v24  ;;  %v12755_v24 = vld [vmem:[#allocation63_spill] sm:$0xff]  ;;  %v12756_v41 = vld [vmem:[#allocation61_spill] sm:$0xff] }
0x1393   :  { %v4414_v28 = vpop.xlane.xlu1 %4413  ;;  %3630 = vst.msk [vmem:[#allocation2 + $0x20] sm:$0xff] %vm2753_vm0, %v3626_v46  ;;  %v11871_v11 = vmul.f32 %v9541_v44, %v12753_v14  ;;  %v9193_v46 = vld [vmem:[#allocation8 + $0x20] ss:$12 sps:$4 sm:$0xff]   ;;  %v9194_v14 = vld [vmem:[#allocation8 + $0xf8] ss:$12 sps:$4 sm:$0xff]  }
0x1394   :  { %v9543_v40 = vpop.eup %9542  ;;  %9552 = vrcp.f32 %v4414_v28 }
0x1395   :  { %v2916_v27 = vpop.xlane.xlu0 %2915  ;;  %v3015_v35 = vmul.f32 %v9543_v40, %v12755_v24 }
0x1396   :  { %v9545_v61 = vpop.eup %9544  ;;  %9554 = vrcp.f32 %v2916_v27  ;;  %v12758_v27 = vld [vmem:[#allocation82_spill] sm:$0xff] }
0x1397   :  { %v3014_v2 = vmul.f32 %v9545_v61, %v12756_v41  ;;  %v2913_v60 = vpop.xlane.xlu1 %2912 }
0x1398   :  { %v9547_v47 = vpop.eup %9546  ;;  %9556 = vrcp.f32 %v2913_v60  ;;  %8539 = vmatmul.mubr.msk.bf16.vlgmr.msra.gmra.mrb[200].mxu1 %vm2753_vm0, %v11515_v6  ;;  %v12759_v6 = vpack.c.bf16 %v11581_v5, %v11578_v63  ;;  %v12762_v63 = vpack.c.bf16 %v11589_v55, %v11586_v13  ;;  %v9199_v55 = vld [vmem:[#allocation8 + $0x68] ss:$12 sps:$4 sm:$0xff]  }
0x1399   :  { %8067 = vmatpush3.bf16.msra.mxu1 %v9191_v15  ;;  %8542 = vmatprep.mubr.msk.bf16.mxu1 %vm2753_vm0, %v11537_v56  ;;  %v3527_v48 = vpop.xlane.xlu0 %3526  ;;  %v3021_v44 = vpack.c.bf16 %v3015_v35, %v3014_v2  ;;  %v3622_v40 = vmul.f32 %v9547_v47, %v12757_v57  ;;  %v9195_v15 = vld [vmem:[#allocation8 + $0x38] ss:$12 sps:$4 sm:$0xff]   ;;  %v9196_v47 = vld [vmem:[#allocation8 + $0x110] ss:$12 sps:$4 sm:$0xff]  }
0x139a   :  { %v9549_v28 = vpop.eup %9548  ;;  %9558 = vrcp.f32 %v3527_v48  ;;  %8068 = vmatprep.subr.bf16.mxu1 %v9192_v50  ;;  %v12760_v50 = vld [vmem:[#allocation17_spill] sm:$0xff] }
0x139b   :  { %v3621_v61 = vmul.f32 %v9549_v28, %v12758_v27  ;;  %v3524_v24 = vpop.xlane.xlu1 %3523  ;;  %3025 = vst.msk [vmem:[#allocation2 + $0x18] sm:$0xff] %vm2753_vm0, %v3021_v44  ;;  %v12761_v44 = vld [vmem:[#allocation13_spill] sm:$0xff]  ;;  %v9198_v27 = vld [vmem:[#allocation8 + $0x128] ss:$12 sps:$4 sm:$0xff]  }
0x139c   :  { %v9551_v41 = vpop.eup %9550  ;;  %9560 = vrcp.f32 %v3524_v24 }
0x139d   :  { %8069 = vmatpush3.bf16.msra.mxu1 %v9193_v46  ;;  %3951 = vrot.lane.b32.xlu1 %v12759_v6, %s9796_s2  ;;  %v4423_v56 = vpop.xlane.xlu0 %4422  ;;  %v3627_v35 = vpack.c.bf16 %v3622_v40, %v3621_v61  ;;  %v11892_v2 = vmul.f32 %v9551_v41, %v12760_v50  ;;  %v12763_v61 = vld [vmem:[#allocation68_spill] sm:$0xff]  ;;  %v12764_v41 = vld [vmem:[#allocation66_spill] sm:$0xff] }
0x139e   :  { %v9553_v60 = vpop.eup %9552  ;;  %9562 = vrcp.f32 %v4423_v56  ;;  %8070 = vmatprep.subr.bf16.mxu1 %v9194_v14  ;;  %v9197_v14 = vld [vmem:[#allocation8 + $0x50] ss:$12 sps:$4 sm:$0xff]   ;;  %v9200_v50 = vld [vmem:[#allocation8 + $0x140] ss:$12 sps:$4 sm:$0xff]  }
0x139f   :  { %v4420_v48 = vpop.xlane.xlu1 %4419  ;;  %3631 = vst.msk [vmem:[#allocation2 + $0x38] sm:$0xff] %vm2753_vm0, %v3627_v35  ;;  %v11896_v46 = vmul.f32 %v9553_v60, %v12761_v44  ;;  %v12765_v60 = vld [vmem:[#allocation83_spill] sm:$0xff] }
0x13a0   :  { %v9555_v28 = vpop.eup %9554  ;;  %9564 = vrcp.f32 %v4420_v48  ;;  %3346 = vrot.lane.b32.xlu0 %v12762_v63, %s9796_s2  ;;  %8543 = vmatmul.mubr.msk.bf16.gmra.mrb[204].mxu1 %vm2753_vm0, %v11518_v30  ;;  %v12766_v48 = vld [vmem:[#allocation81_spill] sm:$0xff] }
0x13a1   :  { %8071 = vmatpush3.bf16.msra.mxu1 %v9195_v15  ;;  %v2922_v5 = vpop.xlane.xlu0 %2921  ;;  %v3017_v24 = vmul.f32 %v9555_v28, %v12763_v61 }
0x13a2   :  { %v9557_v40 = vpop.eup %9556  ;;  %9566 = vrcp.f32 %v2922_v5  ;;  %8072 = vmatprep.subr.bf16.mxu1 %v9196_v47  ;;  %v9201_v5 = vld [vmem:[#allocation8 + $0x80] ss:$12 sps:$4 sm:$0xff]  }
0x13a3   :  { %v3016_v6 = vmul.f32 %v9557_v40, %v12764_v41  ;;  %v2919_v56 = vpop.xlane.xlu1 %2918  ;;  %v12767_v40 = vld [vmem:[#allocation108_spill] sm:$0xff]  ;;  %v12768_v41 = vld [vmem:[#allocation106_spill] sm:$0xff] }
0x13a4   :  { %v9559_v13 = vpop.eup %9558  ;;  %9568 = vrcp.f32 %v2919_v56 }
0x13a5   :  { %8073 = vmatpush3.bf16.msra.mxu1 %v9197_v14  ;;  %v3343_v30 = vpop.permute.xlu0 %3342  ;;  %v3022_v15 = vpack.c.bf16 %v3017_v24, %v3016_v6  ;;  %v3624_v47 = vmul.f32 %v9559_v13, %v12765_v60  ;;  %v9203_v13 = vld [vmem:[#allocation8 + $0x98] ss:$12 sps:$4 sm:$0xff]  }
0x13a6   :  { %v9561_v35 = vpop.eup %9560  ;;  %3355 = vst.msk [vmem:[#allocation2] sm:$0xff] %vm3354_vm9, %v3343_v30  ;;  %8074 = vmatprep.subr.bf16.mxu1 %v9198_v27  ;;  %v9202_v27 = vld [vmem:[#allocation8 + $0x158] ss:$12 sps:$4 sm:$0xff]  }
0x13a7   :  { %v3623_v44 = vmul.f32 %v9561_v35, %v12766_v48  ;;  %v3948_v28 = vpop.permute.xlu1 %3947  ;;  %3026 = vst.msk [vmem:[#allocation2 + $0x30] sm:$0xff] %vm2753_vm0, %v3022_v15  ;;  %v9204_v15 = vld [vmem:[#allocation8 + $0x170] ss:$12 sps:$4 sm:$0xff]  }
0x13a8   :  { %v9563_v63 = vpop.eup %9562  ;;  %3959 = vst.msk [vmem:[#allocation2 + $0x8] sm:$0xff] %vm3354_vm9, %v3948_v28  ;;  %v12769_v35 = vld [vmem:[#allocation67_spill] sm:$0xff] }
0x13a9   :  { %8075 = vmatpush3.bf16.msra.mxu1 %v9199_v55  ;;  %v3628_v14 = vpack.c.bf16 %v3624_v47, %v3623_v44  ;;  %v11914_v61 = vmul.f32 %v9563_v63, %v12767_v40  ;;  %v12770_v47 = vld [vmem:[#allocation65_spill] sm:$0xff]  ;;  %v9205_v44 = vld [vmem:[#allocation8 + $0xb0] ss:$12 sps:$4 sm:$0xff]  }
0x13aa   :  { %v9565_v24 = vpop.eup %9564  ;;  %8076 = vmatprep.subr.bf16.mxu1 %v9200_v50  ;;  %v12772_v40 = vld [vmem:[#allocation129_spill] sm:$0xff] }
0x13ab   :  { %3632 = vst.msk [vmem:[#allocation2 + $0x50] sm:$0xff] %vm2753_vm0, %v3628_v14  ;;  %v11918_v6 = vmul.f32 %v9565_v24, %v12768_v41  ;;  %v5328_v24 = vsel %vm2753_vm0, %v12772_v40, 0.0 }
0x13ac   :  { %v9567_v56 = vpop.eup %9566 }
0x13ad   :  { %8077 = vmatpush3.bf16.msra.mxu1 %v9201_v5  ;;  %v3019_v60 = vmul.f32 %v9567_v56, %v12769_v35  ;;  %v11928_v63 = vld [vmem:[#allocation2] sm:$0xff]  ;;  %v12771_v5 = vld [vmem:[#allocation127_spill] sm:$0xff] }
0x13ae   :  { %v9569_v55 = vpop.eup %9568  ;;  %8078 = vmatprep.subr.bf16.mxu1 %v9202_v27  ;;  %v5331_v14 = vsel %vm2753_vm0, %v12771_v5, 0.0  ;;  %v12773_v27 = vld [vmem:[#allocation113_spill] sm:$0xff]  ;;  %v12774_v56 = vld [vmem:[#allocation115_spill] sm:$0xff] }
0x13af   :  { %v3018_v48 = vmul.f32 %v9569_v55, %v12770_v47  ;;  %v11924_v50 = vld [vmem:[#allocation2 + $0x8] sm:$0xff]  ;;  %v4727_v41 = vsel %vm2753_vm0, %v12773_v27, 0.0  ;;  %v12775_v55 = vpack.c.bf16 %v11597_v59, %v11594_v17  ;;  %v12777_v59 = vld [vmem:[#allocation107_spill] sm:$0xff]  ;;  %v12778_v27 = vld [vmem:[#allocation105_spill] sm:$0xff] }
0x13b0   :  { %7158 = vmatprep.mubr.bf16.mxu1 %v11924_v50 }
0x13b1   :  { %8079 = vmatpush3.bf16.msra.mxu1 %v9203_v13  ;;  %v3023_v28 = vpack.c.bf16 %v3019_v60, %v3018_v48  ;;  %v4724_v13 = vsel %vm2753_vm0, %v12774_v56, 0.0  ;;  %v12776_v60 = vpack.c.bf16 %v11605_v7, %v11602_v58 }
0x13b2   :  { %8080 = vmatprep.subr.bf16.mxu1 %v9204_v15 }
0x13b3   :  { %3027 = vst.msk [vmem:[#allocation2 + $0x48] sm:$0xff] %vm2753_vm0, %v3023_v28 }
0x13b5   :  { %8081 = vmatpush3.bf16.msra.mxu1 %v9205_v44 }
0x13b8   :  { %7159 = vmatmul.mubr.bf16.vlgmr.msra.gmra.mrb[208].mxu1 %v11928_v63 }
0x13bf   :  { %5332 = vadd.xlane.f32.xlu0 %v5331_v14 }
0x13c1   :  { %5329 = vadd.xlane.f32.xlu1 %v5328_v24 }
0x13c3   :  { %4728 = vadd.xlane.f32.xlu0 %v4727_v41 }
0x13c5   :  { %4725 = vadd.xlane.f32.xlu1 %v4724_v13  ;;  %v12779_v13 = vld [vmem:[#allocation130_spill] sm:$0xff] }
0x13d6   :  { %3953 = vrot.lane.b32.xlu1 %v12775_v55, %s9796_s2  ;;  %v4429_v15 = vpop.xlane.xlu0 %4428 }
0x13d7   :  { %9570 = vrcp.f32 %v4429_v15  ;;  %v12780_v15 = vld [vmem:[#allocation45_spill] sm:$0xff] }
0x13d8   :  { %v4426_v35 = vpop.xlane.xlu1 %4425 }
0x13d9   :  { %9572 = vrcp.f32 %v4426_v35  ;;  %3348 = vrot.lane.b32.xlu0 %v12776_v60, %s9796_s2 }
0x13da   :  { %v5321_v47 = vpop.xlane.xlu0 %5320 }
0x13db   :  { %9574 = vrcp.f32 %v5321_v47 }
0x13dc   :  { %v5318_v48 = vpop.xlane.xlu1 %5317 }
0x13dd   :  { %9576 = vrcp.f32 %v5318_v48 }
0x13de   :  { %v4717_v44 = vpop.xlane.xlu0 %4716 }
0x13df   :  { %9578 = vrcp.f32 %v4717_v44  ;;  %v12781_v44 = vld [vmem:[#allocation116_spill] sm:$0xff] }
0x13e0   :  { %v4714_v28 = vpop.xlane.xlu1 %4713 }
0x13e1   :  { %v9571_v5 = vpop.eup %9570  ;;  %9580 = vrcp.f32 %v4714_v28 }
0x13e2   :  { %v3345_v17 = vpop.permute.xlu0 %3344  ;;  %v11948_v14 = vmul.f32 %v9571_v5, %v12777_v59  ;;  %v12782_v5 = vld [vmem:[#allocation40_spill] sm:$0xff] }
0x13e3   :  { %v9573_v40 = vpop.eup %9572  ;;  %3356 = vst.msk [vmem:[#allocation2 + $0x18] sm:$0xff] %vm3354_vm9, %v3345_v17 }
0x13e4   :  { %v3950_v24 = vpop.permute.xlu1 %3949  ;;  %v11952_v58 = vmul.f32 %v9573_v40, %v12778_v27  ;;  %v12783_v27 = vld [vmem:[#allocation43_spill] sm:$0xff] }
0x13e5   :  { %v9575_v7 = vpop.eup %9574  ;;  %3960 = vst.msk [vmem:[#allocation2 + $0x20] sm:$0xff] %vm3354_vm9, %v3950_v24 }
0x13e6   :  { %v5430_v55 = vmul.f32 %v9575_v7, %v12779_v13  ;;  %v5337_v7 = vsel %vm2753_vm0, %v12783_v27, 0.0 }
0x13e7   :  { %v9577_v56 = vpop.eup %9576 }
0x13e8   :  { %v5429_v35 = vmul.f32 %v9577_v56, %v12780_v15  ;;  %v12784_v56 = vld [vmem:[#allocation128_spill] sm:$0xff] }
0x13e9   :  { %v9579_v60 = vpop.eup %9578  ;;  %v5334_v13 = vsel %vm2753_vm0, %v12784_v56, 0.0 }
0x13ea   :  { %v5437_v47 = vpack.c.bf16 %v5430_v55, %v5429_v35  ;;  %v4826_v28 = vmul.f32 %v9579_v60, %v12781_v44  ;;  %v11965_v40 = vld [vmem:[#allocation2 + $0x18] sm:$0xff]  ;;  %v12785_v55 = vld [vmem:[#allocation37_spill] sm:$0xff]  ;;  %v12786_v35 = vld [vmem:[#allocation114_spill] sm:$0xff] }
0x13eb   :  { %v9581_v48 = vpop.eup %9580  ;;  %v4733_v15 = vsel %vm2753_vm0, %v12785_v55, 0.0  ;;  %v4730_v60 = vsel %vm2753_vm0, %v12786_v35, 0.0 }
0x13ec   :  { %v4825_v17 = vmul.f32 %v9581_v48, %v12782_v5  ;;  %v11961_v59 = vld [vmem:[#allocation2 + $0x20] sm:$0xff]  ;;  %5441 = vst.msk [vmem:[#allocation2 + $0x68] sm:$0xff] %vm2753_vm0, %v5437_v47 }
0x13ed   :  { %7166 = vmatprep.mubr.bf16.mxu1 %v11961_v59 }
0x13ee   :  { %7167 = vmatmul.mubr.bf16.gmra.mrb[212].mxu1 %v11965_v40  ;;  %v4833_v24 = vpack.c.bf16 %v4826_v28, %v4825_v17 }
0x13f0   :  { %4837 = vst.msk [vmem:[#allocation2 + $0x60] sm:$0xff] %vm2753_vm0, %v4833_v24 }
0x13f8   :  { %5338 = vadd.xlane.f32.xlu0 %v5337_v7  ;;  %v12787_v7 = vld [vmem:[#allocation46_spill] sm:$0xff] }
0x13fa   :  { %5335 = vadd.xlane.f32.xlu1 %v5334_v13  ;;  %v12788_v13 = vld [vmem:[#allocation44_spill] sm:$0xff] }
0x13fc   :  { %4734 = vadd.xlane.f32.xlu0 %v4733_v15 }
0x13fe   :  { %4731 = vadd.xlane.f32.xlu1 %v4730_v60 }
0x1413   :  { %v5327_v47 = vpop.xlane.xlu0 %5326 }
0x1414   :  { %9582 = vrcp.f32 %v5327_v47  ;;  %v12789_v47 = vld [vmem:[#allocation42_spill] sm:$0xff] }
0x1415   :  { %v5324_v48 = vpop.xlane.xlu1 %5323 }
0x1416   :  { %9584 = vrcp.f32 %v5324_v48 }
0x1417   :  { %v4723_v44 = vpop.xlane.xlu0 %4722 }
0x1418   :  { %9586 = vrcp.f32 %v4723_v44  ;;  %v12790_v44 = vld [vmem:[#allocation38_spill] sm:$0xff] }
0x1419   :  { %v4720_v28 = vpop.xlane.xlu1 %4719 }
0x141a   :  { %9588 = vrcp.f32 %v4720_v28 }
0x141b   :  { %v3347_v5 = vpop.permute.xlu0 %3346 }
0x141c   :  { %3357 = vst.msk [vmem:[#allocation2 + $0x30] sm:$0xff] %vm3354_vm9, %v3347_v5 }
0x141d   :  { %v3952_v17 = vpop.permute.xlu1 %3951 }
0x141e   :  { %v9583_v24 = vpop.eup %9582  ;;  %3961 = vst.msk [vmem:[#allocation2 + $0x38] sm:$0xff] %vm3354_vm9, %v3952_v17 }
0x141f   :  { %v5432_v56 = vmul.f32 %v9583_v24, %v12787_v7 }
0x1420   :  { %v9585_v27 = vpop.eup %9584 }
0x1421   :  { %v5431_v55 = vmul.f32 %v9585_v27, %v12788_v13 }
0x1422   :  { %v9587_v15 = vpop.eup %9586 }
0x1423   :  { %v5438_v35 = vpack.c.bf16 %v5432_v56, %v5431_v55  ;;  %v4828_v48 = vmul.f32 %v9587_v15, %v12789_v47  ;;  %v11987_v5 = vld [vmem:[#allocation2 + $0x30] sm:$0xff] }
0x1424   :  { %v9589_v60 = vpop.eup %9588 }
0x1425   :  { %v4827_v41 = vmul.f32 %v9589_v60, %v12790_v44  ;;  %v11983_v28 = vld [vmem:[#allocation2 + $0x38] sm:$0xff]  ;;  %5442 = vst.msk [vmem:[#allocation2 + $0x80] sm:$0xff] %vm2753_vm0, %v5438_v35  ;;  %v12795_v44 = vld [vmem:[#allocation134_spill] sm:$0xff] }
0x1426   :  { %7174 = vmatprep.mubr.bf16.mxu1 %v11983_v28 }
0x1427   :  { %7175 = vmatmul.mubr.bf16.gmra.mrb[216].mxu1 %v11987_v5  ;;  %v4834_v17 = vpack.c.bf16 %v4828_v48, %v4827_v41 }
0x1429   :  { %4838 = vst.msk [vmem:[#allocation2 + $0x78] sm:$0xff] %vm2753_vm0, %v4834_v17 }
0x144b   :  { %v11991_v24 = vpop.f32.mrb[192].mxu1 }
0x144c   :  { %12791 = vst [vmem:[#allocation36_spill] sm:$0xff] %v11991_v24  ;;  %v11993_v27 = vpop.f32.mrb[193].mxu1  ;;  %v5333_v7 = vpop.xlane.xlu0 %5332 }
0x144d   :  { %12792 = vst [vmem:[#allocation23_spill] sm:$0xff] %v11993_v27  ;;  %9590 = vrcp.f32 %v5333_v7  ;;  %v11995_v56 = vpop.f32.mrb[194].mxu1  ;;  %v12796_v7 = vld [vmem:[#allocation132_spill] sm:$0xff] }
0x144e   :  { %12793 = vst [vmem:[#allocation27_spill] sm:$0xff] %v11995_v56  ;;  %v5330_v13 = vpop.xlane.xlu1 %5329  ;;  %v11997_v55 = vpop.f32.mrb[195].mxu1 }
0x144f   :  { %12794 = vst [vmem:[#allocation32_spill] sm:$0xff] %v11997_v55  ;;  %9592 = vrcp.f32 %v5330_v13  ;;  %v12797_v13 = vld [vmem:[#allocation120_spill] sm:$0xff]  ;;  %v9208_v55 = vld [vmem:[#allocation8 + $0x4] ss:$12 sps:$4 sm:$0xff]  }
0x1450   :  { %v4729_v15 = vpop.xlane.xlu0 %4728  ;;  %6900 = vmatprep.subr.bf16.mxu0 %v9208_v55 }
0x1451   :  { %9594 = vrcp.f32 %v4729_v15  ;;  %v12798_v15 = vld [vmem:[#allocation118_spill] sm:$0xff] }
0x1452   :  { %v4726_v35 = vpop.xlane.xlu1 %4725 }
0x1453   :  { %9596 = vrcp.f32 %v4726_v35 }
0x1454   :  { %v3349_v60 = vpop.permute.xlu0 %3348 }
0x1455   :  { %3358 = vst.msk [vmem:[#allocation2 + $0x48] sm:$0xff] %vm3354_vm9, %v3349_v60 }
0x1456   :  { %v3954_v41 = vpop.permute.xlu1 %3953 }
0x1457   :  { %v9591_v47 = vpop.eup %9590  ;;  %3962 = vst.msk [vmem:[#allocation2 + $0x50] sm:$0xff] %vm3354_vm9, %v3954_v41 }
0x1458   :  { %v5434_v17 = vmul.f32 %v9591_v47, %v12795_v44 }
0x1459   :  { %v9593_v48 = vpop.eup %9592 }
0x145a   :  { %v5433_v30 = vmul.f32 %v9593_v48, %v12796_v7 }
0x145b   :  { %v9595_v57 = vpop.eup %9594 }
0x145c   :  { %v5439_v43 = vpack.c.bf16 %v5434_v17, %v5433_v30  ;;  %v4830_v56 = vmul.f32 %v9595_v57, %v12797_v13  ;;  %v12009_v60 = vld [vmem:[#allocation2 + $0x48] sm:$0xff] }
0x145d   :  { %v9597_v21 = vpop.eup %9596 }
0x145e   :  { %v4829_v24 = vmul.f32 %v9597_v21, %v12798_v15  ;;  %v12005_v35 = vld [vmem:[#allocation2 + $0x50] sm:$0xff]  ;;  %5443 = vst.msk [vmem:[#allocation2 + $0x98] sm:$0xff] %vm2753_vm0, %v5439_v43 }
0x145f   :  { %7182 = vmatprep.mubr.bf16.mxu1 %v12005_v35 }
0x1460   :  { %7183 = vmatmul.mubr.bf16.gmra.mrb[220].mxu1 %v12009_v60  ;;  %v4835_v41 = vpack.c.bf16 %v4830_v56, %v4829_v24 }
0x1462   :  { %4839 = vst.msk [vmem:[#allocation2 + $0x90] sm:$0xff] %vm2753_vm0, %v4835_v41 }
0x1463   :  { %v12013_v47 = vpop.f32.mrb[196].mxu1 }
0x1464   :  { %12799 = vst [vmem:[#allocation21_spill] sm:$0xff] %v12013_v47  ;;  %v12015_v30 = vpop.f32.mrb[197].mxu1 }
0x1465   :  { %12800 = vst [vmem:[#allocation25_spill] sm:$0xff] %v12015_v30  ;;  %v12017_v57 = vpop.f32.mrb[198].mxu1 }
0x1466   :  { %12801 = vst [vmem:[#allocation48_spill] sm:$0xff] %v12017_v57  ;;  %v12019_v21 = vpop.f32.mrb[199].mxu1 }
0x1467   :  { %12802 = vst [vmem:[#allocation58_spill] sm:$0xff] %v12019_v21 }
0x146b   :  { %v8540_v48 = vpop.f32.mrb[200].mxu1 }
0x146c   :  { %v12023_v43 = vsel %vm10352_vm1, %v8540_v48, -inf  ;;  %v6131_v44 = vpop.f32.mrb[201].mxu1 }
0x146d   :  { %v6176_v17 = vsel %vm2753_vm0, %v12023_v43, -inf  ;;  %v8541_v24 = vpop.f32.mrb[202].mxu1  ;;  %v12029_v56 = vsel %vm10361_vm2, %v6131_v44, -inf }
0x146e   :  { %6177 = vmax.xlane.f32.xlu0 %v6176_v17  ;;  %v6134_v7 = vpop.f32.mrb[203].mxu1  ;;  %v6170_v15 = vsel %vm2753_vm0, %v12029_v56, -inf  ;;  %v12041_v41 = vsel %vm10382_vm4, %v8541_v24, -inf }
0x146f   :  { %v12033_v13 = vsel %vm10368_vm3, %v6134_v7, -inf  ;;  %v6179_v44 = vsel %vm2753_vm0, %v12041_v41, -inf }
0x1470   :  { %v6173_v34 = vsel %vm2753_vm0, %v12033_v13, -inf }
0x1471   :  { %6174 = vmax.xlane.f32.xlu1 %v6173_v34 }
0x1472   :  { %6171 = vmax.xlane.f32.xlu0 %v6170_v15 }
0x1473   :  { %v8544_v26 = vpop.f32.mrb[204].mxu1 }
0x1474   :  { %v6147_v48 = vpop.f32.mrb[205].mxu1  ;;  %v12047_v17 = vsel %vm10429_vm7, %v8544_v26, -inf  ;;  %v12803_v26 = vpack.c.bf16 %v11631_v19, %v11629_v33  ;;  %v12804_v33 = vld [vmem:[#allocation133_spill] sm:$0xff] }
0x1475   :  { %v8545_v32 = vpop.f32.mrb[206].mxu1  ;;  %v6188_v34 = vsel %vm2753_vm0, %v12047_v17, -inf }
0x1476   :  { %6180 = vmax.xlane.f32.xlu0 %v6179_v44  ;;  %v6150_v7 = vpop.f32.mrb[207].mxu1  ;;  %v12053_v54 = vsel %vm10446_vm8, %v8545_v32, -inf }
0x1477   :  { %v6191_v24 = vsel %vm2753_vm0, %v12053_v54, -inf  ;;  %v12059_v15 = vsel %vm10399_vm5, %v6150_v7, -inf }
0x1478   :  { %v6185_v25 = vsel %vm2753_vm0, %v12059_v15, -inf }
0x147a   :  { %6189 = vmax.xlane.f32.xlu0 %v6188_v34 }
0x147e   :  { %6192 = vmax.xlane.f32.xlu0 %v6191_v24 }
0x1482   :  { %5759 = vrot.lane.b32.xlu1 %v12803_v26, %s9796_s2  ;;  %6186 = vmax.xlane.f32.xlu0 %v6185_v25  ;;  %v12805_v26 = vld [vmem:[#allocation131_spill] sm:$0xff] }
0x1485   :  { %v5339_v53 = vpop.xlane.xlu0 %5338 }
0x1486   :  { %9598 = vrcp.f32 %v5339_v53 }
0x1487   :  { %v5336_v44 = vpop.xlane.xlu1 %5335 }
0x1488   :  { %9600 = vrcp.f32 %v5336_v44 }
0x1489   :  { %v4735_v32 = vpop.xlane.xlu0 %4734 }
0x148a   :  { %9602 = vrcp.f32 %v4735_v32 }
0x148b   :  { %v8082_v34 = vpop.f32.mrb[208].mxu1  ;;  %v4732_v29 = vpop.xlane.xlu1 %4731 }
0x148c   :  { %9604 = vrcp.f32 %v4732_v29  ;;  %v8083_v7 = vpop.f32.mrb[209].mxu1 }
0x148d   :  { %v12067_v24 = vadd.f32 %v8083_v7, %v8082_v34  ;;  %v8085_v57 = vpop.f32.mrb[210].mxu1 }
0x148e   :  { %v8086_v47 = vpop.f32.mrb[211].mxu1 }
0x148f   :  { %v12069_v21 = vadd.f32 %v8086_v47, %v8085_v57  ;;  %v12808_v47 = vpack.c.bf16 %v11613_v42, %v11610_v62  ;;  %v12811_v62 = vpack.c.bf16 %v11627_v8, %v11625_v1  ;;  %v12815_v8 = vpack.c.bf16 %v11643_v10, %v11641_v9 }
0x1490   :  { %v9599_v30 = vpop.eup %9598 }
0x1491   :  { %v5436_v25 = vmul.f32 %v9599_v30, %v12804_v33  ;;  %v12083_v30 = vsel %vm10415_vm6, %v6147_v48, -inf }
0x1492   :  { %v9601_v19 = vpop.eup %9600  ;;  %v6182_v55 = vsel %vm2753_vm0, %v12083_v30, -inf }
0x1493   :  { %v5435_v53 = vmul.f32 %v9601_v19, %v12805_v26  ;;  %v12812_v26 = vpack.c.bf16 %v11621_v3, %v11618_v36 }
0x1494   :  { %v9603_v44 = vpop.eup %9602 }
0x1495   :  { %v5440_v32 = vpack.c.bf16 %v5436_v25, %v5435_v53  ;;  %v4832_v29 = vmul.f32 %v9603_v44, %v12806_v22  ;;  %v12809_v22 = vld [vmem:[#allocation88_spill] sm:$0xff]  ;;  %v12813_v53 = vld [vmem:[#allocation90_spill] sm:$0xff] }
0x1496   :  { %v9605_v27 = vpop.eup %9604  ;;  %v4114_v44 = vsel %vm2753_vm0, %v12813_v53, 0.0 }
0x1497   :  { %v4831_v34 = vmul.f32 %v9605_v27, %v12807_v31  ;;  %5444 = vst.msk [vmem:[#allocation2 + $0xb0] sm:$0xff] %vm2753_vm0, %v5440_v32  ;;  %v4108_v31 = vsel %vm2753_vm0, %v12809_v22, 0.0  ;;  %v12810_v27 = vld [vmem:[#allocation89_spill] sm:$0xff]  ;;  %v12814_v32 = vld [vmem:[#allocation87_spill] sm:$0xff] }
0x1498   :  { %5155 = vrot.lane.b32.xlu0 %v12808_v47, %s9796_s2  ;;  %v4111_v7 = vsel %vm2753_vm0, %v12810_v27, 0.0  ;;  %v4117_v1 = vsel %vm2753_vm0, %v12814_v32, 0.0 }
0x1499   :  { %v4836_v57 = vpack.c.bf16 %v4832_v29, %v4831_v34 }
0x149b   :  { %4840 = vst.msk [vmem:[#allocation2 + $0xa8] sm:$0xff] %vm2753_vm0, %v4836_v57 }
0x14a6   :  { %6183 = vmax.xlane.f32.xlu1 %v6182_v55 }
0x14aa   :  { %4109 = vadd.xlane.f32.xlu1 %v4108_v31 }
0x14b7   :  { %4112 = vadd.xlane.f32.xlu0 %v4111_v7 }
0x14bb   :  { %5761 = vrot.lane.b32.xlu1 %v12811_v62, %s9796_s2 }
0x14c1   :  { %v8088_v0 = vpop.f32.mrb[212].mxu1 }
0x14c2   :  { %v8089_v42 = vpop.f32.mrb[213].mxu1 }
0x14c3   :  { %v12095_v48 = vadd.f32 %v8089_v42, %v8088_v0  ;;  %v8091_v19 = vpop.f32.mrb[214].mxu1  ;;  %v12816_v42 = vpack.c.bf16 %v11793_v18, %v11790_v20 }
0x14c4   :  { %v8092_v33 = vpop.f32.mrb[215].mxu1 }
0x14c5   :  { %v12097_v25 = vadd.f32 %v8092_v33, %v8091_v19 }
0x14cd   :  { %5157 = vrot.lane.b32.xlu0 %v12812_v26, %s9796_s2 }
0x14df   :  { %4115 = vadd.xlane.f32.xlu1 %v4114_v44 }
0x14ec   :  { %4118 = vadd.xlane.f32.xlu0 %v4117_v1 }
0x14f0   :  { %5763 = vrot.lane.b32.xlu1 %v12815_v8, %s9796_s2  ;;  %v9206_v8 = vld [vmem:[#allocation8] ss:$12 sps:$4 sm:$0xff]  }
0x14fa   :  { %v8094_v29 = vpop.f32.mrb[216].mxu1 }
0x14fb   :  { %v8095_v34 = vpop.f32.mrb[217].mxu1  ;;  %v6178_v47 = vpop.xlane.xlu0 %6177 }
0x14fc   :  { %v12111_v57 = vadd.f32 %v8095_v34, %v8094_v29  ;;  %v8097_v36 = vpop.f32.mrb[218].mxu1  ;;  %v6196_v31 = vsub.f32 %v12023_v43, %v6178_v47  ;;  %v12817_v47 = vld [vmem:[#allocation93_spill] sm:$0xff] }
0x14fd   :  { %v8098_v3 = vpop.f32.mrb[219].mxu1 }
0x14fe   :  { %v12113_v55 = vadd.f32 %v8098_v3, %v8097_v36  ;;  %v6175_v22 = vpop.xlane.xlu1 %6174  ;;  %v6206_v19 = vmul.f32 1.442695, %v6196_v31  ;;  %v4120_v36 = vsel %vm2753_vm0, %v12817_v47, 0.0  ;;  %v9211_v3 = vld [vmem:[#allocation8 + $0x1c] ss:$12 sps:$4 sm:$0xff]  }
0x14ff   :  { %v6195_v27 = vsub.f32 %v12033_v13, %v6175_v22  ;;  %v6172_v7 = vpop.xlane.xlu0 %6171  ;;  %v9209_v22 = vld [vmem:[#allocation8 + $0x18] ss:$12 sps:$4 sm:$0xff]   ;;  %v9214_v31 = vld [vmem:[#allocation8 + $0x34] ss:$12 sps:$4 sm:$0xff]  }
0x1500   :  { %v6194_v62 = vsub.f32 %v12029_v56, %v6172_v7  ;;  %v9227_v47 = vld [vmem:[#allocation8 + $0xa8] ss:$12 sps:$4 sm:$0xff]  }
0x1501   :  { %v6204_v0 = vmul.f32 1.442695, %v6195_v27  ;;  %v9212_v27 = vld [vmem:[#allocation8 + $0x30] ss:$12 sps:$4 sm:$0xff]  }
0x1502   :  { %v6202_v9 = vmul.f32 1.442695, %v6194_v62  ;;  %v5760_v10 = vpop.permute.xlu1 %5759  ;;  %5159 = vrot.lane.b32.xlu0 %v12816_v42, %s9796_s2  ;;  %v9217_v62 = vld [vmem:[#allocation8 + $0x4c] ss:$12 sps:$4 sm:$0xff]  }
0x1503   :  { %9606 = vpow2.f32 %v6204_v0  ;;  %5771 = vst.msk [vmem:[#allocation2 + $0x68] sm:$0xff] %vm3354_vm9, %v5760_v10  ;;  %v6181_v33 = vpop.xlane.xlu0 %6180  ;;  %v9215_v0 = vld [vmem:[#allocation8 + $0x48] ss:$12 sps:$4 sm:$0xff]  }
0x1504   :  { %9608 = vpow2.f32 %v6202_v9  ;;  %v6197_v43 = vsub.f32 %v12041_v41, %v6181_v33  ;;  %v9220_v9 = vld [vmem:[#allocation8 + $0x64] ss:$12 sps:$4 sm:$0xff]   ;;  %v9223_v33 = vld [vmem:[#allocation8 + $0x7c] ss:$12 sps:$4 sm:$0xff]  }
0x1505   :  { %9610 = vpow2.f32 %v6206_v19  ;;  %v12818_v10 = vld [vmem:[#allocation91_spill] sm:$0xff]  ;;  %v9218_v19 = vld [vmem:[#allocation8 + $0x60] ss:$12 sps:$4 sm:$0xff]  }
0x1506   :  { %v6208_v13 = vmul.f32 1.442695, %v6197_v43  ;;  %v4123_v42 = vsel %vm2753_vm0, %v12818_v10, 0.0  ;;  %v12819_v43 = vpack.c.bf16 %v11806_v45, %v11803_v52 }
0x1507   :  { %v12124_v26 = vpop.xlane.xlu0 %6189 }
0x1508   :  { %9612 = vpow2.f32 %v6208_v13  ;;  %v9221_v13 = vld [vmem:[#allocation8 + $0x78] ss:$12 sps:$4 sm:$0xff]   ;;  %v6200_v52 = vsub.f32 %v12047_v17, %v12124_v26 }
0x150a   :  { %v12126_v56 = vld [vmem:[#allocation2 + $0x68] sm:$0xff] }
0x150b   :  { %7190 = vmatprep.mubr.bf16.mxu1 %v12126_v56  ;;  %v6193_v53 = vpop.xlane.xlu0 %6192 }
0x150d   :  { %v12129_v20 = vpop.eup %9606 }
0x150e   :  { %v12131_v18 = vpop.eup %9608 }
0x150f   :  { %v6187_v44 = vpop.xlane.xlu0 %6186  ;;  %v6242_v32 = vpack.c.bf16 %v12129_v20, %v12131_v18  ;;  %v12135_v1 = vpop.eup %9610 }
0x1511   :  { %8554 = vmatprep.mubr.msk.bf16.mxu0 %vm2753_vm0, %v6242_v32  ;;  %v9226_v32 = vld [vmem:[#allocation8 + $0x94] ss:$12 sps:$4 sm:$0xff]  }
0x1512   :  { %v12138_v41 = vpop.eup %9612 }
0x1513   :  { %v6243_v29 = vpack.c.bf16 %v12138_v41, %v12135_v1  ;;  %v5156_v34 = vpop.permute.xlu0 %5155 }
0x1514   :  { %5167 = vst.msk [vmem:[#allocation2 + $0x60] sm:$0xff] %vm3354_vm9, %v5156_v34  ;;  %4121 = vadd.xlane.f32.xlu1 %v4120_v36  ;;  %v6201_v34 = vsub.f32 %v12053_v54, %v6193_v53  ;;  %v6199_v36 = vsub.f32 %v12059_v15, %v6187_v44  ;;  %v9233_v15 = vld [vmem:[#allocation8 + $0xd8] ss:$12 sps:$4 sm:$0xff]   ;;  %v6214_v44 = vmul.f32 1.442695, %v6200_v52 }
0x1515   :  { %8555 = vmatmul.mubr.msk.bf16.vlgmr.msra.gmra.mrb[184].mxu0 %vm2753_vm0, %v6243_v29  ;;  %v9229_v29 = vld [vmem:[#allocation8 + $0xac] ss:$12 sps:$4 sm:$0xff]   ;;  %v9247_v52 = vld [vmem:[#allocation8 + $0x13c] ss:$12 sps:$4 sm:$0xff]  }
0x1516   :  { %6901 = vmatpush1.bf16.msra.mxu0 %v9206_v8  ;;  %v9224_v8 = vld [vmem:[#allocation8 + $0x90] ss:$12 sps:$4 sm:$0xff]   ;;  %v6216_v45 = vmul.f32 1.442695, %v6201_v34 }
0x1517   :  { %6902 = vmatprep.subr.bf16.mxu0 %v9211_v3  ;;  %v9232_v3 = vld [vmem:[#allocation8 + $0xc4] ss:$12 sps:$4 sm:$0xff]  }
0x1518   :  { %9614 = vpow2.f32 %v6216_v45 }
0x151a   :  { %6903 = vmatpush1.bf16.msra.mxu0 %v9209_v22  ;;  %v9230_v22 = vld [vmem:[#allocation8 + $0xc0] ss:$12 sps:$4 sm:$0xff]  }
0x151b   :  { %6904 = vmatprep.subr.bf16.mxu0 %v9214_v31  ;;  %v12146_v7 = vld [vmem:[#allocation2 + $0x60] sm:$0xff]  ;;  %v6212_v31 = vmul.f32 1.442695, %v6199_v36 }
0x151c   :  { %7191 = vmatmul.mubr.bf16.gmra.mrb[224].mxu1 %v12146_v7 }
0x151d   :  { %9616 = vpow2.f32 %v6212_v31 }
0x151e   :  { %6905 = vmatpush1.bf16.msra.mxu0 %v9212_v27 }
0x151f   :  { %6906 = vmatprep.subr.bf16.mxu0 %v9217_v62 }
0x1521   :  { %4124 = vadd.xlane.f32.xlu0 %v4123_v42 }
0x1522   :  { %6907 = vmatpush1.bf16.msra.mxu0 %v9215_v0  ;;  %v9235_v0 = vld [vmem:[#allocation8 + $0xdc] ss:$12 sps:$4 sm:$0xff]   ;;  %v12169_v34 = vpop.eup %9614 }
0x1523   :  { %6908 = vmatprep.subr.bf16.mxu0 %v9220_v9 }
0x1525   :  { %5765 = vrot.lane.b32.xlu1 %v12819_v43, %s9796_s2  ;;  %v9236_v43 = vld [vmem:[#allocation8 + $0xf0] ss:$12 sps:$4 sm:$0xff]  }
0x1526   :  { %6909 = vmatpush1.bf16.msra.mxu0 %v9218_v19 }
0x1527   :  { %6910 = vmatprep.subr.bf16.mxu0 %v9223_v33  ;;  %v12820_v33 = vpack.c.bf16 %v11826_v12, %v11823_v4  ;;  %v9242_v12 = vld [vmem:[#allocation8 + $0x120] ss:$12 sps:$4 sm:$0xff]  }
0x152a   :  { %6911 = vmatpush1.bf16.msra.mxu0 %v9221_v13 }
0x152b   :  { %6912 = vmatprep.subr.bf16.mxu0 %v9226_v32  ;;  %v9241_v32 = vld [vmem:[#allocation8 + $0x10c] ss:$12 sps:$4 sm:$0xff]  }
0x152e   :  { %6913 = vmatpush1.bf16.msra.mxu0 %v9224_v8  ;;  %v9239_v8 = vld [vmem:[#allocation8 + $0x108] ss:$12 sps:$4 sm:$0xff]  }
0x152f   :  { %6914 = vmatprep.subr.bf16.mxu0 %v9229_v29  ;;  %v9244_v29 = vld [vmem:[#allocation8 + $0x124] ss:$12 sps:$4 sm:$0xff]  }
0x1532   :  { %6915 = vmatpush1.bf16.msra.mxu0 %v9227_v47  ;;  %v12171_v47 = vpop.eup %9616 }
0x1533   :  { %v6184_v27 = vpop.xlane.xlu1 %6183  ;;  %v8100_v62 = vpop.f32.mrb[220].mxu1  ;;  %6916 = vmatprep.subr.bf16.mxu0 %v9232_v3 }
0x1534   :  { %v6198_v9 = vsub.f32 %v12083_v30, %v6184_v27  ;;  %v8101_v54 = vpop.f32.mrb[221].mxu1  ;;  %v9238_v30 = vld [vmem:[#allocation8 + $0xf4] ss:$12 sps:$4 sm:$0xff]   ;;  %v9245_v27 = vld [vmem:[#allocation8 + $0x138] ss:$12 sps:$4 sm:$0xff]  }
0x1535   :  { %v12160_v53 = vadd.f32 %v8101_v54, %v8100_v62  ;;  %v8103_v10 = vpop.f32.mrb[222].mxu1  ;;  %v9250_v62 = vld [vmem:[#allocation8 + $0x154] ss:$12 sps:$4 sm:$0xff]  }
0x1536   :  { %v6210_v42 = vmul.f32 1.442695, %v6198_v9  ;;  %6917 = vmatpush1.bf16.msra.mxu0 %v9230_v22  ;;  %v8104_v17 = vpop.f32.mrb[223].mxu1  ;;  %v12821_v9 = vld [vmem:[#allocation92_spill] sm:$0xff] }
0x1537   :  { %v12162_v26 = vadd.f32 %v8104_v17, %v8103_v10  ;;  %v4110_v19 = vpop.xlane.xlu1 %4109  ;;  %5161 = vrot.lane.b32.xlu0 %v12820_v33, %s9796_s2  ;;  %6918 = vmatprep.subr.bf16.mxu0 %v9235_v0  ;;  %v4126_v54 = vsel %vm2753_vm0, %v12821_v9, 0.0  ;;  %v9248_v10 = vld [vmem:[#allocation8 + $0x150] ss:$12 sps:$4 sm:$0xff]   ;;  %v9251_v17 = vld [vmem:[#allocation8 + $0x168] ss:$12 sps:$4 sm:$0xff]   ;;  %v12822_v33 = vld [vmem:[#allocation41_spill] sm:$0xff] }
0x1538   :  { %9618 = vpow2.f32 %v6210_v42  ;;  %v9266_v9 = vld [vmem:[#allocation8 + $0x1e0] ss:$12 sps:$4 sm:$0xff]  }
0x1539   :  { %9620 = vpow2.f32 %v6214_v44  ;;  %v6224_v44 = vsel %vm2753_vm0, %v12135_v1, 0.0 }
0x153a   :  { %6919 = vmatpush1.bf16.msra.mxu0 %v9233_v15  ;;  %9622 = vrcp.f32 %v4110_v19  ;;  %v9253_v15 = vld [vmem:[#allocation8 + $0x16c] ss:$12 sps:$4 sm:$0xff]  }
0x153b   :  { %v5762_v13 = vpop.permute.xlu1 %5761  ;;  %6920 = vmatprep.subr.bf16.mxu0 %v9238_v30 }
0x153c   :  { %5772 = vst.msk [vmem:[#allocation2 + $0x80] sm:$0xff] %vm3354_vm9, %v5762_v13 }
0x153e   :  { %6921 = vmatpush1.bf16.msra.mxu0 %v9236_v43  ;;  %v12823_v43 = vld [vmem:[#allocation96_spill] sm:$0xff] }
0x153f   :  { %6922 = vmatprep.subr.bf16.mxu0 %v9241_v32  ;;  %v6218_v32 = vsel %vm2753_vm0, %v12131_v18, 0.0  ;;  %v9259_v18 = vld [vmem:[#allocation8 + $0x19c] ss:$12 sps:$4 sm:$0xff]  }
0x1542   :  { %v9619_v4 = vpop.eup %9618  ;;  %6923 = vmatpush1.bf16.msra.mxu0 %v9239_v8 }
0x1543   :  { %6924 = vmatprep.subr.bf16.mxu0 %v9244_v29  ;;  %v12173_v36 = vld [vmem:[#allocation2 + $0x80] sm:$0xff]  ;;  %v6244_v3 = vpack.c.bf16 %v12171_v47, %v9619_v4  ;;  %v9621_v45 = vpop.eup %9620 }
0x1544   :  { %7198 = vmatprep.mubr.bf16.mxu1 %v12173_v36  ;;  %v4113_v22 = vpop.xlane.xlu0 %4112  ;;  %v6245_v31 = vpack.c.bf16 %v12169_v34, %v9621_v45  ;;  %v9623_v42 = vpop.eup %9622  ;;  %v9254_v29 = vld [vmem:[#allocation8 + $0x180] ss:$12 sps:$4 sm:$0xff]  }
0x1545   :  { %9624 = vrcp.f32 %v4113_v22  ;;  %8558 = vmatprep.mubr.msk.bf16.mxu0 %vm2753_vm0, %v6244_v3  ;;  %v4221_v30 = vmul.f32 %v9623_v42, %v12822_v33  ;;  %v12824_v3 = vld [vmem:[#allocation94_spill] sm:$0xff]  ;;  %v9257_v22 = vld [vmem:[#allocation8 + $0x198] ss:$12 sps:$4 sm:$0xff]  }
0x1546   :  { %6925 = vmatpush1.bf16.msra.mxu0 %v9242_v12  ;;  %v6236_v12 = vsel %vm2753_vm0, %v9621_v45, 0.0  ;;  %v6227_v45 = vsel %vm2753_vm0, %v12138_v41, 0.0  ;;  %v5920_v41 = vsel %vm2753_vm0, %v11785_v37, 0.0  ;;  %v6239_v37 = vsel %vm2753_vm0, %v12169_v34, 0.0  ;;  %v9279_v34 = vld [vmem:[#allocation8 + $0x22c] ss:$12 sps:$4 sm:$0xff]  }
0x1547   :  { %8559 = vmatmul.mubr.msk.bf16.gmra.mrb[188].mxu0 %vm2753_vm0, %v6245_v31  ;;  %6926 = vmatprep.subr.bf16.mxu0 %v9247_v52  ;;  %v4129_v52 = vsel %vm2753_vm0, %v12824_v3, 0.0  ;;  %v6230_v31 = vsel %vm2753_vm0, %v9619_v4, 0.0  ;;  %v9263_v4 = vld [vmem:[#allocation8 + $0x1c8] ss:$12 sps:$4 sm:$0xff]   ;;  %v5926_v3 = vsel %vm2753_vm0, %v11781_v51, 0.0  ;;  %v5932_v51 = vsel %vm2753_vm0, %v11846_v49, 0.0 }
0x1548   :  { %6932 = vmatprep.mubr.bf16.mxu0 %v11924_v50  ;;  %v5158_v0 = vpop.permute.xlu0 %5157  ;;  %v9256_v50 = vld [vmem:[#allocation8 + $0x184] ss:$12 sps:$4 sm:$0xff]  }
0x1549   :  { %5168 = vst.msk [vmem:[#allocation2 + $0x78] sm:$0xff] %vm3354_vm9, %v5158_v0  ;;  %4127 = vadd.xlane.f32.xlu1 %v4126_v54  ;;  %v9268_v0 = vld [vmem:[#allocation8 + $0x1e4] ss:$12 sps:$4 sm:$0xff]   ;;  %v9272_v54 = vld [vmem:[#allocation8 + $0x188] ss:$12 sps:$4 sm:$0xff]  }
0x154a   :  { %6927 = vmatpush1.bf16.msra.mxu0 %v9245_v27  ;;  %v9262_v27 = vld [vmem:[#allocation8 + $0x1b4] ss:$12 sps:$4 sm:$0xff]   ;;  %8562 = vmatprep.subr.bf16.mxu1 %v9272_v54 }
0x154b   :  { %6928 = vmatprep.subr.bf16.mxu0 %v9250_v62  ;;  %v9265_v62 = vld [vmem:[#allocation8 + $0x1cc] ss:$12 sps:$4 sm:$0xff]   ;;  %8563 = vmatpush3.bf16.msra.mxu1 %v9272_v54 }
0x154d   :  { %6225 = vadd.xlane.f32.xlu1 %v6224_v44  ;;  %v6233_v44 = vsel %vm2753_vm0, %v12171_v47, 0.0 }
0x154e   :  { %6929 = vmatpush1.bf16.msra.mxu0 %v9248_v10  ;;  %v12825_v10 = vpack.c.bf16 %v11874_v38, %v11871_v11  ;;  %v9277_v11 = vld [vmem:[#allocation8 + $0x228] ss:$12 sps:$4 sm:$0xff]   ;;  %v9280_v38 = vld [vmem:[#allocation8 + $0x1b8] ss:$12 sps:$4 sm:$0xff]  }
0x154f   :  { %v9625_v19 = vpop.eup %9624  ;;  %6930 = vmatprep.subr.bf16.mxu0 %v9253_v15 }
0x1550   :  { %v4222_v13 = vmul.f32 %v9625_v19, %v12823_v43  ;;  %v12190_v8 = vld [vmem:[#allocation2 + $0x78] sm:$0xff]  ;;  %v9283_v19 = vld [vmem:[#allocation8 + $0x200] ss:$12 sps:$4 sm:$0xff]   ;;  %v12826_v43 = vpack.c.bf16 %v11892_v2, %v11896_v46  ;;  %v12829_v2 = vpack.c.bf16 %v11914_v61, %v11918_v6  ;;  %v5935_v61 = vsel %vm2753_vm0, %v11852_v16, 0.0 }
0x1551   :  { %6219 = vadd.xlane.f32.xlu1 %v6218_v32  ;;  %7199 = vmatmul.mubr.bf16.gmra.mrb[228].mxu1 %v12190_v8 }
0x1552   :  { %6931 = vmatpush1.bf16.msra.mxu0 %v9251_v17  ;;  %v4229_v1 = vpack.c.bf16 %v4222_v13, %v4221_v30  ;;  %v12827_v13 = vld [vmem:[#allocation39_spill] sm:$0xff] }
0x1553   :  { %7013 = vmatprep.subr.bf16.mxu0 %v9256_v50 }
0x1554   :  { %4233 = vst.msk [vmem:[#allocation2 + $0x10] sm:$0xff] %vm2753_vm0, %v4229_v1 }
0x1555   :  { %6933 = vmatmul.mubr.bf16.vlgmr.msra.gmra.mrb[192].mxu0 %v11928_v63  ;;  %6237 = vadd.xlane.f32.xlu1 %v6236_v12  ;;  %v9260_v63 = vld [vmem:[#allocation8 + $0x1b0] ss:$12 sps:$4 sm:$0xff]  }
0x1556   :  { %6942 = vmatprep.mubr.bf16.mxu0 %v11961_v59  ;;  %4130 = vadd.xlane.f32.xlu0 %v4129_v52  ;;  %v6221_v59 = vsel %vm2753_vm0, %v12129_v20, 0.0  ;;  %v9269_v20 = vld [vmem:[#allocation8 + $0x1f8] ss:$12 sps:$4 sm:$0xff]   ;;  %v5929_v52 = vsel %vm2753_vm0, %v11783_v39, 0.0 }
0x1557   :  { %7014 = vmatpush1.bf16.msra.mxu0 %v9254_v29 }
0x1558   :  { %7015 = vmatprep.subr.bf16.mxu0 %v9259_v18  ;;  %v12830_v18 = vpack.c.bf16 %v11948_v14, %v11952_v58 }
0x1559   :  { %6231 = vadd.xlane.f32.xlu1 %v6230_v31  ;;  %v12831_v31 = vld [vmem:[#allocation30_spill] sm:$0xff] }
0x155a   :  { %6228 = vadd.xlane.f32.xlu0 %v6227_v45  ;;  %v5938_v14 = vsel %vm2753_vm0, %v12831_v31, 0.0 }
0x155b   :  { %7016 = vmatpush1.bf16.msra.mxu0 %v9257_v22 }
0x155c   :  { %7017 = vmatprep.subr.bf16.mxu0 %v9262_v27  ;;  %v12832_v27 = vld [vmem:[#allocation98_spill] sm:$0xff] }
0x155d   :  { %6943 = vmatmul.mubr.bf16.gmra.mrb[196].mxu0 %v11965_v40  ;;  %v5923_v40 = vsel %vm2753_vm0, %v11787_v23, 0.0  ;;  %v9273_v23 = vld [vmem:[#allocation8 + $0x210] ss:$12 sps:$4 sm:$0xff]  }
0x155e   :  { %6952 = vmatprep.mubr.bf16.mxu0 %v11983_v28  ;;  %6222 = vadd.xlane.f32.xlu0 %v6221_v59  ;;  %v9271_v28 = vld [vmem:[#allocation8 + $0x1fc] ss:$12 sps:$4 sm:$0xff]  }
0x155f   :  { %7018 = vmatpush1.bf16.msra.mxu0 %v9260_v63  ;;  %v12833_v59 = vld [vmem:[#allocation100_spill] sm:$0xff] }
0x1560   :  { %7019 = vmatprep.subr.bf16.mxu0 %v9265_v62 }
0x1562   :  { %5921 = vadd.xlane.f32.xlu0 %v5920_v41 }
0x1563   :  { %7020 = vmatpush1.bf16.msra.mxu0 %v9263_v4  ;;  %v12834_v4 = vmov 0  }
0x1564   :  { %7021 = vmatprep.subr.bf16.mxu0 %v9268_v0  ;;  %v12835_v0 = vld [vmem:[#allocation34_spill] sm:$0xff] }
0x1565   :  { %6953 = vmatmul.mubr.bf16.gmra.mrb[200].mxu0 %v11987_v5  ;;  %v9275_v5 = vld [vmem:[#allocation8 + $0x214] ss:$12 sps:$4 sm:$0xff]  }
0x1566   :  { %6962 = vmatprep.mubr.bf16.mxu0 %v12005_v35  ;;  %5924 = vadd.xlane.f32.xlu0 %v5923_v40  ;;  %v9276_v35 = vld [vmem:[#allocation8 + $0x1a0] ss:$12 sps:$4 sm:$0xff]  }
0x1567   :  { %7022 = vmatpush1.bf16.msra.mxu0 %v9266_v9  ;;  %8564 = vmatprep.subr.bf16.mxu1 %v9276_v35  ;;  %v5941_v9 = vsel %vm2753_vm0, %v12835_v0, 0.0 }
0x1568   :  { %7023 = vmatprep.subr.bf16.mxu0 %v9271_v28  ;;  %8565 = vmatpush3.bf16.msra.mxu1 %v9276_v35 }
0x1569   :  { %8566 = vmatprep.subr.bf16.mxu1 %v9280_v38 }
0x156a   :  { %4551 = vrot.lane.b32.xlu1 %v12825_v10, %s9796_s2  ;;  %6240 = vadd.xlane.f32.xlu0 %v6239_v37 }
0x156b   :  { %7024 = vmatpush1.bf16.msra.mxu0 %v9269_v20 }
0x156c   :  { %v4116_v15 = vpop.xlane.xlu1 %4115  ;;  %7025 = vmatprep.subr.bf16.mxu0 %v9275_v5  ;;  %8567 = vmatpush3.bf16.msra.mxu1 %v9280_v38 }
0x156d   :  { %6963 = vmatmul.mubr.bf16.gmra.mrb[204].mxu0 %v12009_v60  ;;  %v9281_v60 = vld [vmem:[#allocation8 + $0x1d0] ss:$12 sps:$4 sm:$0xff]   ;;  %9626 = vrcp.f32 %v4116_v15 }
0x156e   :  { %6972 = vmatprep.mubr.bf16.mxu0 %v12126_v56  ;;  %6234 = vadd.xlane.f32.xlu0 %v6233_v44  ;;  %v9282_v56 = vld [vmem:[#allocation8 + $0x1e8] ss:$12 sps:$4 sm:$0xff]  }
0x156f   :  { %7026 = vmatpush1.bf16.msra.mxu0 %v9273_v23  ;;  %8568 = vmatprep.subr.bf16.mxu1 %v9281_v60 }
0x1570   :  { %v5764_v42 = vpop.permute.xlu1 %5763  ;;  %7027 = vmatprep.subr.bf16.mxu0 %v9279_v34  ;;  %8569 = vmatpush3.bf16.msra.mxu1 %v9281_v60  ;;  %v12836_v60 = vld [vmem:[#allocation97_spill] sm:$0xff] }
0x1571   :  { %5773 = vst.msk [vmem:[#allocation2 + $0x98] sm:$0xff] %vm3354_vm9, %v5764_v42  ;;  %8570 = vmatprep.subr.bf16.mxu1 %v9282_v56 }
0x1573   :  { %7028 = vmatpush1.bf16.msra.mxu0 %v9277_v11 }
0x1574   :  { %8571 = vmatpush3.bf16.msra.mxu1 %v9282_v56 }
0x1575   :  { %6973 = vmatmul.mubr.bf16.gmra.mrb[208].mxu0 %v12146_v7  ;;  %8572 = vmatprep.subr.bf16.mxu1 %v9283_v19  ;;  %v9284_v7 = vld [vmem:[#allocation8 + $0x218] ss:$12 sps:$4 sm:$0xff]  }
0x1576   :  { %6982 = vmatprep.mubr.bf16.mxu0 %v12173_v36  ;;  %v9285_v36 = vld [vmem:[#allocation8 + $0x230] ss:$12 sps:$4 sm:$0xff]  }
0x1577   :  { %v9627_v33 = vpop.eup %9626 }
0x1578   :  { %v6398_v47 = vld [vmem:[#allocation2 + $0x98] sm:$0xff]  ;;  %8573 = vmatpush3.bf16.msra.mxu1 %v9283_v19  ;;  %v4223_v32 = vmul.f32 %v9627_v33, %v12827_v13 }
0x1579   :  { %7206 = vmatprep.mubr.bf16.mxu1 %v6398_v47  ;;  %v4119_v17 = vpop.xlane.xlu0 %4118  ;;  %8574 = vmatprep.subr.bf16.mxu1 %v9284_v7 }
0x157a   :  { %9628 = vrcp.f32 %v4119_v17 }
0x157c   :  { %8575 = vmatpush3.bf16.msra.mxu1 %v9284_v7 }
0x157d   :  { %6983 = vmatmul.mubr.bf16.gmra.mrb[212].mxu0 %v12190_v8  ;;  %v5160_v50 = vpop.permute.xlu0 %5159  ;;  %8576 = vmatprep.subr.bf16.mxu1 %v9285_v36  ;;  %v12828_v8 = vld [vmem:[#allocation95_spill] sm:$0xff] }
0x157e   :  { %6992 = vmatprep.mubr.bf16.mxu0 %v6398_v47  ;;  %5169 = vst.msk [vmem:[#allocation2 + $0x90] sm:$0xff] %vm3354_vm9, %v5160_v50  ;;  %v12837_v47 = vld [vmem:[#allocation99_spill] sm:$0xff] }
0x1580   :  { %8577 = vmatpush3.bf16.msra.mxu1 %v9285_v36 }
0x1584   :  { %v9629_v30 = vpop.eup %9628  ;;  %4553 = vrot.lane.b32.xlu0 %v12826_v43, %s9796_s2 }
0x1585   :  { %v4224_v1 = vmul.f32 %v9629_v30, %v12828_v8  ;;  %v6397_v29 = vld [vmem:[#allocation2 + $0x90] sm:$0xff] }
0x1586   :  { %6993 = vmatmul.mubr.bf16.gmra.mrb[216].mxu0 %v6397_v29  ;;  %7207 = vmatmul.mubr.bf16.gmra.mrb[232].mxu1 %v6397_v29 }
0x1587   :  { %v4230_v12 = vpack.c.bf16 %v4224_v1, %v4223_v32 }
0x1589   :  { %4234 = vst.msk [vmem:[#allocation2 + $0x28] sm:$0xff] %vm2753_vm0, %v4230_v12 }
0x158e   :  { %5927 = vadd.xlane.f32.xlu1 %v5926_v3 }
0x159f   :  { %4555 = vrot.lane.b32.xlu1 %v12829_v2, %s9796_s2 }
0x15a1   :  { %v4122_v46 = vpop.xlane.xlu1 %4121 }
0x15a2   :  { %9630 = vrcp.f32 %v4122_v46 }
0x15a3   :  { %4557 = vrot.lane.b32.xlu1 %v12830_v18, %s9796_s2  ;;  %5930 = vadd.xlane.f32.xlu0 %v5929_v52 }
0x15a5   :  { %v5766_v22 = vpop.permute.xlu1 %5765 }
0x15a6   :  { %5774 = vst.msk [vmem:[#allocation2 + $0xb0] sm:$0xff] %vm3354_vm9, %v5766_v22 }
0x15a7   :  { %5933 = vadd.xlane.f32.xlu0 %v5932_v51 }
0x15ab   :  { %5936 = vadd.xlane.f32.xlu0 %v5935_v61 }
0x15ac   :  { %v9631_v45 = vpop.eup %9630 }
0x15ad   :  { %v6401_v6 = vld [vmem:[#allocation2 + $0xb0] sm:$0xff]  ;;  %v4225_v63 = vmul.f32 %v9631_v45, %v12832_v27  ;;  %v12839_v45 = vld [vmem:[#allocation32_spill] sm:$0xff] }
0x15ae   :  { %7002 = vmatprep.mubr.bf16.mxu0 %v6401_v6  ;;  %7214 = vmatprep.mubr.bf16.mxu1 %v6401_v6  ;;  %v4125_v39 = vpop.xlane.xlu0 %4124 }
0x15af   :  { %9632 = vrcp.f32 %v4125_v39  ;;  %5939 = vadd.xlane.f32.xlu0 %v5938_v14  ;;  %v12838_v14 = vld [vmem:[#allocation23_spill] sm:$0xff] }
0x15b2   :  { %v5162_v58 = vpop.permute.xlu0 %5161 }
0x15b3   :  { %5170 = vst.msk [vmem:[#allocation2 + $0xa8] sm:$0xff] %vm3354_vm9, %v5162_v58 }
0x15b9   :  { %v9633_v49 = vpop.eup %9632 }
0x15ba   :  { %v4226_v16 = vmul.f32 %v9633_v49, %v12833_v59  ;;  %v6400_v62 = vld [vmem:[#allocation2 + $0xa8] sm:$0xff] }
0x15bb   :  { %7003 = vmatmul.mubr.bf16.gmra.mrb[220].mxu0 %v6400_v62  ;;  %7215 = vmatmul.mubr.bf16.gmra.mrb[236].mxu1 %v6400_v62 }
0x15bc   :  { %7045 = vmatprep.mubr.bf16.mxu0 %v12834_v4  ;;  %v4231_v41 = vpack.c.bf16 %v4226_v16, %v4225_v63 }
0x15be   :  { %4235 = vst.msk [vmem:[#allocation2 + $0x40] sm:$0xff] %vm2753_vm0, %v4231_v41 }
0x15c7   :  { %5942 = vadd.xlane.f32.xlu1 %v5941_v9 }
0x15d6   :  { %v4128_v40 = vpop.xlane.xlu1 %4127 }
0x15d7   :  { %9634 = vrcp.f32 %v4128_v40 }
0x15da   :  { %v6226_v28 = vpop.xlane.xlu1 %6225 }
0x15de   :  { %v6220_v20 = vpop.xlane.xlu1 %6219 }
0x15e1   :  { %v9635_v38 = vpop.eup %9634 }
0x15e2   :  { %v6238_v54 = vpop.xlane.xlu1 %6237  ;;  %v4227_v56 = vmul.f32 %v9635_v38, %v12836_v60 }
0x15e3   :  { %v4131_v37 = vpop.xlane.xlu0 %4130 }
0x15e4   :  { %9636 = vrcp.f32 %v4131_v37 }
0x15e5   :  { %9638 = vrcp.f32 %v6226_v28 }
0x15e6   :  { %v6232_v10 = vpop.xlane.xlu1 %6231 }
0x15e7   :  { %v6229_v5 = vpop.xlane.xlu0 %6228 }
0x15e8   :  { %9640 = vrcp.f32 %v6229_v5  ;;  %v8556_v23 = vpop.f32.mrb[184].mxu0 }
0x15e9   :  { %v6308_v35 = vpop.f32.mrb[185].mxu0  ;;  %9642 = vrcp.f32 %v6220_v20 }
0x15ea   :  { %v8557_v15 = vpop.f32.mrb[186].mxu0  ;;  %v4552_v44 = vpop.permute.xlu1 %4551 }
0x15eb   :  { %4563 = vst.msk [vmem:[#allocation2 + $0x10] sm:$0xff] %vm3354_vm9, %v4552_v44  ;;  %v6311_v34 = vpop.f32.mrb[187].mxu0  ;;  %v6223_v11 = vpop.xlane.xlu0 %6222 }
0x15ec   :  { %9644 = vrcp.f32 %v6223_v11 }
0x15ee   :  { %v9637_v42 = vpop.eup %9636 }
0x15ef   :  { %v4228_v17 = vmul.f32 %v9637_v42, %v12837_v47  ;;  %v8106_v19 = vpop.f32.mrb[224].mxu1  ;;  %v5922_v50 = vpop.xlane.xlu0 %5921 }
0x15f0   :  { %v8107_v7 = vpop.f32.mrb[225].mxu1  ;;  %v9639_v36 = vpop.eup %9638  ;;  %9646 = vrcp.f32 %v5922_v50 }
0x15f1   :  { %v12263_v33 = vadd.f32 %v8107_v7, %v8106_v19  ;;  %v8109_v30 = vpop.f32.mrb[226].mxu1  ;;  %v4232_v43 = vpack.c.bf16 %v4228_v17, %v4227_v56  ;;  %v6349_v1 = vmul.f32 %v9639_v36, %v8556_v23 }
0x15f2   :  { %v9641_v13 = vpop.eup %9640  ;;  %v8110_v32 = vpop.f32.mrb[227].mxu1  ;;  %v6381_v8 = vld [vmem:[#allocation2 + $0x10] sm:$0xff] }
0x15f3   :  { %v6350_v29 = vmul.f32 %v9641_v13, %v8557_v15  ;;  %v12265_v12 = vadd.f32 %v8110_v32, %v8109_v30  ;;  %7046 = vmatmul.mubr.bf16.vlgmr.msra.gmra.mrb[192].mxu0 %v6381_v8  ;;  %8578 = vmatprep.mubr.bf16.mxu1 %v6381_v8  ;;  %v5925_v3 = vpop.xlane.xlu0 %5924  ;;  %4236 = vst.msk [vmem:[#allocation2 + $0x58] sm:$0xff] %vm2753_vm0, %v4232_v43  ;;  %v9643_v2 = vpop.eup %9642  ;;  %v12840_v13 = vld [vmem:[#allocation36_spill] sm:$0xff]  ;;  %v12841_v8 = vld [vmem:[#allocation27_spill] sm:$0xff] }
0x15f4   :  { %9648 = vrcp.f32 %v5925_v3  ;;  %7055 = vmatprep.mubr.bf16.mxu0 %v12834_v4  ;;  %v6347_v18 = vmul.f32 %v9643_v2, %v6308_v35 }
0x15f5   :  { %v6356_v46 = vpack.c.bf16 %v6350_v29, %v6349_v1  ;;  %9650 = vrcp.f32 %v6238_v54 }
0x15f6   :  { %v9645_v52 = vpop.eup %9644  ;;  %9652 = vrcp.f32 %v6232_v10 }
0x15f7   :  { %v6241_v22 = vpop.xlane.xlu0 %6240  ;;  %v6348_v51 = vmul.f32 %v9645_v52, %v6311_v34 }
0x15f8   :  { %9654 = vrcp.f32 %v6241_v22 }
0x15f9   :  { %v6355_v61 = vpack.c.bf16 %v6348_v51, %v6347_v18  ;;  %v12843_v18 = vld [vmem:[#allocation58_spill] sm:$0xff] }
0x15fa   :  { %v9647_v39 = vpop.eup %9646 }
0x15fb   :  { %6363 = vrot.lane.b32.xlu0 %v6355_v61, %s9796_s2  ;;  %v6235_v6 = vpop.xlane.xlu0 %6234  ;;  %v6033_v58 = vmul.f32 %v9647_v39, %v12838_v14 }
0x15fc   :  { %9656 = vrcp.f32 %v6235_v6 }
0x15fe   :  { %v9649_v31 = vpop.eup %9648 }
0x15ff   :  { %v6034_v49 = vmul.f32 %v9649_v31, %v12839_v45  ;;  %6365 = vrot.lane.b32.xlu0 %v6356_v46, %s9796_s2  ;;  %v4554_v27 = vpop.permute.xlu0 %4553  ;;  %v9651_v16 = vpop.eup %9650  ;;  %v12842_v46 = vld [vmem:[#allocation25_spill] sm:$0xff] }
0x1600   :  { %4564 = vst.msk [vmem:[#allocation2 + $0x28] sm:$0xff] %vm3354_vm9, %v4554_v27  ;;  %v9653_v41 = vpop.eup %9652 }
0x1601   :  { %v6041_v63 = vpack.c.bf16 %v6034_v49, %v6033_v58 }
0x1602   :  { %v9655_v40 = vpop.eup %9654 }
0x1603   :  { %6045 = vst.msk [vmem:[#allocation2 + $0x70] sm:$0xff] %vm2753_vm0, %v6041_v63 }
0x1606   :  { %v9657_v20 = vpop.eup %9656 }
0x1607   :  { %v6384_v59 = vld [vmem:[#allocation2 + $0x28] sm:$0xff] }
0x1608   :  { %7056 = vmatmul.mubr.bf16.gmra.mrb[196].mxu0 %v6384_v59  ;;  %8579 = vmatmul.mubr.bf16.vlgmr.msra.gmra.mrb[240].mxu1 %v6384_v59  ;;  %v12844_v59 = vld [vmem:[#allocation21_spill] sm:$0xff] }
0x1609   :  { %7065 = vmatprep.mubr.bf16.mxu0 %v12834_v4 }
0x161a   :  { %v8560_v62 = vpop.f32.mrb[188].mxu0 }
0x161b   :  { %v6324_v0 = vpop.f32.mrb[189].mxu0  ;;  %v5928_v9 = vpop.xlane.xlu1 %5927  ;;  %v6353_v37 = vmul.f32 %v9651_v16, %v8560_v62  ;;  %v12845_v62 = vld [vmem:[#allocation48_spill] sm:$0xff] }
0x161c   :  { %v8561_v28 = vpop.f32.mrb[190].mxu0  ;;  %v6351_v35 = vmul.f32 %v9653_v41, %v6324_v0  ;;  %9658 = vrcp.f32 %v5928_v9 }
0x161d   :  { %v6354_v5 = vmul.f32 %v9655_v40, %v8561_v28  ;;  %v6327_v23 = vpop.f32.mrb[191].mxu0 }
0x161e   :  { %v6352_v15 = vmul.f32 %v9657_v20, %v6327_v23 }
0x161f   :  { %v6358_v44 = vpack.c.bf16 %v6354_v5, %v6353_v37  ;;  %v4556_v34 = vpop.permute.xlu1 %4555 }
0x1620   :  { %v6357_v11 = vpack.c.bf16 %v6352_v15, %v6351_v35  ;;  %4565 = vst.msk [vmem:[#allocation2 + $0x40] sm:$0xff] %vm3354_vm9, %v4556_v34 }
0x1622   :  { %6367 = vrot.lane.b32.xlu0 %v6357_v11, %s9796_s2 }
0x1623   :  { %v4558_v54 = vpop.permute.xlu1 %4557 }
0x1624   :  { %4566 = vst.msk [vmem:[#allocation2 + $0x58] sm:$0xff] %vm3354_vm9, %v4558_v54  ;;  %v8112_v10 = vpop.f32.mrb[228].mxu1 }
0x1625   :  { %v8113_v38 = vpop.f32.mrb[229].mxu1 }
0x1626   :  { %v12279_v42 = vadd.f32 %v8113_v38, %v8112_v10  ;;  %6369 = vrot.lane.b32.xlu0 %v6358_v44, %s9796_s2  ;;  %v8115_v60 = vpop.f32.mrb[230].mxu1  ;;  %v9659_v30 = vpop.eup %9658  ;;  %v12846_v38 = vld [vmem:[#allocation47_spill] sm:$0xff] }
0x1627   :  { %v8116_v56 = vpop.f32.mrb[231].mxu1  ;;  %v6387_v47 = vld [vmem:[#allocation2 + $0x40] sm:$0xff]  ;;  %v6035_v32 = vmul.f32 %v9659_v30, %v12840_v13 }
0x1628   :  { %v12282_v17 = vadd.f32 %v8116_v56, %v8115_v60  ;;  %7066 = vmatmul.mubr.bf16.gmra.mrb[200].mxu0 %v6387_v47  ;;  %8582 = vmatprep.mubr.bf16.mxu1 %v6387_v47  ;;  %v6503_v60 = vsub.s32 0, %v12846_v38  ;;  %v6507_v56 = vsub.s32 1, %v12846_v38  ;;  %v6499_v47 = vld [vmem:[%s12401_s3] sm:$0x7]  ;;  %s9797_s3 = smov [#allocation9]  }
0x1629   :  { %7075 = vmatprep.mubr.bf16.mxu0 %v12834_v4  ;;  %s7373_s29 = sshll.u32 %s9797_s3, 4  ;;  %s7374_s29 = int_to_ptr.vmem [resolvable:$true] %s7373_s29 }
0x162a   :  { %s9760_s30 = scalar_lea.vmem %s7374_s29, 6144  ;;  %p9765_p11 = scmp.lt.s32.totalorder %s7374_s29, %s7374_s29 }
0x162b   :  { %v6390_v19 = vld [vmem:[#allocation2 + $0x58] sm:$0xff]  ;;  %p9761_p10 = scmp.ne.s32.totalorder %s7374_s29, %s9760_s30  ;;  %p9766_p12 = scmp.lt.s32.totalorder %s9760_s30, %s9760_s30 }
0x162c   :  { %8583 = vmatmul.mubr.bf16.gmra.mrb[244].mxu1 %v6390_v19 }
0x162d   :  { %p9767_p13 = por %p9766_p12, %p9765_p11 }
0x162f   :  { %p9768_p0 = pnand %p9767_p13, %p9761_p10 }
0x1630   :  { %7076 = vmatmul.mubr.bf16.gmra.mrb[204].mxu0 %v6390_v19  ;;  %v5931_v50 = vpop.xlane.xlu0 %5930  ;;  %v12315_v19 = vrot.slane %v6499_v47, %v6503_v60 }
0x1631   :  { %9660 = vrcp.f32 %v5931_v50  ;;  %7085 = vmatprep.mubr.bf16.mxu0 %v12834_v4  ;;  %v12317_v50 = vrot.slane %v6499_v47, %v6507_v56 }
0x1634   :  { %v5934_v7 = vpop.xlane.xlu0 %5933 }
0x1635   :  { %9662 = vrcp.f32 %v5934_v7 }
0x1638   :  { %v5937_v36 = vpop.xlane.xlu0 %5936 }
0x1639   :  { %9664 = vrcp.f32 %v5937_v36 }
0x163b   :  { %v9661_v43 = vpop.eup %9660 }
0x163c   :  { %v6036_v1 = vmul.f32 %v9661_v43, %v12841_v8  ;;  %v5940_v61 = vpop.xlane.xlu0 %5939 }
0x163d   :  { %9666 = vrcp.f32 %v5940_v61 }
0x163e   :  { %v6042_v29 = vpack.c.bf16 %v6036_v1, %v6035_v32  ;;  %v6511_v1 = vsub.s32 2, %v12846_v38 }
0x163f   :  { %v9663_v3 = vpop.eup %9662 }
0x1640   :  { %6046 = vst.msk [vmem:[#allocation2 + $0x88] sm:$0xff] %vm2753_vm0, %v6042_v29  ;;  %v6037_v52 = vmul.f32 %v9663_v3, %v12842_v46  ;;  %v12324_v29 = vrot.slane %v6499_v47, %v6511_v1 }
0x1642   :  { %v7169_v3 = vadd.f32 %v12095_v48, %v12324_v29  ;;  %v7164_v48 = vadd.f32 %v12069_v21, %v12324_v29  ;;  %v7180_v38 = vadd.f32 %v12113_v55, %v12324_v29 }
0x1643   :  { %v9665_v2 = vpop.eup %9664 }
0x1644   :  { %v6038_v22 = vmul.f32 %v9665_v2, %v12843_v18 }
0x1646   :  { %v6043_v51 = vpack.c.bf16 %v6038_v22, %v6037_v52  ;;  %v7161_v52 = vadd.f32 %v12067_v24, %v12324_v29 }
0x1647   :  { %v9667_v49 = vpop.eup %9666 }
0x1648   :  { %6047 = vst.msk [vmem:[#allocation2 + $0xa0] sm:$0xff] %vm2753_vm0, %v6043_v51  ;;  %v6039_v16 = vmul.f32 %v9667_v49, %v12844_v59 }
0x1654   :  { %v5943_v6 = vpop.xlane.xlu1 %5942 }
0x1655   :  { %9668 = vrcp.f32 %v5943_v6  ;;  %v7172_v6 = vadd.f32 %v12097_v25, %v12324_v29 }
0x1659   :  { %v8118_v39 = vpop.f32.mrb[232].mxu1 }
0x165a   :  { %v8119_v31 = vpop.f32.mrb[233].mxu1 }
0x165b   :  { %v12292_v14 = vadd.f32 %v8119_v31, %v8118_v39  ;;  %v8121_v58 = vpop.f32.mrb[234].mxu1 }
0x165c   :  { %v8122_v45 = vpop.f32.mrb[235].mxu1 }
0x165d   :  { %v12294_v27 = vadd.f32 %v8122_v45, %v8121_v58 }
0x165f   :  { %v9669_v63 = vpop.eup %9668 }
0x1660   :  { %v6040_v41 = vmul.f32 %v9669_v63, %v12845_v62 }
0x1662   :  { %v6044_v0 = vpack.c.bf16 %v6040_v41, %v6039_v16 }
0x1664   :  { %6048 = vst.msk [vmem:[#allocation2 + $0xb8] sm:$0xff] %vm2753_vm0, %v6044_v0 }
0x166d   :  { %v6364_v9 = vpop.permute.xlu0 %6363 }
0x166e   :  { %6375 = vst.msk [vmem:[#allocation2 + $0x70] sm:$0xff] %vm3354_vm9, %v6364_v9 }
0x1671   :  { %v6366_v40 = vpop.permute.xlu0 %6365 }
0x1672   :  { %6376 = vst.msk [vmem:[#allocation2 + $0x88] sm:$0xff] %vm3354_vm9, %v6366_v40 }
0x1675   :  { %v6393_v28 = vld [vmem:[#allocation2 + $0x70] sm:$0xff] }
0x1676   :  { %7086 = vmatmul.mubr.bf16.gmra.mrb[208].mxu0 %v6393_v28  ;;  %8586 = vmatprep.mubr.bf16.mxu1 %v6393_v28 }
0x1677   :  { %7095 = vmatprep.mubr.bf16.mxu0 %v12834_v4 }
0x1679   :  { %v6396_v20 = vld [vmem:[#allocation2 + $0x88] sm:$0xff] }
0x167a   :  { %8587 = vmatmul.mubr.bf16.gmra.mrb[248].mxu1 %v6396_v20 }
0x167e   :  { %7096 = vmatmul.mubr.bf16.gmra.mrb[212].mxu0 %v6396_v20  ;;  %v7185_v20 = vadd.f32 %v12160_v53, %v12324_v29 }
0x167f   :  { %7105 = vmatprep.mubr.bf16.mxu0 %v12834_v4 }
0x168e   :  { %v8124_v37 = vpop.f32.mrb[236].mxu1 }
0x168f   :  { %v8125_v5 = vpop.f32.mrb[237].mxu1 }
0x1690   :  { %v12303_v23 = vadd.f32 %v8125_v5, %v8124_v37  ;;  %v8127_v35 = vpop.f32.mrb[238].mxu1 }
0x1691   :  { %v8128_v15 = vpop.f32.mrb[239].mxu1 }
0x1692   :  { %v12305_v44 = vadd.f32 %v8128_v15, %v8127_v35  ;;  %v7177_v35 = vadd.f32 %v12111_v57, %v12324_v29 }
0x1694   :  { %v6368_v34 = vpop.permute.xlu0 %6367 }
0x1695   :  { %6377 = vst.msk [vmem:[#allocation2 + $0xa0] sm:$0xff] %vm3354_vm9, %v6368_v34 }
0x1698   :  { %v6370_v11 = vpop.permute.xlu0 %6369 }
0x1699   :  { %6378 = vst.msk [vmem:[#allocation2 + $0xb8] sm:$0xff] %vm3354_vm9, %v6370_v11  ;;  %v7188_v11 = vadd.f32 %v12162_v26, %v12324_v29 }
0x169c   :  { %v6399_v54 = vld [vmem:[#allocation2 + $0xa0] sm:$0xff] }
0x169d   :  { %7106 = vmatmul.mubr.bf16.gmra.mrb[216].mxu0 %v6399_v54  ;;  %8590 = vmatprep.mubr.bf16.mxu1 %v6399_v54 }
0x169e   :  { %7115 = vmatprep.mubr.bf16.mxu0 %v12834_v4 }
0x16a0   :  { %v6402_v10 = vld [vmem:[#allocation2 + $0xb8] sm:$0xff] }
0x16a1   :  { %8591 = vmatmul.mubr.bf16.gmra.mrb[252].mxu1 %v6402_v10 }
0x16a5   :  { %7116 = vmatmul.mubr.bf16.gmra.mrb[220].mxu0 %v6402_v10 }
0x16c6   :  { %v7047_v7 = vpop.f32.mrb[192].mxu0 }
0x16c7   :  { %v8626_v36 = vadd.f32 %v7047_v7, %v12315_v19  ;;  %v7049_v30 = vpop.f32.mrb[193].mxu0 }
0x16c8   :  { %v8627_v4 = vadd.f32 %v7049_v30, %v12317_v50  ;;  %v7051_v43 = vpop.f32.mrb[194].mxu0 }
0x16c9   :  { %7320 = vst [vmem:[#allocation9] sm:$0xff] %v8626_v36  ;;  %v8628_v13 = vadd.f32 %v7051_v43, %v12315_v19  ;;  %v7053_v32 = vpop.f32.mrb[195].mxu0 }
0x16ca   :  { %7321 = vst [vmem:[#allocation9 + $0x8] sm:$0xff] %v8627_v4  ;;  %v8629_v8 = vadd.f32 %v7053_v32, %v12317_v50 }
0x16cb   :  { %7323 = vst [vmem:[#allocation9 + $0x18] sm:$0xff] %v8628_v13 }
0x16cc   :  { %7324 = vst [vmem:[#allocation9 + $0x20] sm:$0xff] %v8629_v8 }
0x16db   :  { %v7057_v2 = vpop.f32.mrb[196].mxu0  ;;  %v8580_v46 = vpop.f32.mrb[240].mxu1 }
0x16dc   :  { %v8630_v18 = vadd.f32 %v7057_v2, %v12315_v19  ;;  %v7266_v22 = vadd.f32 %v8580_v46, %v7169_v3  ;;  %v7059_v51 = vpop.f32.mrb[197].mxu0  ;;  %v7257_v61 = vpop.f32.mrb[241].mxu1  ;;  %v7201_v46 = vadd.f32 %v12279_v42, %v12324_v29 }
0x16dd   :  { %v8631_v39 = vadd.f32 %v7059_v51, %v12317_v50  ;;  %v7258_v31 = vadd.f32 %v7257_v61, %v7161_v52  ;;  %v7061_v58 = vpop.f32.mrb[198].mxu0  ;;  %v8581_v45 = vpop.f32.mrb[242].mxu1 }
0x16de   :  { %7326 = vst [vmem:[#allocation9 + $0x30] sm:$0xff] %v8630_v18  ;;  %7328 = vst [vmem:[#allocation9 + $0x40] sm:$0xff] %v7266_v22  ;;  %v8632_v24 = vadd.f32 %v7061_v58, %v12315_v19  ;;  %v7269_v49 = vadd.f32 %v8581_v45, %v7172_v6  ;;  %v7063_v63 = vpop.f32.mrb[199].mxu0  ;;  %v7260_v59 = vpop.f32.mrb[243].mxu1  ;;  %v7193_v22 = vadd.f32 %v12263_v33, %v12324_v29 }
0x16df   :  { %7327 = vst [vmem:[#allocation9 + $0x38] sm:$0xff] %v8631_v39  ;;  %7322 = vst [vmem:[#allocation9 + $0x10] sm:$0xff] %v7258_v31  ;;  %v8633_v16 = vadd.f32 %v7063_v63, %v12317_v50  ;;  %v7261_v25 = vadd.f32 %v7260_v59, %v7164_v48  ;;  %v7204_v6 = vadd.f32 %v12282_v17, %v12324_v29 }
0x16e0   :  { %7329 = vst [vmem:[#allocation9 + $0x48] sm:$0xff] %v8632_v24  ;;  %7331 = vst [vmem:[#allocation9 + $0x58] sm:$0xff] %v7269_v49  ;;  %v7196_v58 = vadd.f32 %v12265_v12, %v12324_v29 }
0x16e1   :  { %7330 = vst [vmem:[#allocation9 + $0x50] sm:$0xff] %v8633_v16  ;;  %7325 = vst [vmem:[#allocation9 + $0x28] sm:$0xff] %v7261_v25 }
0x16fb   :  { %v7067_v62 = vpop.f32.mrb[200].mxu0 }
0x16fc   :  { %v8634_v41 = vadd.f32 %v7067_v62, %v12315_v19  ;;  %v7069_v21 = vpop.f32.mrb[201].mxu0 }
0x16fd   :  { %v8635_v0 = vadd.f32 %v7069_v21, %v12317_v50  ;;  %v7071_v9 = vpop.f32.mrb[202].mxu0 }
0x16fe   :  { %7332 = vst [vmem:[#allocation9 + $0x60] sm:$0xff] %v8634_v41  ;;  %v8636_v40 = vadd.f32 %v7071_v9, %v12315_v19  ;;  %v7073_v28 = vpop.f32.mrb[203].mxu0 }
0x16ff   :  { %7333 = vst [vmem:[#allocation9 + $0x68] sm:$0xff] %v8635_v0  ;;  %v8637_v37 = vadd.f32 %v7073_v28, %v12317_v50  ;;  %v8584_v5 = vpop.f32.mrb[244].mxu1  ;;  %v7217_v28 = vadd.f32 %v12303_v23, %v12324_v29 }
0x1700   :  { %7335 = vst [vmem:[#allocation9 + $0x78] sm:$0xff] %v8636_v40  ;;  %v7282_v15 = vadd.f32 %v8584_v5, %v7185_v20  ;;  %v7273_v34 = vpop.f32.mrb[245].mxu1  ;;  %v7209_v5 = vadd.f32 %v12292_v14, %v12324_v29 }
0x1701   :  { %7336 = vst [vmem:[#allocation9 + $0x80] sm:$0xff] %v8637_v37  ;;  %v7274_v54 = vadd.f32 %v7273_v34, %v7177_v35  ;;  %v8585_v10 = vpop.f32.mrb[246].mxu1  ;;  %v7220_v34 = vadd.f32 %v12305_v44, %v12324_v29 }
0x1702   :  { %7340 = vst [vmem:[#allocation9 + $0xa0] sm:$0xff] %v7282_v15  ;;  %v7285_v53 = vadd.f32 %v8585_v10, %v7188_v11  ;;  %v7276_v60 = vpop.f32.mrb[247].mxu1  ;;  %v7212_v10 = vadd.f32 %v12294_v27, %v12324_v29 }
0x1703   :  { %7334 = vst [vmem:[#allocation9 + $0x70] sm:$0xff] %v7274_v54  ;;  %v7277_v56 = vadd.f32 %v7276_v60, %v7180_v38  ;;  %v7077_v47 = vpop.f32.mrb[204].mxu0 }
0x1704   :  { %7343 = vst [vmem:[#allocation9 + $0xb8] sm:$0xff] %v7285_v53  ;;  %v8638_v57 = vadd.f32 %v7077_v47, %v12315_v19  ;;  %v7079_v7 = vpop.f32.mrb[205].mxu0 }
0x1705   :  { %7337 = vst [vmem:[#allocation9 + $0x88] sm:$0xff] %v7277_v56  ;;  %v8639_v36 = vadd.f32 %v7079_v7, %v12317_v50  ;;  %v7081_v26 = vpop.f32.mrb[206].mxu0 }
0x1706   :  { %7338 = vst [vmem:[#allocation9 + $0x90] sm:$0xff] %v8638_v57  ;;  %v8640_v30 = vadd.f32 %v7081_v26, %v12315_v19  ;;  %v7083_v4 = vpop.f32.mrb[207].mxu0 }
0x1707   :  { %7339 = vst [vmem:[#allocation9 + $0x98] sm:$0xff] %v8639_v36  ;;  %v8641_v55 = vadd.f32 %v7083_v4, %v12317_v50 }
0x1708   :  { %7341 = vst [vmem:[#allocation9 + $0xa8] sm:$0xff] %v8640_v30 }
0x1709   :  { %7342 = vst [vmem:[#allocation9 + $0xb0] sm:$0xff] %v8641_v55 }
0x1749   :  { %v7087_v43 = vpop.f32.mrb[208].mxu0 }
0x174a   :  { %v8642_v13 = vadd.f32 %v7087_v43, %v12315_v19  ;;  %v7089_v32 = vpop.f32.mrb[209].mxu0 }
0x174b   :  { %v8643_v8 = vadd.f32 %v7089_v32, %v12317_v50  ;;  %v7091_v1 = vpop.f32.mrb[210].mxu0 }
0x174c   :  { %7344 = vst [vmem:[#allocation9 + $0xc0] sm:$0xff] %v8642_v13  ;;  %v8644_v3 = vadd.f32 %v7091_v1, %v12315_v19  ;;  %v7093_v2 = vpop.f32.mrb[211].mxu0 }
0x174d   :  { %7345 = vst [vmem:[#allocation9 + $0xc8] sm:$0xff] %v8643_v8  ;;  %v8645_v52 = vadd.f32 %v7093_v2, %v12317_v50  ;;  %v8588_v18 = vpop.f32.mrb[248].mxu1 }
0x174e   :  { %7347 = vst [vmem:[#allocation9 + $0xd8] sm:$0xff] %v8644_v3  ;;  %v7298_v51 = vadd.f32 %v8588_v18, %v7201_v46  ;;  %v7289_v61 = vpop.f32.mrb[249].mxu1 }
0x174f   :  { %7348 = vst [vmem:[#allocation9 + $0xe0] sm:$0xff] %v8645_v52  ;;  %v7290_v39 = vadd.f32 %v7289_v61, %v7193_v22  ;;  %v8589_v31 = vpop.f32.mrb[250].mxu1 }
0x1750   :  { %7352 = vst [vmem:[#allocation9 + $0x100] sm:$0xff] %v7298_v51  ;;  %v7301_v42 = vadd.f32 %v8589_v31, %v7204_v6  ;;  %v7292_v45 = vpop.f32.mrb[251].mxu1 }
0x1751   :  { %7346 = vst [vmem:[#allocation9 + $0xd0] sm:$0xff] %v7290_v39  ;;  %v7293_v48 = vadd.f32 %v7292_v45, %v7196_v58  ;;  %v7097_v24 = vpop.f32.mrb[212].mxu0 }
0x1752   :  { %7355 = vst [vmem:[#allocation9 + $0x118] sm:$0xff] %v7301_v42  ;;  %v8646_v33 = vadd.f32 %v7097_v24, %v12315_v19  ;;  %v7099_v49 = vpop.f32.mrb[213].mxu0 }
0x1753   :  { %7349 = vst [vmem:[#allocation9 + $0xe8] sm:$0xff] %v7293_v48  ;;  %v8647_v63 = vadd.f32 %v7099_v49, %v12317_v50  ;;  %v7101_v17 = vpop.f32.mrb[214].mxu0 }
0x1754   :  { %7350 = vst [vmem:[#allocation9 + $0xf0] sm:$0xff] %v8646_v33  ;;  %v8648_v59 = vadd.f32 %v7101_v17, %v12315_v19  ;;  %v7103_v16 = vpop.f32.mrb[215].mxu0 }
0x1755   :  { %7351 = vst [vmem:[#allocation9 + $0xf8] sm:$0xff] %v8647_v63  ;;  %v8649_v12 = vadd.f32 %v7103_v16, %v12317_v50 }
0x1756   :  { %7353 = vst [vmem:[#allocation9 + $0x108] sm:$0xff] %v8648_v59 }
0x1757   :  { %7354 = vst [vmem:[#allocation9 + $0x110] sm:$0xff] %v8649_v12 }
0x1770   :  { %v7107_v25 = vpop.f32.mrb[216].mxu0 }
0x1771   :  { %v8650_v62 = vadd.f32 %v7107_v25, %v12315_v19  ;;  %v7109_v41 = vpop.f32.mrb[217].mxu0 }
0x1772   :  { %v8651_v21 = vadd.f32 %v7109_v41, %v12317_v50  ;;  %v7111_v0 = vpop.f32.mrb[218].mxu0 }
0x1773   :  { %7356 = vst [vmem:[#allocation9 + $0x120] sm:$0xff] %v8650_v62  ;;  %v8652_v9 = vadd.f32 %v7111_v0, %v12315_v19  ;;  %v7113_v40 = vpop.f32.mrb[219].mxu0 }
0x1774   :  { %7357 = vst [vmem:[#allocation9 + $0x128] sm:$0xff] %v8651_v21  ;;  %v8653_v20 = vadd.f32 %v7113_v40, %v12317_v50  ;;  %v8592_v37 = vpop.f32.mrb[252].mxu1 }
0x1775   :  { %7359 = vst [vmem:[#allocation9 + $0x138] sm:$0xff] %v8652_v9  ;;  %v7314_v35 = vadd.f32 %v8592_v37, %v7217_v28  ;;  %v7305_v15 = vpop.f32.mrb[253].mxu1 }
0x1776   :  { %7360 = vst [vmem:[#allocation9 + $0x140] sm:$0xff] %v8653_v20  ;;  %v7306_v11 = vadd.f32 %v7305_v15, %v7209_v5  ;;  %v8593_v54 = vpop.f32.mrb[254].mxu1 }
0x1777   :  { %7364 = vst [vmem:[#allocation9 + $0x160] sm:$0xff] %v7314_v35  ;;  %v7317_v23 = vadd.f32 %v8593_v54, %v7220_v34  ;;  %v7308_v38 = vpop.f32.mrb[255].mxu1 }
0x1778   :  { %7358 = vst [vmem:[#allocation9 + $0x130] sm:$0xff] %v7306_v11  ;;  %v7309_v53 = vadd.f32 %v7308_v38, %v7212_v10  ;;  %v7117_v60 = vpop.f32.mrb[220].mxu0 }
0x1779   :  { %7367 = vst [vmem:[#allocation9 + $0x178] sm:$0xff] %v7317_v23  ;;  %v8654_v14 = vadd.f32 %v7117_v60, %v12315_v19  ;;  %v7119_v56 = vpop.f32.mrb[221].mxu0 }
0x177a   :  { %7361 = vst [vmem:[#allocation9 + $0x148] sm:$0xff] %v7309_v53  ;;  %v8655_v44 = vadd.f32 %v7119_v56, %v12317_v50  ;;  %v7121_v47 = vpop.f32.mrb[222].mxu0 }
0x177b   :  { %7362 = vst [vmem:[#allocation9 + $0x150] sm:$0xff] %v8654_v14  ;;  %v8656_v57 = vadd.f32 %v7121_v47, %v12315_v19  ;;  %v7123_v27 = vpop.f32.mrb[223].mxu0 }
0x177c   :  { %7363 = vst [vmem:[#allocation9 + $0x158] sm:$0xff] %v8655_v44  ;;  %v8657_v29 = vadd.f32 %v7123_v27, %v12317_v50 }
0x177d   :  { %7365 = vst [vmem:[#allocation9 + $0x168] sm:$0xff] %v8656_v57 }
0x177e   :  { %7366 = vst [vmem:[#allocation9 + $0x170] sm:$0xff] %v8657_v29 }
0x177f   :  { %9771 = shalt.err (!%p9768_p0)
}
0x1780   :  { %s9772_s7 = scalar_lea.hbm %s12402_s4, 6144 }
0x1781   :  { %p9773_p1 = scmp.ne.s32.totalorder %s12402_s4, %s9772_s7  ;;  %p9776_p2 = scmp.lt.u32.totalorder %s9772_s7, %s12402_s4 }
0x1783   :  { %p9778_p3 = pnand %p9776_p2, %p9773_p1 }
0x1785   :  { %9781 = shalt.err (!%p9778_p3)
}
0x1786   :  { %s9798_s12 = smov 384   ;;  %s9799_s1 = smov 24  }
0x1787   :  { %7379 = dma.vmem_to_hbm [thread:$0]  %s7374_s29, 6144, %s12402_s4, [#allocation5], %s9798_s12, %s9798_s12, %s9799_s1  }
0x1788   :  { %9786 = dma.done.wait [#allocation5], 6144  }
0x1789   :  { %9787 = vsyncadd [#allocation5], 4294961152 }
0x178a   :  { %7383 = vsyncpa [#allocation4], 1 }
0x178b   :  { %7384 = vsyncpa [#allocation7], 1 }
0x178c   :  { %7385 = vsyncpa [#allocation5], 1 }

</bundles_post_ra>
